<compile_context>
chip_gen: v7x
topology: tpu7x:2x2x1
jax: 0.10.0
libtpu: 0.0.40
codegen_flags: <defaults>
</compile_context>

<pallas_src>
import functools

import jax
import jax.numpy as jnp
from jax import lax
from jax.experimental import pallas as pl
from jax.experimental.pallas import tpu as pltpu


# ----------------------------------------------------------------------------
# Fused kernel: 4 bidirectional LSTM layers + valid Conv1d, single invocation.
# refs layout: x2d, (wA, wB, whh) x nlayers, convA, convB, conv_b, out,
#              then scratch: x_rev, (gx, h_out, h_rev) x nlayers.
# ----------------------------------------------------------------------------
def _fused_bilstm_conv_kernel(nlayers, T, B, K, *refs):
    f32, bf16 = jnp.float32, jnp.bfloat16
    x_ref = refs[0]
    w_refs = refs[1:1 + 3 * nlayers]
    convA_ref = refs[1 + 3 * nlayers]
    convB_ref = refs[2 + 3 * nlayers]
    bconv_ref = refs[3 + 3 * nlayers]
    out_ref = refs[4 + 3 * nlayers]
    scratch = refs[5 + 3 * nlayers:]
    xrev_ref = scratch[0]
    lscr = scratch[1:]

    # Hoisted (off the serial chain): time-block-reversed copy of the layer-0
    # input.  B is padded to 8, so each copy is a full (8, F) aligned block.
    for t in range(T):
        xrev_ref[t * B:(t + 1) * B, :] = x_ref[(T - 1 - t) * B:(T - t) * B, :]

    inp_ref, inprev_ref = x_ref, xrev_ref

    for l in range(nlayers):
        wA = w_refs[3 * l][...]        # (Din, 8H) bf16 -- multiplies time-forward input
        wB = w_refs[3 * l + 1][...]    # (Din, 8H) bf16 -- multiplies time-reversed input
        whh = w_refs[3 * l + 2][...]   # (2H, 8H) bf16 -- block structure: fwd-carry rows
                                       # feed ONLY fwd-gate cols, bwd rows ONLY bwd cols;
                                       # the zero blocks are load-bearing, keep them zero.
        gx_ref = lscr[3 * l]           # (T*B, 8H) f32
        ho_ref = lscr[3 * l + 1]       # (T*B, 2H) f32, step-ordered [h_f(s) | h_b(T-1-s)]
        hr_ref = lscr[3 * l + 2]       # (T*B, 2H) f32, row-reversed copy of ho
        H2 = whh.shape[0]              # 2H (fwd|bwd packed)
        H = H2 // 2
        G8 = wA.shape[1]               # 8H, gate-major columns: [i | f | o | g], 2H each

        # (A) hoisted input->gates matmul for ALL timesteps and BOTH directions.
        # Row s of gx holds the fwd gates for time s AND the bwd gates for time
        # T-1-s (time reversal folded into the wA/wB packing + inprev), so the
        # serial loop reads ONE contiguous (8, 8H) row per step.
        gx_ref[...] = (
            jnp.dot(inp_ref[...].astype(bf16), wA, preferred_element_type=f32)
            + jnp.dot(inprev_ref[...].astype(bf16), wB, preferred_element_type=f32))

        # Constant lane mask (hoisted): sigmoid lanes [0, 6H) = i,f,o ; tanh
        # lanes [6H, 8H) = g.  Full-vreg transcendentals + one select per step.
        sig_mask = lax.broadcasted_iota(jnp.int32, (B, G8), 1) < 6 * H

        # (B) serial recurrence: packed (B,2H) carries, one bf16 (B,2H)@(2H,8H)
        # MXU call per step, one aligned (B,2H) store per step.  Mosaic keeps
        # `whh` staged across the unrolled steps; explicit matmul_push_rhs /
        # matmul_acc_lhs would be the next lever if a bundle dump showed it isn't.
        h16 = jnp.zeros((B, H2), bf16)
        c = jnp.zeros((B, H2), f32)
        for s in range(T):             # T small & static -> full unroll is fine
            gates = gx_ref[s * B:(s + 1) * B, :] + jnp.dot(
                h16, whh, preferred_element_type=f32)              # (B, 8H) f32
            act = jnp.where(sig_mask, jax.nn.sigmoid(gates), jnp.tanh(gates))
            i_g = act[:, 0 * H2:1 * H2]
            f_g = act[:, 1 * H2:2 * H2]
            o_g = act[:, 2 * H2:3 * H2]
            g_g = act[:, 3 * H2:4 * H2]
            c = f_g * c + i_g * g_g
            h = o_g * jnp.tanh(c)                                  # f32 (v5e-safe)
            ho_ref[s * B:(s + 1) * B, :] = h                       # one store/step
            h16 = h.astype(bf16)                                   # bf16 feeds MXU only

        # Hoisted once-per-layer time-block reversal; feeds the next layer's
        # pre-combined gx and (for the last layer) the conv.
        for t in range(T):
            hr_ref[t * B:(t + 1) * B, :] = ho_ref[(T - 1 - t) * B:(T - t) * B, :]

        inp_ref, inprev_ref = ho_ref, hr_ref

    # (C) final Conv1d(C=2H, fc, kernel=K, valid, bias) as K pairs of
    # accumulated matmuls over contiguous, 8-row-aligned windows.  convA picks
    # the forward feature half from the step-ordered buffer, convB the backward
    # half from the reversed buffer (zero rows packed on the host).
    # NOTE: the reference's dead 1x1 `self.weight` conv is intentionally skipped.
    C = inp_ref.shape[-1]
    fc_out = bconv_ref.shape[-1]
    Tout = T - K + 1
    convA = convA_ref[...]
    convB = convB_ref[...]
    acc = jnp.zeros((Tout * B, fc_out), f32)
    for k in range(K):
        lo, hi = k * B, (k + Tout) * B
        acc = acc + jnp.dot(inp_ref[lo:hi, :].astype(bf16),
                            convA[k * C:(k + 1) * C, :], preferred_element_type=f32)
        acc = acc + jnp.dot(inprev_ref[lo:hi, :].astype(bf16),
                            convB[k * C:(k + 1) * C, :], preferred_element_type=f32)
    out_ref[...] = acc + bconv_ref[...]


# ----------------------------------------------------------------------------
# Host wrapper: one pallas_call for the whole forward.
# ----------------------------------------------------------------------------
@jax.jit
def bilstm_attrition_forward(x, packed_layers, conv_wA, conv_wB, conv_b2d):
    """x: (T, B, F); packed_layers: [(wA (Din,8H), wB (Din,8H), whh (2H,8H)), ...]
    (bf16); conv_wA/conv_wB: (K*C, fc) bf16; conv_b2d: (1, fc) f32.
    Returns the torch-equivalent squeezed (B, fc, T-K+1)."""
    T, B, F = x.shape
    nlayers = len(packed_layers)
    h_sizes = [whh.shape[0] // 2 for (_, _, whh) in packed_layers]
    H_last = h_sizes[-1]
    C = 2 * H_last
    fc_out = conv_b2d.shape[-1]
    K = conv_wA.shape[0] // C
    Tout = T - K + 1
    B_pad = ((B + 7) // 8) * 8          # pad batch to a full sublane tile

    x_p = jnp.pad(x.astype(jnp.float32), ((0, 0), (0, B_pad - B), (0, 0)))

    flat_w = [w for triple in packed_layers for w in triple]
    n_inputs = 1 + len(flat_w) + 3

    scratch_shapes = [pltpu.VMEM((T * B_pad, F), jnp.float32)]             # x_rev
    for h in h_sizes:
        scratch_shapes += [pltpu.VMEM((T * B_pad, 8 * h), jnp.float32),    # gx
                           pltpu.VMEM((T * B_pad, 2 * h), jnp.float32),    # step-ordered out
                           pltpu.VMEM((T * B_pad, 2 * h), jnp.float32)]    # reversed out

    out2d = pl.pallas_call(
        functools.partial(_fused_bilstm_conv_kernel, nlayers, T, B_pad, K),
        out_shape=jax.ShapeDtypeStruct((Tout * B_pad, fc_out), jnp.float32),
        in_specs=[pl.BlockSpec(memory_space=pltpu.MemorySpace.VMEM)] * n_inputs,
        out_specs=pl.BlockSpec(memory_space=pltpu.MemorySpace.VMEM),
        scratch_shapes=scratch_shapes,
    )(x_p.reshape(T * B_pad, F), *flat_w, conv_wA, conv_wB, conv_b2d)

    y = out2d.reshape(Tout, B_pad, fc_out)[:, :B]      # drop padded batch rows
    y = y.transpose(1, 2, 0)                           # (B, fc, Tout)
    return jnp.squeeze(y)    # matches torch .squeeze(); shape-fragile if B==1


# ----------------------------------------------------------------------------
# One-time host-side parameter prep (transpose + gate reorder + fwd/bwd packing
# + time-reversal folding + bf16 cast).  Gate-major column layout, 2H per gate:
#   cols [0,2H)=i, [2H,4H)=f, [4H,6H)=o, [6H,8H)=g ; each block = [fwd H | bwd H]
# ----------------------------------------------------------------------------
_GATE_ORDER = ("i", "f", "o", "g")      # kernel column-block order


def _gate_rows(w, H):
    """Split torch (4H, Din) weight (row order i, f, g, o) into per-gate blocks."""
    return {"i": w[0:H], "f": w[H:2 * H], "g": w[2 * H:3 * H], "o": w[3 * H:4 * H]}


def pack_lstm_params(layer_params, dtype=jnp.bfloat16):
    """layer_params: [((wih_f, whh_f), (wih_b, whh_b)), ...] in torch shapes
    (4H, Din) / (4H, H).  Returns [(wA, wB, whh_p), ...] bf16.

    wA multiplies the time-forward input rows, wB the time-reversed rows; for
    layers > 0 the 'input' is the previous layer's STEP-ORDERED output
    [h_f(s) | h_b(T-1-s)], so the fwd/bwd feature halves are split between wA
    and wB accordingly.  whh_p is block-structured: the zero blocks keep the
    forward carry out of the backward gates (and vice versa) -- must stay zero."""
    packed = []
    first = True
    for (wih_f, whh_f), (wih_b, whh_b) in layer_params:
        H = whh_f.shape[1]
        Din = wih_f.shape[1]
        G8 = 8 * H
        wA = jnp.zeros((Din, G8), jnp.float32)
        wB = jnp.zeros((Din, G8), jnp.float32)
        whh_p = jnp.zeros((2 * H, G8), jnp.float32)
        gf, gb = _gate_rows(wih_f, H), _gate_rows(wih_b, H)
        hf, hb = _gate_rows(whh_f, H), _gate_rows(whh_b, H)
        for gi, gname in enumerate(_GATE_ORDER):
            cf = slice(gi * 2 * H, gi * 2 * H + H)          # fwd-direction cols
            cb = slice(gi * 2 * H + H, (gi + 1) * 2 * H)    # bwd-direction cols
            if first:
                wA = wA.at[:, cf].set(gf[gname].T)          # layer 0: plain input
                wB = wB.at[:, cb].set(gb[gname].T)
            else:
                Hp = Din // 2
                wA = wA.at[:Hp, cf].set(gf[gname][:, :Hp].T)
                wA = wA.at[Hp:, cb].set(gb[gname][:, Hp:].T)
                wB = wB.at[Hp:, cf].set(gf[gname][:, Hp:].T)
                wB = wB.at[:Hp, cb].set(gb[gname][:, :Hp].T)
            whh_p = whh_p.at[:H, cf].set(hf[gname].T)
            whh_p = whh_p.at[H:, cb].set(hb[gname].T)
        packed.append((wA.astype(dtype), wB.astype(dtype), whh_p.astype(dtype)))
        first = False
    return packed


def pack_conv_params(fc_w, fc_b, dtype=jnp.bfloat16):
    """fc_w: (Cout, Cin, K); fc_b: (Cout,).  Returns (convA (K*Cin, Cout),
    convB (K*Cin, Cout), bias (1, Cout)).  convA keeps only the forward-feature
    rows (bwd rows zeroed), convB only the backward-feature rows, matching the
    kernel's step-ordered / reversed last-layer buffers."""
    Cout, Cin, K = fc_w.shape
    H = Cin // 2
    wA = jnp.zeros((K * Cin, Cout), jnp.float32)
    wB = jnp.zeros((K * Cin, Cout), jnp.float32)
    for k in range(K):
        wk = fc_w[:, :, k].T                                 # (Cin, Cout)
        wA = wA.at[k * Cin:k * Cin + H, :].set(wk[:H])
        wB = wB.at[k * Cin + H:(k + 1) * Cin, :].set(wk[H:])
    return wA.astype(dtype), wB.astype(dtype), fc_b.reshape(1, Cout).astype(jnp.float32)


def make_bilstm_params(key, input_size, hidden, num_layers, scale=0.1):
    """Synthetic torch-shaped LSTM weights (bias=False, bidirectional)."""
    params = []
    in_sz = input_size
    for _ in range(num_layers):
        key, k1, k2, k3, k4 = jax.random.split(key, 5)
        p_fwd = (scale * jax.random.normal(k1, (4 * hidden, in_sz), jnp.float32),
                 scale * jax.random.normal(k2, (4 * hidden, hidden), jnp.float32))
        p_bwd = (scale * jax.random.normal(k3, (4 * hidden, in_sz), jnp.float32),
                 scale * jax.random.normal(k4, (4 * hidden, hidden), jnp.float32))
        params.append((p_fwd, p_bwd))
        in_sz = 2 * hidden
    return params, key


# ----------------------------------------------------------------------------
# Pure-JAX f32 reference (torch semantics) for correctness checking
# ----------------------------------------------------------------------------
def _lstm_dir_ref(x, w_ih, w_hh):
    T, B, _ = x.shape
    H = w_hh.shape[1]

    def step(carry, x_t):
        h, c = carry
        gates = x_t @ w_ih.T + h @ w_hh.T
        i = jax.nn.sigmoid(gates[:, :H])
        f = jax.nn.sigmoid(gates[:, H:2 * H])
        g = jnp.tanh(gates[:, 2 * H:3 * H])
        o = jax.nn.sigmoid(gates[:, 3 * H:])
        c = f * c + i * g
        h = o * jnp.tanh(c)
        return (h, c), h

    init = (jnp.zeros((B, H), jnp.float32), jnp.zeros((B, H), jnp.float32))
    _, hs = lax.scan(step, init, x)
    return hs


def _forward_ref(x, layer_params, fc_w, fc_b):
    h = x
    for p_fwd, p_bwd in layer_params:
        hf = _lstm_dir_ref(h, *p_fwd)
        hb = jnp.flip(_lstm_dir_ref(jnp.flip(h, 0), *p_bwd), 0)
        h = jnp.concatenate([hf, hb], axis=-1)
    h = jnp.transpose(h, (1, 2, 0))                     # (B, C, T)
    Cout, _, K = fc_w.shape
    Tout = h.shape[-1] - K + 1
    y = fc_b[None, :, None]
    for k in range(K):
        y = y + jnp.einsum('oc,bct->bot', fc_w[:, :, k], h[:, :, k:k + Tout])
    return jnp.squeeze(y)


if __name__ == "__main__":
    # Small, module-consistent shapes.
    T, B = 16, 2               # sequence steps, batch
    seq_length = 8             # LSTM input feature size (ctor arg name)
    hidden_size = 32           # bilstm output width (= 2 * hidden_size//2)
    hidden_size2 = 32          # opt.hidden_size2
    fc_channels = 4            # opt.fc
    num_layer = 2

    key = jax.random.PRNGKey(0)
    key, k_x = jax.random.split(key)
    x = jax.random.normal(k_x, (T, B, seq_length), jnp.float32)

    p1, key = make_bilstm_params(key, seq_length, hidden_size // 2, num_layer)
    p2, key = make_bilstm_params(key, hidden_size, hidden_size2 // 2, num_layer)
    key, kw, kb = jax.random.split(key, 3)
    fc_w = 0.1 * jax.random.normal(kw, (fc_channels, hidden_size2, 7), jnp.float32)
    fc_b = 0.1 * jax.random.normal(kb, (fc_channels,), jnp.float32)

    # One-time host-side weight packing (outside the jitted forward).
    packed = pack_lstm_params(p1 + p2)
    conv_wA, conv_wB, conv_b2d = pack_conv_params(fc_w, fc_b)

    out = bilstm_attrition_forward(x, packed, conv_wA, conv_wB, conv_b2d)
    jax.block_until_ready(out)
    assert out.shape == (B, fc_channels, T - 6), out.shape

    ref = _forward_ref(x, p1 + p2, fc_w, fc_b)
    max_err = float(jnp.max(jnp.abs(out - ref)))
    # Kernel uses bf16 MXU inputs with f32 accumulation (f32-weight variant is
    # ~1e-5 vs the reference); 1e-2 still catches any gate-reorder/packing bug.
    assert max_err < 1e-2, max_err

    print("KERNEL_OK")
</pallas_src>

<mosaic_0001>
module attributes {stable_mosaic.version = 11 : i64} {
  func.func @_fused_bilstm_conv_kernel(%arg0: memref<128x8xf32, #tpu.memory_space<vmem>>, %arg1: memref<8x128xbf16, #tpu.memory_space<vmem>>, %arg2: memref<8x128xbf16, #tpu.memory_space<vmem>>, %arg3: memref<32x128xbf16, #tpu.memory_space<vmem>>, %arg4: memref<32x128xbf16, #tpu.memory_space<vmem>>, %arg5: memref<32x128xbf16, #tpu.memory_space<vmem>>, %arg6: memref<32x128xbf16, #tpu.memory_space<vmem>>, %arg7: memref<32x128xbf16, #tpu.memory_space<vmem>>, %arg8: memref<32x128xbf16, #tpu.memory_space<vmem>>, %arg9: memref<32x128xbf16, #tpu.memory_space<vmem>>, %arg10: memref<32x128xbf16, #tpu.memory_space<vmem>>, %arg11: memref<32x128xbf16, #tpu.memory_space<vmem>>, %arg12: memref<32x128xbf16, #tpu.memory_space<vmem>>, %arg13: memref<224x4xbf16, #tpu.memory_space<vmem>>, %arg14: memref<224x4xbf16, #tpu.memory_space<vmem>>, %arg15: memref<1x4xf32, #tpu.memory_space<vmem>>, %arg16: memref<80x4xf32, #tpu.memory_space<vmem>>, %arg17: memref<128x8xf32, #tpu.memory_space<vmem>>, %arg18: memref<128x128xf32, #tpu.memory_space<vmem>>, %arg19: memref<128x32xf32, #tpu.memory_space<vmem>>, %arg20: memref<128x32xf32, #tpu.memory_space<vmem>>, %arg21: memref<128x128xf32, #tpu.memory_space<vmem>>, %arg22: memref<128x32xf32, #tpu.memory_space<vmem>>, %arg23: memref<128x32xf32, #tpu.memory_space<vmem>>, %arg24: memref<128x128xf32, #tpu.memory_space<vmem>>, %arg25: memref<128x32xf32, #tpu.memory_space<vmem>>, %arg26: memref<128x32xf32, #tpu.memory_space<vmem>>, %arg27: memref<128x128xf32, #tpu.memory_space<vmem>>, %arg28: memref<128x32xf32, #tpu.memory_space<vmem>>, %arg29: memref<128x32xf32, #tpu.memory_space<vmem>>) attributes {dimension_semantics = [], scalar_prefetch = 0 : i64, scratch_operands = 13 : i64, tpu.core_type = #tpu.core_type<tc>} {
    %c120 = arith.constant 120 : index
    %c0 = arith.constant 0 : index
    %0 = vector.load %arg0[%c120, %c0] : memref<128x8xf32, #tpu.memory_space<vmem>>, vector<8x8xf32>
    %c0_0 = arith.constant 0 : index
    %c0_1 = arith.constant 0 : index
    %1 = vector.load %arg17[%c0_0, %c0_1] : memref<128x8xf32, #tpu.memory_space<vmem>>, vector<8x8xf32>
    tpu.vector_store %arg17[%c0_0, %c0_1], %0 {strides = array<i32>} : memref<128x8xf32, #tpu.memory_space<vmem>>, vector<8x8xf32>,
    %c112 = arith.constant 112 : index
    %c0_2 = arith.constant 0 : index
    %2 = vector.load %arg0[%c112, %c0_2] : memref<128x8xf32, #tpu.memory_space<vmem>>, vector<8x8xf32>
    %c8 = arith.constant 8 : index
    %c0_3 = arith.constant 0 : index
    %3 = vector.load %arg17[%c8, %c0_3] : memref<128x8xf32, #tpu.memory_space<vmem>>, vector<8x8xf32>
    tpu.vector_store %arg17[%c8, %c0_3], %2 {strides = array<i32>} : memref<128x8xf32, #tpu.memory_space<vmem>>, vector<8x8xf32>,
    %c104 = arith.constant 104 : index
    %c0_4 = arith.constant 0 : index
    %4 = vector.load %arg0[%c104, %c0_4] : memref<128x8xf32, #tpu.memory_space<vmem>>, vector<8x8xf32>
    %c16 = arith.constant 16 : index
    %c0_5 = arith.constant 0 : index
    %5 = vector.load %arg17[%c16, %c0_5] : memref<128x8xf32, #tpu.memory_space<vmem>>, vector<8x8xf32>
    tpu.vector_store %arg17[%c16, %c0_5], %4 {strides = array<i32>} : memref<128x8xf32, #tpu.memory_space<vmem>>, vector<8x8xf32>,
    %c96 = arith.constant 96 : index
    %c0_6 = arith.constant 0 : index
    %6 = vector.load %arg0[%c96, %c0_6] : memref<128x8xf32, #tpu.memory_space<vmem>>, vector<8x8xf32>
    %c24 = arith.constant 24 : index
    %c0_7 = arith.constant 0 : index
    %7 = vector.load %arg17[%c24, %c0_7] : memref<128x8xf32, #tpu.memory_space<vmem>>, vector<8x8xf32>
    tpu.vector_store %arg17[%c24, %c0_7], %6 {strides = array<i32>} : memref<128x8xf32, #tpu.memory_space<vmem>>, vector<8x8xf32>,
    %c88 = arith.constant 88 : index
    %c0_8 = arith.constant 0 : index
    %8 = vector.load %arg0[%c88, %c0_8] : memref<128x8xf32, #tpu.memory_space<vmem>>, vector<8x8xf32>
    %c32 = arith.constant 32 : index
    %c0_9 = arith.constant 0 : index
    %9 = vector.load %arg17[%c32, %c0_9] : memref<128x8xf32, #tpu.memory_space<vmem>>, vector<8x8xf32>
    tpu.vector_store %arg17[%c32, %c0_9], %8 {strides = array<i32>} : memref<128x8xf32, #tpu.memory_space<vmem>>, vector<8x8xf32>,
    %c80 = arith.constant 80 : index
    %c0_10 = arith.constant 0 : index
    %10 = vector.load %arg0[%c80, %c0_10] : memref<128x8xf32, #tpu.memory_space<vmem>>, vector<8x8xf32>
    %c40 = arith.constant 40 : index
    %c0_11 = arith.constant 0 : index
    %11 = vector.load %arg17[%c40, %c0_11] : memref<128x8xf32, #tpu.memory_space<vmem>>, vector<8x8xf32>
    tpu.vector_store %arg17[%c40, %c0_11], %10 {strides = array<i32>} : memref<128x8xf32, #tpu.memory_space<vmem>>, vector<8x8xf32>,
    %c72 = arith.constant 72 : index
    %c0_12 = arith.constant 0 : index
    %12 = vector.load %arg0[%c72, %c0_12] : memref<128x8xf32, #tpu.memory_space<vmem>>, vector<8x8xf32>
    %c48 = arith.constant 48 : index
    %c0_13 = arith.constant 0 : index
    %13 = vector.load %arg17[%c48, %c0_13] : memref<128x8xf32, #tpu.memory_space<vmem>>, vector<8x8xf32>
    tpu.vector_store %arg17[%c48, %c0_13], %12 {strides = array<i32>} : memref<128x8xf32, #tpu.memory_space<vmem>>, vector<8x8xf32>,
    %c64 = arith.constant 64 : index
    %c0_14 = arith.constant 0 : index
    %14 = vector.load %arg0[%c64, %c0_14] : memref<128x8xf32, #tpu.memory_space<vmem>>, vector<8x8xf32>
    %c56 = arith.constant 56 : index
    %c0_15 = arith.constant 0 : index
    %15 = vector.load %arg17[%c56, %c0_15] : memref<128x8xf32, #tpu.memory_space<vmem>>, vector<8x8xf32>
    tpu.vector_store %arg17[%c56, %c0_15], %14 {strides = array<i32>} : memref<128x8xf32, #tpu.memory_space<vmem>>, vector<8x8xf32>,
    %c56_16 = arith.constant 56 : index
    %c0_17 = arith.constant 0 : index
    %16 = vector.load %arg0[%c56_16, %c0_17] : memref<128x8xf32, #tpu.memory_space<vmem>>, vector<8x8xf32>
    %c64_18 = arith.constant 64 : index
    %c0_19 = arith.constant 0 : index
    %17 = vector.load %arg17[%c64_18, %c0_19] : memref<128x8xf32, #tpu.memory_space<vmem>>, vector<8x8xf32>
    tpu.vector_store %arg17[%c64_18, %c0_19], %16 {strides = array<i32>} : memref<128x8xf32, #tpu.memory_space<vmem>>, vector<8x8xf32>,
    %c48_20 = arith.constant 48 : index
    %c0_21 = arith.constant 0 : index
    %18 = vector.load %arg0[%c48_20, %c0_21] : memref<128x8xf32, #tpu.memory_space<vmem>>, vector<8x8xf32>
    %c72_22 = arith.constant 72 : index
    %c0_23 = arith.constant 0 : index
    %19 = vector.load %arg17[%c72_22, %c0_23] : memref<128x8xf32, #tpu.memory_space<vmem>>, vector<8x8xf32>
    tpu.vector_store %arg17[%c72_22, %c0_23], %18 {strides = array<i32>} : memref<128x8xf32, #tpu.memory_space<vmem>>, vector<8x8xf32>,
    %c40_24 = arith.constant 40 : index
    %c0_25 = arith.constant 0 : index
    %20 = vector.load %arg0[%c40_24, %c0_25] : memref<128x8xf32, #tpu.memory_space<vmem>>, vector<8x8xf32>
    %c80_26 = arith.constant 80 : index
    %c0_27 = arith.constant 0 : index
    %21 = vector.load %arg17[%c80_26, %c0_27] : memref<128x8xf32, #tpu.memory_space<vmem>>, vector<8x8xf32>
    tpu.vector_store %arg17[%c80_26, %c0_27], %20 {strides = array<i32>} : memref<128x8xf32, #tpu.memory_space<vmem>>, vector<8x8xf32>,
    %c32_28 = arith.constant 32 : index
    %c0_29 = arith.constant 0 : index
    %22 = vector.load %arg0[%c32_28, %c0_29] : memref<128x8xf32, #tpu.memory_space<vmem>>, vector<8x8xf32>
    %c88_30 = arith.constant 88 : index
    %c0_31 = arith.constant 0 : index
    %23 = vector.load %arg17[%c88_30, %c0_31] : memref<128x8xf32, #tpu.memory_space<vmem>>, vector<8x8xf32>
    tpu.vector_store %arg17[%c88_30, %c0_31], %22 {strides = array<i32>} : memref<128x8xf32, #tpu.memory_space<vmem>>, vector<8x8xf32>,
    %c24_32 = arith.constant 24 : index
    %c0_33 = arith.constant 0 : index
    %24 = vector.load %arg0[%c24_32, %c0_33] : memref<128x8xf32, #tpu.memory_space<vmem>>, vector<8x8xf32>
    %c96_34 = arith.constant 96 : index
    %c0_35 = arith.constant 0 : index
    %25 = vector.load %arg17[%c96_34, %c0_35] : memref<128x8xf32, #tpu.memory_space<vmem>>, vector<8x8xf32>
    tpu.vector_store %arg17[%c96_34, %c0_35], %24 {strides = array<i32>} : memref<128x8xf32, #tpu.memory_space<vmem>>, vector<8x8xf32>,
    %c16_36 = arith.constant 16 : index
    %c0_37 = arith.constant 0 : index
    %26 = vector.load %arg0[%c16_36, %c0_37] : memref<128x8xf32, #tpu.memory_space<vmem>>, vector<8x8xf32>
    %c104_38 = arith.constant 104 : index
    %c0_39 = arith.constant 0 : index
    %27 = vector.load %arg17[%c104_38, %c0_39] : memref<128x8xf32, #tpu.memory_space<vmem>>, vector<8x8xf32>
    tpu.vector_store %arg17[%c104_38, %c0_39], %26 {strides = array<i32>} : memref<128x8xf32, #tpu.memory_space<vmem>>, vector<8x8xf32>,
    %c8_40 = arith.constant 8 : index
    %c0_41 = arith.constant 0 : index
    %28 = vector.load %arg0[%c8_40, %c0_41] : memref<128x8xf32, #tpu.memory_space<vmem>>, vector<8x8xf32>
    %c112_42 = arith.constant 112 : index
    %c0_43 = arith.constant 0 : index
    %29 = vector.load %arg17[%c112_42, %c0_43] : memref<128x8xf32, #tpu.memory_space<vmem>>, vector<8x8xf32>
    tpu.vector_store %arg17[%c112_42, %c0_43], %28 {strides = array<i32>} : memref<128x8xf32, #tpu.memory_space<vmem>>, vector<8x8xf32>,
    %c0_44 = arith.constant 0 : index
    %c0_45 = arith.constant 0 : index
    %30 = vector.load %arg0[%c0_44, %c0_45] : memref<128x8xf32, #tpu.memory_space<vmem>>, vector<8x8xf32>
    %c120_46 = arith.constant 120 : index
    %c0_47 = arith.constant 0 : index
    %31 = vector.load %arg17[%c120_46, %c0_47] : memref<128x8xf32, #tpu.memory_space<vmem>>, vector<8x8xf32>
    tpu.vector_store %arg17[%c120_46, %c0_47], %30 {strides = array<i32>} : memref<128x8xf32, #tpu.memory_space<vmem>>, vector<8x8xf32>,
    %c0_48 = arith.constant 0 : index
    %c0_49 = arith.constant 0 : index
    %32 = vector.load %arg1[%c0_48, %c0_49] : memref<8x128xbf16, #tpu.memory_space<vmem>>, vector<8x128xbf16>
    %c0_50 = arith.constant 0 : index
    %c0_51 = arith.constant 0 : index
    %33 = vector.load %arg2[%c0_50, %c0_51] : memref<8x128xbf16, #tpu.memory_space<vmem>>, vector<8x128xbf16>
    %c0_52 = arith.constant 0 : index
    %c0_53 = arith.constant 0 : index
    %34 = vector.load %arg3[%c0_52, %c0_53] : memref<32x128xbf16, #tpu.memory_space<vmem>>, vector<32x128xbf16>
    %c0_54 = arith.constant 0 : index
    %c0_55 = arith.constant 0 : index
    %35 = vector.load %arg0[%c0_54, %c0_55] : memref<128x8xf32, #tpu.memory_space<vmem>>, vector<128x8xf32>
    %36 = arith.truncf %35 : vector<128x8xf32> to vector<128x8xbf16>
    %cst = arith.constant dense<0.000000e+00> : vector<128x128xf32>
    %37 = tpu.matmul %36, %32, %cst {dimension_numbers = #tpu.dot_dimension_numbers<[1], [0], [0], [1], [0, 0, 1, 1], [], []>} : vector<128x8xbf16>, vector<8x128xbf16>, vector<128x128xf32> -> vector<128x128xf32>
    %c0_56 = arith.constant 0 : index
    %c0_57 = arith.constant 0 : index
    %38 = vector.load %arg17[%c0_56, %c0_57] : memref<128x8xf32, #tpu.memory_space<vmem>>, vector<128x8xf32>
    %39 = arith.truncf %38 : vector<128x8xf32> to vector<128x8xbf16>
    %cst_58 = arith.constant dense<0.000000e+00> : vector<128x128xf32>
    %40 = tpu.matmul %39, %33, %cst_58 {dimension_numbers = #tpu.dot_dimension_numbers<[1], [0], [0], [1], [0, 0, 1, 1], [], []>} : vector<128x8xbf16>, vector<8x128xbf16>, vector<128x128xf32> -> vector<128x128xf32>
    %41 = arith.addf %37, %40 : vector<128x128xf32>
    %c0_59 = arith.constant 0 : index
    %c0_60 = arith.constant 0 : index
    %42 = vector.load %arg18[%c0_59, %c0_60] : memref<128x128xf32, #tpu.memory_space<vmem>>, vector<128x128xf32>
    tpu.vector_store %arg18[%c0_59, %c0_60], %41 {strides = array<i32>} : memref<128x128xf32, #tpu.memory_space<vmem>>, vector<128x128xf32>,
    %43 = tpu.iota {dimensions = array<i32: 1>} : vector<8x128xi32>
    %c96_i32 = arith.constant 96 : i32
    %44 = vector.broadcast %c96_i32 : i32 to vector<8x128xi32>
    %45 = arith.cmpi slt, %43, %44 : vector<8x128xi32>
    %cst_61 = arith.constant 0.000000e+00 : bf16
    %46 = vector.broadcast %cst_61 : bf16 to vector<8x32xbf16>
    %cst_62 = arith.constant 0.000000e+00 : f32
    %47 = vector.broadcast %cst_62 : f32 to vector<8x32xf32>
    %c0_63 = arith.constant 0 : index
    %c0_64 = arith.constant 0 : index
    %48 = vector.load %arg18[%c0_63, %c0_64] : memref<128x128xf32, #tpu.memory_space<vmem>>, vector<8x128xf32>
    %cst_65 = arith.constant dense<0.000000e+00> : vector<8x128xf32>
    %49 = tpu.matmul %46, %34, %cst_65 {dimension_numbers = #tpu.dot_dimension_numbers<[1], [0], [0], [1], [0, 0, 1, 1], [], []>} : vector<8x32xbf16>, vector<32x128xbf16>, vector<8x128xf32> -> vector<8x128xf32>
    %50 = arith.addf %48, %49 : vector<8x128xf32>
    %51 = arith.negf %50 : vector<8x128xf32>
    %52 = math.exp %51 : vector<8x128xf32>
    %cst_66 = arith.constant 1.000000e+00 : f32
    %53 = vector.broadcast %cst_66 : f32 to vector<8x128xf32>
    %54 = arith.addf %53, %52 : vector<8x128xf32>
    %55 = arith.divf %53, %54 : vector<8x128xf32>
    %56 = math.tanh %50 : vector<8x128xf32>
    %57 = arith.select %45, %55, %56 : vector<8x128xi1>, vector<8x128xf32>
    %58 = vector.extract_strided_slice %57 {offsets = [0, 0], sizes = [8, 32], strides = [1, 1]} : vector<8x128xf32> to vector<8x32xf32>
    %59 = vector.extract_strided_slice %57 {offsets = [0, 32], sizes = [8, 32], strides = [1, 1]} : vector<8x128xf32> to vector<8x32xf32>
    %60 = vector.extract_strided_slice %57 {offsets = [0, 64], sizes = [8, 32], strides = [1, 1]} : vector<8x128xf32> to vector<8x32xf32>
    %61 = vector.extract_strided_slice %57 {offsets = [0, 96], sizes = [8, 32], strides = [1, 1]} : vector<8x128xf32> to vector<8x32xf32>
    %62 = arith.mulf %59, %47 : vector<8x32xf32>
    %63 = arith.mulf %58, %61 : vector<8x32xf32>
    %64 = arith.addf %62, %63 : vector<8x32xf32>
    %65 = math.tanh %64 : vector<8x32xf32>
    %66 = arith.mulf %60, %65 : vector<8x32xf32>
    %c0_67 = arith.constant 0 : index
    %c0_68 = arith.constant 0 : index
    %67 = vector.load %arg19[%c0_67, %c0_68] : memref<128x32xf32, #tpu.memory_space<vmem>>, vector<8x32xf32>
    tpu.vector_store %arg19[%c0_67, %c0_68], %66 {strides = array<i32>} : memref<128x32xf32, #tpu.memory_space<vmem>>, vector<8x32xf32>,
    %68 = arith.truncf %66 : vector<8x32xf32> to vector<8x32xbf16>
    %c8_69 = arith.constant 8 : index
    %c0_70 = arith.constant 0 : index
    %69 = vector.load %arg18[%c8_69, %c0_70] : memref<128x128xf32, #tpu.memory_space<vmem>>, vector<8x128xf32>
    %cst_71 = arith.constant dense<0.000000e+00> : vector<8x128xf32>
    %70 = tpu.matmul %68, %34, %cst_71 {dimension_numbers = #tpu.dot_dimension_numbers<[1], [0], [0], [1], [0, 0, 1, 1], [], []>} : vector<8x32xbf16>, vector<32x128xbf16>, vector<8x128xf32> -> vector<8x128xf32>
    %71 = arith.addf %69, %70 : vector<8x128xf32>
    %72 = arith.negf %71 : vector<8x128xf32>
    %73 = math.exp %72 : vector<8x128xf32>
    %cst_72 = arith.constant 1.000000e+00 : f32
    %74 = vector.broadcast %cst_72 : f32 to vector<8x128xf32>
    %75 = arith.addf %74, %73 : vector<8x128xf32>
    %76 = arith.divf %74, %75 : vector<8x128xf32>
    %77 = math.tanh %71 : vector<8x128xf32>
    %78 = arith.select %45, %76, %77 : vector<8x128xi1>, vector<8x128xf32>
    %79 = vector.extract_strided_slice %78 {offsets = [0, 0], sizes = [8, 32], strides = [1, 1]} : vector<8x128xf32> to vector<8x32xf32>
    %80 = vector.extract_strided_slice %78 {offsets = [0, 32], sizes = [8, 32], strides = [1, 1]} : vector<8x128xf32> to vector<8x32xf32>
    %81 = vector.extract_strided_slice %78 {offsets = [0, 64], sizes = [8, 32], strides = [1, 1]} : vector<8x128xf32> to vector<8x32xf32>
    %82 = vector.extract_strided_slice %78 {offsets = [0, 96], sizes = [8, 32], strides = [1, 1]} : vector<8x128xf32> to vector<8x32xf32>
    %83 = arith.mulf %80, %64 : vector<8x32xf32>
    %84 = arith.mulf %79, %82 : vector<8x32xf32>
    %85 = arith.addf %83, %84 : vector<8x32xf32>
    %86 = math.tanh %85 : vector<8x32xf32>
    %87 = arith.mulf %81, %86 : vector<8x32xf32>
    %c8_73 = arith.constant 8 : index
    %c0_74 = arith.constant 0 : index
    %88 = vector.load %arg19[%c8_73, %c0_74] : memref<128x32xf32, #tpu.memory_space<vmem>>, vector<8x32xf32>
    tpu.vector_store %arg19[%c8_73, %c0_74], %87 {strides = array<i32>} : memref<128x32xf32, #tpu.memory_space<vmem>>, vector<8x32xf32>,
    %89 = arith.truncf %87 : vector<8x32xf32> to vector<8x32xbf16>
    %c16_75 = arith.constant 16 : index
    %c0_76 = arith.constant 0 : index
    %90 = vector.load %arg18[%c16_75, %c0_76] : memref<128x128xf32, #tpu.memory_space<vmem>>, vector<8x128xf32>
    %cst_77 = arith.constant dense<0.000000e+00> : vector<8x128xf32>
    %91 = tpu.matmul %89, %34, %cst_77 {dimension_numbers = #tpu.dot_dimension_numbers<[1], [0], [0], [1], [0, 0, 1, 1], [], []>} : vector<8x32xbf16>, vector<32x128xbf16>, vector<8x128xf32> -> vector<8x128xf32>
    %92 = arith.addf %90, %91 : vector<8x128xf32>
    %93 = arith.negf %92 : vector<8x128xf32>
    %94 = math.exp %93 : vector<8x128xf32>
    %cst_78 = arith.constant 1.000000e+00 : f32
    %95 = vector.broadcast %cst_78 : f32 to vector<8x128xf32>
    %96 = arith.addf %95, %94 : vector<8x128xf32>
    %97 = arith.divf %95, %96 : vector<8x128xf32>
    %98 = math.tanh %92 : vector<8x128xf32>
    %99 = arith.select %45, %97, %98 : vector<8x128xi1>, vector<8x128xf32>
    %100 = vector.extract_strided_slice %99 {offsets = [0, 0], sizes = [8, 32], strides = [1, 1]} : vector<8x128xf32> to vector<8x32xf32>
    %101 = vector.extract_strided_slice %99 {offsets = [0, 32], sizes = [8, 32], strides = [1, 1]} : vector<8x128xf32> to vector<8x32xf32>
    %102 = vector.extract_strided_slice %99 {offsets = [0, 64], sizes = [8, 32], strides = [1, 1]} : vector<8x128xf32> to vector<8x32xf32>
    %103 = vector.extract_strided_slice %99 {offsets = [0, 96], sizes = [8, 32], strides = [1, 1]} : vector<8x128xf32> to vector<8x32xf32>
    %104 = arith.mulf %101, %85 : vector<8x32xf32>
    %105 = arith.mulf %100, %103 : vector<8x32xf32>
    %106 = arith.addf %104, %105 : vector<8x32xf32>
    %107 = math.tanh %106 : vector<8x32xf32>
    %108 = arith.mulf %102, %107 : vector<8x32xf32>
    %c16_79 = arith.constant 16 : index
    %c0_80 = arith.constant 0 : index
    %109 = vector.load %arg19[%c16_79, %c0_80] : memref<128x32xf32, #tpu.memory_space<vmem>>, vector<8x32xf32>
    tpu.vector_store %arg19[%c16_79, %c0_80], %108 {strides = array<i32>} : memref<128x32xf32, #tpu.memory_space<vmem>>, vector<8x32xf32>,
    %110 = arith.truncf %108 : vector<8x32xf32> to vector<8x32xbf16>
    %c24_81 = arith.constant 24 : index
    %c0_82 = arith.constant 0 : index
    %111 = vector.load %arg18[%c24_81, %c0_82] : memref<128x128xf32, #tpu.memory_space<vmem>>, vector<8x128xf32>
    %cst_83 = arith.constant dense<0.000000e+00> : vector<8x128xf32>
    %112 = tpu.matmul %110, %34, %cst_83 {dimension_numbers = #tpu.dot_dimension_numbers<[1], [0], [0], [1], [0, 0, 1, 1], [], []>} : vector<8x32xbf16>, vector<32x128xbf16>, vector<8x128xf32> -> vector<8x128xf32>
    %113 = arith.addf %111, %112 : vector<8x128xf32>
    %114 = arith.negf %113 : vector<8x128xf32>
    %115 = math.exp %114 : vector<8x128xf32>
    %cst_84 = arith.constant 1.000000e+00 : f32
    %116 = vector.broadcast %cst_84 : f32 to vector<8x128xf32>
    %117 = arith.addf %116, %115 : vector<8x128xf32>
    %118 = arith.divf %116, %117 : vector<8x128xf32>
    %119 = math.tanh %113 : vector<8x128xf32>
    %120 = arith.select %45, %118, %119 : vector<8x128xi1>, vector<8x128xf32>
    %121 = vector.extract_strided_slice %120 {offsets = [0, 0], sizes = [8, 32], strides = [1, 1]} : vector<8x128xf32> to vector<8x32xf32>
    %122 = vector.extract_strided_slice %120 {offsets = [0, 32], sizes = [8, 32], strides = [1, 1]} : vector<8x128xf32> to vector<8x32xf32>
    %123 = vector.extract_strided_slice %120 {offsets = [0, 64], sizes = [8, 32], strides = [1, 1]} : vector<8x128xf32> to vector<8x32xf32>
    %124 = vector.extract_strided_slice %120 {offsets = [0, 96], sizes = [8, 32], strides = [1, 1]} : vector<8x128xf32> to vector<8x32xf32>
    %125 = arith.mulf %122, %106 : vector<8x32xf32>
    %126 = arith.mulf %121, %124 : vector<8x32xf32>
    %127 = arith.addf %125, %126 : vector<8x32xf32>
    %128 = math.tanh %127 : vector<8x32xf32>
    %129 = arith.mulf %123, %128 : vector<8x32xf32>
    %c24_85 = arith.constant 24 : index
    %c0_86 = arith.constant 0 : index
    %130 = vector.load %arg19[%c24_85, %c0_86] : memref<128x32xf32, #tpu.memory_space<vmem>>, vector<8x32xf32>
    tpu.vector_store %arg19[%c24_85, %c0_86], %129 {strides = array<i32>} : memref<128x32xf32, #tpu.memory_space<vmem>>, vector<8x32xf32>,
    %131 = arith.truncf %129 : vector<8x32xf32> to vector<8x32xbf16>
    %c32_87 = arith.constant 32 : index
    %c0_88 = arith.constant 0 : index
    %132 = vector.load %arg18[%c32_87, %c0_88] : memref<128x128xf32, #tpu.memory_space<vmem>>, vector<8x128xf32>
    %cst_89 = arith.constant dense<0.000000e+00> : vector<8x128xf32>
    %133 = tpu.matmul %131, %34, %cst_89 {dimension_numbers = #tpu.dot_dimension_numbers<[1], [0], [0], [1], [0, 0, 1, 1], [], []>} : vector<8x32xbf16>, vector<32x128xbf16>, vector<8x128xf32> -> vector<8x128xf32>
    %134 = arith.addf %132, %133 : vector<8x128xf32>
    %135 = arith.negf %134 : vector<8x128xf32>
    %136 = math.exp %135 : vector<8x128xf32>
    %cst_90 = arith.constant 1.000000e+00 : f32
    %137 = vector.broadcast %cst_90 : f32 to vector<8x128xf32>
    %138 = arith.addf %137, %136 : vector<8x128xf32>
    %139 = arith.divf %137, %138 : vector<8x128xf32>
    %140 = math.tanh %134 : vector<8x128xf32>
    %141 = arith.select %45, %139, %140 : vector<8x128xi1>, vector<8x128xf32>
    %142 = vector.extract_strided_slice %141 {offsets = [0, 0], sizes = [8, 32], strides = [1, 1]} : vector<8x128xf32> to vector<8x32xf32>
    %143 = vector.extract_strided_slice %141 {offsets = [0, 32], sizes = [8, 32], strides = [1, 1]} : vector<8x128xf32> to vector<8x32xf32>
    %144 = vector.extract_strided_slice %141 {offsets = [0, 64], sizes = [8, 32], strides = [1, 1]} : vector<8x128xf32> to vector<8x32xf32>
    %145 = vector.extract_strided_slice %141 {offsets = [0, 96], sizes = [8, 32], strides = [1, 1]} : vector<8x128xf32> to vector<8x32xf32>
    %146 = arith.mulf %143, %127 : vector<8x32xf32>
    %147 = arith.mulf %142, %145 : vector<8x32xf32>
    %148 = arith.addf %146, %147 : vector<8x32xf32>
    %149 = math.tanh %148 : vector<8x32xf32>
    %150 = arith.mulf %144, %149 : vector<8x32xf32>
    %c32_91 = arith.constant 32 : index
    %c0_92 = arith.constant 0 : index
    %151 = vector.load %arg19[%c32_91, %c0_92] : memref<128x32xf32, #tpu.memory_space<vmem>>, vector<8x32xf32>
    tpu.vector_store %arg19[%c32_91, %c0_92], %150 {strides = array<i32>} : memref<128x32xf32, #tpu.memory_space<vmem>>, vector<8x32xf32>,
    %152 = arith.truncf %150 : vector<8x32xf32> to vector<8x32xbf16>
    %c40_93 = arith.constant 40 : index
    %c0_94 = arith.constant 0 : index
    %153 = vector.load %arg18[%c40_93, %c0_94] : memref<128x128xf32, #tpu.memory_space<vmem>>, vector<8x128xf32>
    %cst_95 = arith.constant dense<0.000000e+00> : vector<8x128xf32>
    %154 = tpu.matmul %152, %34, %cst_95 {dimension_numbers = #tpu.dot_dimension_numbers<[1], [0], [0], [1], [0, 0, 1, 1], [], []>} : vector<8x32xbf16>, vector<32x128xbf16>, vector<8x128xf32> -> vector<8x128xf32>
    %155 = arith.addf %153, %154 : vector<8x128xf32>
    %156 = arith.negf %155 : vector<8x128xf32>
    %157 = math.exp %156 : vector<8x128xf32>
    %cst_96 = arith.constant 1.000000e+00 : f32
    %158 = vector.broadcast %cst_96 : f32 to vector<8x128xf32>
    %159 = arith.addf %158, %157 : vector<8x128xf32>
    %160 = arith.divf %158, %159 : vector<8x128xf32>
    %161 = math.tanh %155 : vector<8x128xf32>
    %162 = arith.select %45, %160, %161 : vector<8x128xi1>, vector<8x128xf32>
    %163 = vector.extract_strided_slice %162 {offsets = [0, 0], sizes = [8, 32], strides = [1, 1]} : vector<8x128xf32> to vector<8x32xf32>
    %164 = vector.extract_strided_slice %162 {offsets = [0, 32], sizes = [8, 32], strides = [1, 1]} : vector<8x128xf32> to vector<8x32xf32>
    %165 = vector.extract_strided_slice %162 {offsets = [0, 64], sizes = [8, 32], strides = [1, 1]} : vector<8x128xf32> to vector<8x32xf32>
    %166 = vector.extract_strided_slice %162 {offsets = [0, 96], sizes = [8, 32], strides = [1, 1]} : vector<8x128xf32> to vector<8x32xf32>
    %167 = arith.mulf %164, %148 : vector<8x32xf32>
    %168 = arith.mulf %163, %166 : vector<8x32xf32>
    %169 = arith.addf %167, %168 : vector<8x32xf32>
    %170 = math.tanh %169 : vector<8x32xf32>
    %171 = arith.mulf %165, %170 : vector<8x32xf32>
    %c40_97 = arith.constant 40 : index
    %c0_98 = arith.constant 0 : index
    %172 = vector.load %arg19[%c40_97, %c0_98] : memref<128x32xf32, #tpu.memory_space<vmem>>, vector<8x32xf32>
    tpu.vector_store %arg19[%c40_97, %c0_98], %171 {strides = array<i32>} : memref<128x32xf32, #tpu.memory_space<vmem>>, vector<8x32xf32>,
    %173 = arith.truncf %171 : vector<8x32xf32> to vector<8x32xbf16>
    %c48_99 = arith.constant 48 : index
    %c0_100 = arith.constant 0 : index
    %174 = vector.load %arg18[%c48_99, %c0_100] : memref<128x128xf32, #tpu.memory_space<vmem>>, vector<8x128xf32>
    %cst_101 = arith.constant dense<0.000000e+00> : vector<8x128xf32>
    %175 = tpu.matmul %173, %34, %cst_101 {dimension_numbers = #tpu.dot_dimension_numbers<[1], [0], [0], [1], [0, 0, 1, 1], [], []>} : vector<8x32xbf16>, vector<32x128xbf16>, vector<8x128xf32> -> vector<8x128xf32>
    %176 = arith.addf %174, %175 : vector<8x128xf32>
    %177 = arith.negf %176 : vector<8x128xf32>
    %178 = math.exp %177 : vector<8x128xf32>
    %cst_102 = arith.constant 1.000000e+00 : f32
    %179 = vector.broadcast %cst_102 : f32 to vector<8x128xf32>
    %180 = arith.addf %179, %178 : vector<8x128xf32>
    %181 = arith.divf %179, %180 : vector<8x128xf32>
    %182 = math.tanh %176 : vector<8x128xf32>
    %183 = arith.select %45, %181, %182 : vector<8x128xi1>, vector<8x128xf32>
    %184 = vector.extract_strided_slice %183 {offsets = [0, 0], sizes = [8, 32], strides = [1, 1]} : vector<8x128xf32> to vector<8x32xf32>
    %185 = vector.extract_strided_slice %183 {offsets = [0, 32], sizes = [8, 32], strides = [1, 1]} : vector<8x128xf32> to vector<8x32xf32>
    %186 = vector.extract_strided_slice %183 {offsets = [0, 64], sizes = [8, 32], strides = [1, 1]} : vector<8x128xf32> to vector<8x32xf32>
    %187 = vector.extract_strided_slice %183 {offsets = [0, 96], sizes = [8, 32], strides = [1, 1]} : vector<8x128xf32> to vector<8x32xf32>
    %188 = arith.mulf %185, %169 : vector<8x32xf32>
    %189 = arith.mulf %184, %187 : vector<8x32xf32>
    %190 = arith.addf %188, %189 : vector<8x32xf32>
    %191 = math.tanh %190 : vector<8x32xf32>
    %192 = arith.mulf %186, %191 : vector<8x32xf32>
    %c48_103 = arith.constant 48 : index
    %c0_104 = arith.constant 0 : index
    %193 = vector.load %arg19[%c48_103, %c0_104] : memref<128x32xf32, #tpu.memory_space<vmem>>, vector<8x32xf32>
    tpu.vector_store %arg19[%c48_103, %c0_104], %192 {strides = array<i32>} : memref<128x32xf32, #tpu.memory_space<vmem>>, vector<8x32xf32>,
    %194 = arith.truncf %192 : vector<8x32xf32> to vector<8x32xbf16>
    %c56_105 = arith.constant 56 : index
    %c0_106 = arith.constant 0 : index
    %195 = vector.load %arg18[%c56_105, %c0_106] : memref<128x128xf32, #tpu.memory_space<vmem>>, vector<8x128xf32>
    %cst_107 = arith.constant dense<0.000000e+00> : vector<8x128xf32>
    %196 = tpu.matmul %194, %34, %cst_107 {dimension_numbers = #tpu.dot_dimension_numbers<[1], [0], [0], [1], [0, 0, 1, 1], [], []>} : vector<8x32xbf16>, vector<32x128xbf16>, vector<8x128xf32> -> vector<8x128xf32>
    %197 = arith.addf %195, %196 : vector<8x128xf32>
    %198 = arith.negf %197 : vector<8x128xf32>
    %199 = math.exp %198 : vector<8x128xf32>
    %cst_108 = arith.constant 1.000000e+00 : f32
    %200 = vector.broadcast %cst_108 : f32 to vector<8x128xf32>
    %201 = arith.addf %200, %199 : vector<8x128xf32>
    %202 = arith.divf %200, %201 : vector<8x128xf32>
    %203 = math.tanh %197 : vector<8x128xf32>
    %204 = arith.select %45, %202, %203 : vector<8x128xi1>, vector<8x128xf32>
    %205 = vector.extract_strided_slice %204 {offsets = [0, 0], sizes = [8, 32], strides = [1, 1]} : vector<8x128xf32> to vector<8x32xf32>
    %206 = vector.extract_strided_slice %204 {offsets = [0, 32], sizes = [8, 32], strides = [1, 1]} : vector<8x128xf32> to vector<8x32xf32>
    %207 = vector.extract_strided_slice %204 {offsets = [0, 64], sizes = [8, 32], strides = [1, 1]} : vector<8x128xf32> to vector<8x32xf32>
    %208 = vector.extract_strided_slice %204 {offsets = [0, 96], sizes = [8, 32], strides = [1, 1]} : vector<8x128xf32> to vector<8x32xf32>
    %209 = arith.mulf %206, %190 : vector<8x32xf32>
    %210 = arith.mulf %205, %208 : vector<8x32xf32>
    %211 = arith.addf %209, %210 : vector<8x32xf32>
    %212 = math.tanh %211 : vector<8x32xf32>
    %213 = arith.mulf %207, %212 : vector<8x32xf32>
    %c56_109 = arith.constant 56 : index
    %c0_110 = arith.constant 0 : index
    %214 = vector.load %arg19[%c56_109, %c0_110] : memref<128x32xf32, #tpu.memory_space<vmem>>, vector<8x32xf32>
    tpu.vector_store %arg19[%c56_109, %c0_110], %213 {strides = array<i32>} : memref<128x32xf32, #tpu.memory_space<vmem>>, vector<8x32xf32>,
    %215 = arith.truncf %213 : vector<8x32xf32> to vector<8x32xbf16>
    %c64_111 = arith.constant 64 : index
    %c0_112 = arith.constant 0 : index
    %216 = vector.load %arg18[%c64_111, %c0_112] : memref<128x128xf32, #tpu.memory_space<vmem>>, vector<8x128xf32>
    %cst_113 = arith.constant dense<0.000000e+00> : vector<8x128xf32>
    %217 = tpu.matmul %215, %34, %cst_113 {dimension_numbers = #tpu.dot_dimension_numbers<[1], [0], [0], [1], [0, 0, 1, 1], [], []>} : vector<8x32xbf16>, vector<32x128xbf16>, vector<8x128xf32> -> vector<8x128xf32>
    %218 = arith.addf %216, %217 : vector<8x128xf32>
    %219 = arith.negf %218 : vector<8x128xf32>
    %220 = math.exp %219 : vector<8x128xf32>
    %cst_114 = arith.constant 1.000000e+00 : f32
    %221 = vector.broadcast %cst_114 : f32 to vector<8x128xf32>
    %222 = arith.addf %221, %220 : vector<8x128xf32>
    %223 = arith.divf %221, %222 : vector<8x128xf32>
    %224 = math.tanh %218 : vector<8x128xf32>
    %225 = arith.select %45, %223, %224 : vector<8x128xi1>, vector<8x128xf32>
    %226 = vector.extract_strided_slice %225 {offsets = [0, 0], sizes = [8, 32], strides = [1, 1]} : vector<8x128xf32> to vector<8x32xf32>
    %227 = vector.extract_strided_slice %225 {offsets = [0, 32], sizes = [8, 32], strides = [1, 1]} : vector<8x128xf32> to vector<8x32xf32>
    %228 = vector.extract_strided_slice %225 {offsets = [0, 64], sizes = [8, 32], strides = [1, 1]} : vector<8x128xf32> to vector<8x32xf32>
    %229 = vector.extract_strided_slice %225 {offsets = [0, 96], sizes = [8, 32], strides = [1, 1]} : vector<8x128xf32> to vector<8x32xf32>
    %230 = arith.mulf %227, %211 : vector<8x32xf32>
    %231 = arith.mulf %226, %229 : vector<8x32xf32>
    %232 = arith.addf %230, %231 : vector<8x32xf32>
    %233 = math.tanh %232 : vector<8x32xf32>
    %234 = arith.mulf %228, %233 : vector<8x32xf32>
    %c64_115 = arith.constant 64 : index
    %c0_116 = arith.constant 0 : index
    %235 = vector.load %arg19[%c64_115, %c0_116] : memref<128x32xf32, #tpu.memory_space<vmem>>, vector<8x32xf32>
    tpu.vector_store %arg19[%c64_115, %c0_116], %234 {strides = array<i32>} : memref<128x32xf32, #tpu.memory_space<vmem>>, vector<8x32xf32>,
    %236 = arith.truncf %234 : vector<8x32xf32> to vector<8x32xbf16>
    %c72_117 = arith.constant 72 : index
    %c0_118 = arith.constant 0 : index
    %237 = vector.load %arg18[%c72_117, %c0_118] : memref<128x128xf32, #tpu.memory_space<vmem>>, vector<8x128xf32>
    %cst_119 = arith.constant dense<0.000000e+00> : vector<8x128xf32>
    %238 = tpu.matmul %236, %34, %cst_119 {dimension_numbers = #tpu.dot_dimension_numbers<[1], [0], [0], [1], [0, 0, 1, 1], [], []>} : vector<8x32xbf16>, vector<32x128xbf16>, vector<8x128xf32> -> vector<8x128xf32>
    %239 = arith.addf %237, %238 : vector<8x128xf32>
    %240 = arith.negf %239 : vector<8x128xf32>
    %241 = math.exp %240 : vector<8x128xf32>
    %cst_120 = arith.constant 1.000000e+00 : f32
    %242 = vector.broadcast %cst_120 : f32 to vector<8x128xf32>
    %243 = arith.addf %242, %241 : vector<8x128xf32>
    %244 = arith.divf %242, %243 : vector<8x128xf32>
    %245 = math.tanh %239 : vector<8x128xf32>
    %246 = arith.select %45, %244, %245 : vector<8x128xi1>, vector<8x128xf32>
    %247 = vector.extract_strided_slice %246 {offsets = [0, 0], sizes = [8, 32], strides = [1, 1]} : vector<8x128xf32> to vector<8x32xf32>
    %248 = vector.extract_strided_slice %246 {offsets = [0, 32], sizes = [8, 32], strides = [1, 1]} : vector<8x128xf32> to vector<8x32xf32>
    %249 = vector.extract_strided_slice %246 {offsets = [0, 64], sizes = [8, 32], strides = [1, 1]} : vector<8x128xf32> to vector<8x32xf32>
    %250 = vector.extract_strided_slice %246 {offsets = [0, 96], sizes = [8, 32], strides = [1, 1]} : vector<8x128xf32> to vector<8x32xf32>
    %251 = arith.mulf %248, %232 : vector<8x32xf32>
    %252 = arith.mulf %247, %250 : vector<8x32xf32>
    %253 = arith.addf %251, %252 : vector<8x32xf32>
    %254 = math.tanh %253 : vector<8x32xf32>
    %255 = arith.mulf %249, %254 : vector<8x32xf32>
    %c72_121 = arith.constant 72 : index
    %c0_122 = arith.constant 0 : index
    %256 = vector.load %arg19[%c72_121, %c0_122] : memref<128x32xf32, #tpu.memory_space<vmem>>, vector<8x32xf32>
    tpu.vector_store %arg19[%c72_121, %c0_122], %255 {strides = array<i32>} : memref<128x32xf32, #tpu.memory_space<vmem>>, vector<8x32xf32>,
    %257 = arith.truncf %255 : vector<8x32xf32> to vector<8x32xbf16>
    %c80_123 = arith.constant 80 : index
    %c0_124 = arith.constant 0 : index
    %258 = vector.load %arg18[%c80_123, %c0_124] : memref<128x128xf32, #tpu.memory_space<vmem>>, vector<8x128xf32>
    %cst_125 = arith.constant dense<0.000000e+00> : vector<8x128xf32>
    %259 = tpu.matmul %257, %34, %cst_125 {dimension_numbers = #tpu.dot_dimension_numbers<[1], [0], [0], [1], [0, 0, 1, 1], [], []>} : vector<8x32xbf16>, vector<32x128xbf16>, vector<8x128xf32> -> vector<8x128xf32>
    %260 = arith.addf %258, %259 : vector<8x128xf32>
    %261 = arith.negf %260 : vector<8x128xf32>
    %262 = math.exp %261 : vector<8x128xf32>
    %cst_126 = arith.constant 1.000000e+00 : f32
    %263 = vector.broadcast %cst_126 : f32 to vector<8x128xf32>
    %264 = arith.addf %263, %262 : vector<8x128xf32>
    %265 = arith.divf %263, %264 : vector<8x128xf32>
    %266 = math.tanh %260 : vector<8x128xf32>
    %267 = arith.select %45, %265, %266 : vector<8x128xi1>, vector<8x128xf32>
    %268 = vector.extract_strided_slice %267 {offsets = [0, 0], sizes = [8, 32], strides = [1, 1]} : vector<8x128xf32> to vector<8x32xf32>
    %269 = vector.extract_strided_slice %267 {offsets = [0, 32], sizes = [8, 32], strides = [1, 1]} : vector<8x128xf32> to vector<8x32xf32>
    %270 = vector.extract_strided_slice %267 {offsets = [0, 64], sizes = [8, 32], strides = [1, 1]} : vector<8x128xf32> to vector<8x32xf32>
    %271 = vector.extract_strided_slice %267 {offsets = [0, 96], sizes = [8, 32], strides = [1, 1]} : vector<8x128xf32> to vector<8x32xf32>
    %272 = arith.mulf %269, %253 : vector<8x32xf32>
    %273 = arith.mulf %268, %271 : vector<8x32xf32>
    %274 = arith.addf %272, %273 : vector<8x32xf32>
    %275 = math.tanh %274 : vector<8x32xf32>
    %276 = arith.mulf %270, %275 : vector<8x32xf32>
    %c80_127 = arith.constant 80 : index
    %c0_128 = arith.constant 0 : index
    %277 = vector.load %arg19[%c80_127, %c0_128] : memref<128x32xf32, #tpu.memory_space<vmem>>, vector<8x32xf32>
    tpu.vector_store %arg19[%c80_127, %c0_128], %276 {strides = array<i32>} : memref<128x32xf32, #tpu.memory_space<vmem>>, vector<8x32xf32>,
    %278 = arith.truncf %276 : vector<8x32xf32> to vector<8x32xbf16>
    %c88_129 = arith.constant 88 : index
    %c0_130 = arith.constant 0 : index
    %279 = vector.load %arg18[%c88_129, %c0_130] : memref<128x128xf32, #tpu.memory_space<vmem>>, vector<8x128xf32>
    %cst_131 = arith.constant dense<0.000000e+00> : vector<8x128xf32>
    %280 = tpu.matmul %278, %34, %cst_131 {dimension_numbers = #tpu.dot_dimension_numbers<[1], [0], [0], [1], [0, 0, 1, 1], [], []>} : vector<8x32xbf16>, vector<32x128xbf16>, vector<8x128xf32> -> vector<8x128xf32>
    %281 = arith.addf %279, %280 : vector<8x128xf32>
    %282 = arith.negf %281 : vector<8x128xf32>
    %283 = math.exp %282 : vector<8x128xf32>
    %cst_132 = arith.constant 1.000000e+00 : f32
    %284 = vector.broadcast %cst_132 : f32 to vector<8x128xf32>
    %285 = arith.addf %284, %283 : vector<8x128xf32>
    %286 = arith.divf %284, %285 : vector<8x128xf32>
    %287 = math.tanh %281 : vector<8x128xf32>
    %288 = arith.select %45, %286, %287 : vector<8x128xi1>, vector<8x128xf32>
    %289 = vector.extract_strided_slice %288 {offsets = [0, 0], sizes = [8, 32], strides = [1, 1]} : vector<8x128xf32> to vector<8x32xf32>
    %290 = vector.extract_strided_slice %288 {offsets = [0, 32], sizes = [8, 32], strides = [1, 1]} : vector<8x128xf32> to vector<8x32xf32>
    %291 = vector.extract_strided_slice %288 {offsets = [0, 64], sizes = [8, 32], strides = [1, 1]} : vector<8x128xf32> to vector<8x32xf32>
    %292 = vector.extract_strided_slice %288 {offsets = [0, 96], sizes = [8, 32], strides = [1, 1]} : vector<8x128xf32> to vector<8x32xf32>
    %293 = arith.mulf %290, %274 : vector<8x32xf32>
    %294 = arith.mulf %289, %292 : vector<8x32xf32>
    %295 = arith.addf %293, %294 : vector<8x32xf32>
    %296 = math.tanh %295 : vector<8x32xf32>
    %297 = arith.mulf %291, %296 : vector<8x32xf32>
    %c88_133 = arith.constant 88 : index
    %c0_134 = arith.constant 0 : index
    %298 = vector.load %arg19[%c88_133, %c0_134] : memref<128x32xf32, #tpu.memory_space<vmem>>, vector<8x32xf32>
    tpu.vector_store %arg19[%c88_133, %c0_134], %297 {strides = array<i32>} : memref<128x32xf32, #tpu.memory_space<vmem>>, vector<8x32xf32>,
    %299 = arith.truncf %297 : vector<8x32xf32> to vector<8x32xbf16>
    %c96_135 = arith.constant 96 : index
    %c0_136 = arith.constant 0 : index
    %300 = vector.load %arg18[%c96_135, %c0_136] : memref<128x128xf32, #tpu.memory_space<vmem>>, vector<8x128xf32>
    %cst_137 = arith.constant dense<0.000000e+00> : vector<8x128xf32>
    %301 = tpu.matmul %299, %34, %cst_137 {dimension_numbers = #tpu.dot_dimension_numbers<[1], [0], [0], [1], [0, 0, 1, 1], [], []>} : vector<8x32xbf16>, vector<32x128xbf16>, vector<8x128xf32> -> vector<8x128xf32>
    %302 = arith.addf %300, %301 : vector<8x128xf32>
    %303 = arith.negf %302 : vector<8x128xf32>
    %304 = math.exp %303 : vector<8x128xf32>
    %cst_138 = arith.constant 1.000000e+00 : f32
    %305 = vector.broadcast %cst_138 : f32 to vector<8x128xf32>
    %306 = arith.addf %305, %304 : vector<8x128xf32>
    %307 = arith.divf %305, %306 : vector<8x128xf32>
    %308 = math.tanh %302 : vector<8x128xf32>
    %309 = arith.select %45, %307, %308 : vector<8x128xi1>, vector<8x128xf32>
    %310 = vector.extract_strided_slice %309 {offsets = [0, 0], sizes = [8, 32], strides = [1, 1]} : vector<8x128xf32> to vector<8x32xf32>
    %311 = vector.extract_strided_slice %309 {offsets = [0, 32], sizes = [8, 32], strides = [1, 1]} : vector<8x128xf32> to vector<8x32xf32>
    %312 = vector.extract_strided_slice %309 {offsets = [0, 64], sizes = [8, 32], strides = [1, 1]} : vector<8x128xf32> to vector<8x32xf32>
    %313 = vector.extract_strided_slice %309 {offsets = [0, 96], sizes = [8, 32], strides = [1, 1]} : vector<8x128xf32> to vector<8x32xf32>
    %314 = arith.mulf %311, %295 : vector<8x32xf32>
    %315 = arith.mulf %310, %313 : vector<8x32xf32>
    %316 = arith.addf %314, %315 : vector<8x32xf32>
    %317 = math.tanh %316 : vector<8x32xf32>
    %318 = arith.mulf %312, %317 : vector<8x32xf32>
    %c96_139 = arith.constant 96 : index
    %c0_140 = arith.constant 0 : index
    %319 = vector.load %arg19[%c96_139, %c0_140] : memref<128x32xf32, #tpu.memory_space<vmem>>, vector<8x32xf32>
    tpu.vector_store %arg19[%c96_139, %c0_140], %318 {strides = array<i32>} : memref<128x32xf32, #tpu.memory_space<vmem>>, vector<8x32xf32>,
    %320 = arith.truncf %318 : vector<8x32xf32> to vector<8x32xbf16>
    %c104_141 = arith.constant 104 : index
    %c0_142 = arith.constant 0 : index
    %321 = vector.load %arg18[%c104_141, %c0_142] : memref<128x128xf32, #tpu.memory_space<vmem>>, vector<8x128xf32>
    %cst_143 = arith.constant dense<0.000000e+00> : vector<8x128xf32>
    %322 = tpu.matmul %320, %34, %cst_143 {dimension_numbers = #tpu.dot_dimension_numbers<[1], [0], [0], [1], [0, 0, 1, 1], [], []>} : vector<8x32xbf16>, vector<32x128xbf16>, vector<8x128xf32> -> vector<8x128xf32>
    %323 = arith.addf %321, %322 : vector<8x128xf32>
    %324 = arith.negf %323 : vector<8x128xf32>
    %325 = math.exp %324 : vector<8x128xf32>
    %cst_144 = arith.constant 1.000000e+00 : f32
    %326 = vector.broadcast %cst_144 : f32 to vector<8x128xf32>
    %327 = arith.addf %326, %325 : vector<8x128xf32>
    %328 = arith.divf %326, %327 : vector<8x128xf32>
    %329 = math.tanh %323 : vector<8x128xf32>
    %330 = arith.select %45, %328, %329 : vector<8x128xi1>, vector<8x128xf32>
    %331 = vector.extract_strided_slice %330 {offsets = [0, 0], sizes = [8, 32], strides = [1, 1]} : vector<8x128xf32> to vector<8x32xf32>
    %332 = vector.extract_strided_slice %330 {offsets = [0, 32], sizes = [8, 32], strides = [1, 1]} : vector<8x128xf32> to vector<8x32xf32>
    %333 = vector.extract_strided_slice %330 {offsets = [0, 64], sizes = [8, 32], strides = [1, 1]} : vector<8x128xf32> to vector<8x32xf32>
    %334 = vector.extract_strided_slice %330 {offsets = [0, 96], sizes = [8, 32], strides = [1, 1]} : vector<8x128xf32> to vector<8x32xf32>
    %335 = arith.mulf %332, %316 : vector<8x32xf32>
    %336 = arith.mulf %331, %334 : vector<8x32xf32>
    %337 = arith.addf %335, %336 : vector<8x32xf32>
    %338 = math.tanh %337 : vector<8x32xf32>
    %339 = arith.mulf %333, %338 : vector<8x32xf32>
    %c104_145 = arith.constant 104 : index
    %c0_146 = arith.constant 0 : index
    %340 = vector.load %arg19[%c104_145, %c0_146] : memref<128x32xf32, #tpu.memory_space<vmem>>, vector<8x32xf32>
    tpu.vector_store %arg19[%c104_145, %c0_146], %339 {strides = array<i32>} : memref<128x32xf32, #tpu.memory_space<vmem>>, vector<8x32xf32>,
    %341 = arith.truncf %339 : vector<8x32xf32> to vector<8x32xbf16>
    %c112_147 = arith.constant 112 : index
    %c0_148 = arith.constant 0 : index
    %342 = vector.load %arg18[%c112_147, %c0_148] : memref<128x128xf32, #tpu.memory_space<vmem>>, vector<8x128xf32>
    %cst_149 = arith.constant dense<0.000000e+00> : vector<8x128xf32>
    %343 = tpu.matmul %341, %34, %cst_149 {dimension_numbers = #tpu.dot_dimension_numbers<[1], [0], [0], [1], [0, 0, 1, 1], [], []>} : vector<8x32xbf16>, vector<32x128xbf16>, vector<8x128xf32> -> vector<8x128xf32>
    %344 = arith.addf %342, %343 : vector<8x128xf32>
    %345 = arith.negf %344 : vector<8x128xf32>
    %346 = math.exp %345 : vector<8x128xf32>
    %cst_150 = arith.constant 1.000000e+00 : f32
    %347 = vector.broadcast %cst_150 : f32 to vector<8x128xf32>
    %348 = arith.addf %347, %346 : vector<8x128xf32>
    %349 = arith.divf %347, %348 : vector<8x128xf32>
    %350 = math.tanh %344 : vector<8x128xf32>
    %351 = arith.select %45, %349, %350 : vector<8x128xi1>, vector<8x128xf32>
    %352 = vector.extract_strided_slice %351 {offsets = [0, 0], sizes = [8, 32], strides = [1, 1]} : vector<8x128xf32> to vector<8x32xf32>
    %353 = vector.extract_strided_slice %351 {offsets = [0, 32], sizes = [8, 32], strides = [1, 1]} : vector<8x128xf32> to vector<8x32xf32>
    %354 = vector.extract_strided_slice %351 {offsets = [0, 64], sizes = [8, 32], strides = [1, 1]} : vector<8x128xf32> to vector<8x32xf32>
    %355 = vector.extract_strided_slice %351 {offsets = [0, 96], sizes = [8, 32], strides = [1, 1]} : vector<8x128xf32> to vector<8x32xf32>
    %356 = arith.mulf %353, %337 : vector<8x32xf32>
    %357 = arith.mulf %352, %355 : vector<8x32xf32>
    %358 = arith.addf %356, %357 : vector<8x32xf32>
    %359 = math.tanh %358 : vector<8x32xf32>
    %360 = arith.mulf %354, %359 : vector<8x32xf32>
    %c112_151 = arith.constant 112 : index
    %c0_152 = arith.constant 0 : index
    %361 = vector.load %arg19[%c112_151, %c0_152] : memref<128x32xf32, #tpu.memory_space<vmem>>, vector<8x32xf32>
    tpu.vector_store %arg19[%c112_151, %c0_152], %360 {strides = array<i32>} : memref<128x32xf32, #tpu.memory_space<vmem>>, vector<8x32xf32>,
    %362 = arith.truncf %360 : vector<8x32xf32> to vector<8x32xbf16>
    %c120_153 = arith.constant 120 : index
    %c0_154 = arith.constant 0 : index
    %363 = vector.load %arg18[%c120_153, %c0_154] : memref<128x128xf32, #tpu.memory_space<vmem>>, vector<8x128xf32>
    %cst_155 = arith.constant dense<0.000000e+00> : vector<8x128xf32>
    %364 = tpu.matmul %362, %34, %cst_155 {dimension_numbers = #tpu.dot_dimension_numbers<[1], [0], [0], [1], [0, 0, 1, 1], [], []>} : vector<8x32xbf16>, vector<32x128xbf16>, vector<8x128xf32> -> vector<8x128xf32>
    %365 = arith.addf %363, %364 : vector<8x128xf32>
    %366 = arith.negf %365 : vector<8x128xf32>
    %367 = math.exp %366 : vector<8x128xf32>
    %cst_156 = arith.constant 1.000000e+00 : f32
    %368 = vector.broadcast %cst_156 : f32 to vector<8x128xf32>
    %369 = arith.addf %368, %367 : vector<8x128xf32>
    %370 = arith.divf %368, %369 : vector<8x128xf32>
    %371 = math.tanh %365 : vector<8x128xf32>
    %372 = arith.select %45, %370, %371 : vector<8x128xi1>, vector<8x128xf32>
    %373 = vector.extract_strided_slice %372 {offsets = [0, 0], sizes = [8, 32], strides = [1, 1]} : vector<8x128xf32> to vector<8x32xf32>
    %374 = vector.extract_strided_slice %372 {offsets = [0, 32], sizes = [8, 32], strides = [1, 1]} : vector<8x128xf32> to vector<8x32xf32>
    %375 = vector.extract_strided_slice %372 {offsets = [0, 64], sizes = [8, 32], strides = [1, 1]} : vector<8x128xf32> to vector<8x32xf32>
    %376 = vector.extract_strided_slice %372 {offsets = [0, 96], sizes = [8, 32], strides = [1, 1]} : vector<8x128xf32> to vector<8x32xf32>
    %377 = arith.mulf %374, %358 : vector<8x32xf32>
    %378 = arith.mulf %373, %376 : vector<8x32xf32>
    %379 = arith.addf %377, %378 : vector<8x32xf32>
    %380 = math.tanh %379 : vector<8x32xf32>
    %381 = arith.mulf %375, %380 : vector<8x32xf32>
    %c120_157 = arith.constant 120 : index
    %c0_158 = arith.constant 0 : index
    %382 = vector.load %arg19[%c120_157, %c0_158] : memref<128x32xf32, #tpu.memory_space<vmem>>, vector<8x32xf32>
    tpu.vector_store %arg19[%c120_157, %c0_158], %381 {strides = array<i32>} : memref<128x32xf32, #tpu.memory_space<vmem>>, vector<8x32xf32>,
    %c120_159 = arith.constant 120 : index
    %c0_160 = arith.constant 0 : index
    %383 = vector.load %arg19[%c120_159, %c0_160] : memref<128x32xf32, #tpu.memory_space<vmem>>, vector<8x32xf32>
    %c0_161 = arith.constant 0 : index
    %c0_162 = arith.constant 0 : index
    %384 = vector.load %arg20[%c0_161, %c0_162] : memref<128x32xf32, #tpu.memory_space<vmem>>, vector<8x32xf32>
    tpu.vector_store %arg20[%c0_161, %c0_162], %383 {strides = array<i32>} : memref<128x32xf32, #tpu.memory_space<vmem>>, vector<8x32xf32>,
    %c112_163 = arith.constant 112 : index
    %c0_164 = arith.constant 0 : index
    %385 = vector.load %arg19[%c112_163, %c0_164] : memref<128x32xf32, #tpu.memory_space<vmem>>, vector<8x32xf32>
    %c8_165 = arith.constant 8 : index
    %c0_166 = arith.constant 0 : index
    %386 = vector.load %arg20[%c8_165, %c0_166] : memref<128x32xf32, #tpu.memory_space<vmem>>, vector<8x32xf32>
    tpu.vector_store %arg20[%c8_165, %c0_166], %385 {strides = array<i32>} : memref<128x32xf32, #tpu.memory_space<vmem>>, vector<8x32xf32>,
    %c104_167 = arith.constant 104 : index
    %c0_168 = arith.constant 0 : index
    %387 = vector.load %arg19[%c104_167, %c0_168] : memref<128x32xf32, #tpu.memory_space<vmem>>, vector<8x32xf32>
    %c16_169 = arith.constant 16 : index
    %c0_170 = arith.constant 0 : index
    %388 = vector.load %arg20[%c16_169, %c0_170] : memref<128x32xf32, #tpu.memory_space<vmem>>, vector<8x32xf32>
    tpu.vector_store %arg20[%c16_169, %c0_170], %387 {strides = array<i32>} : memref<128x32xf32, #tpu.memory_space<vmem>>, vector<8x32xf32>,
    %c96_171 = arith.constant 96 : index
    %c0_172 = arith.constant 0 : index
    %389 = vector.load %arg19[%c96_171, %c0_172] : memref<128x32xf32, #tpu.memory_space<vmem>>, vector<8x32xf32>
    %c24_173 = arith.constant 24 : index
    %c0_174 = arith.constant 0 : index
    %390 = vector.load %arg20[%c24_173, %c0_174] : memref<128x32xf32, #tpu.memory_space<vmem>>, vector<8x32xf32>
    tpu.vector_store %arg20[%c24_173, %c0_174], %389 {strides = array<i32>} : memref<128x32xf32, #tpu.memory_space<vmem>>, vector<8x32xf32>,
    %c88_175 = arith.constant 88 : index
    %c0_176 = arith.constant 0 : index
    %391 = vector.load %arg19[%c88_175, %c0_176] : memref<128x32xf32, #tpu.memory_space<vmem>>, vector<8x32xf32>
    %c32_177 = arith.constant 32 : index
    %c0_178 = arith.constant 0 : index
    %392 = vector.load %arg20[%c32_177, %c0_178] : memref<128x32xf32, #tpu.memory_space<vmem>>, vector<8x32xf32>
    tpu.vector_store %arg20[%c32_177, %c0_178], %391 {strides = array<i32>} : memref<128x32xf32, #tpu.memory_space<vmem>>, vector<8x32xf32>,
    %c80_179 = arith.constant 80 : index
    %c0_180 = arith.constant 0 : index
    %393 = vector.load %arg19[%c80_179, %c0_180] : memref<128x32xf32, #tpu.memory_space<vmem>>, vector<8x32xf32>
    %c40_181 = arith.constant 40 : index
    %c0_182 = arith.constant 0 : index
    %394 = vector.load %arg20[%c40_181, %c0_182] : memref<128x32xf32, #tpu.memory_space<vmem>>, vector<8x32xf32>
    tpu.vector_store %arg20[%c40_181, %c0_182], %393 {strides = array<i32>} : memref<128x32xf32, #tpu.memory_space<vmem>>, vector<8x32xf32>,
    %c72_183 = arith.constant 72 : index
    %c0_184 = arith.constant 0 : index
    %395 = vector.load %arg19[%c72_183, %c0_184] : memref<128x32xf32, #tpu.memory_space<vmem>>, vector<8x32xf32>
    %c48_185 = arith.constant 48 : index
    %c0_186 = arith.constant 0 : index
    %396 = vector.load %arg20[%c48_185, %c0_186] : memref<128x32xf32, #tpu.memory_space<vmem>>, vector<8x32xf32>
    tpu.vector_store %arg20[%c48_185, %c0_186], %395 {strides = array<i32>} : memref<128x32xf32, #tpu.memory_space<vmem>>, vector<8x32xf32>,
    %c64_187 = arith.constant 64 : index
    %c0_188 = arith.constant 0 : index
    %397 = vector.load %arg19[%c64_187, %c0_188] : memref<128x32xf32, #tpu.memory_space<vmem>>, vector<8x32xf32>
    %c56_189 = arith.constant 56 : index
    %c0_190 = arith.constant 0 : index
    %398 = vector.load %arg20[%c56_189, %c0_190] : memref<128x32xf32, #tpu.memory_space<vmem>>, vector<8x32xf32>
    tpu.vector_store %arg20[%c56_189, %c0_190], %397 {strides = array<i32>} : memref<128x32xf32, #tpu.memory_space<vmem>>, vector<8x32xf32>,
    %c56_191 = arith.constant 56 : index
    %c0_192 = arith.constant 0 : index
    %399 = vector.load %arg19[%c56_191, %c0_192] : memref<128x32xf32, #tpu.memory_space<vmem>>, vector<8x32xf32>
    %c64_193 = arith.constant 64 : index
    %c0_194 = arith.constant 0 : index
    %400 = vector.load %arg20[%c64_193, %c0_194] : memref<128x32xf32, #tpu.memory_space<vmem>>, vector<8x32xf32>
    tpu.vector_store %arg20[%c64_193, %c0_194], %399 {strides = array<i32>} : memref<128x32xf32, #tpu.memory_space<vmem>>, vector<8x32xf32>,
    %c48_195 = arith.constant 48 : index
    %c0_196 = arith.constant 0 : index
    %401 = vector.load %arg19[%c48_195, %c0_196] : memref<128x32xf32, #tpu.memory_space<vmem>>, vector<8x32xf32>
    %c72_197 = arith.constant 72 : index
    %c0_198 = arith.constant 0 : index
    %402 = vector.load %arg20[%c72_197, %c0_198] : memref<128x32xf32, #tpu.memory_space<vmem>>, vector<8x32xf32>
    tpu.vector_store %arg20[%c72_197, %c0_198], %401 {strides = array<i32>} : memref<128x32xf32, #tpu.memory_space<vmem>>, vector<8x32xf32>,
    %c40_199 = arith.constant 40 : index
    %c0_200 = arith.constant 0 : index
    %403 = vector.load %arg19[%c40_199, %c0_200] : memref<128x32xf32, #tpu.memory_space<vmem>>, vector<8x32xf32>
    %c80_201 = arith.constant 80 : index
    %c0_202 = arith.constant 0 : index
    %404 = vector.load %arg20[%c80_201, %c0_202] : memref<128x32xf32, #tpu.memory_space<vmem>>, vector<8x32xf32>
    tpu.vector_store %arg20[%c80_201, %c0_202], %403 {strides = array<i32>} : memref<128x32xf32, #tpu.memory_space<vmem>>, vector<8x32xf32>,
    %c32_203 = arith.constant 32 : index
    %c0_204 = arith.constant 0 : index
    %405 = vector.load %arg19[%c32_203, %c0_204] : memref<128x32xf32, #tpu.memory_space<vmem>>, vector<8x32xf32>
    %c88_205 = arith.constant 88 : index
    %c0_206 = arith.constant 0 : index
    %406 = vector.load %arg20[%c88_205, %c0_206] : memref<128x32xf32, #tpu.memory_space<vmem>>, vector<8x32xf32>
    tpu.vector_store %arg20[%c88_205, %c0_206], %405 {strides = array<i32>} : memref<128x32xf32, #tpu.memory_space<vmem>>, vector<8x32xf32>,
    %c24_207 = arith.constant 24 : index
    %c0_208 = arith.constant 0 : index
    %407 = vector.load %arg19[%c24_207, %c0_208] : memref<128x32xf32, #tpu.memory_space<vmem>>, vector<8x32xf32>
    %c96_209 = arith.constant 96 : index
    %c0_210 = arith.constant 0 : index
    %408 = vector.load %arg20[%c96_209, %c0_210] : memref<128x32xf32, #tpu.memory_space<vmem>>, vector<8x32xf32>
    tpu.vector_store %arg20[%c96_209, %c0_210], %407 {strides = array<i32>} : memref<128x32xf32, #tpu.memory_space<vmem>>, vector<8x32xf32>,
    %c16_211 = arith.constant 16 : index
    %c0_212 = arith.constant 0 : index
    %409 = vector.load %arg19[%c16_211, %c0_212] : memref<128x32xf32, #tpu.memory_space<vmem>>, vector<8x32xf32>
    %c104_213 = arith.constant 104 : index
    %c0_214 = arith.constant 0 : index
    %410 = vector.load %arg20[%c104_213, %c0_214] : memref<128x32xf32, #tpu.memory_space<vmem>>, vector<8x32xf32>
    tpu.vector_store %arg20[%c104_213, %c0_214], %409 {strides = array<i32>} : memref<128x32xf32, #tpu.memory_space<vmem>>, vector<8x32xf32>,
    %c8_215 = arith.constant 8 : index
    %c0_216 = arith.constant 0 : index
    %411 = vector.load %arg19[%c8_215, %c0_216] : memref<128x32xf32, #tpu.memory_space<vmem>>, vector<8x32xf32>
    %c112_217 = arith.constant 112 : index
    %c0_218 = arith.constant 0 : index
    %412 = vector.load %arg20[%c112_217, %c0_218] : memref<128x32xf32, #tpu.memory_space<vmem>>, vector<8x32xf32>
    tpu.vector_store %arg20[%c112_217, %c0_218], %411 {strides = array<i32>} : memref<128x32xf32, #tpu.memory_space<vmem>>, vector<8x32xf32>,
    %c0_219 = arith.constant 0 : index
    %c0_220 = arith.constant 0 : index
    %413 = vector.load %arg19[%c0_219, %c0_220] : memref<128x32xf32, #tpu.memory_space<vmem>>, vector<8x32xf32>
    %c120_221 = arith.constant 120 : index
    %c0_222 = arith.constant 0 : index
    %414 = vector.load %arg20[%c120_221, %c0_222] : memref<128x32xf32, #tpu.memory_space<vmem>>, vector<8x32xf32>
    tpu.vector_store %arg20[%c120_221, %c0_222], %413 {strides = array<i32>} : memref<128x32xf32, #tpu.memory_space<vmem>>, vector<8x32xf32>,
    %c0_223 = arith.constant 0 : index
    %c0_224 = arith.constant 0 : index
    %415 = vector.load %arg4[%c0_223, %c0_224] : memref<32x128xbf16, #tpu.memory_space<vmem>>, vector<32x128xbf16>
    %c0_225 = arith.constant 0 : index
    %c0_226 = arith.constant 0 : index
    %416 = vector.load %arg5[%c0_225, %c0_226] : memref<32x128xbf16, #tpu.memory_space<vmem>>, vector<32x128xbf16>
    %c0_227 = arith.constant 0 : index
    %c0_228 = arith.constant 0 : index
    %417 = vector.load %arg6[%c0_227, %c0_228] : memref<32x128xbf16, #tpu.memory_space<vmem>>, vector<32x128xbf16>
    %c0_229 = arith.constant 0 : index
    %c0_230 = arith.constant 0 : index
    %418 = vector.load %arg19[%c0_229, %c0_230] : memref<128x32xf32, #tpu.memory_space<vmem>>, vector<128x32xf32>
    %419 = arith.truncf %418 : vector<128x32xf32> to vector<128x32xbf16>
    %cst_231 = arith.constant dense<0.000000e+00> : vector<128x128xf32>
    %420 = tpu.matmul %419, %415, %cst_231 {dimension_numbers = #tpu.dot_dimension_numbers<[1], [0], [0], [1], [0, 0, 1, 1], [], []>} : vector<128x32xbf16>, vector<32x128xbf16>, vector<128x128xf32> -> vector<128x128xf32>
    %c0_232 = arith.constant 0 : index
    %c0_233 = arith.constant 0 : index
    %421 = vector.load %arg20[%c0_232, %c0_233] : memref<128x32xf32, #tpu.memory_space<vmem>>, vector<128x32xf32>
    %422 = arith.truncf %421 : vector<128x32xf32> to vector<128x32xbf16>
    %cst_234 = arith.constant dense<0.000000e+00> : vector<128x128xf32>
    %423 = tpu.matmul %422, %416, %cst_234 {dimension_numbers = #tpu.dot_dimension_numbers<[1], [0], [0], [1], [0, 0, 1, 1], [], []>} : vector<128x32xbf16>, vector<32x128xbf16>, vector<128x128xf32> -> vector<128x128xf32>
    %424 = arith.addf %420, %423 : vector<128x128xf32>
    %c0_235 = arith.constant 0 : index
    %c0_236 = arith.constant 0 : index
    %425 = vector.load %arg21[%c0_235, %c0_236] : memref<128x128xf32, #tpu.memory_space<vmem>>, vector<128x128xf32>
    tpu.vector_store %arg21[%c0_235, %c0_236], %424 {strides = array<i32>} : memref<128x128xf32, #tpu.memory_space<vmem>>, vector<128x128xf32>,
    %426 = tpu.iota {dimensions = array<i32: 1>} : vector<8x128xi32>
    %c96_i32_237 = arith.constant 96 : i32
    %427 = vector.broadcast %c96_i32_237 : i32 to vector<8x128xi32>
    %428 = arith.cmpi slt, %426, %427 : vector<8x128xi32>
    %cst_238 = arith.constant 0.000000e+00 : bf16
    %429 = vector.broadcast %cst_238 : bf16 to vector<8x32xbf16>
    %cst_239 = arith.constant 0.000000e+00 : f32
    %430 = vector.broadcast %cst_239 : f32 to vector<8x32xf32>
    %c0_240 = arith.constant 0 : index
    %c0_241 = arith.constant 0 : index
    %431 = vector.load %arg21[%c0_240, %c0_241] : memref<128x128xf32, #tpu.memory_space<vmem>>, vector<8x128xf32>
    %cst_242 = arith.constant dense<0.000000e+00> : vector<8x128xf32>
    %432 = tpu.matmul %429, %417, %cst_242 {dimension_numbers = #tpu.dot_dimension_numbers<[1], [0], [0], [1], [0, 0, 1, 1], [], []>} : vector<8x32xbf16>, vector<32x128xbf16>, vector<8x128xf32> -> vector<8x128xf32>
    %433 = arith.addf %431, %432 : vector<8x128xf32>
    %434 = arith.negf %433 : vector<8x128xf32>
    %435 = math.exp %434 : vector<8x128xf32>
    %cst_243 = arith.constant 1.000000e+00 : f32
    %436 = vector.broadcast %cst_243 : f32 to vector<8x128xf32>
    %437 = arith.addf %436, %435 : vector<8x128xf32>
    %438 = arith.divf %436, %437 : vector<8x128xf32>
    %439 = math.tanh %433 : vector<8x128xf32>
    %440 = arith.select %428, %438, %439 : vector<8x128xi1>, vector<8x128xf32>
    %441 = vector.extract_strided_slice %440 {offsets = [0, 0], sizes = [8, 32], strides = [1, 1]} : vector<8x128xf32> to vector<8x32xf32>
    %442 = vector.extract_strided_slice %440 {offsets = [0, 32], sizes = [8, 32], strides = [1, 1]} : vector<8x128xf32> to vector<8x32xf32>
    %443 = vector.extract_strided_slice %440 {offsets = [0, 64], sizes = [8, 32], strides = [1, 1]} : vector<8x128xf32> to vector<8x32xf32>
    %444 = vector.extract_strided_slice %440 {offsets = [0, 96], sizes = [8, 32], strides = [1, 1]} : vector<8x128xf32> to vector<8x32xf32>
    %445 = arith.mulf %442, %430 : vector<8x32xf32>
    %446 = arith.mulf %441, %444 : vector<8x32xf32>
    %447 = arith.addf %445, %446 : vector<8x32xf32>
    %448 = math.tanh %447 : vector<8x32xf32>
    %449 = arith.mulf %443, %448 : vector<8x32xf32>
    %c0_244 = arith.constant 0 : index
    %c0_245 = arith.constant 0 : index
    %450 = vector.load %arg22[%c0_244, %c0_245] : memref<128x32xf32, #tpu.memory_space<vmem>>, vector<8x32xf32>
    tpu.vector_store %arg22[%c0_244, %c0_245], %449 {strides = array<i32>} : memref<128x32xf32, #tpu.memory_space<vmem>>, vector<8x32xf32>,
    %451 = arith.truncf %449 : vector<8x32xf32> to vector<8x32xbf16>
    %c8_246 = arith.constant 8 : index
    %c0_247 = arith.constant 0 : index
    %452 = vector.load %arg21[%c8_246, %c0_247] : memref<128x128xf32, #tpu.memory_space<vmem>>, vector<8x128xf32>
    %cst_248 = arith.constant dense<0.000000e+00> : vector<8x128xf32>
    %453 = tpu.matmul %451, %417, %cst_248 {dimension_numbers = #tpu.dot_dimension_numbers<[1], [0], [0], [1], [0, 0, 1, 1], [], []>} : vector<8x32xbf16>, vector<32x128xbf16>, vector<8x128xf32> -> vector<8x128xf32>
    %454 = arith.addf %452, %453 : vector<8x128xf32>
    %455 = arith.negf %454 : vector<8x128xf32>
    %456 = math.exp %455 : vector<8x128xf32>
    %cst_249 = arith.constant 1.000000e+00 : f32
    %457 = vector.broadcast %cst_249 : f32 to vector<8x128xf32>
    %458 = arith.addf %457, %456 : vector<8x128xf32>
    %459 = arith.divf %457, %458 : vector<8x128xf32>
    %460 = math.tanh %454 : vector<8x128xf32>
    %461 = arith.select %428, %459, %460 : vector<8x128xi1>, vector<8x128xf32>
    %462 = vector.extract_strided_slice %461 {offsets = [0, 0], sizes = [8, 32], strides = [1, 1]} : vector<8x128xf32> to vector<8x32xf32>
    %463 = vector.extract_strided_slice %461 {offsets = [0, 32], sizes = [8, 32], strides = [1, 1]} : vector<8x128xf32> to vector<8x32xf32>
    %464 = vector.extract_strided_slice %461 {offsets = [0, 64], sizes = [8, 32], strides = [1, 1]} : vector<8x128xf32> to vector<8x32xf32>
    %465 = vector.extract_strided_slice %461 {offsets = [0, 96], sizes = [8, 32], strides = [1, 1]} : vector<8x128xf32> to vector<8x32xf32>
    %466 = arith.mulf %463, %447 : vector<8x32xf32>
    %467 = arith.mulf %462, %465 : vector<8x32xf32>
    %468 = arith.addf %466, %467 : vector<8x32xf32>
    %469 = math.tanh %468 : vector<8x32xf32>
    %470 = arith.mulf %464, %469 : vector<8x32xf32>
    %c8_250 = arith.constant 8 : index
    %c0_251 = arith.constant 0 : index
    %471 = vector.load %arg22[%c8_250, %c0_251] : memref<128x32xf32, #tpu.memory_space<vmem>>, vector<8x32xf32>
    tpu.vector_store %arg22[%c8_250, %c0_251], %470 {strides = array<i32>} : memref<128x32xf32, #tpu.memory_space<vmem>>, vector<8x32xf32>,
    %472 = arith.truncf %470 : vector<8x32xf32> to vector<8x32xbf16>
    %c16_252 = arith.constant 16 : index
    %c0_253 = arith.constant 0 : index
    %473 = vector.load %arg21[%c16_252, %c0_253] : memref<128x128xf32, #tpu.memory_space<vmem>>, vector<8x128xf32>
    %cst_254 = arith.constant dense<0.000000e+00> : vector<8x128xf32>
    %474 = tpu.matmul %472, %417, %cst_254 {dimension_numbers = #tpu.dot_dimension_numbers<[1], [0], [0], [1], [0, 0, 1, 1], [], []>} : vector<8x32xbf16>, vector<32x128xbf16>, vector<8x128xf32> -> vector<8x128xf32>
    %475 = arith.addf %473, %474 : vector<8x128xf32>
    %476 = arith.negf %475 : vector<8x128xf32>
    %477 = math.exp %476 : vector<8x128xf32>
    %cst_255 = arith.constant 1.000000e+00 : f32
    %478 = vector.broadcast %cst_255 : f32 to vector<8x128xf32>
    %479 = arith.addf %478, %477 : vector<8x128xf32>
    %480 = arith.divf %478, %479 : vector<8x128xf32>
    %481 = math.tanh %475 : vector<8x128xf32>
    %482 = arith.select %428, %480, %481 : vector<8x128xi1>, vector<8x128xf32>
    %483 = vector.extract_strided_slice %482 {offsets = [0, 0], sizes = [8, 32], strides = [1, 1]} : vector<8x128xf32> to vector<8x32xf32>
    %484 = vector.extract_strided_slice %482 {offsets = [0, 32], sizes = [8, 32], strides = [1, 1]} : vector<8x128xf32> to vector<8x32xf32>
    %485 = vector.extract_strided_slice %482 {offsets = [0, 64], sizes = [8, 32], strides = [1, 1]} : vector<8x128xf32> to vector<8x32xf32>
    %486 = vector.extract_strided_slice %482 {offsets = [0, 96], sizes = [8, 32], strides = [1, 1]} : vector<8x128xf32> to vector<8x32xf32>
    %487 = arith.mulf %484, %468 : vector<8x32xf32>
    %488 = arith.mulf %483, %486 : vector<8x32xf32>
    %489 = arith.addf %487, %488 : vector<8x32xf32>
    %490 = math.tanh %489 : vector<8x32xf32>
    %491 = arith.mulf %485, %490 : vector<8x32xf32>
    %c16_256 = arith.constant 16 : index
    %c0_257 = arith.constant 0 : index
    %492 = vector.load %arg22[%c16_256, %c0_257] : memref<128x32xf32, #tpu.memory_space<vmem>>, vector<8x32xf32>
    tpu.vector_store %arg22[%c16_256, %c0_257], %491 {strides = array<i32>} : memref<128x32xf32, #tpu.memory_space<vmem>>, vector<8x32xf32>,
    %493 = arith.truncf %491 : vector<8x32xf32> to vector<8x32xbf16>
    %c24_258 = arith.constant 24 : index
    %c0_259 = arith.constant 0 : index
    %494 = vector.load %arg21[%c24_258, %c0_259] : memref<128x128xf32, #tpu.memory_space<vmem>>, vector<8x128xf32>
    %cst_260 = arith.constant dense<0.000000e+00> : vector<8x128xf32>
    %495 = tpu.matmul %493, %417, %cst_260 {dimension_numbers = #tpu.dot_dimension_numbers<[1], [0], [0], [1], [0, 0, 1, 1], [], []>} : vector<8x32xbf16>, vector<32x128xbf16>, vector<8x128xf32> -> vector<8x128xf32>
    %496 = arith.addf %494, %495 : vector<8x128xf32>
    %497 = arith.negf %496 : vector<8x128xf32>
    %498 = math.exp %497 : vector<8x128xf32>
    %cst_261 = arith.constant 1.000000e+00 : f32
    %499 = vector.broadcast %cst_261 : f32 to vector<8x128xf32>
    %500 = arith.addf %499, %498 : vector<8x128xf32>
    %501 = arith.divf %499, %500 : vector<8x128xf32>
    %502 = math.tanh %496 : vector<8x128xf32>
    %503 = arith.select %428, %501, %502 : vector<8x128xi1>, vector<8x128xf32>
    %504 = vector.extract_strided_slice %503 {offsets = [0, 0], sizes = [8, 32], strides = [1, 1]} : vector<8x128xf32> to vector<8x32xf32>
    %505 = vector.extract_strided_slice %503 {offsets = [0, 32], sizes = [8, 32], strides = [1, 1]} : vector<8x128xf32> to vector<8x32xf32>
    %506 = vector.extract_strided_slice %503 {offsets = [0, 64], sizes = [8, 32], strides = [1, 1]} : vector<8x128xf32> to vector<8x32xf32>
    %507 = vector.extract_strided_slice %503 {offsets = [0, 96], sizes = [8, 32], strides = [1, 1]} : vector<8x128xf32> to vector<8x32xf32>
    %508 = arith.mulf %505, %489 : vector<8x32xf32>
    %509 = arith.mulf %504, %507 : vector<8x32xf32>
    %510 = arith.addf %508, %509 : vector<8x32xf32>
    %511 = math.tanh %510 : vector<8x32xf32>
    %512 = arith.mulf %506, %511 : vector<8x32xf32>
    %c24_262 = arith.constant 24 : index
    %c0_263 = arith.constant 0 : index
    %513 = vector.load %arg22[%c24_262, %c0_263] : memref<128x32xf32, #tpu.memory_space<vmem>>, vector<8x32xf32>
    tpu.vector_store %arg22[%c24_262, %c0_263], %512 {strides = array<i32>} : memref<128x32xf32, #tpu.memory_space<vmem>>, vector<8x32xf32>,
    %514 = arith.truncf %512 : vector<8x32xf32> to vector<8x32xbf16>
    %c32_264 = arith.constant 32 : index
    %c0_265 = arith.constant 0 : index
    %515 = vector.load %arg21[%c32_264, %c0_265] : memref<128x128xf32, #tpu.memory_space<vmem>>, vector<8x128xf32>
    %cst_266 = arith.constant dense<0.000000e+00> : vector<8x128xf32>
    %516 = tpu.matmul %514, %417, %cst_266 {dimension_numbers = #tpu.dot_dimension_numbers<[1], [0], [0], [1], [0, 0, 1, 1], [], []>} : vector<8x32xbf16>, vector<32x128xbf16>, vector<8x128xf32> -> vector<8x128xf32>
    %517 = arith.addf %515, %516 : vector<8x128xf32>
    %518 = arith.negf %517 : vector<8x128xf32>
    %519 = math.exp %518 : vector<8x128xf32>
    %cst_267 = arith.constant 1.000000e+00 : f32
    %520 = vector.broadcast %cst_267 : f32 to vector<8x128xf32>
    %521 = arith.addf %520, %519 : vector<8x128xf32>
    %522 = arith.divf %520, %521 : vector<8x128xf32>
    %523 = math.tanh %517 : vector<8x128xf32>
    %524 = arith.select %428, %522, %523 : vector<8x128xi1>, vector<8x128xf32>
    %525 = vector.extract_strided_slice %524 {offsets = [0, 0], sizes = [8, 32], strides = [1, 1]} : vector<8x128xf32> to vector<8x32xf32>
    %526 = vector.extract_strided_slice %524 {offsets = [0, 32], sizes = [8, 32], strides = [1, 1]} : vector<8x128xf32> to vector<8x32xf32>
    %527 = vector.extract_strided_slice %524 {offsets = [0, 64], sizes = [8, 32], strides = [1, 1]} : vector<8x128xf32> to vector<8x32xf32>
    %528 = vector.extract_strided_slice %524 {offsets = [0, 96], sizes = [8, 32], strides = [1, 1]} : vector<8x128xf32> to vector<8x32xf32>
    %529 = arith.mulf %526, %510 : vector<8x32xf32>
    %530 = arith.mulf %525, %528 : vector<8x32xf32>
    %531 = arith.addf %529, %530 : vector<8x32xf32>
    %532 = math.tanh %531 : vector<8x32xf32>
    %533 = arith.mulf %527, %532 : vector<8x32xf32>
    %c32_268 = arith.constant 32 : index
    %c0_269 = arith.constant 0 : index
    %534 = vector.load %arg22[%c32_268, %c0_269] : memref<128x32xf32, #tpu.memory_space<vmem>>, vector<8x32xf32>
    tpu.vector_store %arg22[%c32_268, %c0_269], %533 {strides = array<i32>} : memref<128x32xf32, #tpu.memory_space<vmem>>, vector<8x32xf32>,
    %535 = arith.truncf %533 : vector<8x32xf32> to vector<8x32xbf16>
    %c40_270 = arith.constant 40 : index
    %c0_271 = arith.constant 0 : index
    %536 = vector.load %arg21[%c40_270, %c0_271] : memref<128x128xf32, #tpu.memory_space<vmem>>, vector<8x128xf32>
    %cst_272 = arith.constant dense<0.000000e+00> : vector<8x128xf32>
    %537 = tpu.matmul %535, %417, %cst_272 {dimension_numbers = #tpu.dot_dimension_numbers<[1], [0], [0], [1], [0, 0, 1, 1], [], []>} : vector<8x32xbf16>, vector<32x128xbf16>, vector<8x128xf32> -> vector<8x128xf32>
    %538 = arith.addf %536, %537 : vector<8x128xf32>
    %539 = arith.negf %538 : vector<8x128xf32>
    %540 = math.exp %539 : vector<8x128xf32>
    %cst_273 = arith.constant 1.000000e+00 : f32
    %541 = vector.broadcast %cst_273 : f32 to vector<8x128xf32>
    %542 = arith.addf %541, %540 : vector<8x128xf32>
    %543 = arith.divf %541, %542 : vector<8x128xf32>
    %544 = math.tanh %538 : vector<8x128xf32>
    %545 = arith.select %428, %543, %544 : vector<8x128xi1>, vector<8x128xf32>
    %546 = vector.extract_strided_slice %545 {offsets = [0, 0], sizes = [8, 32], strides = [1, 1]} : vector<8x128xf32> to vector<8x32xf32>
    %547 = vector.extract_strided_slice %545 {offsets = [0, 32], sizes = [8, 32], strides = [1, 1]} : vector<8x128xf32> to vector<8x32xf32>
    %548 = vector.extract_strided_slice %545 {offsets = [0, 64], sizes = [8, 32], strides = [1, 1]} : vector<8x128xf32> to vector<8x32xf32>
    %549 = vector.extract_strided_slice %545 {offsets = [0, 96], sizes = [8, 32], strides = [1, 1]} : vector<8x128xf32> to vector<8x32xf32>
    %550 = arith.mulf %547, %531 : vector<8x32xf32>
    %551 = arith.mulf %546, %549 : vector<8x32xf32>
    %552 = arith.addf %550, %551 : vector<8x32xf32>
    %553 = math.tanh %552 : vector<8x32xf32>
    %554 = arith.mulf %548, %553 : vector<8x32xf32>
    %c40_274 = arith.constant 40 : index
    %c0_275 = arith.constant 0 : index
    %555 = vector.load %arg22[%c40_274, %c0_275] : memref<128x32xf32, #tpu.memory_space<vmem>>, vector<8x32xf32>
    tpu.vector_store %arg22[%c40_274, %c0_275], %554 {strides = array<i32>} : memref<128x32xf32, #tpu.memory_space<vmem>>, vector<8x32xf32>,
    %556 = arith.truncf %554 : vector<8x32xf32> to vector<8x32xbf16>
    %c48_276 = arith.constant 48 : index
    %c0_277 = arith.constant 0 : index
    %557 = vector.load %arg21[%c48_276, %c0_277] : memref<128x128xf32, #tpu.memory_space<vmem>>, vector<8x128xf32>
    %cst_278 = arith.constant dense<0.000000e+00> : vector<8x128xf32>
    %558 = tpu.matmul %556, %417, %cst_278 {dimension_numbers = #tpu.dot_dimension_numbers<[1], [0], [0], [1], [0, 0, 1, 1], [], []>} : vector<8x32xbf16>, vector<32x128xbf16>, vector<8x128xf32> -> vector<8x128xf32>
    %559 = arith.addf %557, %558 : vector<8x128xf32>
    %560 = arith.negf %559 : vector<8x128xf32>
    %561 = math.exp %560 : vector<8x128xf32>
    %cst_279 = arith.constant 1.000000e+00 : f32
    %562 = vector.broadcast %cst_279 : f32 to vector<8x128xf32>
    %563 = arith.addf %562, %561 : vector<8x128xf32>
    %564 = arith.divf %562, %563 : vector<8x128xf32>
    %565 = math.tanh %559 : vector<8x128xf32>
    %566 = arith.select %428, %564, %565 : vector<8x128xi1>, vector<8x128xf32>
    %567 = vector.extract_strided_slice %566 {offsets = [0, 0], sizes = [8, 32], strides = [1, 1]} : vector<8x128xf32> to vector<8x32xf32>
    %568 = vector.extract_strided_slice %566 {offsets = [0, 32], sizes = [8, 32], strides = [1, 1]} : vector<8x128xf32> to vector<8x32xf32>
    %569 = vector.extract_strided_slice %566 {offsets = [0, 64], sizes = [8, 32], strides = [1, 1]} : vector<8x128xf32> to vector<8x32xf32>
    %570 = vector.extract_strided_slice %566 {offsets = [0, 96], sizes = [8, 32], strides = [1, 1]} : vector<8x128xf32> to vector<8x32xf32>
    %571 = arith.mulf %568, %552 : vector<8x32xf32>
    %572 = arith.mulf %567, %570 : vector<8x32xf32>
    %573 = arith.addf %571, %572 : vector<8x32xf32>
    %574 = math.tanh %573 : vector<8x32xf32>
    %575 = arith.mulf %569, %574 : vector<8x32xf32>
    %c48_280 = arith.constant 48 : index
    %c0_281 = arith.constant 0 : index
    %576 = vector.load %arg22[%c48_280, %c0_281] : memref<128x32xf32, #tpu.memory_space<vmem>>, vector<8x32xf32>
    tpu.vector_store %arg22[%c48_280, %c0_281], %575 {strides = array<i32>} : memref<128x32xf32, #tpu.memory_space<vmem>>, vector<8x32xf32>,
    %577 = arith.truncf %575 : vector<8x32xf32> to vector<8x32xbf16>
    %c56_282 = arith.constant 56 : index
    %c0_283 = arith.constant 0 : index
    %578 = vector.load %arg21[%c56_282, %c0_283] : memref<128x128xf32, #tpu.memory_space<vmem>>, vector<8x128xf32>
    %cst_284 = arith.constant dense<0.000000e+00> : vector<8x128xf32>
    %579 = tpu.matmul %577, %417, %cst_284 {dimension_numbers = #tpu.dot_dimension_numbers<[1], [0], [0], [1], [0, 0, 1, 1], [], []>} : vector<8x32xbf16>, vector<32x128xbf16>, vector<8x128xf32> -> vector<8x128xf32>
    %580 = arith.addf %578, %579 : vector<8x128xf32>
    %581 = arith.negf %580 : vector<8x128xf32>
    %582 = math.exp %581 : vector<8x128xf32>
    %cst_285 = arith.constant 1.000000e+00 : f32
    %583 = vector.broadcast %cst_285 : f32 to vector<8x128xf32>
    %584 = arith.addf %583, %582 : vector<8x128xf32>
    %585 = arith.divf %583, %584 : vector<8x128xf32>
    %586 = math.tanh %580 : vector<8x128xf32>
    %587 = arith.select %428, %585, %586 : vector<8x128xi1>, vector<8x128xf32>
    %588 = vector.extract_strided_slice %587 {offsets = [0, 0], sizes = [8, 32], strides = [1, 1]} : vector<8x128xf32> to vector<8x32xf32>
    %589 = vector.extract_strided_slice %587 {offsets = [0, 32], sizes = [8, 32], strides = [1, 1]} : vector<8x128xf32> to vector<8x32xf32>
    %590 = vector.extract_strided_slice %587 {offsets = [0, 64], sizes = [8, 32], strides = [1, 1]} : vector<8x128xf32> to vector<8x32xf32>
    %591 = vector.extract_strided_slice %587 {offsets = [0, 96], sizes = [8, 32], strides = [1, 1]} : vector<8x128xf32> to vector<8x32xf32>
    %592 = arith.mulf %589, %573 : vector<8x32xf32>
    %593 = arith.mulf %588, %591 : vector<8x32xf32>
    %594 = arith.addf %592, %593 : vector<8x32xf32>
    %595 = math.tanh %594 : vector<8x32xf32>
    %596 = arith.mulf %590, %595 : vector<8x32xf32>
    %c56_286 = arith.constant 56 : index
    %c0_287 = arith.constant 0 : index
    %597 = vector.load %arg22[%c56_286, %c0_287] : memref<128x32xf32, #tpu.memory_space<vmem>>, vector<8x32xf32>
    tpu.vector_store %arg22[%c56_286, %c0_287], %596 {strides = array<i32>} : memref<128x32xf32, #tpu.memory_space<vmem>>, vector<8x32xf32>,
    %598 = arith.truncf %596 : vector<8x32xf32> to vector<8x32xbf16>
    %c64_288 = arith.constant 64 : index
    %c0_289 = arith.constant 0 : index
    %599 = vector.load %arg21[%c64_288, %c0_289] : memref<128x128xf32, #tpu.memory_space<vmem>>, vector<8x128xf32>
    %cst_290 = arith.constant dense<0.000000e+00> : vector<8x128xf32>
    %600 = tpu.matmul %598, %417, %cst_290 {dimension_numbers = #tpu.dot_dimension_numbers<[1], [0], [0], [1], [0, 0, 1, 1], [], []>} : vector<8x32xbf16>, vector<32x128xbf16>, vector<8x128xf32> -> vector<8x128xf32>
    %601 = arith.addf %599, %600 : vector<8x128xf32>
    %602 = arith.negf %601 : vector<8x128xf32>
    %603 = math.exp %602 : vector<8x128xf32>
    %cst_291 = arith.constant 1.000000e+00 : f32
    %604 = vector.broadcast %cst_291 : f32 to vector<8x128xf32>
    %605 = arith.addf %604, %603 : vector<8x128xf32>
    %606 = arith.divf %604, %605 : vector<8x128xf32>
    %607 = math.tanh %601 : vector<8x128xf32>
    %608 = arith.select %428, %606, %607 : vector<8x128xi1>, vector<8x128xf32>
    %609 = vector.extract_strided_slice %608 {offsets = [0, 0], sizes = [8, 32], strides = [1, 1]} : vector<8x128xf32> to vector<8x32xf32>
    %610 = vector.extract_strided_slice %608 {offsets = [0, 32], sizes = [8, 32], strides = [1, 1]} : vector<8x128xf32> to vector<8x32xf32>
    %611 = vector.extract_strided_slice %608 {offsets = [0, 64], sizes = [8, 32], strides = [1, 1]} : vector<8x128xf32> to vector<8x32xf32>
    %612 = vector.extract_strided_slice %608 {offsets = [0, 96], sizes = [8, 32], strides = [1, 1]} : vector<8x128xf32> to vector<8x32xf32>
    %613 = arith.mulf %610, %594 : vector<8x32xf32>
    %614 = arith.mulf %609, %612 : vector<8x32xf32>
    %615 = arith.addf %613, %614 : vector<8x32xf32>
    %616 = math.tanh %615 : vector<8x32xf32>
    %617 = arith.mulf %611, %616 : vector<8x32xf32>
    %c64_292 = arith.constant 64 : index
    %c0_293 = arith.constant 0 : index
    %618 = vector.load %arg22[%c64_292, %c0_293] : memref<128x32xf32, #tpu.memory_space<vmem>>, vector<8x32xf32>
    tpu.vector_store %arg22[%c64_292, %c0_293], %617 {strides = array<i32>} : memref<128x32xf32, #tpu.memory_space<vmem>>, vector<8x32xf32>,
    %619 = arith.truncf %617 : vector<8x32xf32> to vector<8x32xbf16>
    %c72_294 = arith.constant 72 : index
    %c0_295 = arith.constant 0 : index
    %620 = vector.load %arg21[%c72_294, %c0_295] : memref<128x128xf32, #tpu.memory_space<vmem>>, vector<8x128xf32>
    %cst_296 = arith.constant dense<0.000000e+00> : vector<8x128xf32>
    %621 = tpu.matmul %619, %417, %cst_296 {dimension_numbers = #tpu.dot_dimension_numbers<[1], [0], [0], [1], [0, 0, 1, 1], [], []>} : vector<8x32xbf16>, vector<32x128xbf16>, vector<8x128xf32> -> vector<8x128xf32>
    %622 = arith.addf %620, %621 : vector<8x128xf32>
    %623 = arith.negf %622 : vector<8x128xf32>
    %624 = math.exp %623 : vector<8x128xf32>
    %cst_297 = arith.constant 1.000000e+00 : f32
    %625 = vector.broadcast %cst_297 : f32 to vector<8x128xf32>
    %626 = arith.addf %625, %624 : vector<8x128xf32>
    %627 = arith.divf %625, %626 : vector<8x128xf32>
    %628 = math.tanh %622 : vector<8x128xf32>
    %629 = arith.select %428, %627, %628 : vector<8x128xi1>, vector<8x128xf32>
    %630 = vector.extract_strided_slice %629 {offsets = [0, 0], sizes = [8, 32], strides = [1, 1]} : vector<8x128xf32> to vector<8x32xf32>
    %631 = vector.extract_strided_slice %629 {offsets = [0, 32], sizes = [8, 32], strides = [1, 1]} : vector<8x128xf32> to vector<8x32xf32>
    %632 = vector.extract_strided_slice %629 {offsets = [0, 64], sizes = [8, 32], strides = [1, 1]} : vector<8x128xf32> to vector<8x32xf32>
    %633 = vector.extract_strided_slice %629 {offsets = [0, 96], sizes = [8, 32], strides = [1, 1]} : vector<8x128xf32> to vector<8x32xf32>
    %634 = arith.mulf %631, %615 : vector<8x32xf32>
    %635 = arith.mulf %630, %633 : vector<8x32xf32>
    %636 = arith.addf %634, %635 : vector<8x32xf32>
    %637 = math.tanh %636 : vector<8x32xf32>
    %638 = arith.mulf %632, %637 : vector<8x32xf32>
    %c72_298 = arith.constant 72 : index
    %c0_299 = arith.constant 0 : index
    %639 = vector.load %arg22[%c72_298, %c0_299] : memref<128x32xf32, #tpu.memory_space<vmem>>, vector<8x32xf32>
    tpu.vector_store %arg22[%c72_298, %c0_299], %638 {strides = array<i32>} : memref<128x32xf32, #tpu.memory_space<vmem>>, vector<8x32xf32>,
    %640 = arith.truncf %638 : vector<8x32xf32> to vector<8x32xbf16>
    %c80_300 = arith.constant 80 : index
    %c0_301 = arith.constant 0 : index
    %641 = vector.load %arg21[%c80_300, %c0_301] : memref<128x128xf32, #tpu.memory_space<vmem>>, vector<8x128xf32>
    %cst_302 = arith.constant dense<0.000000e+00> : vector<8x128xf32>
    %642 = tpu.matmul %640, %417, %cst_302 {dimension_numbers = #tpu.dot_dimension_numbers<[1], [0], [0], [1], [0, 0, 1, 1], [], []>} : vector<8x32xbf16>, vector<32x128xbf16>, vector<8x128xf32> -> vector<8x128xf32>
    %643 = arith.addf %641, %642 : vector<8x128xf32>
    %644 = arith.negf %643 : vector<8x128xf32>
    %645 = math.exp %644 : vector<8x128xf32>
    %cst_303 = arith.constant 1.000000e+00 : f32
    %646 = vector.broadcast %cst_303 : f32 to vector<8x128xf32>
    %647 = arith.addf %646, %645 : vector<8x128xf32>
    %648 = arith.divf %646, %647 : vector<8x128xf32>
    %649 = math.tanh %643 : vector<8x128xf32>
    %650 = arith.select %428, %648, %649 : vector<8x128xi1>, vector<8x128xf32>
    %651 = vector.extract_strided_slice %650 {offsets = [0, 0], sizes = [8, 32], strides = [1, 1]} : vector<8x128xf32> to vector<8x32xf32>
    %652 = vector.extract_strided_slice %650 {offsets = [0, 32], sizes = [8, 32], strides = [1, 1]} : vector<8x128xf32> to vector<8x32xf32>
    %653 = vector.extract_strided_slice %650 {offsets = [0, 64], sizes = [8, 32], strides = [1, 1]} : vector<8x128xf32> to vector<8x32xf32>
    %654 = vector.extract_strided_slice %650 {offsets = [0, 96], sizes = [8, 32], strides = [1, 1]} : vector<8x128xf32> to vector<8x32xf32>
    %655 = arith.mulf %652, %636 : vector<8x32xf32>
    %656 = arith.mulf %651, %654 : vector<8x32xf32>
    %657 = arith.addf %655, %656 : vector<8x32xf32>
    %658 = math.tanh %657 : vector<8x32xf32>
    %659 = arith.mulf %653, %658 : vector<8x32xf32>
    %c80_304 = arith.constant 80 : index
    %c0_305 = arith.constant 0 : index
    %660 = vector.load %arg22[%c80_304, %c0_305] : memref<128x32xf32, #tpu.memory_space<vmem>>, vector<8x32xf32>
    tpu.vector_store %arg22[%c80_304, %c0_305], %659 {strides = array<i32>} : memref<128x32xf32, #tpu.memory_space<vmem>>, vector<8x32xf32>,
    %661 = arith.truncf %659 : vector<8x32xf32> to vector<8x32xbf16>
    %c88_306 = arith.constant 88 : index
    %c0_307 = arith.constant 0 : index
    %662 = vector.load %arg21[%c88_306, %c0_307] : memref<128x128xf32, #tpu.memory_space<vmem>>, vector<8x128xf32>
    %cst_308 = arith.constant dense<0.000000e+00> : vector<8x128xf32>
    %663 = tpu.matmul %661, %417, %cst_308 {dimension_numbers = #tpu.dot_dimension_numbers<[1], [0], [0], [1], [0, 0, 1, 1], [], []>} : vector<8x32xbf16>, vector<32x128xbf16>, vector<8x128xf32> -> vector<8x128xf32>
    %664 = arith.addf %662, %663 : vector<8x128xf32>
    %665 = arith.negf %664 : vector<8x128xf32>
    %666 = math.exp %665 : vector<8x128xf32>
    %cst_309 = arith.constant 1.000000e+00 : f32
    %667 = vector.broadcast %cst_309 : f32 to vector<8x128xf32>
    %668 = arith.addf %667, %666 : vector<8x128xf32>
    %669 = arith.divf %667, %668 : vector<8x128xf32>
    %670 = math.tanh %664 : vector<8x128xf32>
    %671 = arith.select %428, %669, %670 : vector<8x128xi1>, vector<8x128xf32>
    %672 = vector.extract_strided_slice %671 {offsets = [0, 0], sizes = [8, 32], strides = [1, 1]} : vector<8x128xf32> to vector<8x32xf32>
    %673 = vector.extract_strided_slice %671 {offsets = [0, 32], sizes = [8, 32], strides = [1, 1]} : vector<8x128xf32> to vector<8x32xf32>
    %674 = vector.extract_strided_slice %671 {offsets = [0, 64], sizes = [8, 32], strides = [1, 1]} : vector<8x128xf32> to vector<8x32xf32>
    %675 = vector.extract_strided_slice %671 {offsets = [0, 96], sizes = [8, 32], strides = [1, 1]} : vector<8x128xf32> to vector<8x32xf32>
    %676 = arith.mulf %673, %657 : vector<8x32xf32>
    %677 = arith.mulf %672, %675 : vector<8x32xf32>
    %678 = arith.addf %676, %677 : vector<8x32xf32>
    %679 = math.tanh %678 : vector<8x32xf32>
    %680 = arith.mulf %674, %679 : vector<8x32xf32>
    %c88_310 = arith.constant 88 : index
    %c0_311 = arith.constant 0 : index
    %681 = vector.load %arg22[%c88_310, %c0_311] : memref<128x32xf32, #tpu.memory_space<vmem>>, vector<8x32xf32>
    tpu.vector_store %arg22[%c88_310, %c0_311], %680 {strides = array<i32>} : memref<128x32xf32, #tpu.memory_space<vmem>>, vector<8x32xf32>,
    %682 = arith.truncf %680 : vector<8x32xf32> to vector<8x32xbf16>
    %c96_312 = arith.constant 96 : index
    %c0_313 = arith.constant 0 : index
    %683 = vector.load %arg21[%c96_312, %c0_313] : memref<128x128xf32, #tpu.memory_space<vmem>>, vector<8x128xf32>
    %cst_314 = arith.constant dense<0.000000e+00> : vector<8x128xf32>
    %684 = tpu.matmul %682, %417, %cst_314 {dimension_numbers = #tpu.dot_dimension_numbers<[1], [0], [0], [1], [0, 0, 1, 1], [], []>} : vector<8x32xbf16>, vector<32x128xbf16>, vector<8x128xf32> -> vector<8x128xf32>
    %685 = arith.addf %683, %684 : vector<8x128xf32>
    %686 = arith.negf %685 : vector<8x128xf32>
    %687 = math.exp %686 : vector<8x128xf32>
    %cst_315 = arith.constant 1.000000e+00 : f32
    %688 = vector.broadcast %cst_315 : f32 to vector<8x128xf32>
    %689 = arith.addf %688, %687 : vector<8x128xf32>
    %690 = arith.divf %688, %689 : vector<8x128xf32>
    %691 = math.tanh %685 : vector<8x128xf32>
    %692 = arith.select %428, %690, %691 : vector<8x128xi1>, vector<8x128xf32>
    %693 = vector.extract_strided_slice %692 {offsets = [0, 0], sizes = [8, 32], strides = [1, 1]} : vector<8x128xf32> to vector<8x32xf32>
    %694 = vector.extract_strided_slice %692 {offsets = [0, 32], sizes = [8, 32], strides = [1, 1]} : vector<8x128xf32> to vector<8x32xf32>
    %695 = vector.extract_strided_slice %692 {offsets = [0, 64], sizes = [8, 32], strides = [1, 1]} : vector<8x128xf32> to vector<8x32xf32>
    %696 = vector.extract_strided_slice %692 {offsets = [0, 96], sizes = [8, 32], strides = [1, 1]} : vector<8x128xf32> to vector<8x32xf32>
    %697 = arith.mulf %694, %678 : vector<8x32xf32>
    %698 = arith.mulf %693, %696 : vector<8x32xf32>
    %699 = arith.addf %697, %698 : vector<8x32xf32>
    %700 = math.tanh %699 : vector<8x32xf32>
    %701 = arith.mulf %695, %700 : vector<8x32xf32>
    %c96_316 = arith.constant 96 : index
    %c0_317 = arith.constant 0 : index
    %702 = vector.load %arg22[%c96_316, %c0_317] : memref<128x32xf32, #tpu.memory_space<vmem>>, vector<8x32xf32>
    tpu.vector_store %arg22[%c96_316, %c0_317], %701 {strides = array<i32>} : memref<128x32xf32, #tpu.memory_space<vmem>>, vector<8x32xf32>,
    %703 = arith.truncf %701 : vector<8x32xf32> to vector<8x32xbf16>
    %c104_318 = arith.constant 104 : index
    %c0_319 = arith.constant 0 : index
    %704 = vector.load %arg21[%c104_318, %c0_319] : memref<128x128xf32, #tpu.memory_space<vmem>>, vector<8x128xf32>
    %cst_320 = arith.constant dense<0.000000e+00> : vector<8x128xf32>
    %705 = tpu.matmul %703, %417, %cst_320 {dimension_numbers = #tpu.dot_dimension_numbers<[1], [0], [0], [1], [0, 0, 1, 1], [], []>} : vector<8x32xbf16>, vector<32x128xbf16>, vector<8x128xf32> -> vector<8x128xf32>
    %706 = arith.addf %704, %705 : vector<8x128xf32>
    %707 = arith.negf %706 : vector<8x128xf32>
    %708 = math.exp %707 : vector<8x128xf32>
    %cst_321 = arith.constant 1.000000e+00 : f32
    %709 = vector.broadcast %cst_321 : f32 to vector<8x128xf32>
    %710 = arith.addf %709, %708 : vector<8x128xf32>
    %711 = arith.divf %709, %710 : vector<8x128xf32>
    %712 = math.tanh %706 : vector<8x128xf32>
    %713 = arith.select %428, %711, %712 : vector<8x128xi1>, vector<8x128xf32>
    %714 = vector.extract_strided_slice %713 {offsets = [0, 0], sizes = [8, 32], strides = [1, 1]} : vector<8x128xf32> to vector<8x32xf32>
    %715 = vector.extract_strided_slice %713 {offsets = [0, 32], sizes = [8, 32], strides = [1, 1]} : vector<8x128xf32> to vector<8x32xf32>
    %716 = vector.extract_strided_slice %713 {offsets = [0, 64], sizes = [8, 32], strides = [1, 1]} : vector<8x128xf32> to vector<8x32xf32>
    %717 = vector.extract_strided_slice %713 {offsets = [0, 96], sizes = [8, 32], strides = [1, 1]} : vector<8x128xf32> to vector<8x32xf32>
    %718 = arith.mulf %715, %699 : vector<8x32xf32>
    %719 = arith.mulf %714, %717 : vector<8x32xf32>
    %720 = arith.addf %718, %719 : vector<8x32xf32>
    %721 = math.tanh %720 : vector<8x32xf32>
    %722 = arith.mulf %716, %721 : vector<8x32xf32>
    %c104_322 = arith.constant 104 : index
    %c0_323 = arith.constant 0 : index
    %723 = vector.load %arg22[%c104_322, %c0_323] : memref<128x32xf32, #tpu.memory_space<vmem>>, vector<8x32xf32>
    tpu.vector_store %arg22[%c104_322, %c0_323], %722 {strides = array<i32>} : memref<128x32xf32, #tpu.memory_space<vmem>>, vector<8x32xf32>,
    %724 = arith.truncf %722 : vector<8x32xf32> to vector<8x32xbf16>
    %c112_324 = arith.constant 112 : index
    %c0_325 = arith.constant 0 : index
    %725 = vector.load %arg21[%c112_324, %c0_325] : memref<128x128xf32, #tpu.memory_space<vmem>>, vector<8x128xf32>
    %cst_326 = arith.constant dense<0.000000e+00> : vector<8x128xf32>
    %726 = tpu.matmul %724, %417, %cst_326 {dimension_numbers = #tpu.dot_dimension_numbers<[1], [0], [0], [1], [0, 0, 1, 1], [], []>} : vector<8x32xbf16>, vector<32x128xbf16>, vector<8x128xf32> -> vector<8x128xf32>
    %727 = arith.addf %725, %726 : vector<8x128xf32>
    %728 = arith.negf %727 : vector<8x128xf32>
    %729 = math.exp %728 : vector<8x128xf32>
    %cst_327 = arith.constant 1.000000e+00 : f32
    %730 = vector.broadcast %cst_327 : f32 to vector<8x128xf32>
    %731 = arith.addf %730, %729 : vector<8x128xf32>
    %732 = arith.divf %730, %731 : vector<8x128xf32>
    %733 = math.tanh %727 : vector<8x128xf32>
    %734 = arith.select %428, %732, %733 : vector<8x128xi1>, vector<8x128xf32>
    %735 = vector.extract_strided_slice %734 {offsets = [0, 0], sizes = [8, 32], strides = [1, 1]} : vector<8x128xf32> to vector<8x32xf32>
    %736 = vector.extract_strided_slice %734 {offsets = [0, 32], sizes = [8, 32], strides = [1, 1]} : vector<8x128xf32> to vector<8x32xf32>
    %737 = vector.extract_strided_slice %734 {offsets = [0, 64], sizes = [8, 32], strides = [1, 1]} : vector<8x128xf32> to vector<8x32xf32>
    %738 = vector.extract_strided_slice %734 {offsets = [0, 96], sizes = [8, 32], strides = [1, 1]} : vector<8x128xf32> to vector<8x32xf32>
    %739 = arith.mulf %736, %720 : vector<8x32xf32>
    %740 = arith.mulf %735, %738 : vector<8x32xf32>
    %741 = arith.addf %739, %740 : vector<8x32xf32>
    %742 = math.tanh %741 : vector<8x32xf32>
    %743 = arith.mulf %737, %742 : vector<8x32xf32>
    %c112_328 = arith.constant 112 : index
    %c0_329 = arith.constant 0 : index
    %744 = vector.load %arg22[%c112_328, %c0_329] : memref<128x32xf32, #tpu.memory_space<vmem>>, vector<8x32xf32>
    tpu.vector_store %arg22[%c112_328, %c0_329], %743 {strides = array<i32>} : memref<128x32xf32, #tpu.memory_space<vmem>>, vector<8x32xf32>,
    %745 = arith.truncf %743 : vector<8x32xf32> to vector<8x32xbf16>
    %c120_330 = arith.constant 120 : index
    %c0_331 = arith.constant 0 : index
    %746 = vector.load %arg21[%c120_330, %c0_331] : memref<128x128xf32, #tpu.memory_space<vmem>>, vector<8x128xf32>
    %cst_332 = arith.constant dense<0.000000e+00> : vector<8x128xf32>
    %747 = tpu.matmul %745, %417, %cst_332 {dimension_numbers = #tpu.dot_dimension_numbers<[1], [0], [0], [1], [0, 0, 1, 1], [], []>} : vector<8x32xbf16>, vector<32x128xbf16>, vector<8x128xf32> -> vector<8x128xf32>
    %748 = arith.addf %746, %747 : vector<8x128xf32>
    %749 = arith.negf %748 : vector<8x128xf32>
    %750 = math.exp %749 : vector<8x128xf32>
    %cst_333 = arith.constant 1.000000e+00 : f32
    %751 = vector.broadcast %cst_333 : f32 to vector<8x128xf32>
    %752 = arith.addf %751, %750 : vector<8x128xf32>
    %753 = arith.divf %751, %752 : vector<8x128xf32>
    %754 = math.tanh %748 : vector<8x128xf32>
    %755 = arith.select %428, %753, %754 : vector<8x128xi1>, vector<8x128xf32>
    %756 = vector.extract_strided_slice %755 {offsets = [0, 0], sizes = [8, 32], strides = [1, 1]} : vector<8x128xf32> to vector<8x32xf32>
    %757 = vector.extract_strided_slice %755 {offsets = [0, 32], sizes = [8, 32], strides = [1, 1]} : vector<8x128xf32> to vector<8x32xf32>
    %758 = vector.extract_strided_slice %755 {offsets = [0, 64], sizes = [8, 32], strides = [1, 1]} : vector<8x128xf32> to vector<8x32xf32>
    %759 = vector.extract_strided_slice %755 {offsets = [0, 96], sizes = [8, 32], strides = [1, 1]} : vector<8x128xf32> to vector<8x32xf32>
    %760 = arith.mulf %757, %741 : vector<8x32xf32>
    %761 = arith.mulf %756, %759 : vector<8x32xf32>
    %762 = arith.addf %760, %761 : vector<8x32xf32>
    %763 = math.tanh %762 : vector<8x32xf32>
    %764 = arith.mulf %758, %763 : vector<8x32xf32>
    %c120_334 = arith.constant 120 : index
    %c0_335 = arith.constant 0 : index
    %765 = vector.load %arg22[%c120_334, %c0_335] : memref<128x32xf32, #tpu.memory_space<vmem>>, vector<8x32xf32>
    tpu.vector_store %arg22[%c120_334, %c0_335], %764 {strides = array<i32>} : memref<128x32xf32, #tpu.memory_space<vmem>>, vector<8x32xf32>,
    %c120_336 = arith.constant 120 : index
    %c0_337 = arith.constant 0 : index
    %766 = vector.load %arg22[%c120_336, %c0_337] : memref<128x32xf32, #tpu.memory_space<vmem>>, vector<8x32xf32>
    %c0_338 = arith.constant 0 : index
    %c0_339 = arith.constant 0 : index
    %767 = vector.load %arg23[%c0_338, %c0_339] : memref<128x32xf32, #tpu.memory_space<vmem>>, vector<8x32xf32>
    tpu.vector_store %arg23[%c0_338, %c0_339], %766 {strides = array<i32>} : memref<128x32xf32, #tpu.memory_space<vmem>>, vector<8x32xf32>,
    %c112_340 = arith.constant 112 : index
    %c0_341 = arith.constant 0 : index
    %768 = vector.load %arg22[%c112_340, %c0_341] : memref<128x32xf32, #tpu.memory_space<vmem>>, vector<8x32xf32>
    %c8_342 = arith.constant 8 : index
    %c0_343 = arith.constant 0 : index
    %769 = vector.load %arg23[%c8_342, %c0_343] : memref<128x32xf32, #tpu.memory_space<vmem>>, vector<8x32xf32>
    tpu.vector_store %arg23[%c8_342, %c0_343], %768 {strides = array<i32>} : memref<128x32xf32, #tpu.memory_space<vmem>>, vector<8x32xf32>,
    %c104_344 = arith.constant 104 : index
    %c0_345 = arith.constant 0 : index
    %770 = vector.load %arg22[%c104_344, %c0_345] : memref<128x32xf32, #tpu.memory_space<vmem>>, vector<8x32xf32>
    %c16_346 = arith.constant 16 : index
    %c0_347 = arith.constant 0 : index
    %771 = vector.load %arg23[%c16_346, %c0_347] : memref<128x32xf32, #tpu.memory_space<vmem>>, vector<8x32xf32>
    tpu.vector_store %arg23[%c16_346, %c0_347], %770 {strides = array<i32>} : memref<128x32xf32, #tpu.memory_space<vmem>>, vector<8x32xf32>,
    %c96_348 = arith.constant 96 : index
    %c0_349 = arith.constant 0 : index
    %772 = vector.load %arg22[%c96_348, %c0_349] : memref<128x32xf32, #tpu.memory_space<vmem>>, vector<8x32xf32>
    %c24_350 = arith.constant 24 : index
    %c0_351 = arith.constant 0 : index
    %773 = vector.load %arg23[%c24_350, %c0_351] : memref<128x32xf32, #tpu.memory_space<vmem>>, vector<8x32xf32>
    tpu.vector_store %arg23[%c24_350, %c0_351], %772 {strides = array<i32>} : memref<128x32xf32, #tpu.memory_space<vmem>>, vector<8x32xf32>,
    %c88_352 = arith.constant 88 : index
    %c0_353 = arith.constant 0 : index
    %774 = vector.load %arg22[%c88_352, %c0_353] : memref<128x32xf32, #tpu.memory_space<vmem>>, vector<8x32xf32>
    %c32_354 = arith.constant 32 : index
    %c0_355 = arith.constant 0 : index
    %775 = vector.load %arg23[%c32_354, %c0_355] : memref<128x32xf32, #tpu.memory_space<vmem>>, vector<8x32xf32>
    tpu.vector_store %arg23[%c32_354, %c0_355], %774 {strides = array<i32>} : memref<128x32xf32, #tpu.memory_space<vmem>>, vector<8x32xf32>,
    %c80_356 = arith.constant 80 : index
    %c0_357 = arith.constant 0 : index
    %776 = vector.load %arg22[%c80_356, %c0_357] : memref<128x32xf32, #tpu.memory_space<vmem>>, vector<8x32xf32>
    %c40_358 = arith.constant 40 : index
    %c0_359 = arith.constant 0 : index
    %777 = vector.load %arg23[%c40_358, %c0_359] : memref<128x32xf32, #tpu.memory_space<vmem>>, vector<8x32xf32>
    tpu.vector_store %arg23[%c40_358, %c0_359], %776 {strides = array<i32>} : memref<128x32xf32, #tpu.memory_space<vmem>>, vector<8x32xf32>,
    %c72_360 = arith.constant 72 : index
    %c0_361 = arith.constant 0 : index
    %778 = vector.load %arg22[%c72_360, %c0_361] : memref<128x32xf32, #tpu.memory_space<vmem>>, vector<8x32xf32>
    %c48_362 = arith.constant 48 : index
    %c0_363 = arith.constant 0 : index
    %779 = vector.load %arg23[%c48_362, %c0_363] : memref<128x32xf32, #tpu.memory_space<vmem>>, vector<8x32xf32>
    tpu.vector_store %arg23[%c48_362, %c0_363], %778 {strides = array<i32>} : memref<128x32xf32, #tpu.memory_space<vmem>>, vector<8x32xf32>,
    %c64_364 = arith.constant 64 : index
    %c0_365 = arith.constant 0 : index
    %780 = vector.load %arg22[%c64_364, %c0_365] : memref<128x32xf32, #tpu.memory_space<vmem>>, vector<8x32xf32>
    %c56_366 = arith.constant 56 : index
    %c0_367 = arith.constant 0 : index
    %781 = vector.load %arg23[%c56_366, %c0_367] : memref<128x32xf32, #tpu.memory_space<vmem>>, vector<8x32xf32>
    tpu.vector_store %arg23[%c56_366, %c0_367], %780 {strides = array<i32>} : memref<128x32xf32, #tpu.memory_space<vmem>>, vector<8x32xf32>,
    %c56_368 = arith.constant 56 : index
    %c0_369 = arith.constant 0 : index
    %782 = vector.load %arg22[%c56_368, %c0_369] : memref<128x32xf32, #tpu.memory_space<vmem>>, vector<8x32xf32>
    %c64_370 = arith.constant 64 : index
    %c0_371 = arith.constant 0 : index
    %783 = vector.load %arg23[%c64_370, %c0_371] : memref<128x32xf32, #tpu.memory_space<vmem>>, vector<8x32xf32>
    tpu.vector_store %arg23[%c64_370, %c0_371], %782 {strides = array<i32>} : memref<128x32xf32, #tpu.memory_space<vmem>>, vector<8x32xf32>,
    %c48_372 = arith.constant 48 : index
    %c0_373 = arith.constant 0 : index
    %784 = vector.load %arg22[%c48_372, %c0_373] : memref<128x32xf32, #tpu.memory_space<vmem>>, vector<8x32xf32>
    %c72_374 = arith.constant 72 : index
    %c0_375 = arith.constant 0 : index
    %785 = vector.load %arg23[%c72_374, %c0_375] : memref<128x32xf32, #tpu.memory_space<vmem>>, vector<8x32xf32>
    tpu.vector_store %arg23[%c72_374, %c0_375], %784 {strides = array<i32>} : memref<128x32xf32, #tpu.memory_space<vmem>>, vector<8x32xf32>,
    %c40_376 = arith.constant 40 : index
    %c0_377 = arith.constant 0 : index
    %786 = vector.load %arg22[%c40_376, %c0_377] : memref<128x32xf32, #tpu.memory_space<vmem>>, vector<8x32xf32>
    %c80_378 = arith.constant 80 : index
    %c0_379 = arith.constant 0 : index
    %787 = vector.load %arg23[%c80_378, %c0_379] : memref<128x32xf32, #tpu.memory_space<vmem>>, vector<8x32xf32>
    tpu.vector_store %arg23[%c80_378, %c0_379], %786 {strides = array<i32>} : memref<128x32xf32, #tpu.memory_space<vmem>>, vector<8x32xf32>,
    %c32_380 = arith.constant 32 : index
    %c0_381 = arith.constant 0 : index
    %788 = vector.load %arg22[%c32_380, %c0_381] : memref<128x32xf32, #tpu.memory_space<vmem>>, vector<8x32xf32>
    %c88_382 = arith.constant 88 : index
    %c0_383 = arith.constant 0 : index
    %789 = vector.load %arg23[%c88_382, %c0_383] : memref<128x32xf32, #tpu.memory_space<vmem>>, vector<8x32xf32>
    tpu.vector_store %arg23[%c88_382, %c0_383], %788 {strides = array<i32>} : memref<128x32xf32, #tpu.memory_space<vmem>>, vector<8x32xf32>,
    %c24_384 = arith.constant 24 : index
    %c0_385 = arith.constant 0 : index
    %790 = vector.load %arg22[%c24_384, %c0_385] : memref<128x32xf32, #tpu.memory_space<vmem>>, vector<8x32xf32>
    %c96_386 = arith.constant 96 : index
    %c0_387 = arith.constant 0 : index
    %791 = vector.load %arg23[%c96_386, %c0_387] : memref<128x32xf32, #tpu.memory_space<vmem>>, vector<8x32xf32>
    tpu.vector_store %arg23[%c96_386, %c0_387], %790 {strides = array<i32>} : memref<128x32xf32, #tpu.memory_space<vmem>>, vector<8x32xf32>,
    %c16_388 = arith.constant 16 : index
    %c0_389 = arith.constant 0 : index
    %792 = vector.load %arg22[%c16_388, %c0_389] : memref<128x32xf32, #tpu.memory_space<vmem>>, vector<8x32xf32>
    %c104_390 = arith.constant 104 : index
    %c0_391 = arith.constant 0 : index
    %793 = vector.load %arg23[%c104_390, %c0_391] : memref<128x32xf32, #tpu.memory_space<vmem>>, vector<8x32xf32>
    tpu.vector_store %arg23[%c104_390, %c0_391], %792 {strides = array<i32>} : memref<128x32xf32, #tpu.memory_space<vmem>>, vector<8x32xf32>,
    %c8_392 = arith.constant 8 : index
    %c0_393 = arith.constant 0 : index
    %794 = vector.load %arg22[%c8_392, %c0_393] : memref<128x32xf32, #tpu.memory_space<vmem>>, vector<8x32xf32>
    %c112_394 = arith.constant 112 : index
    %c0_395 = arith.constant 0 : index
    %795 = vector.load %arg23[%c112_394, %c0_395] : memref<128x32xf32, #tpu.memory_space<vmem>>, vector<8x32xf32>
    tpu.vector_store %arg23[%c112_394, %c0_395], %794 {strides = array<i32>} : memref<128x32xf32, #tpu.memory_space<vmem>>, vector<8x32xf32>,
    %c0_396 = arith.constant 0 : index
    %c0_397 = arith.constant 0 : index
    %796 = vector.load %arg22[%c0_396, %c0_397] : memref<128x32xf32, #tpu.memory_space<vmem>>, vector<8x32xf32>
    %c120_398 = arith.constant 120 : index
    %c0_399 = arith.constant 0 : index
    %797 = vector.load %arg23[%c120_398, %c0_399] : memref<128x32xf32, #tpu.memory_space<vmem>>, vector<8x32xf32>
    tpu.vector_store %arg23[%c120_398, %c0_399], %796 {strides = array<i32>} : memref<128x32xf32, #tpu.memory_space<vmem>>, vector<8x32xf32>,
    %c0_400 = arith.constant 0 : index
    %c0_401 = arith.constant 0 : index
    %798 = vector.load %arg7[%c0_400, %c0_401] : memref<32x128xbf16, #tpu.memory_space<vmem>>, vector<32x128xbf16>
    %c0_402 = arith.constant 0 : index
    %c0_403 = arith.constant 0 : index
    %799 = vector.load %arg8[%c0_402, %c0_403] : memref<32x128xbf16, #tpu.memory_space<vmem>>, vector<32x128xbf16>
    %c0_404 = arith.constant 0 : index
    %c0_405 = arith.constant 0 : index
    %800 = vector.load %arg9[%c0_404, %c0_405] : memref<32x128xbf16, #tpu.memory_space<vmem>>, vector<32x128xbf16>
    %c0_406 = arith.constant 0 : index
    %c0_407 = arith.constant 0 : index
    %801 = vector.load %arg22[%c0_406, %c0_407] : memref<128x32xf32, #tpu.memory_space<vmem>>, vector<128x32xf32>
    %802 = arith.truncf %801 : vector<128x32xf32> to vector<128x32xbf16>
    %cst_408 = arith.constant dense<0.000000e+00> : vector<128x128xf32>
    %803 = tpu.matmul %802, %798, %cst_408 {dimension_numbers = #tpu.dot_dimension_numbers<[1], [0], [0], [1], [0, 0, 1, 1], [], []>} : vector<128x32xbf16>, vector<32x128xbf16>, vector<128x128xf32> -> vector<128x128xf32>
    %c0_409 = arith.constant 0 : index
    %c0_410 = arith.constant 0 : index
    %804 = vector.load %arg23[%c0_409, %c0_410] : memref<128x32xf32, #tpu.memory_space<vmem>>, vector<128x32xf32>
    %805 = arith.truncf %804 : vector<128x32xf32> to vector<128x32xbf16>
    %cst_411 = arith.constant dense<0.000000e+00> : vector<128x128xf32>
    %806 = tpu.matmul %805, %799, %cst_411 {dimension_numbers = #tpu.dot_dimension_numbers<[1], [0], [0], [1], [0, 0, 1, 1], [], []>} : vector<128x32xbf16>, vector<32x128xbf16>, vector<128x128xf32> -> vector<128x128xf32>
    %807 = arith.addf %803, %806 : vector<128x128xf32>
    %c0_412 = arith.constant 0 : index
    %c0_413 = arith.constant 0 : index
    %808 = vector.load %arg24[%c0_412, %c0_413] : memref<128x128xf32, #tpu.memory_space<vmem>>, vector<128x128xf32>
    tpu.vector_store %arg24[%c0_412, %c0_413], %807 {strides = array<i32>} : memref<128x128xf32, #tpu.memory_space<vmem>>, vector<128x128xf32>,
    %809 = tpu.iota {dimensions = array<i32: 1>} : vector<8x128xi32>
    %c96_i32_414 = arith.constant 96 : i32
    %810 = vector.broadcast %c96_i32_414 : i32 to vector<8x128xi32>
    %811 = arith.cmpi slt, %809, %810 : vector<8x128xi32>
    %cst_415 = arith.constant 0.000000e+00 : bf16
    %812 = vector.broadcast %cst_415 : bf16 to vector<8x32xbf16>
    %cst_416 = arith.constant 0.000000e+00 : f32
    %813 = vector.broadcast %cst_416 : f32 to vector<8x32xf32>
    %c0_417 = arith.constant 0 : index
    %c0_418 = arith.constant 0 : index
    %814 = vector.load %arg24[%c0_417, %c0_418] : memref<128x128xf32, #tpu.memory_space<vmem>>, vector<8x128xf32>
    %cst_419 = arith.constant dense<0.000000e+00> : vector<8x128xf32>
    %815 = tpu.matmul %812, %800, %cst_419 {dimension_numbers = #tpu.dot_dimension_numbers<[1], [0], [0], [1], [0, 0, 1, 1], [], []>} : vector<8x32xbf16>, vector<32x128xbf16>, vector<8x128xf32> -> vector<8x128xf32>
    %816 = arith.addf %814, %815 : vector<8x128xf32>
    %817 = arith.negf %816 : vector<8x128xf32>
    %818 = math.exp %817 : vector<8x128xf32>
    %cst_420 = arith.constant 1.000000e+00 : f32
    %819 = vector.broadcast %cst_420 : f32 to vector<8x128xf32>
    %820 = arith.addf %819, %818 : vector<8x128xf32>
    %821 = arith.divf %819, %820 : vector<8x128xf32>
    %822 = math.tanh %816 : vector<8x128xf32>
    %823 = arith.select %811, %821, %822 : vector<8x128xi1>, vector<8x128xf32>
    %824 = vector.extract_strided_slice %823 {offsets = [0, 0], sizes = [8, 32], strides = [1, 1]} : vector<8x128xf32> to vector<8x32xf32>
    %825 = vector.extract_strided_slice %823 {offsets = [0, 32], sizes = [8, 32], strides = [1, 1]} : vector<8x128xf32> to vector<8x32xf32>
    %826 = vector.extract_strided_slice %823 {offsets = [0, 64], sizes = [8, 32], strides = [1, 1]} : vector<8x128xf32> to vector<8x32xf32>
    %827 = vector.extract_strided_slice %823 {offsets = [0, 96], sizes = [8, 32], strides = [1, 1]} : vector<8x128xf32> to vector<8x32xf32>
    %828 = arith.mulf %825, %813 : vector<8x32xf32>
    %829 = arith.mulf %824, %827 : vector<8x32xf32>
    %830 = arith.addf %828, %829 : vector<8x32xf32>
    %831 = math.tanh %830 : vector<8x32xf32>
    %832 = arith.mulf %826, %831 : vector<8x32xf32>
    %c0_421 = arith.constant 0 : index
    %c0_422 = arith.constant 0 : index
    %833 = vector.load %arg25[%c0_421, %c0_422] : memref<128x32xf32, #tpu.memory_space<vmem>>, vector<8x32xf32>
    tpu.vector_store %arg25[%c0_421, %c0_422], %832 {strides = array<i32>} : memref<128x32xf32, #tpu.memory_space<vmem>>, vector<8x32xf32>,
    %834 = arith.truncf %832 : vector<8x32xf32> to vector<8x32xbf16>
    %c8_423 = arith.constant 8 : index
    %c0_424 = arith.constant 0 : index
    %835 = vector.load %arg24[%c8_423, %c0_424] : memref<128x128xf32, #tpu.memory_space<vmem>>, vector<8x128xf32>
    %cst_425 = arith.constant dense<0.000000e+00> : vector<8x128xf32>
    %836 = tpu.matmul %834, %800, %cst_425 {dimension_numbers = #tpu.dot_dimension_numbers<[1], [0], [0], [1], [0, 0, 1, 1], [], []>} : vector<8x32xbf16>, vector<32x128xbf16>, vector<8x128xf32> -> vector<8x128xf32>
    %837 = arith.addf %835, %836 : vector<8x128xf32>
    %838 = arith.negf %837 : vector<8x128xf32>
    %839 = math.exp %838 : vector<8x128xf32>
    %cst_426 = arith.constant 1.000000e+00 : f32
    %840 = vector.broadcast %cst_426 : f32 to vector<8x128xf32>
    %841 = arith.addf %840, %839 : vector<8x128xf32>
    %842 = arith.divf %840, %841 : vector<8x128xf32>
    %843 = math.tanh %837 : vector<8x128xf32>
    %844 = arith.select %811, %842, %843 : vector<8x128xi1>, vector<8x128xf32>
    %845 = vector.extract_strided_slice %844 {offsets = [0, 0], sizes = [8, 32], strides = [1, 1]} : vector<8x128xf32> to vector<8x32xf32>
    %846 = vector.extract_strided_slice %844 {offsets = [0, 32], sizes = [8, 32], strides = [1, 1]} : vector<8x128xf32> to vector<8x32xf32>
    %847 = vector.extract_strided_slice %844 {offsets = [0, 64], sizes = [8, 32], strides = [1, 1]} : vector<8x128xf32> to vector<8x32xf32>
    %848 = vector.extract_strided_slice %844 {offsets = [0, 96], sizes = [8, 32], strides = [1, 1]} : vector<8x128xf32> to vector<8x32xf32>
    %849 = arith.mulf %846, %830 : vector<8x32xf32>
    %850 = arith.mulf %845, %848 : vector<8x32xf32>
    %851 = arith.addf %849, %850 : vector<8x32xf32>
    %852 = math.tanh %851 : vector<8x32xf32>
    %853 = arith.mulf %847, %852 : vector<8x32xf32>
    %c8_427 = arith.constant 8 : index
    %c0_428 = arith.constant 0 : index
    %854 = vector.load %arg25[%c8_427, %c0_428] : memref<128x32xf32, #tpu.memory_space<vmem>>, vector<8x32xf32>
    tpu.vector_store %arg25[%c8_427, %c0_428], %853 {strides = array<i32>} : memref<128x32xf32, #tpu.memory_space<vmem>>, vector<8x32xf32>,
    %855 = arith.truncf %853 : vector<8x32xf32> to vector<8x32xbf16>
    %c16_429 = arith.constant 16 : index
    %c0_430 = arith.constant 0 : index
    %856 = vector.load %arg24[%c16_429, %c0_430] : memref<128x128xf32, #tpu.memory_space<vmem>>, vector<8x128xf32>
    %cst_431 = arith.constant dense<0.000000e+00> : vector<8x128xf32>
    %857 = tpu.matmul %855, %800, %cst_431 {dimension_numbers = #tpu.dot_dimension_numbers<[1], [0], [0], [1], [0, 0, 1, 1], [], []>} : vector<8x32xbf16>, vector<32x128xbf16>, vector<8x128xf32> -> vector<8x128xf32>
    %858 = arith.addf %856, %857 : vector<8x128xf32>
    %859 = arith.negf %858 : vector<8x128xf32>
    %860 = math.exp %859 : vector<8x128xf32>
    %cst_432 = arith.constant 1.000000e+00 : f32
    %861 = vector.broadcast %cst_432 : f32 to vector<8x128xf32>
    %862 = arith.addf %861, %860 : vector<8x128xf32>
    %863 = arith.divf %861, %862 : vector<8x128xf32>
    %864 = math.tanh %858 : vector<8x128xf32>
    %865 = arith.select %811, %863, %864 : vector<8x128xi1>, vector<8x128xf32>
    %866 = vector.extract_strided_slice %865 {offsets = [0, 0], sizes = [8, 32], strides = [1, 1]} : vector<8x128xf32> to vector<8x32xf32>
    %867 = vector.extract_strided_slice %865 {offsets = [0, 32], sizes = [8, 32], strides = [1, 1]} : vector<8x128xf32> to vector<8x32xf32>
    %868 = vector.extract_strided_slice %865 {offsets = [0, 64], sizes = [8, 32], strides = [1, 1]} : vector<8x128xf32> to vector<8x32xf32>
    %869 = vector.extract_strided_slice %865 {offsets = [0, 96], sizes = [8, 32], strides = [1, 1]} : vector<8x128xf32> to vector<8x32xf32>
    %870 = arith.mulf %867, %851 : vector<8x32xf32>
    %871 = arith.mulf %866, %869 : vector<8x32xf32>
    %872 = arith.addf %870, %871 : vector<8x32xf32>
    %873 = math.tanh %872 : vector<8x32xf32>
    %874 = arith.mulf %868, %873 : vector<8x32xf32>
    %c16_433 = arith.constant 16 : index
    %c0_434 = arith.constant 0 : index
    %875 = vector.load %arg25[%c16_433, %c0_434] : memref<128x32xf32, #tpu.memory_space<vmem>>, vector<8x32xf32>
    tpu.vector_store %arg25[%c16_433, %c0_434], %874 {strides = array<i32>} : memref<128x32xf32, #tpu.memory_space<vmem>>, vector<8x32xf32>,
    %876 = arith.truncf %874 : vector<8x32xf32> to vector<8x32xbf16>
    %c24_435 = arith.constant 24 : index
    %c0_436 = arith.constant 0 : index
    %877 = vector.load %arg24[%c24_435, %c0_436] : memref<128x128xf32, #tpu.memory_space<vmem>>, vector<8x128xf32>
    %cst_437 = arith.constant dense<0.000000e+00> : vector<8x128xf32>
    %878 = tpu.matmul %876, %800, %cst_437 {dimension_numbers = #tpu.dot_dimension_numbers<[1], [0], [0], [1], [0, 0, 1, 1], [], []>} : vector<8x32xbf16>, vector<32x128xbf16>, vector<8x128xf32> -> vector<8x128xf32>
    %879 = arith.addf %877, %878 : vector<8x128xf32>
    %880 = arith.negf %879 : vector<8x128xf32>
    %881 = math.exp %880 : vector<8x128xf32>
    %cst_438 = arith.constant 1.000000e+00 : f32
    %882 = vector.broadcast %cst_438 : f32 to vector<8x128xf32>
    %883 = arith.addf %882, %881 : vector<8x128xf32>
    %884 = arith.divf %882, %883 : vector<8x128xf32>
    %885 = math.tanh %879 : vector<8x128xf32>
    %886 = arith.select %811, %884, %885 : vector<8x128xi1>, vector<8x128xf32>
    %887 = vector.extract_strided_slice %886 {offsets = [0, 0], sizes = [8, 32], strides = [1, 1]} : vector<8x128xf32> to vector<8x32xf32>
    %888 = vector.extract_strided_slice %886 {offsets = [0, 32], sizes = [8, 32], strides = [1, 1]} : vector<8x128xf32> to vector<8x32xf32>
    %889 = vector.extract_strided_slice %886 {offsets = [0, 64], sizes = [8, 32], strides = [1, 1]} : vector<8x128xf32> to vector<8x32xf32>
    %890 = vector.extract_strided_slice %886 {offsets = [0, 96], sizes = [8, 32], strides = [1, 1]} : vector<8x128xf32> to vector<8x32xf32>
    %891 = arith.mulf %888, %872 : vector<8x32xf32>
    %892 = arith.mulf %887, %890 : vector<8x32xf32>
    %893 = arith.addf %891, %892 : vector<8x32xf32>
    %894 = math.tanh %893 : vector<8x32xf32>
    %895 = arith.mulf %889, %894 : vector<8x32xf32>
    %c24_439 = arith.constant 24 : index
    %c0_440 = arith.constant 0 : index
    %896 = vector.load %arg25[%c24_439, %c0_440] : memref<128x32xf32, #tpu.memory_space<vmem>>, vector<8x32xf32>
    tpu.vector_store %arg25[%c24_439, %c0_440], %895 {strides = array<i32>} : memref<128x32xf32, #tpu.memory_space<vmem>>, vector<8x32xf32>,
    %897 = arith.truncf %895 : vector<8x32xf32> to vector<8x32xbf16>
    %c32_441 = arith.constant 32 : index
    %c0_442 = arith.constant 0 : index
    %898 = vector.load %arg24[%c32_441, %c0_442] : memref<128x128xf32, #tpu.memory_space<vmem>>, vector<8x128xf32>
    %cst_443 = arith.constant dense<0.000000e+00> : vector<8x128xf32>
    %899 = tpu.matmul %897, %800, %cst_443 {dimension_numbers = #tpu.dot_dimension_numbers<[1], [0], [0], [1], [0, 0, 1, 1], [], []>} : vector<8x32xbf16>, vector<32x128xbf16>, vector<8x128xf32> -> vector<8x128xf32>
    %900 = arith.addf %898, %899 : vector<8x128xf32>
    %901 = arith.negf %900 : vector<8x128xf32>
    %902 = math.exp %901 : vector<8x128xf32>
    %cst_444 = arith.constant 1.000000e+00 : f32
    %903 = vector.broadcast %cst_444 : f32 to vector<8x128xf32>
    %904 = arith.addf %903, %902 : vector<8x128xf32>
    %905 = arith.divf %903, %904 : vector<8x128xf32>
    %906 = math.tanh %900 : vector<8x128xf32>
    %907 = arith.select %811, %905, %906 : vector<8x128xi1>, vector<8x128xf32>
    %908 = vector.extract_strided_slice %907 {offsets = [0, 0], sizes = [8, 32], strides = [1, 1]} : vector<8x128xf32> to vector<8x32xf32>
    %909 = vector.extract_strided_slice %907 {offsets = [0, 32], sizes = [8, 32], strides = [1, 1]} : vector<8x128xf32> to vector<8x32xf32>
    %910 = vector.extract_strided_slice %907 {offsets = [0, 64], sizes = [8, 32], strides = [1, 1]} : vector<8x128xf32> to vector<8x32xf32>
    %911 = vector.extract_strided_slice %907 {offsets = [0, 96], sizes = [8, 32], strides = [1, 1]} : vector<8x128xf32> to vector<8x32xf32>
    %912 = arith.mulf %909, %893 : vector<8x32xf32>
    %913 = arith.mulf %908, %911 : vector<8x32xf32>
    %914 = arith.addf %912, %913 : vector<8x32xf32>
    %915 = math.tanh %914 : vector<8x32xf32>
    %916 = arith.mulf %910, %915 : vector<8x32xf32>
    %c32_445 = arith.constant 32 : index
    %c0_446 = arith.constant 0 : index
    %917 = vector.load %arg25[%c32_445, %c0_446] : memref<128x32xf32, #tpu.memory_space<vmem>>, vector<8x32xf32>
    tpu.vector_store %arg25[%c32_445, %c0_446], %916 {strides = array<i32>} : memref<128x32xf32, #tpu.memory_space<vmem>>, vector<8x32xf32>,
    %918 = arith.truncf %916 : vector<8x32xf32> to vector<8x32xbf16>
    %c40_447 = arith.constant 40 : index
    %c0_448 = arith.constant 0 : index
    %919 = vector.load %arg24[%c40_447, %c0_448] : memref<128x128xf32, #tpu.memory_space<vmem>>, vector<8x128xf32>
    %cst_449 = arith.constant dense<0.000000e+00> : vector<8x128xf32>
    %920 = tpu.matmul %918, %800, %cst_449 {dimension_numbers = #tpu.dot_dimension_numbers<[1], [0], [0], [1], [0, 0, 1, 1], [], []>} : vector<8x32xbf16>, vector<32x128xbf16>, vector<8x128xf32> -> vector<8x128xf32>
    %921 = arith.addf %919, %920 : vector<8x128xf32>
    %922 = arith.negf %921 : vector<8x128xf32>
    %923 = math.exp %922 : vector<8x128xf32>
    %cst_450 = arith.constant 1.000000e+00 : f32
    %924 = vector.broadcast %cst_450 : f32 to vector<8x128xf32>
    %925 = arith.addf %924, %923 : vector<8x128xf32>
    %926 = arith.divf %924, %925 : vector<8x128xf32>
    %927 = math.tanh %921 : vector<8x128xf32>
    %928 = arith.select %811, %926, %927 : vector<8x128xi1>, vector<8x128xf32>
    %929 = vector.extract_strided_slice %928 {offsets = [0, 0], sizes = [8, 32], strides = [1, 1]} : vector<8x128xf32> to vector<8x32xf32>
    %930 = vector.extract_strided_slice %928 {offsets = [0, 32], sizes = [8, 32], strides = [1, 1]} : vector<8x128xf32> to vector<8x32xf32>
    %931 = vector.extract_strided_slice %928 {offsets = [0, 64], sizes = [8, 32], strides = [1, 1]} : vector<8x128xf32> to vector<8x32xf32>
    %932 = vector.extract_strided_slice %928 {offsets = [0, 96], sizes = [8, 32], strides = [1, 1]} : vector<8x128xf32> to vector<8x32xf32>
    %933 = arith.mulf %930, %914 : vector<8x32xf32>
    %934 = arith.mulf %929, %932 : vector<8x32xf32>
    %935 = arith.addf %933, %934 : vector<8x32xf32>
    %936 = math.tanh %935 : vector<8x32xf32>
    %937 = arith.mulf %931, %936 : vector<8x32xf32>
    %c40_451 = arith.constant 40 : index
    %c0_452 = arith.constant 0 : index
    %938 = vector.load %arg25[%c40_451, %c0_452] : memref<128x32xf32, #tpu.memory_space<vmem>>, vector<8x32xf32>
    tpu.vector_store %arg25[%c40_451, %c0_452], %937 {strides = array<i32>} : memref<128x32xf32, #tpu.memory_space<vmem>>, vector<8x32xf32>,
    %939 = arith.truncf %937 : vector<8x32xf32> to vector<8x32xbf16>
    %c48_453 = arith.constant 48 : index
    %c0_454 = arith.constant 0 : index
    %940 = vector.load %arg24[%c48_453, %c0_454] : memref<128x128xf32, #tpu.memory_space<vmem>>, vector<8x128xf32>
    %cst_455 = arith.constant dense<0.000000e+00> : vector<8x128xf32>
    %941 = tpu.matmul %939, %800, %cst_455 {dimension_numbers = #tpu.dot_dimension_numbers<[1], [0], [0], [1], [0, 0, 1, 1], [], []>} : vector<8x32xbf16>, vector<32x128xbf16>, vector<8x128xf32> -> vector<8x128xf32>
    %942 = arith.addf %940, %941 : vector<8x128xf32>
    %943 = arith.negf %942 : vector<8x128xf32>
    %944 = math.exp %943 : vector<8x128xf32>
    %cst_456 = arith.constant 1.000000e+00 : f32
    %945 = vector.broadcast %cst_456 : f32 to vector<8x128xf32>
    %946 = arith.addf %945, %944 : vector<8x128xf32>
    %947 = arith.divf %945, %946 : vector<8x128xf32>
    %948 = math.tanh %942 : vector<8x128xf32>
    %949 = arith.select %811, %947, %948 : vector<8x128xi1>, vector<8x128xf32>
    %950 = vector.extract_strided_slice %949 {offsets = [0, 0], sizes = [8, 32], strides = [1, 1]} : vector<8x128xf32> to vector<8x32xf32>
    %951 = vector.extract_strided_slice %949 {offsets = [0, 32], sizes = [8, 32], strides = [1, 1]} : vector<8x128xf32> to vector<8x32xf32>
    %952 = vector.extract_strided_slice %949 {offsets = [0, 64], sizes = [8, 32], strides = [1, 1]} : vector<8x128xf32> to vector<8x32xf32>
    %953 = vector.extract_strided_slice %949 {offsets = [0, 96], sizes = [8, 32], strides = [1, 1]} : vector<8x128xf32> to vector<8x32xf32>
    %954 = arith.mulf %951, %935 : vector<8x32xf32>
    %955 = arith.mulf %950, %953 : vector<8x32xf32>
    %956 = arith.addf %954, %955 : vector<8x32xf32>
    %957 = math.tanh %956 : vector<8x32xf32>
    %958 = arith.mulf %952, %957 : vector<8x32xf32>
    %c48_457 = arith.constant 48 : index
    %c0_458 = arith.constant 0 : index
    %959 = vector.load %arg25[%c48_457, %c0_458] : memref<128x32xf32, #tpu.memory_space<vmem>>, vector<8x32xf32>
    tpu.vector_store %arg25[%c48_457, %c0_458], %958 {strides = array<i32>} : memref<128x32xf32, #tpu.memory_space<vmem>>, vector<8x32xf32>,
    %960 = arith.truncf %958 : vector<8x32xf32> to vector<8x32xbf16>
    %c56_459 = arith.constant 56 : index
    %c0_460 = arith.constant 0 : index
    %961 = vector.load %arg24[%c56_459, %c0_460] : memref<128x128xf32, #tpu.memory_space<vmem>>, vector<8x128xf32>
    %cst_461 = arith.constant dense<0.000000e+00> : vector<8x128xf32>
    %962 = tpu.matmul %960, %800, %cst_461 {dimension_numbers = #tpu.dot_dimension_numbers<[1], [0], [0], [1], [0, 0, 1, 1], [], []>} : vector<8x32xbf16>, vector<32x128xbf16>, vector<8x128xf32> -> vector<8x128xf32>
    %963 = arith.addf %961, %962 : vector<8x128xf32>
    %964 = arith.negf %963 : vector<8x128xf32>
    %965 = math.exp %964 : vector<8x128xf32>
    %cst_462 = arith.constant 1.000000e+00 : f32
    %966 = vector.broadcast %cst_462 : f32 to vector<8x128xf32>
    %967 = arith.addf %966, %965 : vector<8x128xf32>
    %968 = arith.divf %966, %967 : vector<8x128xf32>
    %969 = math.tanh %963 : vector<8x128xf32>
    %970 = arith.select %811, %968, %969 : vector<8x128xi1>, vector<8x128xf32>
    %971 = vector.extract_strided_slice %970 {offsets = [0, 0], sizes = [8, 32], strides = [1, 1]} : vector<8x128xf32> to vector<8x32xf32>
    %972 = vector.extract_strided_slice %970 {offsets = [0, 32], sizes = [8, 32], strides = [1, 1]} : vector<8x128xf32> to vector<8x32xf32>
    %973 = vector.extract_strided_slice %970 {offsets = [0, 64], sizes = [8, 32], strides = [1, 1]} : vector<8x128xf32> to vector<8x32xf32>
    %974 = vector.extract_strided_slice %970 {offsets = [0, 96], sizes = [8, 32], strides = [1, 1]} : vector<8x128xf32> to vector<8x32xf32>
    %975 = arith.mulf %972, %956 : vector<8x32xf32>
    %976 = arith.mulf %971, %974 : vector<8x32xf32>
    %977 = arith.addf %975, %976 : vector<8x32xf32>
    %978 = math.tanh %977 : vector<8x32xf32>
    %979 = arith.mulf %973, %978 : vector<8x32xf32>
    %c56_463 = arith.constant 56 : index
    %c0_464 = arith.constant 0 : index
    %980 = vector.load %arg25[%c56_463, %c0_464] : memref<128x32xf32, #tpu.memory_space<vmem>>, vector<8x32xf32>
    tpu.vector_store %arg25[%c56_463, %c0_464], %979 {strides = array<i32>} : memref<128x32xf32, #tpu.memory_space<vmem>>, vector<8x32xf32>,
    %981 = arith.truncf %979 : vector<8x32xf32> to vector<8x32xbf16>
    %c64_465 = arith.constant 64 : index
    %c0_466 = arith.constant 0 : index
    %982 = vector.load %arg24[%c64_465, %c0_466] : memref<128x128xf32, #tpu.memory_space<vmem>>, vector<8x128xf32>
    %cst_467 = arith.constant dense<0.000000e+00> : vector<8x128xf32>
    %983 = tpu.matmul %981, %800, %cst_467 {dimension_numbers = #tpu.dot_dimension_numbers<[1], [0], [0], [1], [0, 0, 1, 1], [], []>} : vector<8x32xbf16>, vector<32x128xbf16>, vector<8x128xf32> -> vector<8x128xf32>
    %984 = arith.addf %982, %983 : vector<8x128xf32>
    %985 = arith.negf %984 : vector<8x128xf32>
    %986 = math.exp %985 : vector<8x128xf32>
    %cst_468 = arith.constant 1.000000e+00 : f32
    %987 = vector.broadcast %cst_468 : f32 to vector<8x128xf32>
    %988 = arith.addf %987, %986 : vector<8x128xf32>
    %989 = arith.divf %987, %988 : vector<8x128xf32>
    %990 = math.tanh %984 : vector<8x128xf32>
    %991 = arith.select %811, %989, %990 : vector<8x128xi1>, vector<8x128xf32>
    %992 = vector.extract_strided_slice %991 {offsets = [0, 0], sizes = [8, 32], strides = [1, 1]} : vector<8x128xf32> to vector<8x32xf32>
    %993 = vector.extract_strided_slice %991 {offsets = [0, 32], sizes = [8, 32], strides = [1, 1]} : vector<8x128xf32> to vector<8x32xf32>
    %994 = vector.extract_strided_slice %991 {offsets = [0, 64], sizes = [8, 32], strides = [1, 1]} : vector<8x128xf32> to vector<8x32xf32>
    %995 = vector.extract_strided_slice %991 {offsets = [0, 96], sizes = [8, 32], strides = [1, 1]} : vector<8x128xf32> to vector<8x32xf32>
    %996 = arith.mulf %993, %977 : vector<8x32xf32>
    %997 = arith.mulf %992, %995 : vector<8x32xf32>
    %998 = arith.addf %996, %997 : vector<8x32xf32>
    %999 = math.tanh %998 : vector<8x32xf32>
    %1000 = arith.mulf %994, %999 : vector<8x32xf32>
    %c64_469 = arith.constant 64 : index
    %c0_470 = arith.constant 0 : index
    %1001 = vector.load %arg25[%c64_469, %c0_470] : memref<128x32xf32, #tpu.memory_space<vmem>>, vector<8x32xf32>
    tpu.vector_store %arg25[%c64_469, %c0_470], %1000 {strides = array<i32>} : memref<128x32xf32, #tpu.memory_space<vmem>>, vector<8x32xf32>,
    %1002 = arith.truncf %1000 : vector<8x32xf32> to vector<8x32xbf16>
    %c72_471 = arith.constant 72 : index
    %c0_472 = arith.constant 0 : index
    %1003 = vector.load %arg24[%c72_471, %c0_472] : memref<128x128xf32, #tpu.memory_space<vmem>>, vector<8x128xf32>
    %cst_473 = arith.constant dense<0.000000e+00> : vector<8x128xf32>
    %1004 = tpu.matmul %1002, %800, %cst_473 {dimension_numbers = #tpu.dot_dimension_numbers<[1], [0], [0], [1], [0, 0, 1, 1], [], []>} : vector<8x32xbf16>, vector<32x128xbf16>, vector<8x128xf32> -> vector<8x128xf32>
    %1005 = arith.addf %1003, %1004 : vector<8x128xf32>
    %1006 = arith.negf %1005 : vector<8x128xf32>
    %1007 = math.exp %1006 : vector<8x128xf32>
    %cst_474 = arith.constant 1.000000e+00 : f32
    %1008 = vector.broadcast %cst_474 : f32 to vector<8x128xf32>
    %1009 = arith.addf %1008, %1007 : vector<8x128xf32>
    %1010 = arith.divf %1008, %1009 : vector<8x128xf32>
    %1011 = math.tanh %1005 : vector<8x128xf32>
    %1012 = arith.select %811, %1010, %1011 : vector<8x128xi1>, vector<8x128xf32>
    %1013 = vector.extract_strided_slice %1012 {offsets = [0, 0], sizes = [8, 32], strides = [1, 1]} : vector<8x128xf32> to vector<8x32xf32>
    %1014 = vector.extract_strided_slice %1012 {offsets = [0, 32], sizes = [8, 32], strides = [1, 1]} : vector<8x128xf32> to vector<8x32xf32>
    %1015 = vector.extract_strided_slice %1012 {offsets = [0, 64], sizes = [8, 32], strides = [1, 1]} : vector<8x128xf32> to vector<8x32xf32>
    %1016 = vector.extract_strided_slice %1012 {offsets = [0, 96], sizes = [8, 32], strides = [1, 1]} : vector<8x128xf32> to vector<8x32xf32>
    %1017 = arith.mulf %1014, %998 : vector<8x32xf32>
    %1018 = arith.mulf %1013, %1016 : vector<8x32xf32>
    %1019 = arith.addf %1017, %1018 : vector<8x32xf32>
    %1020 = math.tanh %1019 : vector<8x32xf32>
    %1021 = arith.mulf %1015, %1020 : vector<8x32xf32>
    %c72_475 = arith.constant 72 : index
    %c0_476 = arith.constant 0 : index
    %1022 = vector.load %arg25[%c72_475, %c0_476] : memref<128x32xf32, #tpu.memory_space<vmem>>, vector<8x32xf32>
    tpu.vector_store %arg25[%c72_475, %c0_476], %1021 {strides = array<i32>} : memref<128x32xf32, #tpu.memory_space<vmem>>, vector<8x32xf32>,
    %1023 = arith.truncf %1021 : vector<8x32xf32> to vector<8x32xbf16>
    %c80_477 = arith.constant 80 : index
    %c0_478 = arith.constant 0 : index
    %1024 = vector.load %arg24[%c80_477, %c0_478] : memref<128x128xf32, #tpu.memory_space<vmem>>, vector<8x128xf32>
    %cst_479 = arith.constant dense<0.000000e+00> : vector<8x128xf32>
    %1025 = tpu.matmul %1023, %800, %cst_479 {dimension_numbers = #tpu.dot_dimension_numbers<[1], [0], [0], [1], [0, 0, 1, 1], [], []>} : vector<8x32xbf16>, vector<32x128xbf16>, vector<8x128xf32> -> vector<8x128xf32>
    %1026 = arith.addf %1024, %1025 : vector<8x128xf32>
    %1027 = arith.negf %1026 : vector<8x128xf32>
    %1028 = math.exp %1027 : vector<8x128xf32>
    %cst_480 = arith.constant 1.000000e+00 : f32
    %1029 = vector.broadcast %cst_480 : f32 to vector<8x128xf32>
    %1030 = arith.addf %1029, %1028 : vector<8x128xf32>
    %1031 = arith.divf %1029, %1030 : vector<8x128xf32>
    %1032 = math.tanh %1026 : vector<8x128xf32>
    %1033 = arith.select %811, %1031, %1032 : vector<8x128xi1>, vector<8x128xf32>
    %1034 = vector.extract_strided_slice %1033 {offsets = [0, 0], sizes = [8, 32], strides = [1, 1]} : vector<8x128xf32> to vector<8x32xf32>
    %1035 = vector.extract_strided_slice %1033 {offsets = [0, 32], sizes = [8, 32], strides = [1, 1]} : vector<8x128xf32> to vector<8x32xf32>
    %1036 = vector.extract_strided_slice %1033 {offsets = [0, 64], sizes = [8, 32], strides = [1, 1]} : vector<8x128xf32> to vector<8x32xf32>
    %1037 = vector.extract_strided_slice %1033 {offsets = [0, 96], sizes = [8, 32], strides = [1, 1]} : vector<8x128xf32> to vector<8x32xf32>
    %1038 = arith.mulf %1035, %1019 : vector<8x32xf32>
    %1039 = arith.mulf %1034, %1037 : vector<8x32xf32>
    %1040 = arith.addf %1038, %1039 : vector<8x32xf32>
    %1041 = math.tanh %1040 : vector<8x32xf32>
    %1042 = arith.mulf %1036, %1041 : vector<8x32xf32>
    %c80_481 = arith.constant 80 : index
    %c0_482 = arith.constant 0 : index
    %1043 = vector.load %arg25[%c80_481, %c0_482] : memref<128x32xf32, #tpu.memory_space<vmem>>, vector<8x32xf32>
    tpu.vector_store %arg25[%c80_481, %c0_482], %1042 {strides = array<i32>} : memref<128x32xf32, #tpu.memory_space<vmem>>, vector<8x32xf32>,
    %1044 = arith.truncf %1042 : vector<8x32xf32> to vector<8x32xbf16>
    %c88_483 = arith.constant 88 : index
    %c0_484 = arith.constant 0 : index
    %1045 = vector.load %arg24[%c88_483, %c0_484] : memref<128x128xf32, #tpu.memory_space<vmem>>, vector<8x128xf32>
    %cst_485 = arith.constant dense<0.000000e+00> : vector<8x128xf32>
    %1046 = tpu.matmul %1044, %800, %cst_485 {dimension_numbers = #tpu.dot_dimension_numbers<[1], [0], [0], [1], [0, 0, 1, 1], [], []>} : vector<8x32xbf16>, vector<32x128xbf16>, vector<8x128xf32> -> vector<8x128xf32>
    %1047 = arith.addf %1045, %1046 : vector<8x128xf32>
    %1048 = arith.negf %1047 : vector<8x128xf32>
    %1049 = math.exp %1048 : vector<8x128xf32>
    %cst_486 = arith.constant 1.000000e+00 : f32
    %1050 = vector.broadcast %cst_486 : f32 to vector<8x128xf32>
    %1051 = arith.addf %1050, %1049 : vector<8x128xf32>
    %1052 = arith.divf %1050, %1051 : vector<8x128xf32>
    %1053 = math.tanh %1047 : vector<8x128xf32>
    %1054 = arith.select %811, %1052, %1053 : vector<8x128xi1>, vector<8x128xf32>
    %1055 = vector.extract_strided_slice %1054 {offsets = [0, 0], sizes = [8, 32], strides = [1, 1]} : vector<8x128xf32> to vector<8x32xf32>
    %1056 = vector.extract_strided_slice %1054 {offsets = [0, 32], sizes = [8, 32], strides = [1, 1]} : vector<8x128xf32> to vector<8x32xf32>
    %1057 = vector.extract_strided_slice %1054 {offsets = [0, 64], sizes = [8, 32], strides = [1, 1]} : vector<8x128xf32> to vector<8x32xf32>
    %1058 = vector.extract_strided_slice %1054 {offsets = [0, 96], sizes = [8, 32], strides = [1, 1]} : vector<8x128xf32> to vector<8x32xf32>
    %1059 = arith.mulf %1056, %1040 : vector<8x32xf32>
    %1060 = arith.mulf %1055, %1058 : vector<8x32xf32>
    %1061 = arith.addf %1059, %1060 : vector<8x32xf32>
    %1062 = math.tanh %1061 : vector<8x32xf32>
    %1063 = arith.mulf %1057, %1062 : vector<8x32xf32>
    %c88_487 = arith.constant 88 : index
    %c0_488 = arith.constant 0 : index
    %1064 = vector.load %arg25[%c88_487, %c0_488] : memref<128x32xf32, #tpu.memory_space<vmem>>, vector<8x32xf32>
    tpu.vector_store %arg25[%c88_487, %c0_488], %1063 {strides = array<i32>} : memref<128x32xf32, #tpu.memory_space<vmem>>, vector<8x32xf32>,
    %1065 = arith.truncf %1063 : vector<8x32xf32> to vector<8x32xbf16>
    %c96_489 = arith.constant 96 : index
    %c0_490 = arith.constant 0 : index
    %1066 = vector.load %arg24[%c96_489, %c0_490] : memref<128x128xf32, #tpu.memory_space<vmem>>, vector<8x128xf32>
    %cst_491 = arith.constant dense<0.000000e+00> : vector<8x128xf32>
    %1067 = tpu.matmul %1065, %800, %cst_491 {dimension_numbers = #tpu.dot_dimension_numbers<[1], [0], [0], [1], [0, 0, 1, 1], [], []>} : vector<8x32xbf16>, vector<32x128xbf16>, vector<8x128xf32> -> vector<8x128xf32>
    %1068 = arith.addf %1066, %1067 : vector<8x128xf32>
    %1069 = arith.negf %1068 : vector<8x128xf32>
    %1070 = math.exp %1069 : vector<8x128xf32>
    %cst_492 = arith.constant 1.000000e+00 : f32
    %1071 = vector.broadcast %cst_492 : f32 to vector<8x128xf32>
    %1072 = arith.addf %1071, %1070 : vector<8x128xf32>
    %1073 = arith.divf %1071, %1072 : vector<8x128xf32>
    %1074 = math.tanh %1068 : vector<8x128xf32>
    %1075 = arith.select %811, %1073, %1074 : vector<8x128xi1>, vector<8x128xf32>
    %1076 = vector.extract_strided_slice %1075 {offsets = [0, 0], sizes = [8, 32], strides = [1, 1]} : vector<8x128xf32> to vector<8x32xf32>
    %1077 = vector.extract_strided_slice %1075 {offsets = [0, 32], sizes = [8, 32], strides = [1, 1]} : vector<8x128xf32> to vector<8x32xf32>
    %1078 = vector.extract_strided_slice %1075 {offsets = [0, 64], sizes = [8, 32], strides = [1, 1]} : vector<8x128xf32> to vector<8x32xf32>
    %1079 = vector.extract_strided_slice %1075 {offsets = [0, 96], sizes = [8, 32], strides = [1, 1]} : vector<8x128xf32> to vector<8x32xf32>
    %1080 = arith.mulf %1077, %1061 : vector<8x32xf32>
    %1081 = arith.mulf %1076, %1079 : vector<8x32xf32>
    %1082 = arith.addf %1080, %1081 : vector<8x32xf32>
    %1083 = math.tanh %1082 : vector<8x32xf32>
    %1084 = arith.mulf %1078, %1083 : vector<8x32xf32>
    %c96_493 = arith.constant 96 : index
    %c0_494 = arith.constant 0 : index
    %1085 = vector.load %arg25[%c96_493, %c0_494] : memref<128x32xf32, #tpu.memory_space<vmem>>, vector<8x32xf32>
    tpu.vector_store %arg25[%c96_493, %c0_494], %1084 {strides = array<i32>} : memref<128x32xf32, #tpu.memory_space<vmem>>, vector<8x32xf32>,
    %1086 = arith.truncf %1084 : vector<8x32xf32> to vector<8x32xbf16>
    %c104_495 = arith.constant 104 : index
    %c0_496 = arith.constant 0 : index
    %1087 = vector.load %arg24[%c104_495, %c0_496] : memref<128x128xf32, #tpu.memory_space<vmem>>, vector<8x128xf32>
    %cst_497 = arith.constant dense<0.000000e+00> : vector<8x128xf32>
    %1088 = tpu.matmul %1086, %800, %cst_497 {dimension_numbers = #tpu.dot_dimension_numbers<[1], [0], [0], [1], [0, 0, 1, 1], [], []>} : vector<8x32xbf16>, vector<32x128xbf16>, vector<8x128xf32> -> vector<8x128xf32>
    %1089 = arith.addf %1087, %1088 : vector<8x128xf32>
    %1090 = arith.negf %1089 : vector<8x128xf32>
    %1091 = math.exp %1090 : vector<8x128xf32>
    %cst_498 = arith.constant 1.000000e+00 : f32
    %1092 = vector.broadcast %cst_498 : f32 to vector<8x128xf32>
    %1093 = arith.addf %1092, %1091 : vector<8x128xf32>
    %1094 = arith.divf %1092, %1093 : vector<8x128xf32>
    %1095 = math.tanh %1089 : vector<8x128xf32>
    %1096 = arith.select %811, %1094, %1095 : vector<8x128xi1>, vector<8x128xf32>
    %1097 = vector.extract_strided_slice %1096 {offsets = [0, 0], sizes = [8, 32], strides = [1, 1]} : vector<8x128xf32> to vector<8x32xf32>
    %1098 = vector.extract_strided_slice %1096 {offsets = [0, 32], sizes = [8, 32], strides = [1, 1]} : vector<8x128xf32> to vector<8x32xf32>
    %1099 = vector.extract_strided_slice %1096 {offsets = [0, 64], sizes = [8, 32], strides = [1, 1]} : vector<8x128xf32> to vector<8x32xf32>
    %1100 = vector.extract_strided_slice %1096 {offsets = [0, 96], sizes = [8, 32], strides = [1, 1]} : vector<8x128xf32> to vector<8x32xf32>
    %1101 = arith.mulf %1098, %1082 : vector<8x32xf32>
    %1102 = arith.mulf %1097, %1100 : vector<8x32xf32>
    %1103 = arith.addf %1101, %1102 : vector<8x32xf32>
    %1104 = math.tanh %1103 : vector<8x32xf32>
    %1105 = arith.mulf %1099, %1104 : vector<8x32xf32>
    %c104_499 = arith.constant 104 : index
    %c0_500 = arith.constant 0 : index
    %1106 = vector.load %arg25[%c104_499, %c0_500] : memref<128x32xf32, #tpu.memory_space<vmem>>, vector<8x32xf32>
    tpu.vector_store %arg25[%c104_499, %c0_500], %1105 {strides = array<i32>} : memref<128x32xf32, #tpu.memory_space<vmem>>, vector<8x32xf32>,
    %1107 = arith.truncf %1105 : vector<8x32xf32> to vector<8x32xbf16>
    %c112_501 = arith.constant 112 : index
    %c0_502 = arith.constant 0 : index
    %1108 = vector.load %arg24[%c112_501, %c0_502] : memref<128x128xf32, #tpu.memory_space<vmem>>, vector<8x128xf32>
    %cst_503 = arith.constant dense<0.000000e+00> : vector<8x128xf32>
    %1109 = tpu.matmul %1107, %800, %cst_503 {dimension_numbers = #tpu.dot_dimension_numbers<[1], [0], [0], [1], [0, 0, 1, 1], [], []>} : vector<8x32xbf16>, vector<32x128xbf16>, vector<8x128xf32> -> vector<8x128xf32>
    %1110 = arith.addf %1108, %1109 : vector<8x128xf32>
    %1111 = arith.negf %1110 : vector<8x128xf32>
    %1112 = math.exp %1111 : vector<8x128xf32>
    %cst_504 = arith.constant 1.000000e+00 : f32
    %1113 = vector.broadcast %cst_504 : f32 to vector<8x128xf32>
    %1114 = arith.addf %1113, %1112 : vector<8x128xf32>
    %1115 = arith.divf %1113, %1114 : vector<8x128xf32>
    %1116 = math.tanh %1110 : vector<8x128xf32>
    %1117 = arith.select %811, %1115, %1116 : vector<8x128xi1>, vector<8x128xf32>
    %1118 = vector.extract_strided_slice %1117 {offsets = [0, 0], sizes = [8, 32], strides = [1, 1]} : vector<8x128xf32> to vector<8x32xf32>
    %1119 = vector.extract_strided_slice %1117 {offsets = [0, 32], sizes = [8, 32], strides = [1, 1]} : vector<8x128xf32> to vector<8x32xf32>
    %1120 = vector.extract_strided_slice %1117 {offsets = [0, 64], sizes = [8, 32], strides = [1, 1]} : vector<8x128xf32> to vector<8x32xf32>
    %1121 = vector.extract_strided_slice %1117 {offsets = [0, 96], sizes = [8, 32], strides = [1, 1]} : vector<8x128xf32> to vector<8x32xf32>
    %1122 = arith.mulf %1119, %1103 : vector<8x32xf32>
    %1123 = arith.mulf %1118, %1121 : vector<8x32xf32>
    %1124 = arith.addf %1122, %1123 : vector<8x32xf32>
    %1125 = math.tanh %1124 : vector<8x32xf32>
    %1126 = arith.mulf %1120, %1125 : vector<8x32xf32>
    %c112_505 = arith.constant 112 : index
    %c0_506 = arith.constant 0 : index
    %1127 = vector.load %arg25[%c112_505, %c0_506] : memref<128x32xf32, #tpu.memory_space<vmem>>, vector<8x32xf32>
    tpu.vector_store %arg25[%c112_505, %c0_506], %1126 {strides = array<i32>} : memref<128x32xf32, #tpu.memory_space<vmem>>, vector<8x32xf32>,
    %1128 = arith.truncf %1126 : vector<8x32xf32> to vector<8x32xbf16>
    %c120_507 = arith.constant 120 : index
    %c0_508 = arith.constant 0 : index
    %1129 = vector.load %arg24[%c120_507, %c0_508] : memref<128x128xf32, #tpu.memory_space<vmem>>, vector<8x128xf32>
    %cst_509 = arith.constant dense<0.000000e+00> : vector<8x128xf32>
    %1130 = tpu.matmul %1128, %800, %cst_509 {dimension_numbers = #tpu.dot_dimension_numbers<[1], [0], [0], [1], [0, 0, 1, 1], [], []>} : vector<8x32xbf16>, vector<32x128xbf16>, vector<8x128xf32> -> vector<8x128xf32>
    %1131 = arith.addf %1129, %1130 : vector<8x128xf32>
    %1132 = arith.negf %1131 : vector<8x128xf32>
    %1133 = math.exp %1132 : vector<8x128xf32>
    %cst_510 = arith.constant 1.000000e+00 : f32
    %1134 = vector.broadcast %cst_510 : f32 to vector<8x128xf32>
    %1135 = arith.addf %1134, %1133 : vector<8x128xf32>
    %1136 = arith.divf %1134, %1135 : vector<8x128xf32>
    %1137 = math.tanh %1131 : vector<8x128xf32>
    %1138 = arith.select %811, %1136, %1137 : vector<8x128xi1>, vector<8x128xf32>
    %1139 = vector.extract_strided_slice %1138 {offsets = [0, 0], sizes = [8, 32], strides = [1, 1]} : vector<8x128xf32> to vector<8x32xf32>
    %1140 = vector.extract_strided_slice %1138 {offsets = [0, 32], sizes = [8, 32], strides = [1, 1]} : vector<8x128xf32> to vector<8x32xf32>
    %1141 = vector.extract_strided_slice %1138 {offsets = [0, 64], sizes = [8, 32], strides = [1, 1]} : vector<8x128xf32> to vector<8x32xf32>
    %1142 = vector.extract_strided_slice %1138 {offsets = [0, 96], sizes = [8, 32], strides = [1, 1]} : vector<8x128xf32> to vector<8x32xf32>
    %1143 = arith.mulf %1140, %1124 : vector<8x32xf32>
    %1144 = arith.mulf %1139, %1142 : vector<8x32xf32>
    %1145 = arith.addf %1143, %1144 : vector<8x32xf32>
    %1146 = math.tanh %1145 : vector<8x32xf32>
    %1147 = arith.mulf %1141, %1146 : vector<8x32xf32>
    %c120_511 = arith.constant 120 : index
    %c0_512 = arith.constant 0 : index
    %1148 = vector.load %arg25[%c120_511, %c0_512] : memref<128x32xf32, #tpu.memory_space<vmem>>, vector<8x32xf32>
    tpu.vector_store %arg25[%c120_511, %c0_512], %1147 {strides = array<i32>} : memref<128x32xf32, #tpu.memory_space<vmem>>, vector<8x32xf32>,
    %c120_513 = arith.constant 120 : index
    %c0_514 = arith.constant 0 : index
    %1149 = vector.load %arg25[%c120_513, %c0_514] : memref<128x32xf32, #tpu.memory_space<vmem>>, vector<8x32xf32>
    %c0_515 = arith.constant 0 : index
    %c0_516 = arith.constant 0 : index
    %1150 = vector.load %arg26[%c0_515, %c0_516] : memref<128x32xf32, #tpu.memory_space<vmem>>, vector<8x32xf32>
    tpu.vector_store %arg26[%c0_515, %c0_516], %1149 {strides = array<i32>} : memref<128x32xf32, #tpu.memory_space<vmem>>, vector<8x32xf32>,
    %c112_517 = arith.constant 112 : index
    %c0_518 = arith.constant 0 : index
    %1151 = vector.load %arg25[%c112_517, %c0_518] : memref<128x32xf32, #tpu.memory_space<vmem>>, vector<8x32xf32>
    %c8_519 = arith.constant 8 : index
    %c0_520 = arith.constant 0 : index
    %1152 = vector.load %arg26[%c8_519, %c0_520] : memref<128x32xf32, #tpu.memory_space<vmem>>, vector<8x32xf32>
    tpu.vector_store %arg26[%c8_519, %c0_520], %1151 {strides = array<i32>} : memref<128x32xf32, #tpu.memory_space<vmem>>, vector<8x32xf32>,
    %c104_521 = arith.constant 104 : index
    %c0_522 = arith.constant 0 : index
    %1153 = vector.load %arg25[%c104_521, %c0_522] : memref<128x32xf32, #tpu.memory_space<vmem>>, vector<8x32xf32>
    %c16_523 = arith.constant 16 : index
    %c0_524 = arith.constant 0 : index
    %1154 = vector.load %arg26[%c16_523, %c0_524] : memref<128x32xf32, #tpu.memory_space<vmem>>, vector<8x32xf32>
    tpu.vector_store %arg26[%c16_523, %c0_524], %1153 {strides = array<i32>} : memref<128x32xf32, #tpu.memory_space<vmem>>, vector<8x32xf32>,
    %c96_525 = arith.constant 96 : index
    %c0_526 = arith.constant 0 : index
    %1155 = vector.load %arg25[%c96_525, %c0_526] : memref<128x32xf32, #tpu.memory_space<vmem>>, vector<8x32xf32>
    %c24_527 = arith.constant 24 : index
    %c0_528 = arith.constant 0 : index
    %1156 = vector.load %arg26[%c24_527, %c0_528] : memref<128x32xf32, #tpu.memory_space<vmem>>, vector<8x32xf32>
    tpu.vector_store %arg26[%c24_527, %c0_528], %1155 {strides = array<i32>} : memref<128x32xf32, #tpu.memory_space<vmem>>, vector<8x32xf32>,
    %c88_529 = arith.constant 88 : index
    %c0_530 = arith.constant 0 : index
    %1157 = vector.load %arg25[%c88_529, %c0_530] : memref<128x32xf32, #tpu.memory_space<vmem>>, vector<8x32xf32>
    %c32_531 = arith.constant 32 : index
    %c0_532 = arith.constant 0 : index
    %1158 = vector.load %arg26[%c32_531, %c0_532] : memref<128x32xf32, #tpu.memory_space<vmem>>, vector<8x32xf32>
    tpu.vector_store %arg26[%c32_531, %c0_532], %1157 {strides = array<i32>} : memref<128x32xf32, #tpu.memory_space<vmem>>, vector<8x32xf32>,
    %c80_533 = arith.constant 80 : index
    %c0_534 = arith.constant 0 : index
    %1159 = vector.load %arg25[%c80_533, %c0_534] : memref<128x32xf32, #tpu.memory_space<vmem>>, vector<8x32xf32>
    %c40_535 = arith.constant 40 : index
    %c0_536 = arith.constant 0 : index
    %1160 = vector.load %arg26[%c40_535, %c0_536] : memref<128x32xf32, #tpu.memory_space<vmem>>, vector<8x32xf32>
    tpu.vector_store %arg26[%c40_535, %c0_536], %1159 {strides = array<i32>} : memref<128x32xf32, #tpu.memory_space<vmem>>, vector<8x32xf32>,
    %c72_537 = arith.constant 72 : index
    %c0_538 = arith.constant 0 : index
    %1161 = vector.load %arg25[%c72_537, %c0_538] : memref<128x32xf32, #tpu.memory_space<vmem>>, vector<8x32xf32>
    %c48_539 = arith.constant 48 : index
    %c0_540 = arith.constant 0 : index
    %1162 = vector.load %arg26[%c48_539, %c0_540] : memref<128x32xf32, #tpu.memory_space<vmem>>, vector<8x32xf32>
    tpu.vector_store %arg26[%c48_539, %c0_540], %1161 {strides = array<i32>} : memref<128x32xf32, #tpu.memory_space<vmem>>, vector<8x32xf32>,
    %c64_541 = arith.constant 64 : index
    %c0_542 = arith.constant 0 : index
    %1163 = vector.load %arg25[%c64_541, %c0_542] : memref<128x32xf32, #tpu.memory_space<vmem>>, vector<8x32xf32>
    %c56_543 = arith.constant 56 : index
    %c0_544 = arith.constant 0 : index
    %1164 = vector.load %arg26[%c56_543, %c0_544] : memref<128x32xf32, #tpu.memory_space<vmem>>, vector<8x32xf32>
    tpu.vector_store %arg26[%c56_543, %c0_544], %1163 {strides = array<i32>} : memref<128x32xf32, #tpu.memory_space<vmem>>, vector<8x32xf32>,
    %c56_545 = arith.constant 56 : index
    %c0_546 = arith.constant 0 : index
    %1165 = vector.load %arg25[%c56_545, %c0_546] : memref<128x32xf32, #tpu.memory_space<vmem>>, vector<8x32xf32>
    %c64_547 = arith.constant 64 : index
    %c0_548 = arith.constant 0 : index
    %1166 = vector.load %arg26[%c64_547, %c0_548] : memref<128x32xf32, #tpu.memory_space<vmem>>, vector<8x32xf32>
    tpu.vector_store %arg26[%c64_547, %c0_548], %1165 {strides = array<i32>} : memref<128x32xf32, #tpu.memory_space<vmem>>, vector<8x32xf32>,
    %c48_549 = arith.constant 48 : index
    %c0_550 = arith.constant 0 : index
    %1167 = vector.load %arg25[%c48_549, %c0_550] : memref<128x32xf32, #tpu.memory_space<vmem>>, vector<8x32xf32>
    %c72_551 = arith.constant 72 : index
    %c0_552 = arith.constant 0 : index
    %1168 = vector.load %arg26[%c72_551, %c0_552] : memref<128x32xf32, #tpu.memory_space<vmem>>, vector<8x32xf32>
    tpu.vector_store %arg26[%c72_551, %c0_552], %1167 {strides = array<i32>} : memref<128x32xf32, #tpu.memory_space<vmem>>, vector<8x32xf32>,
    %c40_553 = arith.constant 40 : index
    %c0_554 = arith.constant 0 : index
    %1169 = vector.load %arg25[%c40_553, %c0_554] : memref<128x32xf32, #tpu.memory_space<vmem>>, vector<8x32xf32>
    %c80_555 = arith.constant 80 : index
    %c0_556 = arith.constant 0 : index
    %1170 = vector.load %arg26[%c80_555, %c0_556] : memref<128x32xf32, #tpu.memory_space<vmem>>, vector<8x32xf32>
    tpu.vector_store %arg26[%c80_555, %c0_556], %1169 {strides = array<i32>} : memref<128x32xf32, #tpu.memory_space<vmem>>, vector<8x32xf32>,
    %c32_557 = arith.constant 32 : index
    %c0_558 = arith.constant 0 : index
    %1171 = vector.load %arg25[%c32_557, %c0_558] : memref<128x32xf32, #tpu.memory_space<vmem>>, vector<8x32xf32>
    %c88_559 = arith.constant 88 : index
    %c0_560 = arith.constant 0 : index
    %1172 = vector.load %arg26[%c88_559, %c0_560] : memref<128x32xf32, #tpu.memory_space<vmem>>, vector<8x32xf32>
    tpu.vector_store %arg26[%c88_559, %c0_560], %1171 {strides = array<i32>} : memref<128x32xf32, #tpu.memory_space<vmem>>, vector<8x32xf32>,
    %c24_561 = arith.constant 24 : index
    %c0_562 = arith.constant 0 : index
    %1173 = vector.load %arg25[%c24_561, %c0_562] : memref<128x32xf32, #tpu.memory_space<vmem>>, vector<8x32xf32>
    %c96_563 = arith.constant 96 : index
    %c0_564 = arith.constant 0 : index
    %1174 = vector.load %arg26[%c96_563, %c0_564] : memref<128x32xf32, #tpu.memory_space<vmem>>, vector<8x32xf32>
    tpu.vector_store %arg26[%c96_563, %c0_564], %1173 {strides = array<i32>} : memref<128x32xf32, #tpu.memory_space<vmem>>, vector<8x32xf32>,
    %c16_565 = arith.constant 16 : index
    %c0_566 = arith.constant 0 : index
    %1175 = vector.load %arg25[%c16_565, %c0_566] : memref<128x32xf32, #tpu.memory_space<vmem>>, vector<8x32xf32>
    %c104_567 = arith.constant 104 : index
    %c0_568 = arith.constant 0 : index
    %1176 = vector.load %arg26[%c104_567, %c0_568] : memref<128x32xf32, #tpu.memory_space<vmem>>, vector<8x32xf32>
    tpu.vector_store %arg26[%c104_567, %c0_568], %1175 {strides = array<i32>} : memref<128x32xf32, #tpu.memory_space<vmem>>, vector<8x32xf32>,
    %c8_569 = arith.constant 8 : index
    %c0_570 = arith.constant 0 : index
    %1177 = vector.load %arg25[%c8_569, %c0_570] : memref<128x32xf32, #tpu.memory_space<vmem>>, vector<8x32xf32>
    %c112_571 = arith.constant 112 : index
    %c0_572 = arith.constant 0 : index
    %1178 = vector.load %arg26[%c112_571, %c0_572] : memref<128x32xf32, #tpu.memory_space<vmem>>, vector<8x32xf32>
    tpu.vector_store %arg26[%c112_571, %c0_572], %1177 {strides = array<i32>} : memref<128x32xf32, #tpu.memory_space<vmem>>, vector<8x32xf32>,
    %c0_573 = arith.constant 0 : index
    %c0_574 = arith.constant 0 : index
    %1179 = vector.load %arg25[%c0_573, %c0_574] : memref<128x32xf32, #tpu.memory_space<vmem>>, vector<8x32xf32>
    %c120_575 = arith.constant 120 : index
    %c0_576 = arith.constant 0 : index
    %1180 = vector.load %arg26[%c120_575, %c0_576] : memref<128x32xf32, #tpu.memory_space<vmem>>, vector<8x32xf32>
    tpu.vector_store %arg26[%c120_575, %c0_576], %1179 {strides = array<i32>} : memref<128x32xf32, #tpu.memory_space<vmem>>, vector<8x32xf32>,
    %c0_577 = arith.constant 0 : index
    %c0_578 = arith.constant 0 : index
    %1181 = vector.load %arg10[%c0_577, %c0_578] : memref<32x128xbf16, #tpu.memory_space<vmem>>, vector<32x128xbf16>
    %c0_579 = arith.constant 0 : index
    %c0_580 = arith.constant 0 : index
    %1182 = vector.load %arg11[%c0_579, %c0_580] : memref<32x128xbf16, #tpu.memory_space<vmem>>, vector<32x128xbf16>
    %c0_581 = arith.constant 0 : index
    %c0_582 = arith.constant 0 : index
    %1183 = vector.load %arg12[%c0_581, %c0_582] : memref<32x128xbf16, #tpu.memory_space<vmem>>, vector<32x128xbf16>
    %c0_583 = arith.constant 0 : index
    %c0_584 = arith.constant 0 : index
    %1184 = vector.load %arg25[%c0_583, %c0_584] : memref<128x32xf32, #tpu.memory_space<vmem>>, vector<128x32xf32>
    %1185 = arith.truncf %1184 : vector<128x32xf32> to vector<128x32xbf16>
    %cst_585 = arith.constant dense<0.000000e+00> : vector<128x128xf32>
    %1186 = tpu.matmul %1185, %1181, %cst_585 {dimension_numbers = #tpu.dot_dimension_numbers<[1], [0], [0], [1], [0, 0, 1, 1], [], []>} : vector<128x32xbf16>, vector<32x128xbf16>, vector<128x128xf32> -> vector<128x128xf32>
    %c0_586 = arith.constant 0 : index
    %c0_587 = arith.constant 0 : index
    %1187 = vector.load %arg26[%c0_586, %c0_587] : memref<128x32xf32, #tpu.memory_space<vmem>>, vector<128x32xf32>
    %1188 = arith.truncf %1187 : vector<128x32xf32> to vector<128x32xbf16>
    %cst_588 = arith.constant dense<0.000000e+00> : vector<128x128xf32>
    %1189 = tpu.matmul %1188, %1182, %cst_588 {dimension_numbers = #tpu.dot_dimension_numbers<[1], [0], [0], [1], [0, 0, 1, 1], [], []>} : vector<128x32xbf16>, vector<32x128xbf16>, vector<128x128xf32> -> vector<128x128xf32>
    %1190 = arith.addf %1186, %1189 : vector<128x128xf32>
    %c0_589 = arith.constant 0 : index
    %c0_590 = arith.constant 0 : index
    %1191 = vector.load %arg27[%c0_589, %c0_590] : memref<128x128xf32, #tpu.memory_space<vmem>>, vector<128x128xf32>
    tpu.vector_store %arg27[%c0_589, %c0_590], %1190 {strides = array<i32>} : memref<128x128xf32, #tpu.memory_space<vmem>>, vector<128x128xf32>,
    %1192 = tpu.iota {dimensions = array<i32: 1>} : vector<8x128xi32>
    %c96_i32_591 = arith.constant 96 : i32
    %1193 = vector.broadcast %c96_i32_591 : i32 to vector<8x128xi32>
    %1194 = arith.cmpi slt, %1192, %1193 : vector<8x128xi32>
    %cst_592 = arith.constant 0.000000e+00 : bf16
    %1195 = vector.broadcast %cst_592 : bf16 to vector<8x32xbf16>
    %cst_593 = arith.constant 0.000000e+00 : f32
    %1196 = vector.broadcast %cst_593 : f32 to vector<8x32xf32>
    %c0_594 = arith.constant 0 : index
    %c0_595 = arith.constant 0 : index
    %1197 = vector.load %arg27[%c0_594, %c0_595] : memref<128x128xf32, #tpu.memory_space<vmem>>, vector<8x128xf32>
    %cst_596 = arith.constant dense<0.000000e+00> : vector<8x128xf32>
    %1198 = tpu.matmul %1195, %1183, %cst_596 {dimension_numbers = #tpu.dot_dimension_numbers<[1], [0], [0], [1], [0, 0, 1, 1], [], []>} : vector<8x32xbf16>, vector<32x128xbf16>, vector<8x128xf32> -> vector<8x128xf32>
    %1199 = arith.addf %1197, %1198 : vector<8x128xf32>
    %1200 = arith.negf %1199 : vector<8x128xf32>
    %1201 = math.exp %1200 : vector<8x128xf32>
    %cst_597 = arith.constant 1.000000e+00 : f32
    %1202 = vector.broadcast %cst_597 : f32 to vector<8x128xf32>
    %1203 = arith.addf %1202, %1201 : vector<8x128xf32>
    %1204 = arith.divf %1202, %1203 : vector<8x128xf32>
    %1205 = math.tanh %1199 : vector<8x128xf32>
    %1206 = arith.select %1194, %1204, %1205 : vector<8x128xi1>, vector<8x128xf32>
    %1207 = vector.extract_strided_slice %1206 {offsets = [0, 0], sizes = [8, 32], strides = [1, 1]} : vector<8x128xf32> to vector<8x32xf32>
    %1208 = vector.extract_strided_slice %1206 {offsets = [0, 32], sizes = [8, 32], strides = [1, 1]} : vector<8x128xf32> to vector<8x32xf32>
    %1209 = vector.extract_strided_slice %1206 {offsets = [0, 64], sizes = [8, 32], strides = [1, 1]} : vector<8x128xf32> to vector<8x32xf32>
    %1210 = vector.extract_strided_slice %1206 {offsets = [0, 96], sizes = [8, 32], strides = [1, 1]} : vector<8x128xf32> to vector<8x32xf32>
    %1211 = arith.mulf %1208, %1196 : vector<8x32xf32>
    %1212 = arith.mulf %1207, %1210 : vector<8x32xf32>
    %1213 = arith.addf %1211, %1212 : vector<8x32xf32>
    %1214 = math.tanh %1213 : vector<8x32xf32>
    %1215 = arith.mulf %1209, %1214 : vector<8x32xf32>
    %c0_598 = arith.constant 0 : index
    %c0_599 = arith.constant 0 : index
    %1216 = vector.load %arg28[%c0_598, %c0_599] : memref<128x32xf32, #tpu.memory_space<vmem>>, vector<8x32xf32>
    tpu.vector_store %arg28[%c0_598, %c0_599], %1215 {strides = array<i32>} : memref<128x32xf32, #tpu.memory_space<vmem>>, vector<8x32xf32>,
    %1217 = arith.truncf %1215 : vector<8x32xf32> to vector<8x32xbf16>
    %c8_600 = arith.constant 8 : index
    %c0_601 = arith.constant 0 : index
    %1218 = vector.load %arg27[%c8_600, %c0_601] : memref<128x128xf32, #tpu.memory_space<vmem>>, vector<8x128xf32>
    %cst_602 = arith.constant dense<0.000000e+00> : vector<8x128xf32>
    %1219 = tpu.matmul %1217, %1183, %cst_602 {dimension_numbers = #tpu.dot_dimension_numbers<[1], [0], [0], [1], [0, 0, 1, 1], [], []>} : vector<8x32xbf16>, vector<32x128xbf16>, vector<8x128xf32> -> vector<8x128xf32>
    %1220 = arith.addf %1218, %1219 : vector<8x128xf32>
    %1221 = arith.negf %1220 : vector<8x128xf32>
    %1222 = math.exp %1221 : vector<8x128xf32>
    %cst_603 = arith.constant 1.000000e+00 : f32
    %1223 = vector.broadcast %cst_603 : f32 to vector<8x128xf32>
    %1224 = arith.addf %1223, %1222 : vector<8x128xf32>
    %1225 = arith.divf %1223, %1224 : vector<8x128xf32>
    %1226 = math.tanh %1220 : vector<8x128xf32>
    %1227 = arith.select %1194, %1225, %1226 : vector<8x128xi1>, vector<8x128xf32>
    %1228 = vector.extract_strided_slice %1227 {offsets = [0, 0], sizes = [8, 32], strides = [1, 1]} : vector<8x128xf32> to vector<8x32xf32>
    %1229 = vector.extract_strided_slice %1227 {offsets = [0, 32], sizes = [8, 32], strides = [1, 1]} : vector<8x128xf32> to vector<8x32xf32>
    %1230 = vector.extract_strided_slice %1227 {offsets = [0, 64], sizes = [8, 32], strides = [1, 1]} : vector<8x128xf32> to vector<8x32xf32>
    %1231 = vector.extract_strided_slice %1227 {offsets = [0, 96], sizes = [8, 32], strides = [1, 1]} : vector<8x128xf32> to vector<8x32xf32>
    %1232 = arith.mulf %1229, %1213 : vector<8x32xf32>
    %1233 = arith.mulf %1228, %1231 : vector<8x32xf32>
    %1234 = arith.addf %1232, %1233 : vector<8x32xf32>
    %1235 = math.tanh %1234 : vector<8x32xf32>
    %1236 = arith.mulf %1230, %1235 : vector<8x32xf32>
    %c8_604 = arith.constant 8 : index
    %c0_605 = arith.constant 0 : index
    %1237 = vector.load %arg28[%c8_604, %c0_605] : memref<128x32xf32, #tpu.memory_space<vmem>>, vector<8x32xf32>
    tpu.vector_store %arg28[%c8_604, %c0_605], %1236 {strides = array<i32>} : memref<128x32xf32, #tpu.memory_space<vmem>>, vector<8x32xf32>,
    %1238 = arith.truncf %1236 : vector<8x32xf32> to vector<8x32xbf16>
    %c16_606 = arith.constant 16 : index
    %c0_607 = arith.constant 0 : index
    %1239 = vector.load %arg27[%c16_606, %c0_607] : memref<128x128xf32, #tpu.memory_space<vmem>>, vector<8x128xf32>
    %cst_608 = arith.constant dense<0.000000e+00> : vector<8x128xf32>
    %1240 = tpu.matmul %1238, %1183, %cst_608 {dimension_numbers = #tpu.dot_dimension_numbers<[1], [0], [0], [1], [0, 0, 1, 1], [], []>} : vector<8x32xbf16>, vector<32x128xbf16>, vector<8x128xf32> -> vector<8x128xf32>
    %1241 = arith.addf %1239, %1240 : vector<8x128xf32>
    %1242 = arith.negf %1241 : vector<8x128xf32>
    %1243 = math.exp %1242 : vector<8x128xf32>
    %cst_609 = arith.constant 1.000000e+00 : f32
    %1244 = vector.broadcast %cst_609 : f32 to vector<8x128xf32>
    %1245 = arith.addf %1244, %1243 : vector<8x128xf32>
    %1246 = arith.divf %1244, %1245 : vector<8x128xf32>
    %1247 = math.tanh %1241 : vector<8x128xf32>
    %1248 = arith.select %1194, %1246, %1247 : vector<8x128xi1>, vector<8x128xf32>
    %1249 = vector.extract_strided_slice %1248 {offsets = [0, 0], sizes = [8, 32], strides = [1, 1]} : vector<8x128xf32> to vector<8x32xf32>
    %1250 = vector.extract_strided_slice %1248 {offsets = [0, 32], sizes = [8, 32], strides = [1, 1]} : vector<8x128xf32> to vector<8x32xf32>
    %1251 = vector.extract_strided_slice %1248 {offsets = [0, 64], sizes = [8, 32], strides = [1, 1]} : vector<8x128xf32> to vector<8x32xf32>
    %1252 = vector.extract_strided_slice %1248 {offsets = [0, 96], sizes = [8, 32], strides = [1, 1]} : vector<8x128xf32> to vector<8x32xf32>
    %1253 = arith.mulf %1250, %1234 : vector<8x32xf32>
    %1254 = arith.mulf %1249, %1252 : vector<8x32xf32>
    %1255 = arith.addf %1253, %1254 : vector<8x32xf32>
    %1256 = math.tanh %1255 : vector<8x32xf32>
    %1257 = arith.mulf %1251, %1256 : vector<8x32xf32>
    %c16_610 = arith.constant 16 : index
    %c0_611 = arith.constant 0 : index
    %1258 = vector.load %arg28[%c16_610, %c0_611] : memref<128x32xf32, #tpu.memory_space<vmem>>, vector<8x32xf32>
    tpu.vector_store %arg28[%c16_610, %c0_611], %1257 {strides = array<i32>} : memref<128x32xf32, #tpu.memory_space<vmem>>, vector<8x32xf32>,
    %1259 = arith.truncf %1257 : vector<8x32xf32> to vector<8x32xbf16>
    %c24_612 = arith.constant 24 : index
    %c0_613 = arith.constant 0 : index
    %1260 = vector.load %arg27[%c24_612, %c0_613] : memref<128x128xf32, #tpu.memory_space<vmem>>, vector<8x128xf32>
    %cst_614 = arith.constant dense<0.000000e+00> : vector<8x128xf32>
    %1261 = tpu.matmul %1259, %1183, %cst_614 {dimension_numbers = #tpu.dot_dimension_numbers<[1], [0], [0], [1], [0, 0, 1, 1], [], []>} : vector<8x32xbf16>, vector<32x128xbf16>, vector<8x128xf32> -> vector<8x128xf32>
    %1262 = arith.addf %1260, %1261 : vector<8x128xf32>
    %1263 = arith.negf %1262 : vector<8x128xf32>
    %1264 = math.exp %1263 : vector<8x128xf32>
    %cst_615 = arith.constant 1.000000e+00 : f32
    %1265 = vector.broadcast %cst_615 : f32 to vector<8x128xf32>
    %1266 = arith.addf %1265, %1264 : vector<8x128xf32>
    %1267 = arith.divf %1265, %1266 : vector<8x128xf32>
    %1268 = math.tanh %1262 : vector<8x128xf32>
    %1269 = arith.select %1194, %1267, %1268 : vector<8x128xi1>, vector<8x128xf32>
    %1270 = vector.extract_strided_slice %1269 {offsets = [0, 0], sizes = [8, 32], strides = [1, 1]} : vector<8x128xf32> to vector<8x32xf32>
    %1271 = vector.extract_strided_slice %1269 {offsets = [0, 32], sizes = [8, 32], strides = [1, 1]} : vector<8x128xf32> to vector<8x32xf32>
    %1272 = vector.extract_strided_slice %1269 {offsets = [0, 64], sizes = [8, 32], strides = [1, 1]} : vector<8x128xf32> to vector<8x32xf32>
    %1273 = vector.extract_strided_slice %1269 {offsets = [0, 96], sizes = [8, 32], strides = [1, 1]} : vector<8x128xf32> to vector<8x32xf32>
    %1274 = arith.mulf %1271, %1255 : vector<8x32xf32>
    %1275 = arith.mulf %1270, %1273 : vector<8x32xf32>
    %1276 = arith.addf %1274, %1275 : vector<8x32xf32>
    %1277 = math.tanh %1276 : vector<8x32xf32>
    %1278 = arith.mulf %1272, %1277 : vector<8x32xf32>
    %c24_616 = arith.constant 24 : index
    %c0_617 = arith.constant 0 : index
    %1279 = vector.load %arg28[%c24_616, %c0_617] : memref<128x32xf32, #tpu.memory_space<vmem>>, vector<8x32xf32>
    tpu.vector_store %arg28[%c24_616, %c0_617], %1278 {strides = array<i32>} : memref<128x32xf32, #tpu.memory_space<vmem>>, vector<8x32xf32>,
    %1280 = arith.truncf %1278 : vector<8x32xf32> to vector<8x32xbf16>
    %c32_618 = arith.constant 32 : index
    %c0_619 = arith.constant 0 : index
    %1281 = vector.load %arg27[%c32_618, %c0_619] : memref<128x128xf32, #tpu.memory_space<vmem>>, vector<8x128xf32>
    %cst_620 = arith.constant dense<0.000000e+00> : vector<8x128xf32>
    %1282 = tpu.matmul %1280, %1183, %cst_620 {dimension_numbers = #tpu.dot_dimension_numbers<[1], [0], [0], [1], [0, 0, 1, 1], [], []>} : vector<8x32xbf16>, vector<32x128xbf16>, vector<8x128xf32> -> vector<8x128xf32>
    %1283 = arith.addf %1281, %1282 : vector<8x128xf32>
    %1284 = arith.negf %1283 : vector<8x128xf32>
    %1285 = math.exp %1284 : vector<8x128xf32>
    %cst_621 = arith.constant 1.000000e+00 : f32
    %1286 = vector.broadcast %cst_621 : f32 to vector<8x128xf32>
    %1287 = arith.addf %1286, %1285 : vector<8x128xf32>
    %1288 = arith.divf %1286, %1287 : vector<8x128xf32>
    %1289 = math.tanh %1283 : vector<8x128xf32>
    %1290 = arith.select %1194, %1288, %1289 : vector<8x128xi1>, vector<8x128xf32>
    %1291 = vector.extract_strided_slice %1290 {offsets = [0, 0], sizes = [8, 32], strides = [1, 1]} : vector<8x128xf32> to vector<8x32xf32>
    %1292 = vector.extract_strided_slice %1290 {offsets = [0, 32], sizes = [8, 32], strides = [1, 1]} : vector<8x128xf32> to vector<8x32xf32>
    %1293 = vector.extract_strided_slice %1290 {offsets = [0, 64], sizes = [8, 32], strides = [1, 1]} : vector<8x128xf32> to vector<8x32xf32>
    %1294 = vector.extract_strided_slice %1290 {offsets = [0, 96], sizes = [8, 32], strides = [1, 1]} : vector<8x128xf32> to vector<8x32xf32>
    %1295 = arith.mulf %1292, %1276 : vector<8x32xf32>
    %1296 = arith.mulf %1291, %1294 : vector<8x32xf32>
    %1297 = arith.addf %1295, %1296 : vector<8x32xf32>
    %1298 = math.tanh %1297 : vector<8x32xf32>
    %1299 = arith.mulf %1293, %1298 : vector<8x32xf32>
    %c32_622 = arith.constant 32 : index
    %c0_623 = arith.constant 0 : index
    %1300 = vector.load %arg28[%c32_622, %c0_623] : memref<128x32xf32, #tpu.memory_space<vmem>>, vector<8x32xf32>
    tpu.vector_store %arg28[%c32_622, %c0_623], %1299 {strides = array<i32>} : memref<128x32xf32, #tpu.memory_space<vmem>>, vector<8x32xf32>,
    %1301 = arith.truncf %1299 : vector<8x32xf32> to vector<8x32xbf16>
    %c40_624 = arith.constant 40 : index
    %c0_625 = arith.constant 0 : index
    %1302 = vector.load %arg27[%c40_624, %c0_625] : memref<128x128xf32, #tpu.memory_space<vmem>>, vector<8x128xf32>
    %cst_626 = arith.constant dense<0.000000e+00> : vector<8x128xf32>
    %1303 = tpu.matmul %1301, %1183, %cst_626 {dimension_numbers = #tpu.dot_dimension_numbers<[1], [0], [0], [1], [0, 0, 1, 1], [], []>} : vector<8x32xbf16>, vector<32x128xbf16>, vector<8x128xf32> -> vector<8x128xf32>
    %1304 = arith.addf %1302, %1303 : vector<8x128xf32>
    %1305 = arith.negf %1304 : vector<8x128xf32>
    %1306 = math.exp %1305 : vector<8x128xf32>
    %cst_627 = arith.constant 1.000000e+00 : f32
    %1307 = vector.broadcast %cst_627 : f32 to vector<8x128xf32>
    %1308 = arith.addf %1307, %1306 : vector<8x128xf32>
    %1309 = arith.divf %1307, %1308 : vector<8x128xf32>
    %1310 = math.tanh %1304 : vector<8x128xf32>
    %1311 = arith.select %1194, %1309, %1310 : vector<8x128xi1>, vector<8x128xf32>
    %1312 = vector.extract_strided_slice %1311 {offsets = [0, 0], sizes = [8, 32], strides = [1, 1]} : vector<8x128xf32> to vector<8x32xf32>
    %1313 = vector.extract_strided_slice %1311 {offsets = [0, 32], sizes = [8, 32], strides = [1, 1]} : vector<8x128xf32> to vector<8x32xf32>
    %1314 = vector.extract_strided_slice %1311 {offsets = [0, 64], sizes = [8, 32], strides = [1, 1]} : vector<8x128xf32> to vector<8x32xf32>
    %1315 = vector.extract_strided_slice %1311 {offsets = [0, 96], sizes = [8, 32], strides = [1, 1]} : vector<8x128xf32> to vector<8x32xf32>
    %1316 = arith.mulf %1313, %1297 : vector<8x32xf32>
    %1317 = arith.mulf %1312, %1315 : vector<8x32xf32>
    %1318 = arith.addf %1316, %1317 : vector<8x32xf32>
    %1319 = math.tanh %1318 : vector<8x32xf32>
    %1320 = arith.mulf %1314, %1319 : vector<8x32xf32>
    %c40_628 = arith.constant 40 : index
    %c0_629 = arith.constant 0 : index
    %1321 = vector.load %arg28[%c40_628, %c0_629] : memref<128x32xf32, #tpu.memory_space<vmem>>, vector<8x32xf32>
    tpu.vector_store %arg28[%c40_628, %c0_629], %1320 {strides = array<i32>} : memref<128x32xf32, #tpu.memory_space<vmem>>, vector<8x32xf32>,
    %1322 = arith.truncf %1320 : vector<8x32xf32> to vector<8x32xbf16>
    %c48_630 = arith.constant 48 : index
    %c0_631 = arith.constant 0 : index
    %1323 = vector.load %arg27[%c48_630, %c0_631] : memref<128x128xf32, #tpu.memory_space<vmem>>, vector<8x128xf32>
    %cst_632 = arith.constant dense<0.000000e+00> : vector<8x128xf32>
    %1324 = tpu.matmul %1322, %1183, %cst_632 {dimension_numbers = #tpu.dot_dimension_numbers<[1], [0], [0], [1], [0, 0, 1, 1], [], []>} : vector<8x32xbf16>, vector<32x128xbf16>, vector<8x128xf32> -> vector<8x128xf32>
    %1325 = arith.addf %1323, %1324 : vector<8x128xf32>
    %1326 = arith.negf %1325 : vector<8x128xf32>
    %1327 = math.exp %1326 : vector<8x128xf32>
    %cst_633 = arith.constant 1.000000e+00 : f32
    %1328 = vector.broadcast %cst_633 : f32 to vector<8x128xf32>
    %1329 = arith.addf %1328, %1327 : vector<8x128xf32>
    %1330 = arith.divf %1328, %1329 : vector<8x128xf32>
    %1331 = math.tanh %1325 : vector<8x128xf32>
    %1332 = arith.select %1194, %1330, %1331 : vector<8x128xi1>, vector<8x128xf32>
    %1333 = vector.extract_strided_slice %1332 {offsets = [0, 0], sizes = [8, 32], strides = [1, 1]} : vector<8x128xf32> to vector<8x32xf32>
    %1334 = vector.extract_strided_slice %1332 {offsets = [0, 32], sizes = [8, 32], strides = [1, 1]} : vector<8x128xf32> to vector<8x32xf32>
    %1335 = vector.extract_strided_slice %1332 {offsets = [0, 64], sizes = [8, 32], strides = [1, 1]} : vector<8x128xf32> to vector<8x32xf32>
    %1336 = vector.extract_strided_slice %1332 {offsets = [0, 96], sizes = [8, 32], strides = [1, 1]} : vector<8x128xf32> to vector<8x32xf32>
    %1337 = arith.mulf %1334, %1318 : vector<8x32xf32>
    %1338 = arith.mulf %1333, %1336 : vector<8x32xf32>
    %1339 = arith.addf %1337, %1338 : vector<8x32xf32>
    %1340 = math.tanh %1339 : vector<8x32xf32>
    %1341 = arith.mulf %1335, %1340 : vector<8x32xf32>
    %c48_634 = arith.constant 48 : index
    %c0_635 = arith.constant 0 : index
    %1342 = vector.load %arg28[%c48_634, %c0_635] : memref<128x32xf32, #tpu.memory_space<vmem>>, vector<8x32xf32>
    tpu.vector_store %arg28[%c48_634, %c0_635], %1341 {strides = array<i32>} : memref<128x32xf32, #tpu.memory_space<vmem>>, vector<8x32xf32>,
    %1343 = arith.truncf %1341 : vector<8x32xf32> to vector<8x32xbf16>
    %c56_636 = arith.constant 56 : index
    %c0_637 = arith.constant 0 : index
    %1344 = vector.load %arg27[%c56_636, %c0_637] : memref<128x128xf32, #tpu.memory_space<vmem>>, vector<8x128xf32>
    %cst_638 = arith.constant dense<0.000000e+00> : vector<8x128xf32>
    %1345 = tpu.matmul %1343, %1183, %cst_638 {dimension_numbers = #tpu.dot_dimension_numbers<[1], [0], [0], [1], [0, 0, 1, 1], [], []>} : vector<8x32xbf16>, vector<32x128xbf16>, vector<8x128xf32> -> vector<8x128xf32>
    %1346 = arith.addf %1344, %1345 : vector<8x128xf32>
    %1347 = arith.negf %1346 : vector<8x128xf32>
    %1348 = math.exp %1347 : vector<8x128xf32>
    %cst_639 = arith.constant 1.000000e+00 : f32
    %1349 = vector.broadcast %cst_639 : f32 to vector<8x128xf32>
    %1350 = arith.addf %1349, %1348 : vector<8x128xf32>
    %1351 = arith.divf %1349, %1350 : vector<8x128xf32>
    %1352 = math.tanh %1346 : vector<8x128xf32>
    %1353 = arith.select %1194, %1351, %1352 : vector<8x128xi1>, vector<8x128xf32>
    %1354 = vector.extract_strided_slice %1353 {offsets = [0, 0], sizes = [8, 32], strides = [1, 1]} : vector<8x128xf32> to vector<8x32xf32>
    %1355 = vector.extract_strided_slice %1353 {offsets = [0, 32], sizes = [8, 32], strides = [1, 1]} : vector<8x128xf32> to vector<8x32xf32>
    %1356 = vector.extract_strided_slice %1353 {offsets = [0, 64], sizes = [8, 32], strides = [1, 1]} : vector<8x128xf32> to vector<8x32xf32>
    %1357 = vector.extract_strided_slice %1353 {offsets = [0, 96], sizes = [8, 32], strides = [1, 1]} : vector<8x128xf32> to vector<8x32xf32>
    %1358 = arith.mulf %1355, %1339 : vector<8x32xf32>
    %1359 = arith.mulf %1354, %1357 : vector<8x32xf32>
    %1360 = arith.addf %1358, %1359 : vector<8x32xf32>
    %1361 = math.tanh %1360 : vector<8x32xf32>
    %1362 = arith.mulf %1356, %1361 : vector<8x32xf32>
    %c56_640 = arith.constant 56 : index
    %c0_641 = arith.constant 0 : index
    %1363 = vector.load %arg28[%c56_640, %c0_641] : memref<128x32xf32, #tpu.memory_space<vmem>>, vector<8x32xf32>
    tpu.vector_store %arg28[%c56_640, %c0_641], %1362 {strides = array<i32>} : memref<128x32xf32, #tpu.memory_space<vmem>>, vector<8x32xf32>,
    %1364 = arith.truncf %1362 : vector<8x32xf32> to vector<8x32xbf16>
    %c64_642 = arith.constant 64 : index
    %c0_643 = arith.constant 0 : index
    %1365 = vector.load %arg27[%c64_642, %c0_643] : memref<128x128xf32, #tpu.memory_space<vmem>>, vector<8x128xf32>
    %cst_644 = arith.constant dense<0.000000e+00> : vector<8x128xf32>
    %1366 = tpu.matmul %1364, %1183, %cst_644 {dimension_numbers = #tpu.dot_dimension_numbers<[1], [0], [0], [1], [0, 0, 1, 1], [], []>} : vector<8x32xbf16>, vector<32x128xbf16>, vector<8x128xf32> -> vector<8x128xf32>
    %1367 = arith.addf %1365, %1366 : vector<8x128xf32>
    %1368 = arith.negf %1367 : vector<8x128xf32>
    %1369 = math.exp %1368 : vector<8x128xf32>
    %cst_645 = arith.constant 1.000000e+00 : f32
    %1370 = vector.broadcast %cst_645 : f32 to vector<8x128xf32>
    %1371 = arith.addf %1370, %1369 : vector<8x128xf32>
    %1372 = arith.divf %1370, %1371 : vector<8x128xf32>
    %1373 = math.tanh %1367 : vector<8x128xf32>
    %1374 = arith.select %1194, %1372, %1373 : vector<8x128xi1>, vector<8x128xf32>
    %1375 = vector.extract_strided_slice %1374 {offsets = [0, 0], sizes = [8, 32], strides = [1, 1]} : vector<8x128xf32> to vector<8x32xf32>
    %1376 = vector.extract_strided_slice %1374 {offsets = [0, 32], sizes = [8, 32], strides = [1, 1]} : vector<8x128xf32> to vector<8x32xf32>
    %1377 = vector.extract_strided_slice %1374 {offsets = [0, 64], sizes = [8, 32], strides = [1, 1]} : vector<8x128xf32> to vector<8x32xf32>
    %1378 = vector.extract_strided_slice %1374 {offsets = [0, 96], sizes = [8, 32], strides = [1, 1]} : vector<8x128xf32> to vector<8x32xf32>
    %1379 = arith.mulf %1376, %1360 : vector<8x32xf32>
    %1380 = arith.mulf %1375, %1378 : vector<8x32xf32>
    %1381 = arith.addf %1379, %1380 : vector<8x32xf32>
    %1382 = math.tanh %1381 : vector<8x32xf32>
    %1383 = arith.mulf %1377, %1382 : vector<8x32xf32>
    %c64_646 = arith.constant 64 : index
    %c0_647 = arith.constant 0 : index
    %1384 = vector.load %arg28[%c64_646, %c0_647] : memref<128x32xf32, #tpu.memory_space<vmem>>, vector<8x32xf32>
    tpu.vector_store %arg28[%c64_646, %c0_647], %1383 {strides = array<i32>} : memref<128x32xf32, #tpu.memory_space<vmem>>, vector<8x32xf32>,
    %1385 = arith.truncf %1383 : vector<8x32xf32> to vector<8x32xbf16>
    %c72_648 = arith.constant 72 : index
    %c0_649 = arith.constant 0 : index
    %1386 = vector.load %arg27[%c72_648, %c0_649] : memref<128x128xf32, #tpu.memory_space<vmem>>, vector<8x128xf32>
    %cst_650 = arith.constant dense<0.000000e+00> : vector<8x128xf32>
    %1387 = tpu.matmul %1385, %1183, %cst_650 {dimension_numbers = #tpu.dot_dimension_numbers<[1], [0], [0], [1], [0, 0, 1, 1], [], []>} : vector<8x32xbf16>, vector<32x128xbf16>, vector<8x128xf32> -> vector<8x128xf32>
    %1388 = arith.addf %1386, %1387 : vector<8x128xf32>
    %1389 = arith.negf %1388 : vector<8x128xf32>
    %1390 = math.exp %1389 : vector<8x128xf32>
    %cst_651 = arith.constant 1.000000e+00 : f32
    %1391 = vector.broadcast %cst_651 : f32 to vector<8x128xf32>
    %1392 = arith.addf %1391, %1390 : vector<8x128xf32>
    %1393 = arith.divf %1391, %1392 : vector<8x128xf32>
    %1394 = math.tanh %1388 : vector<8x128xf32>
    %1395 = arith.select %1194, %1393, %1394 : vector<8x128xi1>, vector<8x128xf32>
    %1396 = vector.extract_strided_slice %1395 {offsets = [0, 0], sizes = [8, 32], strides = [1, 1]} : vector<8x128xf32> to vector<8x32xf32>
    %1397 = vector.extract_strided_slice %1395 {offsets = [0, 32], sizes = [8, 32], strides = [1, 1]} : vector<8x128xf32> to vector<8x32xf32>
    %1398 = vector.extract_strided_slice %1395 {offsets = [0, 64], sizes = [8, 32], strides = [1, 1]} : vector<8x128xf32> to vector<8x32xf32>
    %1399 = vector.extract_strided_slice %1395 {offsets = [0, 96], sizes = [8, 32], strides = [1, 1]} : vector<8x128xf32> to vector<8x32xf32>
    %1400 = arith.mulf %1397, %1381 : vector<8x32xf32>
    %1401 = arith.mulf %1396, %1399 : vector<8x32xf32>
    %1402 = arith.addf %1400, %1401 : vector<8x32xf32>
    %1403 = math.tanh %1402 : vector<8x32xf32>
    %1404 = arith.mulf %1398, %1403 : vector<8x32xf32>
    %c72_652 = arith.constant 72 : index
    %c0_653 = arith.constant 0 : index
    %1405 = vector.load %arg28[%c72_652, %c0_653] : memref<128x32xf32, #tpu.memory_space<vmem>>, vector<8x32xf32>
    tpu.vector_store %arg28[%c72_652, %c0_653], %1404 {strides = array<i32>} : memref<128x32xf32, #tpu.memory_space<vmem>>, vector<8x32xf32>,
    %1406 = arith.truncf %1404 : vector<8x32xf32> to vector<8x32xbf16>
    %c80_654 = arith.constant 80 : index
    %c0_655 = arith.constant 0 : index
    %1407 = vector.load %arg27[%c80_654, %c0_655] : memref<128x128xf32, #tpu.memory_space<vmem>>, vector<8x128xf32>
    %cst_656 = arith.constant dense<0.000000e+00> : vector<8x128xf32>
    %1408 = tpu.matmul %1406, %1183, %cst_656 {dimension_numbers = #tpu.dot_dimension_numbers<[1], [0], [0], [1], [0, 0, 1, 1], [], []>} : vector<8x32xbf16>, vector<32x128xbf16>, vector<8x128xf32> -> vector<8x128xf32>
    %1409 = arith.addf %1407, %1408 : vector<8x128xf32>
    %1410 = arith.negf %1409 : vector<8x128xf32>
    %1411 = math.exp %1410 : vector<8x128xf32>
    %cst_657 = arith.constant 1.000000e+00 : f32
    %1412 = vector.broadcast %cst_657 : f32 to vector<8x128xf32>
    %1413 = arith.addf %1412, %1411 : vector<8x128xf32>
    %1414 = arith.divf %1412, %1413 : vector<8x128xf32>
    %1415 = math.tanh %1409 : vector<8x128xf32>
    %1416 = arith.select %1194, %1414, %1415 : vector<8x128xi1>, vector<8x128xf32>
    %1417 = vector.extract_strided_slice %1416 {offsets = [0, 0], sizes = [8, 32], strides = [1, 1]} : vector<8x128xf32> to vector<8x32xf32>
    %1418 = vector.extract_strided_slice %1416 {offsets = [0, 32], sizes = [8, 32], strides = [1, 1]} : vector<8x128xf32> to vector<8x32xf32>
    %1419 = vector.extract_strided_slice %1416 {offsets = [0, 64], sizes = [8, 32], strides = [1, 1]} : vector<8x128xf32> to vector<8x32xf32>
    %1420 = vector.extract_strided_slice %1416 {offsets = [0, 96], sizes = [8, 32], strides = [1, 1]} : vector<8x128xf32> to vector<8x32xf32>
    %1421 = arith.mulf %1418, %1402 : vector<8x32xf32>
    %1422 = arith.mulf %1417, %1420 : vector<8x32xf32>
    %1423 = arith.addf %1421, %1422 : vector<8x32xf32>
    %1424 = math.tanh %1423 : vector<8x32xf32>
    %1425 = arith.mulf %1419, %1424 : vector<8x32xf32>
    %c80_658 = arith.constant 80 : index
    %c0_659 = arith.constant 0 : index
    %1426 = vector.load %arg28[%c80_658, %c0_659] : memref<128x32xf32, #tpu.memory_space<vmem>>, vector<8x32xf32>
    tpu.vector_store %arg28[%c80_658, %c0_659], %1425 {strides = array<i32>} : memref<128x32xf32, #tpu.memory_space<vmem>>, vector<8x32xf32>,
    %1427 = arith.truncf %1425 : vector<8x32xf32> to vector<8x32xbf16>
    %c88_660 = arith.constant 88 : index
    %c0_661 = arith.constant 0 : index
    %1428 = vector.load %arg27[%c88_660, %c0_661] : memref<128x128xf32, #tpu.memory_space<vmem>>, vector<8x128xf32>
    %cst_662 = arith.constant dense<0.000000e+00> : vector<8x128xf32>
    %1429 = tpu.matmul %1427, %1183, %cst_662 {dimension_numbers = #tpu.dot_dimension_numbers<[1], [0], [0], [1], [0, 0, 1, 1], [], []>} : vector<8x32xbf16>, vector<32x128xbf16>, vector<8x128xf32> -> vector<8x128xf32>
    %1430 = arith.addf %1428, %1429 : vector<8x128xf32>
    %1431 = arith.negf %1430 : vector<8x128xf32>
    %1432 = math.exp %1431 : vector<8x128xf32>
    %cst_663 = arith.constant 1.000000e+00 : f32
    %1433 = vector.broadcast %cst_663 : f32 to vector<8x128xf32>
    %1434 = arith.addf %1433, %1432 : vector<8x128xf32>
    %1435 = arith.divf %1433, %1434 : vector<8x128xf32>
    %1436 = math.tanh %1430 : vector<8x128xf32>
    %1437 = arith.select %1194, %1435, %1436 : vector<8x128xi1>, vector<8x128xf32>
    %1438 = vector.extract_strided_slice %1437 {offsets = [0, 0], sizes = [8, 32], strides = [1, 1]} : vector<8x128xf32> to vector<8x32xf32>
    %1439 = vector.extract_strided_slice %1437 {offsets = [0, 32], sizes = [8, 32], strides = [1, 1]} : vector<8x128xf32> to vector<8x32xf32>
    %1440 = vector.extract_strided_slice %1437 {offsets = [0, 64], sizes = [8, 32], strides = [1, 1]} : vector<8x128xf32> to vector<8x32xf32>
    %1441 = vector.extract_strided_slice %1437 {offsets = [0, 96], sizes = [8, 32], strides = [1, 1]} : vector<8x128xf32> to vector<8x32xf32>
    %1442 = arith.mulf %1439, %1423 : vector<8x32xf32>
    %1443 = arith.mulf %1438, %1441 : vector<8x32xf32>
    %1444 = arith.addf %1442, %1443 : vector<8x32xf32>
    %1445 = math.tanh %1444 : vector<8x32xf32>
    %1446 = arith.mulf %1440, %1445 : vector<8x32xf32>
    %c88_664 = arith.constant 88 : index
    %c0_665 = arith.constant 0 : index
    %1447 = vector.load %arg28[%c88_664, %c0_665] : memref<128x32xf32, #tpu.memory_space<vmem>>, vector<8x32xf32>
    tpu.vector_store %arg28[%c88_664, %c0_665], %1446 {strides = array<i32>} : memref<128x32xf32, #tpu.memory_space<vmem>>, vector<8x32xf32>,
    %1448 = arith.truncf %1446 : vector<8x32xf32> to vector<8x32xbf16>
    %c96_666 = arith.constant 96 : index
    %c0_667 = arith.constant 0 : index
    %1449 = vector.load %arg27[%c96_666, %c0_667] : memref<128x128xf32, #tpu.memory_space<vmem>>, vector<8x128xf32>
    %cst_668 = arith.constant dense<0.000000e+00> : vector<8x128xf32>
    %1450 = tpu.matmul %1448, %1183, %cst_668 {dimension_numbers = #tpu.dot_dimension_numbers<[1], [0], [0], [1], [0, 0, 1, 1], [], []>} : vector<8x32xbf16>, vector<32x128xbf16>, vector<8x128xf32> -> vector<8x128xf32>
    %1451 = arith.addf %1449, %1450 : vector<8x128xf32>
    %1452 = arith.negf %1451 : vector<8x128xf32>
    %1453 = math.exp %1452 : vector<8x128xf32>
    %cst_669 = arith.constant 1.000000e+00 : f32
    %1454 = vector.broadcast %cst_669 : f32 to vector<8x128xf32>
    %1455 = arith.addf %1454, %1453 : vector<8x128xf32>
    %1456 = arith.divf %1454, %1455 : vector<8x128xf32>
    %1457 = math.tanh %1451 : vector<8x128xf32>
    %1458 = arith.select %1194, %1456, %1457 : vector<8x128xi1>, vector<8x128xf32>
    %1459 = vector.extract_strided_slice %1458 {offsets = [0, 0], sizes = [8, 32], strides = [1, 1]} : vector<8x128xf32> to vector<8x32xf32>
    %1460 = vector.extract_strided_slice %1458 {offsets = [0, 32], sizes = [8, 32], strides = [1, 1]} : vector<8x128xf32> to vector<8x32xf32>
    %1461 = vector.extract_strided_slice %1458 {offsets = [0, 64], sizes = [8, 32], strides = [1, 1]} : vector<8x128xf32> to vector<8x32xf32>
    %1462 = vector.extract_strided_slice %1458 {offsets = [0, 96], sizes = [8, 32], strides = [1, 1]} : vector<8x128xf32> to vector<8x32xf32>
    %1463 = arith.mulf %1460, %1444 : vector<8x32xf32>
    %1464 = arith.mulf %1459, %1462 : vector<8x32xf32>
    %1465 = arith.addf %1463, %1464 : vector<8x32xf32>
    %1466 = math.tanh %1465 : vector<8x32xf32>
    %1467 = arith.mulf %1461, %1466 : vector<8x32xf32>
    %c96_670 = arith.constant 96 : index
    %c0_671 = arith.constant 0 : index
    %1468 = vector.load %arg28[%c96_670, %c0_671] : memref<128x32xf32, #tpu.memory_space<vmem>>, vector<8x32xf32>
    tpu.vector_store %arg28[%c96_670, %c0_671], %1467 {strides = array<i32>} : memref<128x32xf32, #tpu.memory_space<vmem>>, vector<8x32xf32>,
    %1469 = arith.truncf %1467 : vector<8x32xf32> to vector<8x32xbf16>
    %c104_672 = arith.constant 104 : index
    %c0_673 = arith.constant 0 : index
    %1470 = vector.load %arg27[%c104_672, %c0_673] : memref<128x128xf32, #tpu.memory_space<vmem>>, vector<8x128xf32>
    %cst_674 = arith.constant dense<0.000000e+00> : vector<8x128xf32>
    %1471 = tpu.matmul %1469, %1183, %cst_674 {dimension_numbers = #tpu.dot_dimension_numbers<[1], [0], [0], [1], [0, 0, 1, 1], [], []>} : vector<8x32xbf16>, vector<32x128xbf16>, vector<8x128xf32> -> vector<8x128xf32>
    %1472 = arith.addf %1470, %1471 : vector<8x128xf32>
    %1473 = arith.negf %1472 : vector<8x128xf32>
    %1474 = math.exp %1473 : vector<8x128xf32>
    %cst_675 = arith.constant 1.000000e+00 : f32
    %1475 = vector.broadcast %cst_675 : f32 to vector<8x128xf32>
    %1476 = arith.addf %1475, %1474 : vector<8x128xf32>
    %1477 = arith.divf %1475, %1476 : vector<8x128xf32>
    %1478 = math.tanh %1472 : vector<8x128xf32>
    %1479 = arith.select %1194, %1477, %1478 : vector<8x128xi1>, vector<8x128xf32>
    %1480 = vector.extract_strided_slice %1479 {offsets = [0, 0], sizes = [8, 32], strides = [1, 1]} : vector<8x128xf32> to vector<8x32xf32>
    %1481 = vector.extract_strided_slice %1479 {offsets = [0, 32], sizes = [8, 32], strides = [1, 1]} : vector<8x128xf32> to vector<8x32xf32>
    %1482 = vector.extract_strided_slice %1479 {offsets = [0, 64], sizes = [8, 32], strides = [1, 1]} : vector<8x128xf32> to vector<8x32xf32>
    %1483 = vector.extract_strided_slice %1479 {offsets = [0, 96], sizes = [8, 32], strides = [1, 1]} : vector<8x128xf32> to vector<8x32xf32>
    %1484 = arith.mulf %1481, %1465 : vector<8x32xf32>
    %1485 = arith.mulf %1480, %1483 : vector<8x32xf32>
    %1486 = arith.addf %1484, %1485 : vector<8x32xf32>
    %1487 = math.tanh %1486 : vector<8x32xf32>
    %1488 = arith.mulf %1482, %1487 : vector<8x32xf32>
    %c104_676 = arith.constant 104 : index
    %c0_677 = arith.constant 0 : index
    %1489 = vector.load %arg28[%c104_676, %c0_677] : memref<128x32xf32, #tpu.memory_space<vmem>>, vector<8x32xf32>
    tpu.vector_store %arg28[%c104_676, %c0_677], %1488 {strides = array<i32>} : memref<128x32xf32, #tpu.memory_space<vmem>>, vector<8x32xf32>,
    %1490 = arith.truncf %1488 : vector<8x32xf32> to vector<8x32xbf16>
    %c112_678 = arith.constant 112 : index
    %c0_679 = arith.constant 0 : index
    %1491 = vector.load %arg27[%c112_678, %c0_679] : memref<128x128xf32, #tpu.memory_space<vmem>>, vector<8x128xf32>
    %cst_680 = arith.constant dense<0.000000e+00> : vector<8x128xf32>
    %1492 = tpu.matmul %1490, %1183, %cst_680 {dimension_numbers = #tpu.dot_dimension_numbers<[1], [0], [0], [1], [0, 0, 1, 1], [], []>} : vector<8x32xbf16>, vector<32x128xbf16>, vector<8x128xf32> -> vector<8x128xf32>
    %1493 = arith.addf %1491, %1492 : vector<8x128xf32>
    %1494 = arith.negf %1493 : vector<8x128xf32>
    %1495 = math.exp %1494 : vector<8x128xf32>
    %cst_681 = arith.constant 1.000000e+00 : f32
    %1496 = vector.broadcast %cst_681 : f32 to vector<8x128xf32>
    %1497 = arith.addf %1496, %1495 : vector<8x128xf32>
    %1498 = arith.divf %1496, %1497 : vector<8x128xf32>
    %1499 = math.tanh %1493 : vector<8x128xf32>
    %1500 = arith.select %1194, %1498, %1499 : vector<8x128xi1>, vector<8x128xf32>
    %1501 = vector.extract_strided_slice %1500 {offsets = [0, 0], sizes = [8, 32], strides = [1, 1]} : vector<8x128xf32> to vector<8x32xf32>
    %1502 = vector.extract_strided_slice %1500 {offsets = [0, 32], sizes = [8, 32], strides = [1, 1]} : vector<8x128xf32> to vector<8x32xf32>
    %1503 = vector.extract_strided_slice %1500 {offsets = [0, 64], sizes = [8, 32], strides = [1, 1]} : vector<8x128xf32> to vector<8x32xf32>
    %1504 = vector.extract_strided_slice %1500 {offsets = [0, 96], sizes = [8, 32], strides = [1, 1]} : vector<8x128xf32> to vector<8x32xf32>
    %1505 = arith.mulf %1502, %1486 : vector<8x32xf32>
    %1506 = arith.mulf %1501, %1504 : vector<8x32xf32>
    %1507 = arith.addf %1505, %1506 : vector<8x32xf32>
    %1508 = math.tanh %1507 : vector<8x32xf32>
    %1509 = arith.mulf %1503, %1508 : vector<8x32xf32>
    %c112_682 = arith.constant 112 : index
    %c0_683 = arith.constant 0 : index
    %1510 = vector.load %arg28[%c112_682, %c0_683] : memref<128x32xf32, #tpu.memory_space<vmem>>, vector<8x32xf32>
    tpu.vector_store %arg28[%c112_682, %c0_683], %1509 {strides = array<i32>} : memref<128x32xf32, #tpu.memory_space<vmem>>, vector<8x32xf32>,
    %1511 = arith.truncf %1509 : vector<8x32xf32> to vector<8x32xbf16>
    %c120_684 = arith.constant 120 : index
    %c0_685 = arith.constant 0 : index
    %1512 = vector.load %arg27[%c120_684, %c0_685] : memref<128x128xf32, #tpu.memory_space<vmem>>, vector<8x128xf32>
    %cst_686 = arith.constant dense<0.000000e+00> : vector<8x128xf32>
    %1513 = tpu.matmul %1511, %1183, %cst_686 {dimension_numbers = #tpu.dot_dimension_numbers<[1], [0], [0], [1], [0, 0, 1, 1], [], []>} : vector<8x32xbf16>, vector<32x128xbf16>, vector<8x128xf32> -> vector<8x128xf32>
    %1514 = arith.addf %1512, %1513 : vector<8x128xf32>
    %1515 = arith.negf %1514 : vector<8x128xf32>
    %1516 = math.exp %1515 : vector<8x128xf32>
    %cst_687 = arith.constant 1.000000e+00 : f32
    %1517 = vector.broadcast %cst_687 : f32 to vector<8x128xf32>
    %1518 = arith.addf %1517, %1516 : vector<8x128xf32>
    %1519 = arith.divf %1517, %1518 : vector<8x128xf32>
    %1520 = math.tanh %1514 : vector<8x128xf32>
    %1521 = arith.select %1194, %1519, %1520 : vector<8x128xi1>, vector<8x128xf32>
    %1522 = vector.extract_strided_slice %1521 {offsets = [0, 0], sizes = [8, 32], strides = [1, 1]} : vector<8x128xf32> to vector<8x32xf32>
    %1523 = vector.extract_strided_slice %1521 {offsets = [0, 32], sizes = [8, 32], strides = [1, 1]} : vector<8x128xf32> to vector<8x32xf32>
    %1524 = vector.extract_strided_slice %1521 {offsets = [0, 64], sizes = [8, 32], strides = [1, 1]} : vector<8x128xf32> to vector<8x32xf32>
    %1525 = vector.extract_strided_slice %1521 {offsets = [0, 96], sizes = [8, 32], strides = [1, 1]} : vector<8x128xf32> to vector<8x32xf32>
    %1526 = arith.mulf %1523, %1507 : vector<8x32xf32>
    %1527 = arith.mulf %1522, %1525 : vector<8x32xf32>
    %1528 = arith.addf %1526, %1527 : vector<8x32xf32>
    %1529 = math.tanh %1528 : vector<8x32xf32>
    %1530 = arith.mulf %1524, %1529 : vector<8x32xf32>
    %c120_688 = arith.constant 120 : index
    %c0_689 = arith.constant 0 : index
    %1531 = vector.load %arg28[%c120_688, %c0_689] : memref<128x32xf32, #tpu.memory_space<vmem>>, vector<8x32xf32>
    tpu.vector_store %arg28[%c120_688, %c0_689], %1530 {strides = array<i32>} : memref<128x32xf32, #tpu.memory_space<vmem>>, vector<8x32xf32>,
    %c120_690 = arith.constant 120 : index
    %c0_691 = arith.constant 0 : index
    %1532 = vector.load %arg28[%c120_690, %c0_691] : memref<128x32xf32, #tpu.memory_space<vmem>>, vector<8x32xf32>
    %c0_692 = arith.constant 0 : index
    %c0_693 = arith.constant 0 : index
    %1533 = vector.load %arg29[%c0_692, %c0_693] : memref<128x32xf32, #tpu.memory_space<vmem>>, vector<8x32xf32>
    tpu.vector_store %arg29[%c0_692, %c0_693], %1532 {strides = array<i32>} : memref<128x32xf32, #tpu.memory_space<vmem>>, vector<8x32xf32>,
    %c112_694 = arith.constant 112 : index
    %c0_695 = arith.constant 0 : index
    %1534 = vector.load %arg28[%c112_694, %c0_695] : memref<128x32xf32, #tpu.memory_space<vmem>>, vector<8x32xf32>
    %c8_696 = arith.constant 8 : index
    %c0_697 = arith.constant 0 : index
    %1535 = vector.load %arg29[%c8_696, %c0_697] : memref<128x32xf32, #tpu.memory_space<vmem>>, vector<8x32xf32>
    tpu.vector_store %arg29[%c8_696, %c0_697], %1534 {strides = array<i32>} : memref<128x32xf32, #tpu.memory_space<vmem>>, vector<8x32xf32>,
    %c104_698 = arith.constant 104 : index
    %c0_699 = arith.constant 0 : index
    %1536 = vector.load %arg28[%c104_698, %c0_699] : memref<128x32xf32, #tpu.memory_space<vmem>>, vector<8x32xf32>
    %c16_700 = arith.constant 16 : index
    %c0_701 = arith.constant 0 : index
    %1537 = vector.load %arg29[%c16_700, %c0_701] : memref<128x32xf32, #tpu.memory_space<vmem>>, vector<8x32xf32>
    tpu.vector_store %arg29[%c16_700, %c0_701], %1536 {strides = array<i32>} : memref<128x32xf32, #tpu.memory_space<vmem>>, vector<8x32xf32>,
    %c96_702 = arith.constant 96 : index
    %c0_703 = arith.constant 0 : index
    %1538 = vector.load %arg28[%c96_702, %c0_703] : memref<128x32xf32, #tpu.memory_space<vmem>>, vector<8x32xf32>
    %c24_704 = arith.constant 24 : index
    %c0_705 = arith.constant 0 : index
    %1539 = vector.load %arg29[%c24_704, %c0_705] : memref<128x32xf32, #tpu.memory_space<vmem>>, vector<8x32xf32>
    tpu.vector_store %arg29[%c24_704, %c0_705], %1538 {strides = array<i32>} : memref<128x32xf32, #tpu.memory_space<vmem>>, vector<8x32xf32>,
    %c88_706 = arith.constant 88 : index
    %c0_707 = arith.constant 0 : index
    %1540 = vector.load %arg28[%c88_706, %c0_707] : memref<128x32xf32, #tpu.memory_space<vmem>>, vector<8x32xf32>
    %c32_708 = arith.constant 32 : index
    %c0_709 = arith.constant 0 : index
    %1541 = vector.load %arg29[%c32_708, %c0_709] : memref<128x32xf32, #tpu.memory_space<vmem>>, vector<8x32xf32>
    tpu.vector_store %arg29[%c32_708, %c0_709], %1540 {strides = array<i32>} : memref<128x32xf32, #tpu.memory_space<vmem>>, vector<8x32xf32>,
    %c80_710 = arith.constant 80 : index
    %c0_711 = arith.constant 0 : index
    %1542 = vector.load %arg28[%c80_710, %c0_711] : memref<128x32xf32, #tpu.memory_space<vmem>>, vector<8x32xf32>
    %c40_712 = arith.constant 40 : index
    %c0_713 = arith.constant 0 : index
    %1543 = vector.load %arg29[%c40_712, %c0_713] : memref<128x32xf32, #tpu.memory_space<vmem>>, vector<8x32xf32>
    tpu.vector_store %arg29[%c40_712, %c0_713], %1542 {strides = array<i32>} : memref<128x32xf32, #tpu.memory_space<vmem>>, vector<8x32xf32>,
    %c72_714 = arith.constant 72 : index
    %c0_715 = arith.constant 0 : index
    %1544 = vector.load %arg28[%c72_714, %c0_715] : memref<128x32xf32, #tpu.memory_space<vmem>>, vector<8x32xf32>
    %c48_716 = arith.constant 48 : index
    %c0_717 = arith.constant 0 : index
    %1545 = vector.load %arg29[%c48_716, %c0_717] : memref<128x32xf32, #tpu.memory_space<vmem>>, vector<8x32xf32>
    tpu.vector_store %arg29[%c48_716, %c0_717], %1544 {strides = array<i32>} : memref<128x32xf32, #tpu.memory_space<vmem>>, vector<8x32xf32>,
    %c64_718 = arith.constant 64 : index
    %c0_719 = arith.constant 0 : index
    %1546 = vector.load %arg28[%c64_718, %c0_719] : memref<128x32xf32, #tpu.memory_space<vmem>>, vector<8x32xf32>
    %c56_720 = arith.constant 56 : index
    %c0_721 = arith.constant 0 : index
    %1547 = vector.load %arg29[%c56_720, %c0_721] : memref<128x32xf32, #tpu.memory_space<vmem>>, vector<8x32xf32>
    tpu.vector_store %arg29[%c56_720, %c0_721], %1546 {strides = array<i32>} : memref<128x32xf32, #tpu.memory_space<vmem>>, vector<8x32xf32>,
    %c56_722 = arith.constant 56 : index
    %c0_723 = arith.constant 0 : index
    %1548 = vector.load %arg28[%c56_722, %c0_723] : memref<128x32xf32, #tpu.memory_space<vmem>>, vector<8x32xf32>
    %c64_724 = arith.constant 64 : index
    %c0_725 = arith.constant 0 : index
    %1549 = vector.load %arg29[%c64_724, %c0_725] : memref<128x32xf32, #tpu.memory_space<vmem>>, vector<8x32xf32>
    tpu.vector_store %arg29[%c64_724, %c0_725], %1548 {strides = array<i32>} : memref<128x32xf32, #tpu.memory_space<vmem>>, vector<8x32xf32>,
    %c48_726 = arith.constant 48 : index
    %c0_727 = arith.constant 0 : index
    %1550 = vector.load %arg28[%c48_726, %c0_727] : memref<128x32xf32, #tpu.memory_space<vmem>>, vector<8x32xf32>
    %c72_728 = arith.constant 72 : index
    %c0_729 = arith.constant 0 : index
    %1551 = vector.load %arg29[%c72_728, %c0_729] : memref<128x32xf32, #tpu.memory_space<vmem>>, vector<8x32xf32>
    tpu.vector_store %arg29[%c72_728, %c0_729], %1550 {strides = array<i32>} : memref<128x32xf32, #tpu.memory_space<vmem>>, vector<8x32xf32>,
    %c40_730 = arith.constant 40 : index
    %c0_731 = arith.constant 0 : index
    %1552 = vector.load %arg28[%c40_730, %c0_731] : memref<128x32xf32, #tpu.memory_space<vmem>>, vector<8x32xf32>
    %c80_732 = arith.constant 80 : index
    %c0_733 = arith.constant 0 : index
    %1553 = vector.load %arg29[%c80_732, %c0_733] : memref<128x32xf32, #tpu.memory_space<vmem>>, vector<8x32xf32>
    tpu.vector_store %arg29[%c80_732, %c0_733], %1552 {strides = array<i32>} : memref<128x32xf32, #tpu.memory_space<vmem>>, vector<8x32xf32>,
    %c32_734 = arith.constant 32 : index
    %c0_735 = arith.constant 0 : index
    %1554 = vector.load %arg28[%c32_734, %c0_735] : memref<128x32xf32, #tpu.memory_space<vmem>>, vector<8x32xf32>
    %c88_736 = arith.constant 88 : index
    %c0_737 = arith.constant 0 : index
    %1555 = vector.load %arg29[%c88_736, %c0_737] : memref<128x32xf32, #tpu.memory_space<vmem>>, vector<8x32xf32>
    tpu.vector_store %arg29[%c88_736, %c0_737], %1554 {strides = array<i32>} : memref<128x32xf32, #tpu.memory_space<vmem>>, vector<8x32xf32>,
    %c24_738 = arith.constant 24 : index
    %c0_739 = arith.constant 0 : index
    %1556 = vector.load %arg28[%c24_738, %c0_739] : memref<128x32xf32, #tpu.memory_space<vmem>>, vector<8x32xf32>
    %c96_740 = arith.constant 96 : index
    %c0_741 = arith.constant 0 : index
    %1557 = vector.load %arg29[%c96_740, %c0_741] : memref<128x32xf32, #tpu.memory_space<vmem>>, vector<8x32xf32>
    tpu.vector_store %arg29[%c96_740, %c0_741], %1556 {strides = array<i32>} : memref<128x32xf32, #tpu.memory_space<vmem>>, vector<8x32xf32>,
    %c16_742 = arith.constant 16 : index
    %c0_743 = arith.constant 0 : index
    %1558 = vector.load %arg28[%c16_742, %c0_743] : memref<128x32xf32, #tpu.memory_space<vmem>>, vector<8x32xf32>
    %c104_744 = arith.constant 104 : index
    %c0_745 = arith.constant 0 : index
    %1559 = vector.load %arg29[%c104_744, %c0_745] : memref<128x32xf32, #tpu.memory_space<vmem>>, vector<8x32xf32>
    tpu.vector_store %arg29[%c104_744, %c0_745], %1558 {strides = array<i32>} : memref<128x32xf32, #tpu.memory_space<vmem>>, vector<8x32xf32>,
    %c8_746 = arith.constant 8 : index
    %c0_747 = arith.constant 0 : index
    %1560 = vector.load %arg28[%c8_746, %c0_747] : memref<128x32xf32, #tpu.memory_space<vmem>>, vector<8x32xf32>
    %c112_748 = arith.constant 112 : index
    %c0_749 = arith.constant 0 : index
    %1561 = vector.load %arg29[%c112_748, %c0_749] : memref<128x32xf32, #tpu.memory_space<vmem>>, vector<8x32xf32>
    tpu.vector_store %arg29[%c112_748, %c0_749], %1560 {strides = array<i32>} : memref<128x32xf32, #tpu.memory_space<vmem>>, vector<8x32xf32>,
    %c0_750 = arith.constant 0 : index
    %c0_751 = arith.constant 0 : index
    %1562 = vector.load %arg28[%c0_750, %c0_751] : memref<128x32xf32, #tpu.memory_space<vmem>>, vector<8x32xf32>
    %c120_752 = arith.constant 120 : index
    %c0_753 = arith.constant 0 : index
    %1563 = vector.load %arg29[%c120_752, %c0_753] : memref<128x32xf32, #tpu.memory_space<vmem>>, vector<8x32xf32>
    tpu.vector_store %arg29[%c120_752, %c0_753], %1562 {strides = array<i32>} : memref<128x32xf32, #tpu.memory_space<vmem>>, vector<8x32xf32>,
    %c0_754 = arith.constant 0 : index
    %c0_755 = arith.constant 0 : index
    %1564 = vector.load %arg13[%c0_754, %c0_755] : memref<224x4xbf16, #tpu.memory_space<vmem>>, vector<224x4xbf16>
    %c0_756 = arith.constant 0 : index
    %c0_757 = arith.constant 0 : index
    %1565 = vector.load %arg14[%c0_756, %c0_757] : memref<224x4xbf16, #tpu.memory_space<vmem>>, vector<224x4xbf16>
    %cst_758 = arith.constant 0.000000e+00 : f32
    %1566 = vector.broadcast %cst_758 : f32 to vector<80x4xf32>
    %c0_759 = arith.constant 0 : index
    %c0_760 = arith.constant 0 : index
    %1567 = vector.load %arg28[%c0_759, %c0_760] : memref<128x32xf32, #tpu.memory_space<vmem>>, vector<80x32xf32>
    %1568 = arith.truncf %1567 : vector<80x32xf32> to vector<80x32xbf16>
    %1569 = vector.extract_strided_slice %1564 {offsets = [0, 0], sizes = [32, 4], strides = [1, 1]} : vector<224x4xbf16> to vector<32x4xbf16>
    %cst_761 = arith.constant dense<0.000000e+00> : vector<80x4xf32>
    %1570 = tpu.matmul %1568, %1569, %cst_761 {dimension_numbers = #tpu.dot_dimension_numbers<[1], [0], [0], [1], [0, 0, 1, 1], [], []>} : vector<80x32xbf16>, vector<32x4xbf16>, vector<80x4xf32> -> vector<80x4xf32>
    %1571 = arith.addf %1566, %1570 : vector<80x4xf32>
    %c0_762 = arith.constant 0 : index
    %c0_763 = arith.constant 0 : index
    %1572 = vector.load %arg29[%c0_762, %c0_763] : memref<128x32xf32, #tpu.memory_space<vmem>>, vector<80x32xf32>
    %1573 = arith.truncf %1572 : vector<80x32xf32> to vector<80x32xbf16>
    %1574 = vector.extract_strided_slice %1565 {offsets = [0, 0], sizes = [32, 4], strides = [1, 1]} : vector<224x4xbf16> to vector<32x4xbf16>
    %cst_764 = arith.constant dense<0.000000e+00> : vector<80x4xf32>
    %1575 = tpu.matmul %1573, %1574, %cst_764 {dimension_numbers = #tpu.dot_dimension_numbers<[1], [0], [0], [1], [0, 0, 1, 1], [], []>} : vector<80x32xbf16>, vector<32x4xbf16>, vector<80x4xf32> -> vector<80x4xf32>
    %1576 = arith.addf %1571, %1575 : vector<80x4xf32>
    %c8_765 = arith.constant 8 : index
    %c0_766 = arith.constant 0 : index
    %1577 = vector.load %arg28[%c8_765, %c0_766] : memref<128x32xf32, #tpu.memory_space<vmem>>, vector<80x32xf32>
    %1578 = arith.truncf %1577 : vector<80x32xf32> to vector<80x32xbf16>
    %1579 = vector.extract_strided_slice %1564 {offsets = [32, 0], sizes = [32, 4], strides = [1, 1]} : vector<224x4xbf16> to vector<32x4xbf16>
    %cst_767 = arith.constant dense<0.000000e+00> : vector<80x4xf32>
    %1580 = tpu.matmul %1578, %1579, %cst_767 {dimension_numbers = #tpu.dot_dimension_numbers<[1], [0], [0], [1], [0, 0, 1, 1], [], []>} : vector<80x32xbf16>, vector<32x4xbf16>, vector<80x4xf32> -> vector<80x4xf32>
    %1581 = arith.addf %1576, %1580 : vector<80x4xf32>
    %c8_768 = arith.constant 8 : index
    %c0_769 = arith.constant 0 : index
    %1582 = vector.load %arg29[%c8_768, %c0_769] : memref<128x32xf32, #tpu.memory_space<vmem>>, vector<80x32xf32>
    %1583 = arith.truncf %1582 : vector<80x32xf32> to vector<80x32xbf16>
    %1584 = vector.extract_strided_slice %1565 {offsets = [32, 0], sizes = [32, 4], strides = [1, 1]} : vector<224x4xbf16> to vector<32x4xbf16>
    %cst_770 = arith.constant dense<0.000000e+00> : vector<80x4xf32>
    %1585 = tpu.matmul %1583, %1584, %cst_770 {dimension_numbers = #tpu.dot_dimension_numbers<[1], [0], [0], [1], [0, 0, 1, 1], [], []>} : vector<80x32xbf16>, vector<32x4xbf16>, vector<80x4xf32> -> vector<80x4xf32>
    %1586 = arith.addf %1581, %1585 : vector<80x4xf32>
    %c16_771 = arith.constant 16 : index
    %c0_772 = arith.constant 0 : index
    %1587 = vector.load %arg28[%c16_771, %c0_772] : memref<128x32xf32, #tpu.memory_space<vmem>>, vector<80x32xf32>
    %1588 = arith.truncf %1587 : vector<80x32xf32> to vector<80x32xbf16>
    %1589 = vector.extract_strided_slice %1564 {offsets = [64, 0], sizes = [32, 4], strides = [1, 1]} : vector<224x4xbf16> to vector<32x4xbf16>
    %cst_773 = arith.constant dense<0.000000e+00> : vector<80x4xf32>
    %1590 = tpu.matmul %1588, %1589, %cst_773 {dimension_numbers = #tpu.dot_dimension_numbers<[1], [0], [0], [1], [0, 0, 1, 1], [], []>} : vector<80x32xbf16>, vector<32x4xbf16>, vector<80x4xf32> -> vector<80x4xf32>
    %1591 = arith.addf %1586, %1590 : vector<80x4xf32>
    %c16_774 = arith.constant 16 : index
    %c0_775 = arith.constant 0 : index
    %1592 = vector.load %arg29[%c16_774, %c0_775] : memref<128x32xf32, #tpu.memory_space<vmem>>, vector<80x32xf32>
    %1593 = arith.truncf %1592 : vector<80x32xf32> to vector<80x32xbf16>
    %1594 = vector.extract_strided_slice %1565 {offsets = [64, 0], sizes = [32, 4], strides = [1, 1]} : vector<224x4xbf16> to vector<32x4xbf16>
    %cst_776 = arith.constant dense<0.000000e+00> : vector<80x4xf32>
    %1595 = tpu.matmul %1593, %1594, %cst_776 {dimension_numbers = #tpu.dot_dimension_numbers<[1], [0], [0], [1], [0, 0, 1, 1], [], []>} : vector<80x32xbf16>, vector<32x4xbf16>, vector<80x4xf32> -> vector<80x4xf32>
    %1596 = arith.addf %1591, %1595 : vector<80x4xf32>
    %c24_777 = arith.constant 24 : index
    %c0_778 = arith.constant 0 : index
    %1597 = vector.load %arg28[%c24_777, %c0_778] : memref<128x32xf32, #tpu.memory_space<vmem>>, vector<80x32xf32>
    %1598 = arith.truncf %1597 : vector<80x32xf32> to vector<80x32xbf16>
    %1599 = vector.extract_strided_slice %1564 {offsets = [96, 0], sizes = [32, 4], strides = [1, 1]} : vector<224x4xbf16> to vector<32x4xbf16>
    %cst_779 = arith.constant dense<0.000000e+00> : vector<80x4xf32>
    %1600 = tpu.matmul %1598, %1599, %cst_779 {dimension_numbers = #tpu.dot_dimension_numbers<[1], [0], [0], [1], [0, 0, 1, 1], [], []>} : vector<80x32xbf16>, vector<32x4xbf16>, vector<80x4xf32> -> vector<80x4xf32>
    %1601 = arith.addf %1596, %1600 : vector<80x4xf32>
    %c24_780 = arith.constant 24 : index
    %c0_781 = arith.constant 0 : index
    %1602 = vector.load %arg29[%c24_780, %c0_781] : memref<128x32xf32, #tpu.memory_space<vmem>>, vector<80x32xf32>
    %1603 = arith.truncf %1602 : vector<80x32xf32> to vector<80x32xbf16>
    %1604 = vector.extract_strided_slice %1565 {offsets = [96, 0], sizes = [32, 4], strides = [1, 1]} : vector<224x4xbf16> to vector<32x4xbf16>
    %cst_782 = arith.constant dense<0.000000e+00> : vector<80x4xf32>
    %1605 = tpu.matmul %1603, %1604, %cst_782 {dimension_numbers = #tpu.dot_dimension_numbers<[1], [0], [0], [1], [0, 0, 1, 1], [], []>} : vector<80x32xbf16>, vector<32x4xbf16>, vector<80x4xf32> -> vector<80x4xf32>
    %1606 = arith.addf %1601, %1605 : vector<80x4xf32>
    %c32_783 = arith.constant 32 : index
    %c0_784 = arith.constant 0 : index
    %1607 = vector.load %arg28[%c32_783, %c0_784] : memref<128x32xf32, #tpu.memory_space<vmem>>, vector<80x32xf32>
    %1608 = arith.truncf %1607 : vector<80x32xf32> to vector<80x32xbf16>
    %1609 = vector.extract_strided_slice %1564 {offsets = [128, 0], sizes = [32, 4], strides = [1, 1]} : vector<224x4xbf16> to vector<32x4xbf16>
    %cst_785 = arith.constant dense<0.000000e+00> : vector<80x4xf32>
    %1610 = tpu.matmul %1608, %1609, %cst_785 {dimension_numbers = #tpu.dot_dimension_numbers<[1], [0], [0], [1], [0, 0, 1, 1], [], []>} : vector<80x32xbf16>, vector<32x4xbf16>, vector<80x4xf32> -> vector<80x4xf32>
    %1611 = arith.addf %1606, %1610 : vector<80x4xf32>
    %c32_786 = arith.constant 32 : index
    %c0_787 = arith.constant 0 : index
    %1612 = vector.load %arg29[%c32_786, %c0_787] : memref<128x32xf32, #tpu.memory_space<vmem>>, vector<80x32xf32>
    %1613 = arith.truncf %1612 : vector<80x32xf32> to vector<80x32xbf16>
    %1614 = vector.extract_strided_slice %1565 {offsets = [128, 0], sizes = [32, 4], strides = [1, 1]} : vector<224x4xbf16> to vector<32x4xbf16>
    %cst_788 = arith.constant dense<0.000000e+00> : vector<80x4xf32>
    %1615 = tpu.matmul %1613, %1614, %cst_788 {dimension_numbers = #tpu.dot_dimension_numbers<[1], [0], [0], [1], [0, 0, 1, 1], [], []>} : vector<80x32xbf16>, vector<32x4xbf16>, vector<80x4xf32> -> vector<80x4xf32>
    %1616 = arith.addf %1611, %1615 : vector<80x4xf32>
    %c40_789 = arith.constant 40 : index
    %c0_790 = arith.constant 0 : index
    %1617 = vector.load %arg28[%c40_789, %c0_790] : memref<128x32xf32, #tpu.memory_space<vmem>>, vector<80x32xf32>
    %1618 = arith.truncf %1617 : vector<80x32xf32> to vector<80x32xbf16>
    %1619 = vector.extract_strided_slice %1564 {offsets = [160, 0], sizes = [32, 4], strides = [1, 1]} : vector<224x4xbf16> to vector<32x4xbf16>
    %cst_791 = arith.constant dense<0.000000e+00> : vector<80x4xf32>
    %1620 = tpu.matmul %1618, %1619, %cst_791 {dimension_numbers = #tpu.dot_dimension_numbers<[1], [0], [0], [1], [0, 0, 1, 1], [], []>} : vector<80x32xbf16>, vector<32x4xbf16>, vector<80x4xf32> -> vector<80x4xf32>
    %1621 = arith.addf %1616, %1620 : vector<80x4xf32>
    %c40_792 = arith.constant 40 : index
    %c0_793 = arith.constant 0 : index
    %1622 = vector.load %arg29[%c40_792, %c0_793] : memref<128x32xf32, #tpu.memory_space<vmem>>, vector<80x32xf32>
    %1623 = arith.truncf %1622 : vector<80x32xf32> to vector<80x32xbf16>
    %1624 = vector.extract_strided_slice %1565 {offsets = [160, 0], sizes = [32, 4], strides = [1, 1]} : vector<224x4xbf16> to vector<32x4xbf16>
    %cst_794 = arith.constant dense<0.000000e+00> : vector<80x4xf32>
    %1625 = tpu.matmul %1623, %1624, %cst_794 {dimension_numbers = #tpu.dot_dimension_numbers<[1], [0], [0], [1], [0, 0, 1, 1], [], []>} : vector<80x32xbf16>, vector<32x4xbf16>, vector<80x4xf32> -> vector<80x4xf32>
    %1626 = arith.addf %1621, %1625 : vector<80x4xf32>
    %c48_795 = arith.constant 48 : index
    %c0_796 = arith.constant 0 : index
    %1627 = vector.load %arg28[%c48_795, %c0_796] : memref<128x32xf32, #tpu.memory_space<vmem>>, vector<80x32xf32>
    %1628 = arith.truncf %1627 : vector<80x32xf32> to vector<80x32xbf16>
    %1629 = vector.extract_strided_slice %1564 {offsets = [192, 0], sizes = [32, 4], strides = [1, 1]} : vector<224x4xbf16> to vector<32x4xbf16>
    %cst_797 = arith.constant dense<0.000000e+00> : vector<80x4xf32>
    %1630 = tpu.matmul %1628, %1629, %cst_797 {dimension_numbers = #tpu.dot_dimension_numbers<[1], [0], [0], [1], [0, 0, 1, 1], [], []>} : vector<80x32xbf16>, vector<32x4xbf16>, vector<80x4xf32> -> vector<80x4xf32>
    %1631 = arith.addf %1626, %1630 : vector<80x4xf32>
    %c48_798 = arith.constant 48 : index
    %c0_799 = arith.constant 0 : index
    %1632 = vector.load %arg29[%c48_798, %c0_799] : memref<128x32xf32, #tpu.memory_space<vmem>>, vector<80x32xf32>
    %1633 = arith.truncf %1632 : vector<80x32xf32> to vector<80x32xbf16>
    %1634 = vector.extract_strided_slice %1565 {offsets = [192, 0], sizes = [32, 4], strides = [1, 1]} : vector<224x4xbf16> to vector<32x4xbf16>
    %cst_800 = arith.constant dense<0.000000e+00> : vector<80x4xf32>
    %1635 = tpu.matmul %1633, %1634, %cst_800 {dimension_numbers = #tpu.dot_dimension_numbers<[1], [0], [0], [1], [0, 0, 1, 1], [], []>} : vector<80x32xbf16>, vector<32x4xbf16>, vector<80x4xf32> -> vector<80x4xf32>
    %1636 = arith.addf %1631, %1635 : vector<80x4xf32>
    %c0_801 = arith.constant 0 : index
    %c0_802 = arith.constant 0 : index
    %1637 = vector.load %arg15[%c0_801, %c0_802] : memref<1x4xf32, #tpu.memory_space<vmem>>, vector<1x4xf32>
    %1638 = vector.broadcast %1637 : vector<1x4xf32> to vector<80x4xf32>
    %1639 = arith.addf %1636, %1638 : vector<80x4xf32>
    %c0_803 = arith.constant 0 : index
    %c0_804 = arith.constant 0 : index
    %1640 = vector.load %arg16[%c0_803, %c0_804] : memref<80x4xf32, #tpu.memory_space<vmem>>, vector<80x4xf32>
    tpu.vector_store %arg16[%c0_803, %c0_804], %1639 {strides = array<i32>} : memref<80x4xf32, #tpu.memory_space<vmem>>, vector<80x4xf32>,
    return
  }
}

</mosaic_0001>

<bundles_post_ra>
// kernel: bilstm_attrition_forward.1
= control target key start
LH: loop header
LB: loop body
LE: loop exit
PB: predicated region body
PF: predicated region fallthrough
CT: control target
= control target key end

     0   :  { %vm165_vm0 = vcmask 1043456   ;;  %vm55_vm1 = vcmask 64512   ;;  %v10779_v3 = vmov 0.0   ;;  %vm10780_vm2 = vmmov 0   ;;  %s10783_s30 = smov 64   ;;  %s13388_s2 = inlined_call_operand.vmem [shape: bf16[8,128], index: 2, kind: input, shape index: {}]   ;;  %s13389_s0 = inlined_call_operand.vmem [shape: f32[128,8], index: 0, kind: input, shape index: {}]   ;;  %s13390_s1 = inlined_call_operand.vmem [shape: bf16[8,128], index: 1, kind: input, shape index: {}]   ;;  %s13391_s3 = inlined_call_operand.vmem [shape: bf16[32,128], index: 3, kind: input, shape index: {}]   ;;  %s13392_s5 = inlined_call_operand.vmem [shape: bf16[32,128], index: 5, kind: input, shape index: {}]   ;;  %s13393_s4 = inlined_call_operand.vmem [shape: bf16[32,128], index: 4, kind: input, shape index: {}]   ;;  %s13394_s6 = inlined_call_operand.vmem [shape: bf16[32,128], index: 6, kind: input, shape index: {}]   ;;  %s13395_s8 = inlined_call_operand.vmem [shape: bf16[32,128], index: 8, kind: input, shape index: {}]   ;;  %s13396_s7 = inlined_call_operand.vmem [shape: bf16[32,128], index: 7, kind: input, shape index: {}]   ;;  %s13397_s9 = inlined_call_operand.vmem [shape: bf16[32,128], index: 9, kind: input, shape index: {}]   ;;  %s13398_s11 = inlined_call_operand.vmem [shape: bf16[32,128], index: 11, kind: input, shape index: {}]   ;;  %s13399_s10 = inlined_call_operand.vmem [shape: bf16[32,128], index: 10, kind: input, shape index: {}]   ;;  %s13400_s12 = inlined_call_operand.vmem [shape: bf16[32,128], index: 12, kind: input, shape index: {}]   ;;  %s13401_s14 = inlined_call_operand.vmem [shape: bf16[224,4], index: 14, kind: input, shape index: {}]   ;;  %s13402_s13 = inlined_call_operand.vmem [shape: bf16[224,4], index: 13, kind: input, shape index: {}]   ;;  %s13403_s15 = inlined_call_operand.vmem [shape: f32[1,4], index: 15, kind: input, shape index: {}]   ;;  %s13404_s16 = inlined_call_operand.vmem [shape: f32[80,4], index: 16, kind: output, shape index: {}]  }
   0x1   :  { %13405 = sst [smem:[#allocation15_spill]] %s13388_s2  ;;  %v10875_v1 = vld [vmem:[%s13389_s0 + $0x78] sm:$0xff]  ;;  %v10880_v2 = vld [vmem:[%s13389_s0 + $0x70] sm:$0xff]  ;;  %9172 = vmatprep.subr.bf16.mxu1 %v10779_v3  ;;  %9176 = vmatprep.mubr.msk.bf16.mxu1 %vm10780_vm2, %v10779_v3  ;;  %v87_v5 = vld [vmem:[%s13390_s1] sm:$0xf]  ;;  %v10781_v37 = vmov 0  }
   0x2   :  { %s13406_s23 = sld [smem:[#allocation15_spill]]  ;;  %56 = vst.msk [vmem:[#allocation2] sm:$0xff] %vm55_vm1, %v10875_v1  ;;  %58 = vst.msk [vmem:[#allocation2 + $0x8] sm:$0xff] %vm55_vm1, %v10880_v2  ;;  %v10897_v6 = vld [vmem:[%s13389_s0 + $0x68] sm:$0xff]  ;;  %v10902_v7 = vld [vmem:[%s13389_s0 + $0x60] sm:$0xff]  ;;  %v116_v8 = vpack.c.bf16 %v10875_v1, %v10880_v2  ;;  %v291_v29 = vsel %vm165_vm0, %v87_v5, 0 }
   0x3   :  { %60 = vst.msk [vmem:[#allocation2 + $0x10] sm:$0xff] %vm55_vm1, %v10897_v6  ;;  %62 = vst.msk [vmem:[#allocation2 + $0x18] sm:$0xff] %vm55_vm1, %v10902_v7  ;;  %v10913_v9 = vld [vmem:[%s13389_s0 + $0x58] sm:$0xff]  ;;  %v10918_v10 = vld [vmem:[%s13389_s0 + $0x50] sm:$0xff]  ;;  %v115_v55 = vpack.c.bf16 %v10897_v6, %v10902_v7  ;;  %vm422_vm4 = vcmask 261120   ;;  %vm8446_vm5 = vcmask 31744  }
   0x4   :  { %v10923_v11 = vld [vmem:[%s13389_s0 + $0x48] sm:$0xff]  ;;  %64 = vst.msk [vmem:[#allocation2 + $0x20] sm:$0xff] %vm55_vm1, %v10913_v9  ;;  %66 = vst.msk [vmem:[#allocation2 + $0x28] sm:$0xff] %vm55_vm1, %v10918_v10  ;;  %v10935_v12 = vld [vmem:[%s13389_s0 + $0x40] sm:$0xff]  ;;  %v114_v54 = vpack.c.bf16 %v10913_v9, %v10918_v10 }
   0x5   :  { %68 = vst.msk [vmem:[#allocation2 + $0x30] sm:$0xff] %vm55_vm1, %v10923_v11  ;;  %v10940_v13 = vld [vmem:[%s13389_s0 + $0x38] sm:$0xff]  ;;  %v10945_v14 = vld [vmem:[%s13389_s0 + $0x30] sm:$0xff]  ;;  %70 = vst.msk [vmem:[#allocation2 + $0x38] sm:$0xff] %vm55_vm1, %v10935_v12  ;;  %v113_v53 = vpack.c.bf16 %v10923_v11, %v10935_v12 }
   0x6   :  { %72 = vst.msk [vmem:[#allocation2 + $0x40] sm:$0xff] %vm55_vm1, %v10940_v13  ;;  %74 = vst.msk [vmem:[#allocation2 + $0x48] sm:$0xff] %vm55_vm1, %v10945_v14  ;;  %v10956_v15 = vld [vmem:[%s13389_s0 + $0x28] sm:$0xff]  ;;  %v10961_v16 = vld [vmem:[%s13389_s0 + $0x20] sm:$0xff]  ;;  %v112_v52 = vpack.c.bf16 %v10940_v13, %v10945_v14  ;;  %v406_v13 = vlaneseq }
   0x7   :  { %v10966_v17 = vld [vmem:[%s13389_s0 + $0x18] sm:$0xff]  ;;  %76 = vst.msk [vmem:[#allocation2 + $0x50] sm:$0xff] %vm55_vm1, %v10956_v15  ;;  %78 = vst.msk [vmem:[#allocation2 + $0x58] sm:$0xff] %vm55_vm1, %v10961_v16  ;;  %v81_v18 = vld [vmem:[%s13389_s0 + $0x10] sm:$0xff]  ;;  %v111_v51 = vpack.c.bf16 %v10956_v15, %v10961_v16 }
   0x8   :  { %v88_v0 = vld [vmem:[%s13406_s23] sm:$0xf]  ;;  %80 = vst.msk [vmem:[#allocation2 + $0x60] sm:$0xff] %vm55_vm1, %v10966_v17  ;;  %82 = vst.msk [vmem:[#allocation2 + $0x68] sm:$0xff] %vm55_vm1, %v81_v18  ;;  %v83_v20 = vld [vmem:[%s13389_s0 + $0x8] sm:$0xff]  ;;  %v110_v50 = vpack.c.bf16 %v10966_v17, %v81_v18  ;;  %v11065_v14 = vand.u32 127, %v406_v13 }
   0x9   :  { %10204 = vmatprep.subr.msk.bf16.mxu0 %vm165_vm0, %v88_v0  ;;  %v167_v4 = vsel %vm165_vm0, %v88_v0, 0  ;;  %v10981_v19 = vld [vmem:[%s13391_s3] sm:$0xff]   ;;  %84 = vst.msk [vmem:[#allocation2 + $0x70] sm:$0xff] %vm55_vm1, %v83_v20  ;;  %v118_v23 = vld [vmem:[#allocation2 + $0x8] sm:$0xff] }
   0xa   :  { %9137 = vmatpush3.bf16.msra.mxu0 %v167_v4  ;;  %v85_v21 = vld [vmem:[%s13389_s0] sm:$0xff]  ;;  %9173 = vmatpush3.bf16.msra.mxu1 %v10981_v19  ;;  %v10995_v24 = vld [vmem:[%s13391_s3 + $0x8] sm:$0xff]   ;;  %v119_v26 = vld [vmem:[#allocation2 + $0x10] sm:$0xff]  ;;  %vm408_vm3 = vcmp.lt.s32.totalorder %v11065_v14, 96  ;;  %s10782_s0 = smov 32  }
   0xb   :  { %10205 = vmatprep.subr.msk.bf16.mxu0 %vm165_vm0, %v87_v5  ;;  %86 = vst.msk [vmem:[#allocation2 + $0x78] sm:$0xff] %vm55_vm1, %v85_v21  ;;  %v117_v22 = vld [vmem:[#allocation2] sm:$0xff]  ;;  %v120_v27 = vld [vmem:[#allocation2 + $0x18] sm:$0xff]  ;;  %9174 = vmatprep.subr.bf16.mxu1 %v10779_v3  ;;  %v122_v31 = vld [vmem:[#allocation2 + $0x28] sm:$0xff]  ;;  %v109_v49 = vpack.c.bf16 %v83_v20, %v85_v21 }
   0xc   :  { %v133_v25 = vpack.c.bf16 %v118_v23, %v117_v22  ;;  %v134_v28 = vpack.c.bf16 %v120_v27, %v119_v26  ;;  %v121_v30 = vld [vmem:[#allocation2 + $0x20] sm:$0xff]  ;;  %v123_v33 = vld [vmem:[#allocation2 + $0x30] sm:$0xff]  ;;  %v124_v34 = vld [vmem:[#allocation2 + $0x38] sm:$0xff] }
   0xd   :  { %v135_v32 = vpack.c.bf16 %v122_v31, %v121_v30  ;;  %v125_v35 = vld [vmem:[#allocation2 + $0x40] sm:$0xff]  ;;  %v126_v36 = vld [vmem:[#allocation2 + $0x48] sm:$0xff]  ;;  %v136_v38 = vpack.c.bf16 %v124_v34, %v123_v33 }
   0xe   :  { %9138 = vmatprep.mubr.msk.bf16.mxu0 %vm55_vm1, %v133_v25  ;;  %9175 = vmatpush3.bf16.msra.mxu1 %v10995_v24  ;;  %v137_v39 = vpack.c.bf16 %v126_v36, %v125_v35  ;;  %v127_v40 = vld [vmem:[#allocation2 + $0x50] sm:$0xff]  ;;  %v128_v41 = vld [vmem:[#allocation2 + $0x58] sm:$0xff] }
   0xf   :  { %9139 = vmatmul.mubr.msk.bf16.vlgmr.msra.gmra.mrb[0].mxu0 %vm55_vm1, %v134_v28  ;;  %9180 = vmatprep.subr.bf16.mxu1 %v10779_v3  ;;  %v129_v42 = vld [vmem:[#allocation2 + $0x60] sm:$0xff]  ;;  %v130_v43 = vld [vmem:[#allocation2 + $0x68] sm:$0xff]  ;;  %v138_v44 = vpack.c.bf16 %v128_v41, %v127_v40 }
  0x10   :  { %9155 = vmatpush3.bf16.msra.mxu0 %v291_v29  ;;  %9142 = vmatprep.mubr.msk.bf16.mxu0 %vm55_vm1, %v135_v32  ;;  %v139_v45 = vpack.c.bf16 %v130_v43, %v129_v42  ;;  %v131_v46 = vld [vmem:[#allocation2 + $0x70] sm:$0xff] }
  0x11   :  { %9236 = vmatprep.subr.bf16.mxu0 %v10779_v3  ;;  %9177 = vmatmul.mubr.bf16.vlgmr.msra.gmra.mrb[0].mxu1 %v10781_v37 }
  0x12   :  { %9181 = vmatpush3.bf16.msra.mxu1 %v10981_v19  ;;  %9184 = vmatprep.mubr.msk.bf16.mxu1 %vm10780_vm2, %v10779_v3  ;;  %v132_v47 = vld [vmem:[#allocation2 + $0x78] sm:$0xff] }
  0x13   :  { %9182 = vmatprep.subr.bf16.mxu1 %v10779_v3  ;;  %v140_v48 = vpack.c.bf16 %v132_v47, %v131_v46 }
  0x16   :  { %9183 = vmatpush3.bf16.msra.mxu1 %v10995_v24 }
  0x17   :  { %9143 = vmatmul.mubr.msk.bf16.gmra.mrb[4].mxu0 %vm55_vm1, %v136_v38  ;;  %9188 = vmatprep.subr.bf16.mxu1 %v10779_v3 }
  0x18   :  { %9146 = vmatprep.mubr.msk.bf16.mxu0 %vm55_vm1, %v137_v39 }
  0x1f   :  { %9147 = vmatmul.mubr.msk.bf16.gmra.mrb[8].mxu0 %vm55_vm1, %v138_v44 }
  0x20   :  { %9150 = vmatprep.mubr.msk.bf16.mxu0 %vm55_vm1, %v139_v45 }
  0x27   :  { %9151 = vmatmul.mubr.msk.bf16.gmra.mrb[12].mxu0 %vm55_vm1, %v140_v48 }
  0x28   :  { %9156 = vmatprep.mubr.msk.bf16.mxu0 %vm55_vm1, %v109_v49 }
  0x2f   :  { %9157 = vmatmul.mubr.msk.bf16.vlgmr.msra.gmra.mrb[0].mxu0 %vm55_vm1, %v110_v50 }
  0x30   :  { %9160 = vmatprep.mubr.msk.bf16.mxu0 %vm55_vm1, %v111_v51  ;;  %9237 = vmatpush3.bf16.msra.mxu0 %v10981_v19 }
  0x31   :  { %9238 = vmatprep.subr.bf16.mxu0 %v10779_v3 }
  0x34   :  { %9239 = vmatpush3.bf16.msra.mxu0 %v10995_v24 }
  0x35   :  { %9252 = vmatprep.subr.bf16.mxu0 %v10779_v3 }
  0x37   :  { %9161 = vmatmul.mubr.msk.bf16.gmra.mrb[4].mxu0 %vm55_vm1, %v112_v52 }
  0x38   :  { %9164 = vmatprep.mubr.msk.bf16.mxu0 %vm55_vm1, %v113_v53 }
  0x3f   :  { %9165 = vmatmul.mubr.msk.bf16.gmra.mrb[8].mxu0 %vm55_vm1, %v114_v54 }
  0x40   :  { %9168 = vmatprep.mubr.msk.bf16.mxu0 %vm55_vm1, %v115_v55 }
  0x47   :  { %9169 = vmatmul.mubr.msk.bf16.gmra.mrb[12].mxu0 %vm55_vm1, %v116_v8 }
  0x48   :  { %9240 = vmatprep.mubr.msk.bf16.mxu0 %vm10780_vm2, %v10779_v3 }
  0xe4   :  { %v460_v56 = vpop.f32.mrb[0].mxu1 }
  0xe5   :  { %v9178_v57 = vpop.f32.mrb[1].mxu1 }
  0xe6   :  { %v463_v58 = vpop.f32.mrb[2].mxu1 }
  0xe7   :  { %v9179_v59 = vpop.f32.mrb[3].mxu1 }
 0x102   :  { %v11045_v60 = vpop.f32.mrb[0].mxu0 }
 0x103   :  { %v327_v61 = vpop.f32.mrb[1].mxu0 }
 0x104   :  { %v466_v62 = vadd.f32 %v460_v56, %v327_v61  ;;  %v11047_v63 = vpop.f32.mrb[2].mxu0 }
 0x105   :  { %v330_v0 = vpop.f32.mrb[3].mxu0 }
 0x106   :  { %v8479_v4 = vmul.f32 -1.442695, %v466_v62 }
 0x108   :  { %10259 = vpow2.f32 %v8479_v4 }
 0x109   :  { %10261 = vtanh.f32 %v466_v62 }
 0x10a   :  { %v11049_v5 = vpop.f32.mrb[4].mxu0 }
 0x10b   :  { %v11051_v1 = vpop.f32.mrb[5].mxu0 }
 0x10c   :  { %v11053_v2 = vpop.f32.mrb[6].mxu0 }
 0x10d   :  { %v11055_v6 = vpop.f32.mrb[7].mxu0 }
 0x112   :  { %v10260_v7 = vpop.eup %10259  ;;  %v11057_v8 = vpop.f32.mrb[8].mxu0 }
 0x113   :  { %v470_v9 = vadd.f32 1.0, %v10260_v7  ;;  %v11059_v10 = vpop.f32.mrb[9].mxu0  ;;  %v10262_v20 = vpop.eup %10261 }
 0x114   :  { %v11061_v11 = vpop.f32.mrb[10].mxu0 }
 0x115   :  { %10263 = vrcp.f32 %v470_v9  ;;  %v11063_v12 = vpop.f32.mrb[11].mxu0 }
 0x11a   :  { %v11067_v15 = vpop.f32.mrb[12].mxu0 }
 0x11b   :  { %v11069_v16 = vpop.f32.mrb[13].mxu0 }
 0x11c   :  { %v11071_v17 = vpop.f32.mrb[14].mxu0 }
 0x11d   :  { %v11073_v18 = vpop.f32.mrb[15].mxu0 }
 0x11f   :  { %v10264_v21 = vpop.eup %10263 }
 0x120   :  { %v474_v22 = vsel %vm408_vm3, %v10264_v21, %v10262_v20 }
 0x121   :  { %477 = vrot.lane.b32.xlu0 %v474_v22, %s10782_s0  ;;  %v475_v26 = vmul.f32 0.0, %v474_v22 }
 0x193   :  { %v478_v23 = vpop.permute.xlu0 %477 }
 0x194   :  { %v480_v25 = vmul.f32 %v478_v23, %v474_v22 }
 0x196   :  { %482 = vrot.lane.b32.xlu0 %v480_v25, %s10782_s0 }
 0x208   :  { %v483_v27 = vpop.permute.xlu0 %482 }
 0x209   :  { %v485_v28 = vadd.f32 %v483_v27, %v475_v26 }
 0x20b   :  { %10265 = vtanh.f32 %v485_v28 }
 0x215   :  { %v10266_v29 = vpop.eup %10265 }
 0x216   :  { %488 = vrot.lane.b32.xlu1 %v10266_v29, %s10782_s0 }
 0x288   :  { %v489_v30 = vpop.permute.xlu1 %488 }
 0x289   :  { %v11081_v31 = vmul.f32 %v489_v30, %v474_v22 }
 0x28b   :  { %v497_v32 = vpack.c.bf16 %v11081_v31, %v11081_v31 }
 0x28d   :  { %500 = vrot.lane.b32.xlu1 %v497_v32, %s10783_s30 }
 0x2ff   :  { %v501_v33 = vpop.permute.xlu1 %500 }
 0x300   :  { %9185 = vmatmul.mubr.msk.bf16.vlgmr.msra.gmra.mrb[4].mxu1 %vm422_vm4, %v501_v33 }
 0x301   :  { %9189 = vmatpush3.bf16.msra.mxu1 %v10981_v19  ;;  %9192 = vmatprep.mubr.msk.bf16.mxu1 %vm10780_vm2, %v10779_v3 }
 0x302   :  { %9190 = vmatprep.subr.bf16.mxu1 %v10779_v3 }
 0x305   :  { %9191 = vmatpush3.bf16.msra.mxu1 %v10995_v24 }
 0x306   :  { %9196 = vmatprep.subr.bf16.mxu1 %v10779_v3 }
 0x3d3   :  { %v539_v34 = vpop.f32.mrb[4].mxu1 }
 0x3d4   :  { %v545_v35 = vadd.f32 %v539_v34, %v330_v0  ;;  %v9186_v36 = vpop.f32.mrb[5].mxu1 }
 0x3d5   :  { %v542_v38 = vpop.f32.mrb[6].mxu1 }
 0x3d6   :  { %v8481_v39 = vmul.f32 -1.442695, %v545_v35  ;;  %v9187_v40 = vpop.f32.mrb[7].mxu1 }
 0x3d8   :  { %10267 = vpow2.f32 %v8481_v39 }
 0x3d9   :  { %10269 = vtanh.f32 %v545_v35 }
 0x3e2   :  { %v10268_v41 = vpop.eup %10267 }
 0x3e3   :  { %v549_v42 = vadd.f32 1.0, %v10268_v41  ;;  %v10270_v43 = vpop.eup %10269 }
 0x3e5   :  { %10271 = vrcp.f32 %v549_v42 }
 0x3ef   :  { %v10272_v44 = vpop.eup %10271 }
 0x3f0   :  { %v553_v45 = vsel %vm408_vm3, %v10272_v44, %v10270_v43 }
 0x3f1   :  { %556 = vrot.lane.b32.xlu0 %v553_v45, %s10782_s0  ;;  %v554_v48 = vmul.f32 %v553_v45, %v485_v28 }
 0x463   :  { %v557_v46 = vpop.permute.xlu0 %556 }
 0x464   :  { %v559_v47 = vmul.f32 %v557_v46, %v553_v45 }
 0x466   :  { %561 = vrot.lane.b32.xlu1 %v559_v47, %s10782_s0 }
 0x4d8   :  { %v562_v49 = vpop.permute.xlu1 %561 }
 0x4d9   :  { %v564_v50 = vadd.f32 %v562_v49, %v554_v48 }
 0x4db   :  { %10273 = vtanh.f32 %v564_v50 }
 0x4e5   :  { %v10274_v51 = vpop.eup %10273 }
 0x4e6   :  { %567 = vrot.lane.b32.xlu0 %v10274_v51, %s10782_s0 }
 0x558   :  { %v568_v52 = vpop.permute.xlu0 %567 }
 0x559   :  { %v11098_v53 = vmul.f32 %v568_v52, %v553_v45 }
 0x55b   :  { %v576_v54 = vpack.c.bf16 %v11098_v53, %v11098_v53 }
 0x55d   :  { %579 = vrot.lane.b32.xlu1 %v576_v54, %s10783_s30 }
 0x5cf   :  { %v580_v55 = vpop.permute.xlu1 %579 }
 0x5d0   :  { %9193 = vmatmul.mubr.msk.bf16.vlgmr.msra.gmra.mrb[8].mxu1 %vm422_vm4, %v580_v55 }
 0x5d1   :  { %9197 = vmatpush3.bf16.msra.mxu1 %v10981_v19  ;;  %9200 = vmatprep.mubr.msk.bf16.mxu1 %vm10780_vm2, %v10779_v3 }
 0x5d2   :  { %9198 = vmatprep.subr.bf16.mxu1 %v10779_v3 }
 0x5d5   :  { %9199 = vmatpush3.bf16.msra.mxu1 %v10995_v24 }
 0x5d6   :  { %9204 = vmatprep.subr.bf16.mxu1 %v10779_v3 }
 0x6a3   :  { %v618_v56 = vpop.f32.mrb[8].mxu1 }
 0x6a4   :  { %v624_v57 = vadd.f32 %v11045_v60, %v618_v56  ;;  %v9194_v58 = vpop.f32.mrb[9].mxu1 }
 0x6a5   :  { %v621_v59 = vpop.f32.mrb[10].mxu1 }
 0x6a6   :  { %v8483_v61 = vmul.f32 -1.442695, %v624_v57  ;;  %v9195_v62 = vpop.f32.mrb[11].mxu1 }
 0x6a8   :  { %10275 = vpow2.f32 %v8483_v61 }
 0x6a9   :  { %10277 = vtanh.f32 %v624_v57 }
 0x6b2   :  { %v10276_v0 = vpop.eup %10275 }
 0x6b3   :  { %v628_v4 = vadd.f32 1.0, %v10276_v0  ;;  %v10278_v7 = vpop.eup %10277 }
 0x6b5   :  { %10279 = vrcp.f32 %v628_v4 }
 0x6bf   :  { %v10280_v9 = vpop.eup %10279 }
 0x6c0   :  { %v632_v13 = vsel %vm408_vm3, %v10280_v9, %v10278_v7 }
 0x6c1   :  { %635 = vrot.lane.b32.xlu0 %v632_v13, %s10782_s0  ;;  %v633_v60 = vmul.f32 %v632_v13, %v564_v50 }
 0x733   :  { %v636_v20 = vpop.permute.xlu0 %635 }
 0x734   :  { %v638_v21 = vmul.f32 %v636_v20, %v632_v13 }
 0x736   :  { %640 = vrot.lane.b32.xlu1 %v638_v21, %s10782_s0 }
 0x7a8   :  { %v641_v22 = vpop.permute.xlu1 %640 }
 0x7a9   :  { %v643_v23 = vadd.f32 %v641_v22, %v633_v60 }
 0x7ab   :  { %10281 = vtanh.f32 %v643_v23 }
 0x7b5   :  { %v10282_v25 = vpop.eup %10281 }
 0x7b6   :  { %646 = vrot.lane.b32.xlu0 %v10282_v25, %s10782_s0 }
 0x828   :  { %v647_v26 = vpop.permute.xlu0 %646 }
 0x829   :  { %v11116_v27 = vmul.f32 %v647_v26, %v632_v13 }
 0x82b   :  { %v655_v28 = vpack.c.bf16 %v11116_v27, %v11116_v27 }
 0x82d   :  { %658 = vrot.lane.b32.xlu1 %v655_v28, %s10783_s30 }
 0x89f   :  { %v659_v29 = vpop.permute.xlu1 %658 }
 0x8a0   :  { %9201 = vmatmul.mubr.msk.bf16.vlgmr.msra.gmra.mrb[12].mxu1 %vm422_vm4, %v659_v29 }
 0x8a1   :  { %9205 = vmatpush3.bf16.msra.mxu1 %v10981_v19  ;;  %9208 = vmatprep.mubr.msk.bf16.mxu1 %vm10780_vm2, %v10779_v3 }
 0x8a2   :  { %9206 = vmatprep.subr.bf16.mxu1 %v10779_v3 }
 0x8a5   :  { %9207 = vmatpush3.bf16.msra.mxu1 %v10995_v24 }
 0x8a6   :  { %9212 = vmatprep.subr.bf16.mxu1 %v10779_v3 }
 0x973   :  { %v697_v30 = vpop.f32.mrb[12].mxu1 }
 0x974   :  { %v703_v32 = vadd.f32 %v11047_v63, %v697_v30  ;;  %v9202_v33 = vpop.f32.mrb[13].mxu1 }
 0x975   :  { %v700_v34 = vpop.f32.mrb[14].mxu1 }
 0x976   :  { %v8485_v35 = vmul.f32 -1.442695, %v703_v32  ;;  %v9203_v36 = vpop.f32.mrb[15].mxu1 }
 0x978   :  { %10283 = vpow2.f32 %v8485_v35 }
 0x979   :  { %10285 = vtanh.f32 %v703_v32 }
 0x982   :  { %v10284_v38 = vpop.eup %10283 }
 0x983   :  { %v707_v39 = vadd.f32 1.0, %v10284_v38  ;;  %v10286_v40 = vpop.eup %10285 }
 0x985   :  { %10287 = vrcp.f32 %v707_v39 }
 0x98f   :  { %v10288_v41 = vpop.eup %10287 }
 0x990   :  { %v711_v42 = vsel %vm408_vm3, %v10288_v41, %v10286_v40 }
 0x991   :  { %714 = vrot.lane.b32.xlu0 %v711_v42, %s10782_s0  ;;  %v712_v63 = vmul.f32 %v711_v42, %v643_v23 }
 0xa03   :  { %v715_v43 = vpop.permute.xlu0 %714 }
 0xa04   :  { %v717_v44 = vmul.f32 %v715_v43, %v711_v42 }
 0xa06   :  { %719 = vrot.lane.b32.xlu1 %v717_v44, %s10782_s0 }
 0xa78   :  { %v720_v45 = vpop.permute.xlu1 %719 }
 0xa79   :  { %v722_v46 = vadd.f32 %v720_v45, %v712_v63 }
 0xa7b   :  { %10289 = vtanh.f32 %v722_v46 }
 0xa85   :  { %v10290_v47 = vpop.eup %10289 }
 0xa86   :  { %725 = vrot.lane.b32.xlu0 %v10290_v47, %s10782_s0 }
 0xaf8   :  { %v726_v48 = vpop.permute.xlu0 %725 }
 0xaf9   :  { %v11134_v49 = vmul.f32 %v726_v48, %v711_v42 }
 0xafb   :  { %v734_v50 = vpack.c.bf16 %v11134_v49, %v11134_v49 }
 0xafd   :  { %737 = vrot.lane.b32.xlu1 %v734_v50, %s10783_s30 }
 0xb6f   :  { %v738_v51 = vpop.permute.xlu1 %737 }
 0xb70   :  { %9209 = vmatmul.mubr.msk.bf16.vlgmr.msra.gmra.mrb[16].mxu1 %vm422_vm4, %v738_v51 }
 0xb71   :  { %9213 = vmatpush3.bf16.msra.mxu1 %v10981_v19  ;;  %9216 = vmatprep.mubr.msk.bf16.mxu1 %vm10780_vm2, %v10779_v3 }
 0xb72   :  { %9214 = vmatprep.subr.bf16.mxu1 %v10779_v3 }
 0xb75   :  { %9215 = vmatpush3.bf16.msra.mxu1 %v10995_v24 }
 0xb76   :  { %9220 = vmatprep.subr.bf16.mxu1 %v10779_v3 }
 0xc43   :  { %v776_v52 = vpop.f32.mrb[16].mxu1 }
 0xc44   :  { %v782_v54 = vadd.f32 %v776_v52, %v11051_v1  ;;  %v9210_v55 = vpop.f32.mrb[17].mxu1 }
 0xc45   :  { %v779_v56 = vpop.f32.mrb[18].mxu1 }
 0xc46   :  { %v8487_v57 = vmul.f32 -1.442695, %v782_v54  ;;  %v9211_v58 = vpop.f32.mrb[19].mxu1 }
 0xc48   :  { %10291 = vpow2.f32 %v8487_v57 }
 0xc49   :  { %10293 = vtanh.f32 %v782_v54 }
 0xc52   :  { %v10292_v59 = vpop.eup %10291 }
 0xc53   :  { %v786_v61 = vadd.f32 1.0, %v10292_v59  ;;  %v10294_v62 = vpop.eup %10293 }
 0xc55   :  { %10295 = vrcp.f32 %v786_v61 }
 0xc5f   :  { %v10296_v0 = vpop.eup %10295 }
 0xc60   :  { %v790_v4 = vsel %vm408_vm3, %v10296_v0, %v10294_v62 }
 0xc61   :  { %793 = vrot.lane.b32.xlu0 %v790_v4, %s10782_s0  ;;  %v791_v1 = vmul.f32 %v790_v4, %v722_v46 }
 0xcd3   :  { %v794_v7 = vpop.permute.xlu0 %793 }
 0xcd4   :  { %v796_v9 = vmul.f32 %v794_v7, %v790_v4 }
 0xcd6   :  { %798 = vrot.lane.b32.xlu1 %v796_v9, %s10782_s0 }
 0xd48   :  { %v799_v13 = vpop.permute.xlu1 %798 }
 0xd49   :  { %v801_v20 = vadd.f32 %v799_v13, %v791_v1 }
 0xd4b   :  { %10297 = vtanh.f32 %v801_v20 }
 0xd55   :  { %v10298_v21 = vpop.eup %10297 }
 0xd56   :  { %804 = vrot.lane.b32.xlu0 %v10298_v21, %s10782_s0 }
 0xdc8   :  { %v805_v60 = vpop.permute.xlu0 %804 }
 0xdc9   :  { %v11152_v22 = vmul.f32 %v805_v60, %v790_v4 }
 0xdcb   :  { %v813_v23 = vpack.c.bf16 %v11152_v22, %v11152_v22 }
 0xdcd   :  { %816 = vrot.lane.b32.xlu1 %v813_v23, %s10783_s30 }
 0xe3f   :  { %v817_v25 = vpop.permute.xlu1 %816 }
 0xe40   :  { %9217 = vmatmul.mubr.msk.bf16.vlgmr.msra.gmra.mrb[20].mxu1 %vm422_vm4, %v817_v25 }
 0xe41   :  { %9221 = vmatpush3.bf16.msra.mxu1 %v10981_v19  ;;  %9224 = vmatprep.mubr.msk.bf16.mxu1 %vm10780_vm2, %v10779_v3 }
 0xe42   :  { %9222 = vmatprep.subr.bf16.mxu1 %v10779_v3 }
 0xe45   :  { %9223 = vmatpush3.bf16.msra.mxu1 %v10995_v24 }
 0xe46   :  { %9228 = vmatprep.subr.bf16.mxu1 %v10779_v3 }
 0xf13   :  { %v855_v26 = vpop.f32.mrb[20].mxu1 }
 0xf14   :  { %v861_v28 = vadd.f32 %v855_v26, %v11055_v6  ;;  %v9218_v29 = vpop.f32.mrb[21].mxu1 }
 0xf15   :  { %v858_v30 = vpop.f32.mrb[22].mxu1 }
 0xf16   :  { %v8489_v32 = vmul.f32 -1.442695, %v861_v28  ;;  %v9219_v33 = vpop.f32.mrb[23].mxu1 }
 0xf18   :  { %10299 = vpow2.f32 %v8489_v32 }
 0xf19   :  { %10301 = vtanh.f32 %v861_v28 }
 0xf22   :  { %v10300_v34 = vpop.eup %10299 }
 0xf23   :  { %v865_v35 = vadd.f32 1.0, %v10300_v34  ;;  %v10302_v36 = vpop.eup %10301 }
 0xf25   :  { %10303 = vrcp.f32 %v865_v35 }
 0xf2f   :  { %v10304_v38 = vpop.eup %10303 }
 0xf30   :  { %v869_v39 = vsel %vm408_vm3, %v10304_v38, %v10302_v36 }
 0xf31   :  { %872 = vrot.lane.b32.xlu0 %v869_v39, %s10782_s0  ;;  %v870_v6 = vmul.f32 %v869_v39, %v801_v20 }
 0xfa3   :  { %v873_v40 = vpop.permute.xlu0 %872 }
 0xfa4   :  { %v875_v41 = vmul.f32 %v873_v40, %v869_v39 }
 0xfa6   :  { %877 = vrot.lane.b32.xlu1 %v875_v41, %s10782_s0 }
0x1018   :  { %v878_v42 = vpop.permute.xlu1 %877 }
0x1019   :  { %v880_v43 = vadd.f32 %v878_v42, %v870_v6 }
0x101b   :  { %10305 = vtanh.f32 %v880_v43 }
0x1025   :  { %v10306_v44 = vpop.eup %10305 }
0x1026   :  { %883 = vrot.lane.b32.xlu0 %v10306_v44, %s10782_s0 }
0x1098   :  { %v884_v63 = vpop.permute.xlu0 %883 }
0x1099   :  { %v11170_v45 = vmul.f32 %v884_v63, %v869_v39 }
0x109b   :  { %v892_v46 = vpack.c.bf16 %v11170_v45, %v11170_v45 }
0x109d   :  { %895 = vrot.lane.b32.xlu1 %v892_v46, %s10783_s30 }
0x110f   :  { %v896_v47 = vpop.permute.xlu1 %895 }
0x1110   :  { %9225 = vmatmul.mubr.msk.bf16.vlgmr.msra.gmra.mrb[24].mxu1 %vm422_vm4, %v896_v47 }
0x1111   :  { %9229 = vmatpush3.bf16.msra.mxu1 %v10981_v19  ;;  %9232 = vmatprep.mubr.msk.bf16.mxu1 %vm10780_vm2, %v10779_v3 }
0x1112   :  { %9230 = vmatprep.subr.bf16.mxu1 %v10779_v3 }
0x1115   :  { %9231 = vmatpush3.bf16.msra.mxu1 %v10995_v24 }
0x1116   :  { %9244 = vmatprep.subr.bf16.mxu1 %v10779_v3 }
0x11e3   :  { %v934_v48 = vpop.f32.mrb[24].mxu1 }
0x11e4   :  { %v940_v50 = vadd.f32 %v11049_v5, %v934_v48  ;;  %v9226_v51 = vpop.f32.mrb[25].mxu1 }
0x11e5   :  { %v937_v52 = vpop.f32.mrb[26].mxu1 }
0x11e6   :  { %v8491_v54 = vmul.f32 -1.442695, %v940_v50  ;;  %v9227_v55 = vpop.f32.mrb[27].mxu1 }
0x11e8   :  { %10307 = vpow2.f32 %v8491_v54 }
0x11e9   :  { %10309 = vtanh.f32 %v940_v50 }
0x11f2   :  { %v10308_v56 = vpop.eup %10307 }
0x11f3   :  { %v944_v57 = vadd.f32 1.0, %v10308_v56  ;;  %v10310_v58 = vpop.eup %10309 }
0x11f5   :  { %10311 = vrcp.f32 %v944_v57 }
0x11ff   :  { %v10312_v59 = vpop.eup %10311 }
0x1200   :  { %v948_v61 = vsel %vm408_vm3, %v10312_v59, %v10310_v58 }
0x1201   :  { %951 = vrot.lane.b32.xlu0 %v948_v61, %s10782_s0  ;;  %v949_v5 = vmul.f32 %v948_v61, %v880_v43 }
0x1273   :  { %v952_v62 = vpop.permute.xlu0 %951 }
0x1274   :  { %v954_v0 = vmul.f32 %v952_v62, %v948_v61 }
0x1276   :  { %956 = vrot.lane.b32.xlu1 %v954_v0, %s10782_s0 }
0x12e8   :  { %v957_v4 = vpop.permute.xlu1 %956 }
0x12e9   :  { %v959_v7 = vadd.f32 %v957_v4, %v949_v5 }
0x12eb   :  { %10313 = vtanh.f32 %v959_v7 }
0x12f5   :  { %v10314_v9 = vpop.eup %10313 }
0x12f6   :  { %962 = vrot.lane.b32.xlu0 %v10314_v9, %s10782_s0 }
0x1368   :  { %v963_v1 = vpop.permute.xlu0 %962 }
0x1369   :  { %v11188_v13 = vmul.f32 %v963_v1, %v948_v61 }
0x136b   :  { %v971_v20 = vpack.c.bf16 %v11188_v13, %v11188_v13 }
0x136d   :  { %974 = vrot.lane.b32.xlu1 %v971_v20, %s10783_s30 }
0x13df   :  { %v975_v21 = vpop.permute.xlu1 %974 }
0x13e0   :  { %9233 = vmatmul.mubr.msk.bf16.vlgmr.msra.gmra.mrb[28].mxu1 %vm422_vm4, %v975_v21 }
0x13e1   :  { %9245 = vmatpush3.bf16.msra.mxu1 %v10981_v19  ;;  %9248 = vmatprep.mubr.msk.bf16.mxu1 %vm10780_vm2, %v10779_v3 }
0x13e2   :  { %9246 = vmatprep.subr.bf16.mxu1 %v10779_v3 }
0x13e5   :  { %9247 = vmatpush3.bf16.msra.mxu1 %v10995_v24 }
0x13e6   :  { %9260 = vmatprep.subr.bf16.mxu1 %v10779_v3 }
0x14b3   :  { %v1013_v60 = vpop.f32.mrb[28].mxu1 }
0x14b4   :  { %v1019_v23 = vadd.f32 %v11053_v2, %v1013_v60  ;;  %v9234_v25 = vpop.f32.mrb[29].mxu1 }
0x14b5   :  { %v1016_v26 = vpop.f32.mrb[30].mxu1 }
0x14b6   :  { %v8493_v28 = vmul.f32 -1.442695, %v1019_v23  ;;  %v9235_v29 = vpop.f32.mrb[31].mxu1 }
0x14b8   :  { %10315 = vpow2.f32 %v8493_v28 }
0x14b9   :  { %10317 = vtanh.f32 %v1019_v23 }
0x14c2   :  { %v10316_v30 = vpop.eup %10315 }
0x14c3   :  { %v1023_v32 = vadd.f32 1.0, %v10316_v30  ;;  %v10318_v33 = vpop.eup %10317 }
0x14c5   :  { %10319 = vrcp.f32 %v1023_v32 }
0x14cf   :  { %v10320_v34 = vpop.eup %10319 }
0x14d0   :  { %v1027_v35 = vsel %vm408_vm3, %v10320_v34, %v10318_v33 }
0x14d1   :  { %1030 = vrot.lane.b32.xlu0 %v1027_v35, %s10782_s0  ;;  %v1028_v2 = vmul.f32 %v1027_v35, %v959_v7 }
0x1543   :  { %v1031_v36 = vpop.permute.xlu0 %1030 }
0x1544   :  { %v1033_v38 = vmul.f32 %v1031_v36, %v1027_v35 }
0x1546   :  { %1035 = vrot.lane.b32.xlu1 %v1033_v38, %s10782_s0 }
0x15b8   :  { %v1036_v39 = vpop.permute.xlu1 %1035 }
0x15b9   :  { %v1038_v40 = vadd.f32 %v1036_v39, %v1028_v2 }
0x15bb   :  { %10321 = vtanh.f32 %v1038_v40 }
0x15c5   :  { %v10322_v41 = vpop.eup %10321 }
0x15c6   :  { %1041 = vrot.lane.b32.xlu0 %v10322_v41, %s10782_s0 }
0x1638   :  { %v1042_v6 = vpop.permute.xlu0 %1041 }
0x1639   :  { %v11206_v42 = vmul.f32 %v1042_v6, %v1027_v35 }
0x163b   :  { %v1050_v43 = vpack.c.bf16 %v11206_v42, %v11206_v42 }
0x163d   :  { %1053 = vrot.lane.b32.xlu1 %v1050_v43, %s10783_s30 }
0x16af   :  { %v1054_v44 = vpop.permute.xlu1 %1053 }
0x16b0   :  { %9241 = vmatmul.mubr.msk.bf16.vlgmr.msra.gmra.mrb[16].mxu0 %vm422_vm4, %v1054_v44 }
0x16b1   :  { %9253 = vmatpush3.bf16.msra.mxu0 %v10981_v19  ;;  %9256 = vmatprep.mubr.msk.bf16.mxu0 %vm10780_vm2, %v10779_v3 }
0x16b2   :  { %9254 = vmatprep.subr.bf16.mxu0 %v10779_v3 }
0x16b5   :  { %9255 = vmatpush3.bf16.msra.mxu0 %v10995_v24 }
0x16b6   :  { %9268 = vmatprep.subr.bf16.mxu0 %v10779_v3 }
0x1783   :  { %v1092_v63 = vpop.f32.mrb[16].mxu0 }
0x1784   :  { %v1098_v46 = vadd.f32 %v1092_v63, %v11059_v10  ;;  %v9242_v47 = vpop.f32.mrb[17].mxu0 }
0x1785   :  { %v1095_v48 = vpop.f32.mrb[18].mxu0 }
0x1786   :  { %v8495_v50 = vmul.f32 -1.442695, %v1098_v46  ;;  %v9243_v51 = vpop.f32.mrb[19].mxu0 }
0x1788   :  { %10323 = vpow2.f32 %v8495_v50 }
0x1789   :  { %10325 = vtanh.f32 %v1098_v46 }
0x1792   :  { %v10324_v52 = vpop.eup %10323 }
0x1793   :  { %v1102_v54 = vadd.f32 1.0, %v10324_v52  ;;  %v10326_v55 = vpop.eup %10325 }
0x1795   :  { %10327 = vrcp.f32 %v1102_v54 }
0x179f   :  { %v10328_v56 = vpop.eup %10327 }
0x17a0   :  { %v1106_v57 = vsel %vm408_vm3, %v10328_v56, %v10326_v55 }
0x17a1   :  { %1109 = vrot.lane.b32.xlu0 %v1106_v57, %s10782_s0  ;;  %v1107_v10 = vmul.f32 %v1106_v57, %v1038_v40 }
0x1813   :  { %v1110_v58 = vpop.permute.xlu0 %1109 }
0x1814   :  { %v1112_v59 = vmul.f32 %v1110_v58, %v1106_v57 }
0x1816   :  { %1114 = vrot.lane.b32.xlu1 %v1112_v59, %s10782_s0 }
0x1888   :  { %v1115_v61 = vpop.permute.xlu1 %1114 }
0x1889   :  { %v1117_v62 = vadd.f32 %v1115_v61, %v1107_v10 }
0x188b   :  { %10329 = vtanh.f32 %v1117_v62 }
0x1895   :  { %v10330_v0 = vpop.eup %10329 }
0x1896   :  { %1120 = vrot.lane.b32.xlu0 %v10330_v0, %s10782_s0 }
0x1908   :  { %v1121_v5 = vpop.permute.xlu0 %1120 }
0x1909   :  { %v11224_v4 = vmul.f32 %v1121_v5, %v1106_v57 }
0x190b   :  { %v1129_v7 = vpack.c.bf16 %v11224_v4, %v11224_v4 }
0x190d   :  { %1132 = vrot.lane.b32.xlu1 %v1129_v7, %s10783_s30 }
0x197f   :  { %v1133_v9 = vpop.permute.xlu1 %1132 }
0x1980   :  { %9249 = vmatmul.mubr.msk.bf16.vlgmr.msra.gmra.mrb[32].mxu1 %vm422_vm4, %v1133_v9 }
0x1981   :  { %9261 = vmatpush3.bf16.msra.mxu1 %v10981_v19  ;;  %9264 = vmatprep.mubr.msk.bf16.mxu1 %vm10780_vm2, %v10779_v3 }
0x1982   :  { %9262 = vmatprep.subr.bf16.mxu1 %v10779_v3 }
0x1985   :  { %9263 = vmatpush3.bf16.msra.mxu1 %v10995_v24 }
0x1986   :  { %9276 = vmatprep.subr.bf16.mxu1 %v10779_v3 }
0x1a53   :  { %v1171_v1 = vpop.f32.mrb[32].mxu1 }
0x1a54   :  { %v1177_v20 = vadd.f32 %v1171_v1, %v11063_v12  ;;  %v9250_v21 = vpop.f32.mrb[33].mxu1 }
0x1a55   :  { %v1174_v60 = vpop.f32.mrb[34].mxu1 }
0x1a56   :  { %v8497_v23 = vmul.f32 -1.442695, %v1177_v20  ;;  %v9251_v25 = vpop.f32.mrb[35].mxu1 }
0x1a58   :  { %10331 = vpow2.f32 %v8497_v23 }
0x1a59   :  { %10333 = vtanh.f32 %v1177_v20 }
0x1a62   :  { %v10332_v26 = vpop.eup %10331 }
0x1a63   :  { %v1181_v28 = vadd.f32 1.0, %v10332_v26  ;;  %v10334_v29 = vpop.eup %10333 }
0x1a65   :  { %10335 = vrcp.f32 %v1181_v28 }
0x1a6f   :  { %v10336_v30 = vpop.eup %10335 }
0x1a70   :  { %v1185_v32 = vsel %vm408_vm3, %v10336_v30, %v10334_v29 }
0x1a71   :  { %1188 = vrot.lane.b32.xlu0 %v1185_v32, %s10782_s0  ;;  %v1186_v12 = vmul.f32 %v1185_v32, %v1117_v62 }
0x1ae3   :  { %v1189_v33 = vpop.permute.xlu0 %1188 }
0x1ae4   :  { %v1191_v34 = vmul.f32 %v1189_v33, %v1185_v32 }
0x1ae6   :  { %1193 = vrot.lane.b32.xlu1 %v1191_v34, %s10782_s0 }
0x1b58   :  { %v1194_v35 = vpop.permute.xlu1 %1193 }
0x1b59   :  { %v1196_v36 = vadd.f32 %v1194_v35, %v1186_v12 }
0x1b5b   :  { %10337 = vtanh.f32 %v1196_v36 }
0x1b65   :  { %v10338_v38 = vpop.eup %10337 }
0x1b66   :  { %1199 = vrot.lane.b32.xlu0 %v10338_v38, %s10782_s0 }
0x1bd8   :  { %v1200_v2 = vpop.permute.xlu0 %1199 }
0x1bd9   :  { %v11242_v39 = vmul.f32 %v1200_v2, %v1185_v32 }
0x1bdb   :  { %v1208_v40 = vpack.c.bf16 %v11242_v39, %v11242_v39 }
0x1bdd   :  { %1211 = vrot.lane.b32.xlu1 %v1208_v40, %s10783_s30 }
0x1c4f   :  { %v1212_v41 = vpop.permute.xlu1 %1211 }
0x1c50   :  { %9257 = vmatmul.mubr.msk.bf16.vlgmr.msra.gmra.mrb[20].mxu0 %vm422_vm4, %v1212_v41 }
0x1c51   :  { %9269 = vmatpush3.bf16.msra.mxu0 %v10981_v19  ;;  %9272 = vmatprep.mubr.msk.bf16.mxu0 %vm10780_vm2, %v10779_v3 }
0x1c52   :  { %9270 = vmatprep.subr.bf16.mxu0 %v10779_v3 }
0x1c55   :  { %9271 = vmatpush3.bf16.msra.mxu0 %v10995_v24 }
0x1c56   :  { %9284 = vmatprep.subr.bf16.mxu0 %v10779_v3 }
0x1d23   :  { %v1250_v6 = vpop.f32.mrb[20].mxu0 }
0x1d24   :  { %v1256_v43 = vadd.f32 %v11057_v8, %v1250_v6  ;;  %v9258_v44 = vpop.f32.mrb[21].mxu0 }
0x1d25   :  { %v1253_v63 = vpop.f32.mrb[22].mxu0 }
0x1d26   :  { %v8499_v46 = vmul.f32 -1.442695, %v1256_v43  ;;  %v9259_v47 = vpop.f32.mrb[23].mxu0 }
0x1d28   :  { %10339 = vpow2.f32 %v8499_v46 }
0x1d29   :  { %10341 = vtanh.f32 %v1256_v43 }
0x1d32   :  { %v10340_v48 = vpop.eup %10339 }
0x1d33   :  { %v1260_v50 = vadd.f32 1.0, %v10340_v48  ;;  %v10342_v51 = vpop.eup %10341 }
0x1d35   :  { %10343 = vrcp.f32 %v1260_v50 }
0x1d3f   :  { %v10344_v52 = vpop.eup %10343 }
0x1d40   :  { %v1264_v54 = vsel %vm408_vm3, %v10344_v52, %v10342_v51 }
0x1d41   :  { %1267 = vrot.lane.b32.xlu0 %v1264_v54, %s10782_s0  ;;  %v1265_v8 = vmul.f32 %v1264_v54, %v1196_v36 }
0x1db3   :  { %v1268_v55 = vpop.permute.xlu0 %1267 }
0x1db4   :  { %v1270_v56 = vmul.f32 %v1268_v55, %v1264_v54 }
0x1db6   :  { %1272 = vrot.lane.b32.xlu1 %v1270_v56, %s10782_s0 }
0x1e28   :  { %v1273_v57 = vpop.permute.xlu1 %1272 }
0x1e29   :  { %v1275_v58 = vadd.f32 %v1273_v57, %v1265_v8 }
0x1e2b   :  { %10345 = vtanh.f32 %v1275_v58 }
0x1e35   :  { %v10346_v59 = vpop.eup %10345 }
0x1e36   :  { %1278 = vrot.lane.b32.xlu0 %v10346_v59, %s10782_s0  ;;  %v10772_v59 = vld [vmem:[%s13391_s3 + $0x8] sm:$0xff]  }
0x1ea8   :  { %v1279_v10 = vpop.permute.xlu0 %1278 }
0x1ea9   :  { %v11260_v61 = vmul.f32 %v1279_v10, %v1264_v54 }
0x1eab   :  { %v1287_v62 = vpack.c.bf16 %v11260_v61, %v11260_v61 }
0x1ead   :  { %1290 = vrot.lane.b32.xlu1 %v1287_v62, %s10783_s30 }
0x1f1f   :  { %v1291_v0 = vpop.permute.xlu1 %1290 }
0x1f20   :  { %9265 = vmatmul.mubr.msk.bf16.vlgmr.msra.gmra.mrb[36].mxu1 %vm422_vm4, %v1291_v0 }
0x1f21   :  { %9277 = vmatpush3.bf16.msra.mxu1 %v10981_v19  ;;  %9280 = vmatprep.mubr.msk.bf16.mxu1 %vm10780_vm2, %v10779_v3 }
0x1f22   :  { %9278 = vmatprep.subr.bf16.mxu1 %v10779_v3 }
0x1f25   :  { %9279 = vmatpush3.bf16.msra.mxu1 %v10995_v24 }
0x1f26   :  { %9292 = vmatprep.subr.bf16.mxu1 %v10779_v3 }
0x1ff3   :  { %v1329_v5 = vpop.f32.mrb[36].mxu1 }
0x1ff4   :  { %v1335_v7 = vadd.f32 %v11061_v11, %v1329_v5  ;;  %v9266_v9 = vpop.f32.mrb[37].mxu1 }
0x1ff5   :  { %v1332_v1 = vpop.f32.mrb[38].mxu1 }
0x1ff6   :  { %v8501_v20 = vmul.f32 -1.442695, %v1335_v7  ;;  %v9267_v21 = vpop.f32.mrb[39].mxu1 }
0x1ff8   :  { %10347 = vpow2.f32 %v8501_v20 }
0x1ff9   :  { %10349 = vtanh.f32 %v1335_v7 }
0x2002   :  { %v10348_v60 = vpop.eup %10347 }
0x2003   :  { %v1339_v23 = vadd.f32 1.0, %v10348_v60  ;;  %v10350_v25 = vpop.eup %10349 }
0x2005   :  { %10351 = vrcp.f32 %v1339_v23 }
0x200f   :  { %v10352_v26 = vpop.eup %10351 }
0x2010   :  { %v1343_v28 = vsel %vm408_vm3, %v10352_v26, %v10350_v25 }
0x2011   :  { %1346 = vrot.lane.b32.xlu0 %v1343_v28, %s10782_s0  ;;  %v1344_v11 = vmul.f32 %v1343_v28, %v1275_v58  ;;  %v10771_v58 = vld [vmem:[%s13391_s3] sm:$0xff]  }
0x2083   :  { %v1347_v29 = vpop.permute.xlu0 %1346 }
0x2084   :  { %v1349_v30 = vmul.f32 %v1347_v29, %v1343_v28 }
0x2086   :  { %1351 = vrot.lane.b32.xlu1 %v1349_v30, %s10782_s0 }
0x20f8   :  { %v1352_v32 = vpop.permute.xlu1 %1351 }
0x20f9   :  { %v1354_v33 = vadd.f32 %v1352_v32, %v1344_v11 }
0x20fb   :  { %10353 = vtanh.f32 %v1354_v33 }
0x2105   :  { %v10354_v34 = vpop.eup %10353 }
0x2106   :  { %1357 = vrot.lane.b32.xlu0 %v10354_v34, %s10782_s0 }
0x2178   :  { %v1358_v12 = vpop.permute.xlu0 %1357 }
0x2179   :  { %v11278_v35 = vmul.f32 %v1358_v12, %v1343_v28 }
0x217b   :  { %v1366_v36 = vpack.c.bf16 %v11278_v35, %v11278_v35 }
0x217d   :  { %1369 = vrot.lane.b32.xlu1 %v1366_v36, %s10783_s30 }
0x21ef   :  { %v1370_v38 = vpop.permute.xlu1 %1369 }
0x21f0   :  { %9273 = vmatmul.mubr.msk.bf16.vlgmr.msra.gmra.mrb[24].mxu0 %vm422_vm4, %v1370_v38 }
0x21f1   :  { %9285 = vmatpush3.bf16.msra.mxu0 %v10981_v19  ;;  %9288 = vmatprep.mubr.msk.bf16.mxu0 %vm10780_vm2, %v10779_v3 }
0x21f2   :  { %9286 = vmatprep.subr.bf16.mxu0 %v10779_v3 }
0x21f5   :  { %9287 = vmatpush3.bf16.msra.mxu0 %v10995_v24 }
0x22c3   :  { %v1408_v2 = vpop.f32.mrb[24].mxu0 }
0x22c4   :  { %v1414_v40 = vadd.f32 %v1408_v2, %v11069_v16  ;;  %v9274_v41 = vpop.f32.mrb[25].mxu0 }
0x22c5   :  { %v1411_v6 = vpop.f32.mrb[26].mxu0 }
0x22c6   :  { %v8503_v43 = vmul.f32 -1.442695, %v1414_v40  ;;  %v9275_v44 = vpop.f32.mrb[27].mxu0 }
0x22c8   :  { %10355 = vpow2.f32 %v8503_v43 }
0x22c9   :  { %10357 = vtanh.f32 %v1414_v40 }
0x22d2   :  { %v10356_v63 = vpop.eup %10355 }
0x22d3   :  { %v1418_v46 = vadd.f32 1.0, %v10356_v63  ;;  %v10358_v19 = vpop.eup %10357 }
0x22d5   :  { %10359 = vrcp.f32 %v1418_v46 }
0x22df   :  { %v10360_v47 = vpop.eup %10359 }
0x22e0   :  { %v1422_v48 = vsel %vm408_vm3, %v10360_v47, %v10358_v19 }
0x22e1   :  { %1425 = vrot.lane.b32.xlu0 %v1422_v48, %s10782_s0  ;;  %v1423_v16 = vmul.f32 %v1422_v48, %v1354_v33 }
0x2353   :  { %v1426_v24 = vpop.permute.xlu0 %1425 }
0x2354   :  { %v1428_v50 = vmul.f32 %v1426_v24, %v1422_v48 }
0x2356   :  { %1430 = vrot.lane.b32.xlu1 %v1428_v50, %s10782_s0 }
0x23c8   :  { %v1431_v51 = vpop.permute.xlu1 %1430 }
0x23c9   :  { %v1433_v52 = vadd.f32 %v1431_v51, %v1423_v16 }
0x23cb   :  { %10361 = vtanh.f32 %v1433_v52 }
0x23d5   :  { %v10362_v54 = vpop.eup %10361 }
0x23d6   :  { %1436 = vrot.lane.b32.xlu0 %v10362_v54, %s10782_s0 }
0x2448   :  { %v1437_v55 = vpop.permute.xlu0 %1436 }
0x2449   :  { %v11295_v56 = vmul.f32 %v1437_v55, %v1422_v48 }
0x244b   :  { %v1445_v8 = vpack.c.bf16 %v11295_v56, %v11295_v56 }
0x244d   :  { %1448 = vrot.lane.b32.xlu1 %v1445_v8, %s10783_s30 }
0x24bf   :  { %v1449_v57 = vpop.permute.xlu1 %1448 }
0x24c0   :  { %9281 = vmatmul.mubr.msk.bf16.vlgmr.msra.gmra.mrb[40].mxu1 %vm422_vm4, %v1449_v57 }
0x24c1   :  { %9293 = vmatpush3.bf16.msra.mxu1 %v10771_v58  ;;  %9296 = vmatprep.mubr.msk.bf16.mxu1 %vm10780_vm2, %v10779_v3 }
0x24c2   :  { %9294 = vmatprep.subr.bf16.mxu1 %v10779_v3 }
0x24c5   :  { %9295 = vmatpush3.bf16.msra.mxu1 %v10772_v59 }
0x24c6   :  { %9340 = vmatprep.subr.bf16.mxu1 %v10779_v3 }
0x2593   :  { %v1487_v10 = vpop.f32.mrb[40].mxu1 }
0x2594   :  { %v1493_v62 = vadd.f32 %v1487_v10, %v11073_v18  ;;  %v9282_v0 = vpop.f32.mrb[41].mxu1 }
0x2595   :  { %v1490_v5 = vpop.f32.mrb[42].mxu1 }
0x2596   :  { %v8505_v7 = vmul.f32 -1.442695, %v1493_v62  ;;  %v9283_v9 = vpop.f32.mrb[43].mxu1 }
0x2598   :  { %10363 = vpow2.f32 %v8505_v7 }
0x2599   :  { %10365 = vtanh.f32 %v1493_v62 }
0x25a2   :  { %v10364_v1 = vpop.eup %10363 }
0x25a3   :  { %v1497_v20 = vadd.f32 1.0, %v10364_v1  ;;  %v10366_v21 = vpop.eup %10365 }
0x25a5   :  { %10367 = vrcp.f32 %v1497_v20 }
0x25af   :  { %v10368_v60 = vpop.eup %10367 }
0x25b0   :  { %v1501_v23 = vsel %vm408_vm3, %v10368_v60, %v10366_v21 }
0x25b1   :  { %1504 = vrot.lane.b32.xlu0 %v1501_v23, %s10782_s0  ;;  %v1502_v18 = vmul.f32 %v1501_v23, %v1433_v52 }
0x2623   :  { %v1505_v25 = vpop.permute.xlu0 %1504 }
0x2624   :  { %v1507_v26 = vmul.f32 %v1505_v25, %v1501_v23 }
0x2626   :  { %1509 = vrot.lane.b32.xlu1 %v1507_v26, %s10782_s0 }
0x2698   :  { %v1510_v28 = vpop.permute.xlu1 %1509 }
0x2699   :  { %v1512_v29 = vadd.f32 %v1510_v28, %v1502_v18 }
0x269b   :  { %10369 = vtanh.f32 %v1512_v29 }
0x26a5   :  { %v10370_v30 = vpop.eup %10369 }
0x26a6   :  { %1515 = vrot.lane.b32.xlu0 %v10370_v30, %s10782_s0 }
0x2718   :  { %v1516_v11 = vpop.permute.xlu0 %1515 }
0x2719   :  { %v11317_v32 = vmul.f32 %v1516_v11, %v1501_v23 }
0x271b   :  { %v1524_v33 = vpack.c.bf16 %v11317_v32, %v11317_v32 }
0x271d   :  { %1527 = vrot.lane.b32.xlu1 %v1524_v33, %s10783_s30 }
0x278f   :  { %v1528_v34 = vpop.permute.xlu1 %1527 }
0x2790   :  { %9289 = vmatmul.mubr.msk.bf16.vlgmr.msra.gmra.mrb[28].mxu0 %vm422_vm4, %v1528_v34 }
0x2863   :  { %v1566_v12 = vpop.f32.mrb[28].mxu0 }
0x2864   :  { %v1572_v36 = vadd.f32 %v11067_v15, %v1566_v12  ;;  %v9290_v38 = vpop.f32.mrb[29].mxu0 }
0x2865   :  { %v1569_v2 = vpop.f32.mrb[30].mxu0  ;;  %v10213_v38 = vld [vmem:[%s13392_s5] sm:$0xff]  }
0x2866   :  { %v8507_v40 = vmul.f32 -1.442695, %v1572_v36  ;;  %v9291_v41 = vpop.f32.mrb[31].mxu0  ;;  %9300 = vmatprep.subr.bf16.mxu0 %v10213_v38  ;;  %v10214_v2 = vld [vmem:[%s13392_s5 + $0x8] sm:$0xff]  }
0x2867   :  { %9301 = vmatpush3.bf16.msra.mxu0 %v10213_v38 }
0x2868   :  { %10371 = vpow2.f32 %v8507_v40  ;;  %9302 = vmatprep.subr.bf16.mxu0 %v10214_v2  ;;  %v10215_v40 = vld [vmem:[%s13393_s4] sm:$0xff]  }
0x2869   :  { %10373 = vtanh.f32 %v1572_v36 }
0x286b   :  { %9303 = vmatpush3.bf16.msra.mxu0 %v10214_v2 }
0x286c   :  { %9320 = vmatprep.subr.bf16.mxu0 %v10215_v40 }
0x2872   :  { %v10372_v6 = vpop.eup %10371 }
0x2873   :  { %v1576_v43 = vadd.f32 1.0, %v10372_v6  ;;  %v10374_v44 = vpop.eup %10373 }
0x2875   :  { %10375 = vrcp.f32 %v1576_v43 }
0x287f   :  { %v10376_v63 = vpop.eup %10375 }
0x2880   :  { %v1580_v46 = vsel %vm408_vm3, %v10376_v63, %v10374_v44 }
0x2881   :  { %1583 = vrot.lane.b32.xlu0 %v1580_v46, %s10782_s0  ;;  %v1581_v15 = vmul.f32 %v1580_v46, %v1512_v29 }
0x28f3   :  { %v1584_v19 = vpop.permute.xlu0 %1583 }
0x28f4   :  { %v1586_v47 = vmul.f32 %v1584_v19, %v1580_v46 }
0x28f6   :  { %1588 = vrot.lane.b32.xlu1 %v1586_v47, %s10782_s0 }
0x2968   :  { %v1589_v48 = vpop.permute.xlu1 %1588 }
0x2969   :  { %v1591_v24 = vadd.f32 %v1589_v48, %v1581_v15 }
0x296b   :  { %10377 = vtanh.f32 %v1591_v24 }
0x2975   :  { %v10378_v50 = vpop.eup %10377 }
0x2976   :  { %1594 = vrot.lane.b32.xlu0 %v10378_v50, %s10782_s0  ;;  %v10216_v50 = vld [vmem:[%s13393_s4 + $0x8] sm:$0xff]  }
0x29e8   :  { %v1595_v16 = vpop.permute.xlu0 %1594 }
0x29e9   :  { %v1597_v51 = vmul.f32 %v1595_v16, %v1580_v46 }
0x29eb   :  { %v1603_v52 = vpack.c.bf16 %v1597_v51, %v1597_v51 }
0x29ed   :  { %1606 = vrot.lane.b32.xlu1 %v1603_v52, %s10783_s30 }
0x2a5f   :  { %v1607_v54 = vpop.permute.xlu1 %1606 }
0x2a60   :  { %9297 = vmatmul.mubr.msk.bf16.vlgmr.msra.gmra.mrb[44].mxu1 %vm422_vm4, %v1607_v54 }
0x2a61   :  { %9344 = vmatprep.mubr.msk.bf16.mxu1 %vm10780_vm2, %v10779_v3 }
0x2b33   :  { %v1645_v55 = vpop.f32.mrb[44].mxu1 }
0x2b34   :  { %v1651_v8 = vadd.f32 %v11071_v17, %v1645_v55  ;;  %v9298_v57 = vpop.f32.mrb[45].mxu1 }
0x2b35   :  { %v1648_v58 = vpop.f32.mrb[46].mxu1 }
0x2b36   :  { %v8509_v59 = vmul.f32 -1.442695, %v1651_v8  ;;  %v9299_v10 = vpop.f32.mrb[47].mxu1 }
0x2b38   :  { %10379 = vpow2.f32 %v8509_v59 }
0x2b39   :  { %10381 = vtanh.f32 %v1651_v8 }
0x2b42   :  { %v10380_v62 = vpop.eup %10379 }
0x2b43   :  { %v1655_v0 = vadd.f32 1.0, %v10380_v62  ;;  %v10382_v5 = vpop.eup %10381 }
0x2b45   :  { %10383 = vrcp.f32 %v1655_v0 }
0x2b4f   :  { %v10384_v7 = vpop.eup %10383 }
0x2b50   :  { %v1659_v9 = vsel %vm408_vm3, %v10384_v7, %v10382_v5 }
0x2b51   :  { %1662 = vrot.lane.b32.xlu0 %v1659_v9, %s10782_s0  ;;  %v1660_v17 = vmul.f32 %v1659_v9, %v1591_v24 }
0x2bc3   :  { %v1663_v1 = vpop.permute.xlu0 %1662 }
0x2bc4   :  { %v1665_v20 = vmul.f32 %v1663_v1, %v1659_v9 }
0x2bc6   :  { %1667 = vrot.lane.b32.xlu1 %v1665_v20, %s10782_s0 }
0x2bca   :  { %1599 = vrot.lane.b32.xlu1 %v1597_v51, %s10783_s30 }
0x2bce   :  { %1441 = vrot.lane.b32.xlu1 %v11295_v56, %s10783_s30 }
0x2bd2   :  { %1283 = vrot.lane.b32.xlu1 %v11260_v61, %s10783_s30 }
0x2bd6   :  { %1125 = vrot.lane.b32.xlu1 %v11224_v4, %s10783_s30 }
0x2bda   :  { %967 = vrot.lane.b32.xlu1 %v11188_v13, %s10783_s30 }
0x2bde   :  { %809 = vrot.lane.b32.xlu1 %v11152_v22, %s10783_s30 }
0x2be2   :  { %651 = vrot.lane.b32.xlu1 %v11116_v27, %s10783_s30 }
0x2be6   :  { %493 = vrot.lane.b32.xlu1 %v11081_v31, %s10783_s30 }
0x2c38   :  { %v1668_v56 = vpop.permute.xlu1 %1667 }
0x2c39   :  { %v1670_v21 = vadd.f32 %v1668_v56, %v1660_v17 }
0x2c3b   :  { %10385 = vtanh.f32 %v1670_v21 }
0x2c3c   :  { %v1600_v61 = vpop.permute.xlu1 %1599 }
0x2c3d   :  { %1602 = vst.msk [vmem:[#allocation4 + $0x70] sm:$0xff] %vm422_vm4, %v1600_v61 }
0x2c40   :  { %v1442_v4 = vpop.permute.xlu1 %1441 }
0x2c41   :  { %1444 = vst.msk [vmem:[#allocation4 + $0x60] sm:$0xff] %vm422_vm4, %v1442_v4 }
0x2c44   :  { %v11355_v13 = vld [vmem:[#allocation4 + $0x70] sm:$0xff]  ;;  %v1284_v60 = vpop.permute.xlu1 %1283 }
0x2c45   :  { %v10386_v22 = vpop.eup %10385  ;;  %1685 = vst.msk [vmem:[#allocation5 + $0x8] sm:$0xff] %vm422_vm4, %v11355_v13  ;;  %1286 = vst.msk [vmem:[#allocation4 + $0x50] sm:$0xff] %vm422_vm4, %v1284_v60 }
0x2c46   :  { %1673 = vrot.lane.b32.xlu0 %v10386_v22, %s10782_s0 }
0x2c48   :  { %v11361_v31 = vld [vmem:[#allocation4 + $0x60] sm:$0xff]  ;;  %v1126_v27 = vpop.permute.xlu1 %1125 }
0x2c49   :  { %1689 = vst.msk [vmem:[#allocation5 + $0x18] sm:$0xff] %vm422_vm4, %v11361_v31  ;;  %1128 = vst.msk [vmem:[#allocation4 + $0x40] sm:$0xff] %vm422_vm4, %v1126_v27 }
0x2c4c   :  { %v11366_v23 = vld [vmem:[#allocation4 + $0x50] sm:$0xff]  ;;  %v968_v25 = vpop.permute.xlu1 %967  ;;  %v1751_v63 = vld [vmem:[#allocation5 + $0x8] sm:$0xff] }
0x2c4d   :  { %1693 = vst.msk [vmem:[#allocation5 + $0x28] sm:$0xff] %vm422_vm4, %v11366_v23  ;;  %970 = vst.msk [vmem:[#allocation4 + $0x30] sm:$0xff] %vm422_vm4, %v968_v25 }
0x2c50   :  { %v11371_v26 = vld [vmem:[#allocation4 + $0x40] sm:$0xff]  ;;  %v810_v18 = vpop.permute.xlu1 %809  ;;  %v1753_v48 = vld [vmem:[#allocation5 + $0x18] sm:$0xff] }
0x2c51   :  { %1697 = vst.msk [vmem:[#allocation5 + $0x38] sm:$0xff] %vm422_vm4, %v11371_v26  ;;  %812 = vst.msk [vmem:[#allocation4 + $0x20] sm:$0xff] %vm422_vm4, %v810_v18 }
0x2c54   :  { %v11376_v28 = vld [vmem:[#allocation4 + $0x30] sm:$0xff]  ;;  %v652_v29 = vpop.permute.xlu1 %651  ;;  %v1755_v54 = vld [vmem:[#allocation5 + $0x28] sm:$0xff] }
0x2c55   :  { %1701 = vst.msk [vmem:[#allocation5 + $0x48] sm:$0xff] %vm422_vm4, %v11376_v28  ;;  %654 = vst.msk [vmem:[#allocation4 + $0x10] sm:$0xff] %vm422_vm4, %v652_v29 }
0x2c58   :  { %v11381_v30 = vld [vmem:[#allocation4 + $0x20] sm:$0xff]  ;;  %v494_v11 = vpop.permute.xlu1 %493  ;;  %v1757_v59 = vld [vmem:[#allocation5 + $0x38] sm:$0xff] }
0x2c59   :  { %1705 = vst.msk [vmem:[#allocation5 + $0x58] sm:$0xff] %vm422_vm4, %v11381_v30  ;;  %496 = vst.msk [vmem:[#allocation4] sm:$0xff] %vm422_vm4, %v494_v11 }
0x2c5c   :  { %v11386_v33 = vld [vmem:[#allocation4 + $0x10] sm:$0xff]  ;;  %v1759_v5 = vld [vmem:[#allocation5 + $0x48] sm:$0xff] }
0x2c5d   :  { %1709 = vst.msk [vmem:[#allocation5 + $0x68] sm:$0xff] %vm422_vm4, %v11386_v33 }
0x2c60   :  { %v11390_v34 = vld [vmem:[#allocation4] sm:$0xff]  ;;  %v1761_v20 = vld [vmem:[#allocation5 + $0x58] sm:$0xff] }
0x2c61   :  { %1713 = vst.msk [vmem:[#allocation5 + $0x78] sm:$0xff] %vm422_vm4, %v11390_v34 }
0x2c64   :  { %v1763_v21 = vld [vmem:[#allocation5 + $0x68] sm:$0xff] }
0x2c68   :  { %v1765_v60 = vld [vmem:[#allocation5 + $0x78] sm:$0xff] }
0x2cb8   :  { %v1674_v12 = vpop.permute.xlu0 %1673 }
0x2cb9   :  { %v1676_v36 = vmul.f32 %v1674_v12, %v1659_v9 }
0x2cbb   :  { %1678 = vrot.lane.b32.xlu0 %v1676_v36, %s10783_s30 }
0x2cbf   :  { %1520 = vrot.lane.b32.xlu0 %v11317_v32, %s10783_s30 }
0x2cc3   :  { %1362 = vrot.lane.b32.xlu0 %v11278_v35, %s10783_s30 }
0x2cc7   :  { %1204 = vrot.lane.b32.xlu0 %v11242_v39, %s10783_s30  ;;  %v11421_v39 = vld [vmem:[%s13394_s6] sm:$0xff]  }
0x2cc8   :  { %9341 = vmatpush3.bf16.msra.mxu1 %v11421_v39 }
0x2cc9   :  { %9342 = vmatprep.subr.bf16.mxu1 %v10779_v3 }
0x2ccb   :  { %1046 = vrot.lane.b32.xlu0 %v11206_v42, %s10783_s30  ;;  %v11428_v42 = vld [vmem:[%s13394_s6 + $0x8] sm:$0xff]  }
0x2ccc   :  { %9343 = vmatpush3.bf16.msra.mxu1 %v11428_v42 }
0x2ccd   :  { %9348 = vmatprep.subr.bf16.mxu1 %v10779_v3 }
0x2ccf   :  { %888 = vrot.lane.b32.xlu0 %v11170_v45, %s10783_s30  ;;  %9345 = vmatmul.mubr.bf16.vlgmr.msra.gmra.mrb[48].mxu1 %v10781_v37 }
0x2cd0   :  { %9349 = vmatpush3.bf16.msra.mxu1 %v11421_v39  ;;  %9352 = vmatprep.mubr.msk.bf16.mxu1 %vm10780_vm2, %v10779_v3 }
0x2cd1   :  { %9350 = vmatprep.subr.bf16.mxu1 %v10779_v3 }
0x2cd3   :  { %730 = vrot.lane.b32.xlu0 %v11134_v49, %s10783_s30 }
0x2cd4   :  { %9351 = vmatpush3.bf16.msra.mxu1 %v11428_v42 }
0x2cd5   :  { %9356 = vmatprep.subr.bf16.mxu1 %v10779_v3 }
0x2cd7   :  { %572 = vrot.lane.b32.xlu0 %v11098_v53, %s10783_s30 }
0x2d2d   :  { %v1679_v53 = vpop.permute.xlu0 %1678 }
0x2d2e   :  { %1681 = vst.msk [vmem:[#allocation4 + $0x78] sm:$0xff] %vm422_vm4, %v1679_v53 }
0x2d31   :  { %v1521_v49 = vpop.permute.xlu0 %1520 }
0x2d32   :  { %1523 = vst.msk [vmem:[#allocation4 + $0x68] sm:$0xff] %vm422_vm4, %v1521_v49 }
0x2d35   :  { %v11441_v45 = vld [vmem:[#allocation4 + $0x78] sm:$0xff]  ;;  %v1363_v35 = vpop.permute.xlu0 %1362 }
0x2d36   :  { %1683 = vst.msk [vmem:[#allocation5] sm:$0xff] %vm422_vm4, %v11441_v45  ;;  %1365 = vst.msk [vmem:[#allocation4 + $0x58] sm:$0xff] %vm422_vm4, %v1363_v35 }
0x2d39   :  { %v11446_v32 = vld [vmem:[#allocation4 + $0x68] sm:$0xff]  ;;  %v1205_v41 = vpop.permute.xlu0 %1204 }
0x2d3a   :  { %1687 = vst.msk [vmem:[#allocation5 + $0x10] sm:$0xff] %vm422_vm4, %v11446_v32  ;;  %1207 = vst.msk [vmem:[#allocation4 + $0x48] sm:$0xff] %vm422_vm4, %v1205_v41 }
0x2d3d   :  { %v11451_v6 = vld [vmem:[#allocation4 + $0x58] sm:$0xff]  ;;  %v1047_v43 = vpop.permute.xlu0 %1046  ;;  %v1750_v44 = vld [vmem:[#allocation5] sm:$0xff] }
0x2d3e   :  { %1691 = vst.msk [vmem:[#allocation5 + $0x20] sm:$0xff] %vm422_vm4, %v11451_v6  ;;  %1049 = vst.msk [vmem:[#allocation4 + $0x38] sm:$0xff] %vm422_vm4, %v1047_v43  ;;  %v1766_v46 = vpack.c.bf16 %v1751_v63, %v1750_v44 }
0x2d40   :  { %9304 = vmatprep.mubr.msk.bf16.mxu0 %vm422_vm4, %v1766_v46 }
0x2d41   :  { %v11457_v19 = vld [vmem:[#allocation4 + $0x48] sm:$0xff]  ;;  %v889_v47 = vpop.permute.xlu0 %888  ;;  %v1752_v15 = vld [vmem:[#allocation5 + $0x10] sm:$0xff] }
0x2d42   :  { %1695 = vst.msk [vmem:[#allocation5 + $0x30] sm:$0xff] %vm422_vm4, %v11457_v19  ;;  %891 = vst.msk [vmem:[#allocation4 + $0x28] sm:$0xff] %vm422_vm4, %v889_v47  ;;  %v1767_v24 = vpack.c.bf16 %v1753_v48, %v1752_v15  ;;  %v1746_v11 = vpack.c.bf16 %v11457_v19, %v11371_v26 }
0x2d44   :  { %9305 = vmatmul.mubr.msk.bf16.vlgmr.msra.gmra.mrb[32].mxu0 %vm422_vm4, %v1767_v24 }
0x2d45   :  { %v1698_v16 = vld [vmem:[#allocation4 + $0x38] sm:$0xff]  ;;  %9321 = vmatpush3.bf16.msra.mxu0 %v10215_v40  ;;  %v731_v51 = vpop.permute.xlu0 %730  ;;  %v1754_v52 = vld [vmem:[#allocation5 + $0x20] sm:$0xff] }
0x2d46   :  { %1699 = vst.msk [vmem:[#allocation5 + $0x40] sm:$0xff] %vm422_vm4, %v1698_v16  ;;  %733 = vst.msk [vmem:[#allocation4 + $0x18] sm:$0xff] %vm422_vm4, %v731_v51  ;;  %v1768_v55 = vpack.c.bf16 %v1755_v54, %v1754_v52  ;;  %9322 = vmatprep.subr.bf16.mxu0 %v10216_v50  ;;  %v1745_v29 = vpack.c.bf16 %v1698_v16, %v11376_v28  ;;  %v1749_v28 = vpack.c.bf16 %v11441_v45, %v11355_v13 }
0x2d48   :  { %9308 = vmatprep.mubr.msk.bf16.mxu0 %vm422_vm4, %v1768_v55 }
0x2d49   :  { %v1702_v8 = vld [vmem:[#allocation4 + $0x28] sm:$0xff]  ;;  %v573_v57 = vpop.permute.xlu0 %572  ;;  %v1756_v58 = vld [vmem:[#allocation5 + $0x30] sm:$0xff]  ;;  %9323 = vmatpush3.bf16.msra.mxu0 %v10216_v50 }
0x2d4a   :  { %1703 = vst.msk [vmem:[#allocation5 + $0x50] sm:$0xff] %vm422_vm4, %v1702_v8  ;;  %575 = vst.msk [vmem:[#allocation4 + $0x8] sm:$0xff] %vm422_vm4, %v573_v57  ;;  %v1769_v10 = vpack.c.bf16 %v1757_v59, %v1756_v58  ;;  %9404 = vmatprep.subr.bf16.mxu0 %v10779_v3  ;;  %v1744_v18 = vpack.c.bf16 %v1702_v8, %v11381_v30  ;;  %v1747_v30 = vpack.c.bf16 %v11451_v6, %v11366_v23 }
0x2d4c   :  { %9309 = vmatmul.mubr.msk.bf16.gmra.mrb[36].mxu0 %vm422_vm4, %v1769_v10 }
0x2d4d   :  { %v1706_v62 = vld [vmem:[#allocation4 + $0x18] sm:$0xff]  ;;  %v1758_v0 = vld [vmem:[#allocation5 + $0x40] sm:$0xff] }
0x2d4e   :  { %1707 = vst.msk [vmem:[#allocation5 + $0x60] sm:$0xff] %vm422_vm4, %v1706_v62  ;;  %v1770_v7 = vpack.c.bf16 %v1759_v5, %v1758_v0  ;;  %v1743_v25 = vpack.c.bf16 %v1706_v62, %v11386_v33  ;;  %v1748_v33 = vpack.c.bf16 %v11446_v32, %v11361_v31 }
0x2d50   :  { %9312 = vmatprep.mubr.msk.bf16.mxu0 %vm422_vm4, %v1770_v7 }
0x2d51   :  { %v1710_v9 = vld [vmem:[#allocation4 + $0x8] sm:$0xff]  ;;  %v1760_v1 = vld [vmem:[#allocation5 + $0x50] sm:$0xff] }
0x2d52   :  { %1711 = vst.msk [vmem:[#allocation5 + $0x70] sm:$0xff] %vm422_vm4, %v1710_v9  ;;  %v1771_v17 = vpack.c.bf16 %v1761_v20, %v1760_v1  ;;  %v1742_v27 = vpack.c.bf16 %v1710_v9, %v11390_v34 }
0x2d54   :  { %9313 = vmatmul.mubr.msk.bf16.gmra.mrb[40].mxu0 %vm422_vm4, %v1771_v17 }
0x2d55   :  { %v1762_v56 = vld [vmem:[#allocation5 + $0x60] sm:$0xff] }
0x2d56   :  { %v1772_v61 = vpack.c.bf16 %v1763_v21, %v1762_v56 }
0x2d58   :  { %9316 = vmatprep.mubr.msk.bf16.mxu0 %vm422_vm4, %v1772_v61 }
0x2d59   :  { %v1764_v4 = vld [vmem:[#allocation5 + $0x70] sm:$0xff] }
0x2d5a   :  { %v1773_v22 = vpack.c.bf16 %v1765_v60, %v1764_v4 }
0x2d5c   :  { %9317 = vmatmul.mubr.msk.bf16.gmra.mrb[44].mxu0 %vm422_vm4, %v1773_v22 }
0x2d5d   :  { %9324 = vmatprep.mubr.msk.bf16.mxu0 %vm422_vm4, %v1742_v27 }
0x2d64   :  { %9325 = vmatmul.mubr.msk.bf16.vlgmr.msra.gmra.mrb[32].mxu0 %vm422_vm4, %v1743_v25 }
0x2d65   :  { %9328 = vmatprep.mubr.msk.bf16.mxu0 %vm422_vm4, %v1744_v18  ;;  %9405 = vmatpush3.bf16.msra.mxu0 %v11421_v39 }
0x2d66   :  { %9406 = vmatprep.subr.bf16.mxu0 %v10779_v3 }
0x2d69   :  { %9407 = vmatpush3.bf16.msra.mxu0 %v11428_v42 }
0x2d6a   :  { %9420 = vmatprep.subr.bf16.mxu0 %v10779_v3 }
0x2d6c   :  { %9329 = vmatmul.mubr.msk.bf16.gmra.mrb[36].mxu0 %vm422_vm4, %v1745_v29 }
0x2d6d   :  { %9332 = vmatprep.mubr.msk.bf16.mxu0 %vm422_vm4, %v1746_v11 }
0x2d74   :  { %9333 = vmatmul.mubr.msk.bf16.gmra.mrb[40].mxu0 %vm422_vm4, %v1747_v30 }
0x2d75   :  { %9336 = vmatprep.mubr.msk.bf16.mxu0 %vm422_vm4, %v1748_v33 }
0x2d7c   :  { %9337 = vmatmul.mubr.msk.bf16.gmra.mrb[44].mxu0 %vm422_vm4, %v1749_v28 }
0x2d7d   :  { %9408 = vmatprep.mubr.msk.bf16.mxu0 %vm10780_vm2, %v10779_v3 }
0x2da2   :  { %v2103_v26 = vpop.f32.mrb[48].mxu1 }
0x2da3   :  { %v9346_v34 = vpop.f32.mrb[49].mxu1 }
0x2da4   :  { %v2106_v12 = vpop.f32.mrb[50].mxu1 }
0x2da5   :  { %v9347_v36 = vpop.f32.mrb[51].mxu1 }
0x2e37   :  { %v11505_v23 = vpop.f32.mrb[32].mxu0 }
0x2e38   :  { %v1977_v38 = vpop.f32.mrb[33].mxu0 }
0x2e39   :  { %v2109_v31 = vadd.f32 %v2103_v26, %v1977_v38  ;;  %v11507_v2 = vpop.f32.mrb[34].mxu0 }
0x2e3a   :  { %v1980_v40 = vpop.f32.mrb[35].mxu0 }
0x2e3b   :  { %v8532_v53 = vmul.f32 -1.442695, %v2109_v31 }
0x2e3d   :  { %10387 = vpow2.f32 %v8532_v53 }
0x2e3e   :  { %10389 = vtanh.f32 %v2109_v31 }
0x2e3f   :  { %v11509_v49 = vpop.f32.mrb[36].mxu0 }
0x2e40   :  { %v11511_v13 = vpop.f32.mrb[37].mxu0 }
0x2e41   :  { %v11513_v45 = vpop.f32.mrb[38].mxu0 }
0x2e42   :  { %v11515_v35 = vpop.f32.mrb[39].mxu0 }
0x2e47   :  { %v10388_v32 = vpop.eup %10387  ;;  %v11517_v41 = vpop.f32.mrb[40].mxu0 }
0x2e48   :  { %v2113_v6 = vadd.f32 1.0, %v10388_v32  ;;  %v11519_v43 = vpop.f32.mrb[41].mxu0  ;;  %v10390_v48 = vpop.eup %10389 }
0x2e49   :  { %v11521_v44 = vpop.f32.mrb[42].mxu0 }
0x2e4a   :  { %10391 = vrcp.f32 %v2113_v6  ;;  %v11523_v63 = vpop.f32.mrb[43].mxu0 }
0x2e4f   :  { %v11525_v46 = vpop.f32.mrb[44].mxu0 }
0x2e50   :  { %v11527_v19 = vpop.f32.mrb[45].mxu0 }
0x2e51   :  { %v11529_v47 = vpop.f32.mrb[46].mxu0 }
0x2e52   :  { %v11531_v15 = vpop.f32.mrb[47].mxu0 }
0x2e54   :  { %v10392_v24 = vpop.eup %10391 }
0x2e55   :  { %v2117_v50 = vsel %vm408_vm3, %v10392_v24, %v10390_v48 }
0x2e56   :  { %2120 = vrot.lane.b32.xlu1 %v2117_v50, %s10782_s0  ;;  %v2118_v52 = vmul.f32 0.0, %v2117_v50 }
0x2ec8   :  { %v2121_v16 = vpop.permute.xlu1 %2120 }
0x2ec9   :  { %v2123_v51 = vmul.f32 %v2121_v16, %v2117_v50 }
0x2ecb   :  { %2125 = vrot.lane.b32.xlu0 %v2123_v51, %s10782_s0 }
0x2f3d   :  { %v2126_v54 = vpop.permute.xlu0 %2125 }
0x2f3e   :  { %v2128_v55 = vadd.f32 %v2126_v54, %v2118_v52 }
0x2f40   :  { %10393 = vtanh.f32 %v2128_v55 }
0x2f4a   :  { %v10394_v8 = vpop.eup %10393 }
0x2f4b   :  { %2131 = vrot.lane.b32.xlu1 %v10394_v8, %s10782_s0 }
0x2fbd   :  { %v2132_v57 = vpop.permute.xlu1 %2131 }
0x2fbe   :  { %v11538_v58 = vmul.f32 %v2132_v57, %v2117_v50 }
0x2fc0   :  { %v2140_v59 = vpack.c.bf16 %v11538_v58, %v11538_v58 }
0x2fc2   :  { %2143 = vrot.lane.b32.xlu0 %v2140_v59, %s10783_s30 }
0x3034   :  { %v2144_v10 = vpop.permute.xlu0 %2143 }
0x3035   :  { %9353 = vmatmul.mubr.msk.bf16.vlgmr.msra.gmra.mrb[52].mxu1 %vm422_vm4, %v2144_v10 }
0x3036   :  { %9357 = vmatpush3.bf16.msra.mxu1 %v11421_v39  ;;  %9360 = vmatprep.mubr.msk.bf16.mxu1 %vm10780_vm2, %v10779_v3 }
0x3037   :  { %9358 = vmatprep.subr.bf16.mxu1 %v10779_v3 }
0x303a   :  { %9359 = vmatpush3.bf16.msra.mxu1 %v11428_v42 }
0x303b   :  { %9364 = vmatprep.subr.bf16.mxu1 %v10779_v3 }
0x3108   :  { %v2182_v62 = vpop.f32.mrb[52].mxu1 }
0x3109   :  { %v2188_v0 = vadd.f32 %v2182_v62, %v1980_v40  ;;  %v9354_v5 = vpop.f32.mrb[53].mxu1 }
0x310a   :  { %v2185_v7 = vpop.f32.mrb[54].mxu1 }
0x310b   :  { %v8534_v9 = vmul.f32 -1.442695, %v2188_v0  ;;  %v9355_v1 = vpop.f32.mrb[55].mxu1 }
0x310d   :  { %10395 = vpow2.f32 %v8534_v9 }
0x310e   :  { %10397 = vtanh.f32 %v2188_v0 }
0x3117   :  { %v10396_v20 = vpop.eup %10395 }
0x3118   :  { %v2192_v17 = vadd.f32 1.0, %v10396_v20  ;;  %v10398_v56 = vpop.eup %10397 }
0x311a   :  { %10399 = vrcp.f32 %v2192_v17 }
0x3124   :  { %v10400_v21 = vpop.eup %10399 }
0x3125   :  { %v2196_v61 = vsel %vm408_vm3, %v10400_v21, %v10398_v56 }
0x3126   :  { %2199 = vrot.lane.b32.xlu1 %v2196_v61, %s10782_s0  ;;  %v2197_v22 = vmul.f32 %v2196_v61, %v2128_v55 }
0x3198   :  { %v2200_v4 = vpop.permute.xlu1 %2199 }
0x3199   :  { %v2202_v60 = vmul.f32 %v2200_v4, %v2196_v61 }
0x319b   :  { %2204 = vrot.lane.b32.xlu0 %v2202_v60, %s10782_s0 }
0x320d   :  { %v2205_v27 = vpop.permute.xlu0 %2204 }
0x320e   :  { %v2207_v25 = vadd.f32 %v2205_v27, %v2197_v22 }
0x3210   :  { %10401 = vtanh.f32 %v2207_v25 }
0x321a   :  { %v10402_v18 = vpop.eup %10401 }
0x321b   :  { %2210 = vrot.lane.b32.xlu1 %v10402_v18, %s10782_s0 }
0x328d   :  { %v2211_v29 = vpop.permute.xlu1 %2210 }
0x328e   :  { %v11555_v11 = vmul.f32 %v2211_v29, %v2196_v61 }
0x3290   :  { %v2219_v30 = vpack.c.bf16 %v11555_v11, %v11555_v11 }
0x3292   :  { %2222 = vrot.lane.b32.xlu0 %v2219_v30, %s10783_s30 }
0x3304   :  { %v2223_v33 = vpop.permute.xlu0 %2222 }
0x3305   :  { %9361 = vmatmul.mubr.msk.bf16.vlgmr.msra.gmra.mrb[56].mxu1 %vm422_vm4, %v2223_v33 }
0x3306   :  { %9365 = vmatpush3.bf16.msra.mxu1 %v11421_v39  ;;  %9368 = vmatprep.mubr.msk.bf16.mxu1 %vm10780_vm2, %v10779_v3 }
0x3307   :  { %9366 = vmatprep.subr.bf16.mxu1 %v10779_v3 }
0x330a   :  { %9367 = vmatpush3.bf16.msra.mxu1 %v11428_v42 }
0x330b   :  { %9372 = vmatprep.subr.bf16.mxu1 %v10779_v3 }
0x33d8   :  { %v2261_v28 = vpop.f32.mrb[56].mxu1 }
0x33d9   :  { %v2267_v26 = vadd.f32 %v11505_v23, %v2261_v28  ;;  %v9362_v34 = vpop.f32.mrb[57].mxu1 }
0x33da   :  { %v2264_v12 = vpop.f32.mrb[58].mxu1 }
0x33db   :  { %v8536_v36 = vmul.f32 -1.442695, %v2267_v26  ;;  %v9363_v38 = vpop.f32.mrb[59].mxu1 }
0x33dd   :  { %10403 = vpow2.f32 %v8536_v36 }
0x33de   :  { %10405 = vtanh.f32 %v2267_v26 }
0x33e7   :  { %v10404_v31 = vpop.eup %10403 }
0x33e8   :  { %v2271_v40 = vadd.f32 1.0, %v10404_v31  ;;  %v10406_v53 = vpop.eup %10405 }
0x33ea   :  { %10407 = vrcp.f32 %v2271_v40 }
0x33f4   :  { %v10408_v32 = vpop.eup %10407 }
0x33f5   :  { %v2275_v6 = vsel %vm408_vm3, %v10408_v32, %v10406_v53 }
0x33f6   :  { %2278 = vrot.lane.b32.xlu1 %v2275_v6, %s10782_s0  ;;  %v2276_v23 = vmul.f32 %v2275_v6, %v2207_v25 }
0x3468   :  { %v2279_v48 = vpop.permute.xlu1 %2278 }
0x3469   :  { %v2281_v24 = vmul.f32 %v2279_v48, %v2275_v6 }
0x346b   :  { %2283 = vrot.lane.b32.xlu0 %v2281_v24, %s10782_s0 }
0x34dd   :  { %v2284_v50 = vpop.permute.xlu0 %2283 }
0x34de   :  { %v2286_v16 = vadd.f32 %v2284_v50, %v2276_v23 }
0x34e0   :  { %10409 = vtanh.f32 %v2286_v16 }
0x34ea   :  { %v10410_v51 = vpop.eup %10409 }
0x34eb   :  { %2289 = vrot.lane.b32.xlu1 %v10410_v51, %s10782_s0 }
0x355d   :  { %v2290_v52 = vpop.permute.xlu1 %2289 }
0x355e   :  { %v11573_v54 = vmul.f32 %v2290_v52, %v2275_v6 }
0x3560   :  { %v2298_v55 = vpack.c.bf16 %v11573_v54, %v11573_v54 }
0x3562   :  { %2301 = vrot.lane.b32.xlu0 %v2298_v55, %s10783_s30 }
0x35d4   :  { %v2302_v8 = vpop.permute.xlu0 %2301 }
0x35d5   :  { %9369 = vmatmul.mubr.msk.bf16.vlgmr.msra.gmra.mrb[60].mxu1 %vm422_vm4, %v2302_v8 }
0x35d6   :  { %9373 = vmatpush3.bf16.msra.mxu1 %v11421_v39  ;;  %9376 = vmatprep.mubr.msk.bf16.mxu1 %vm10780_vm2, %v10779_v3 }
0x35d7   :  { %9374 = vmatprep.subr.bf16.mxu1 %v10779_v3 }
0x35da   :  { %9375 = vmatpush3.bf16.msra.mxu1 %v11428_v42 }
0x35db   :  { %9380 = vmatprep.subr.bf16.mxu1 %v10779_v3 }
0x36a8   :  { %v2340_v57 = vpop.f32.mrb[60].mxu1 }
0x36a9   :  { %v2346_v59 = vadd.f32 %v11507_v2, %v2340_v57  ;;  %v9370_v10 = vpop.f32.mrb[61].mxu1 }
0x36aa   :  { %v2343_v62 = vpop.f32.mrb[62].mxu1 }
0x36ab   :  { %v8538_v0 = vmul.f32 -1.442695, %v2346_v59  ;;  %v9371_v5 = vpop.f32.mrb[63].mxu1 }
0x36ad   :  { %10411 = vpow2.f32 %v8538_v0 }
0x36ae   :  { %10413 = vtanh.f32 %v2346_v59 }
0x36b7   :  { %v10412_v7 = vpop.eup %10411 }
0x36b8   :  { %v2350_v9 = vadd.f32 1.0, %v10412_v7  ;;  %v10414_v1 = vpop.eup %10413 }
0x36ba   :  { %10415 = vrcp.f32 %v2350_v9 }
0x36c4   :  { %v10416_v20 = vpop.eup %10415 }
0x36c5   :  { %v2354_v17 = vsel %vm408_vm3, %v10416_v20, %v10414_v1 }
0x36c6   :  { %2357 = vrot.lane.b32.xlu1 %v2354_v17, %s10782_s0  ;;  %v2355_v2 = vmul.f32 %v2354_v17, %v2286_v16 }
0x3738   :  { %v2358_v56 = vpop.permute.xlu1 %2357 }
0x3739   :  { %v2360_v21 = vmul.f32 %v2358_v56, %v2354_v17 }
0x373b   :  { %2362 = vrot.lane.b32.xlu0 %v2360_v21, %s10782_s0 }
0x37ad   :  { %v2363_v61 = vpop.permute.xlu0 %2362 }
0x37ae   :  { %v2365_v4 = vadd.f32 %v2363_v61, %v2355_v2 }
0x37b0   :  { %10417 = vtanh.f32 %v2365_v4 }
0x37ba   :  { %v10418_v60 = vpop.eup %10417 }
0x37bb   :  { %2368 = vrot.lane.b32.xlu1 %v10418_v60, %s10782_s0 }
0x382d   :  { %v2369_v22 = vpop.permute.xlu1 %2368 }
0x382e   :  { %v11591_v27 = vmul.f32 %v2369_v22, %v2354_v17 }
0x3830   :  { %v2377_v25 = vpack.c.bf16 %v11591_v27, %v11591_v27 }
0x3832   :  { %2380 = vrot.lane.b32.xlu0 %v2377_v25, %s10783_s30 }
0x38a4   :  { %v2381_v18 = vpop.permute.xlu0 %2380 }
0x38a5   :  { %9377 = vmatmul.mubr.msk.bf16.vlgmr.msra.gmra.mrb[64].mxu1 %vm422_vm4, %v2381_v18 }
0x38a6   :  { %9381 = vmatpush3.bf16.msra.mxu1 %v11421_v39  ;;  %9384 = vmatprep.mubr.msk.bf16.mxu1 %vm10780_vm2, %v10779_v3 }
0x38a7   :  { %9382 = vmatprep.subr.bf16.mxu1 %v10779_v3 }
0x38aa   :  { %9383 = vmatpush3.bf16.msra.mxu1 %v11428_v42 }
0x38ab   :  { %9388 = vmatprep.subr.bf16.mxu1 %v10779_v3 }
0x3978   :  { %v2419_v29 = vpop.f32.mrb[64].mxu1 }
0x3979   :  { %v2425_v30 = vadd.f32 %v2419_v29, %v11511_v13  ;;  %v9378_v33 = vpop.f32.mrb[65].mxu1 }
0x397a   :  { %v2422_v28 = vpop.f32.mrb[66].mxu1 }
0x397b   :  { %v8540_v26 = vmul.f32 -1.442695, %v2425_v30  ;;  %v9379_v34 = vpop.f32.mrb[67].mxu1 }
0x397d   :  { %10419 = vpow2.f32 %v8540_v26 }
0x397e   :  { %10421 = vtanh.f32 %v2425_v30 }
0x3987   :  { %v10420_v12 = vpop.eup %10419 }
0x3988   :  { %v2429_v36 = vadd.f32 1.0, %v10420_v12  ;;  %v10422_v38 = vpop.eup %10421 }
0x398a   :  { %10423 = vrcp.f32 %v2429_v36 }
0x3994   :  { %v10424_v31 = vpop.eup %10423 }
0x3995   :  { %v2433_v40 = vsel %vm408_vm3, %v10424_v31, %v10422_v38 }
0x3996   :  { %2436 = vrot.lane.b32.xlu1 %v2433_v40, %s10782_s0  ;;  %v2434_v13 = vmul.f32 %v2433_v40, %v2365_v4 }
0x3a08   :  { %v2437_v53 = vpop.permute.xlu1 %2436 }
0x3a09   :  { %v2439_v32 = vmul.f32 %v2437_v53, %v2433_v40 }
0x3a0b   :  { %2441 = vrot.lane.b32.xlu0 %v2439_v32, %s10782_s0 }
0x3a7d   :  { %v2442_v6 = vpop.permute.xlu0 %2441 }
0x3a7e   :  { %v2444_v48 = vadd.f32 %v2442_v6, %v2434_v13 }
0x3a80   :  { %10425 = vtanh.f32 %v2444_v48 }
0x3a8a   :  { %v10426_v24 = vpop.eup %10425 }
0x3a8b   :  { %2447 = vrot.lane.b32.xlu1 %v10426_v24, %s10782_s0 }
0x3afd   :  { %v2448_v23 = vpop.permute.xlu1 %2447 }
0x3afe   :  { %v11609_v50 = vmul.f32 %v2448_v23, %v2433_v40 }
0x3b00   :  { %v2456_v16 = vpack.c.bf16 %v11609_v50, %v11609_v50 }
0x3b02   :  { %2459 = vrot.lane.b32.xlu0 %v2456_v16, %s10783_s30 }
0x3b74   :  { %v2460_v51 = vpop.permute.xlu0 %2459 }
0x3b75   :  { %9385 = vmatmul.mubr.msk.bf16.vlgmr.msra.gmra.mrb[68].mxu1 %vm422_vm4, %v2460_v51 }
0x3b76   :  { %9389 = vmatpush3.bf16.msra.mxu1 %v11421_v39  ;;  %9392 = vmatprep.mubr.msk.bf16.mxu1 %vm10780_vm2, %v10779_v3 }
0x3b77   :  { %9390 = vmatprep.subr.bf16.mxu1 %v10779_v3 }
0x3b7a   :  { %9391 = vmatpush3.bf16.msra.mxu1 %v11428_v42 }
0x3b7b   :  { %9396 = vmatprep.subr.bf16.mxu1 %v10779_v3 }
0x3c48   :  { %v2498_v52 = vpop.f32.mrb[68].mxu1 }
0x3c49   :  { %v2504_v55 = vadd.f32 %v2498_v52, %v11515_v35  ;;  %v9386_v8 = vpop.f32.mrb[69].mxu1 }
0x3c4a   :  { %v2501_v57 = vpop.f32.mrb[70].mxu1 }
0x3c4b   :  { %v8542_v59 = vmul.f32 -1.442695, %v2504_v55  ;;  %v9387_v10 = vpop.f32.mrb[71].mxu1 }
0x3c4d   :  { %10427 = vpow2.f32 %v8542_v59 }
0x3c4e   :  { %10429 = vtanh.f32 %v2504_v55 }
0x3c57   :  { %v10428_v62 = vpop.eup %10427 }
0x3c58   :  { %v2508_v0 = vadd.f32 1.0, %v10428_v62  ;;  %v10430_v5 = vpop.eup %10429 }
0x3c5a   :  { %10431 = vrcp.f32 %v2508_v0 }
0x3c64   :  { %v10432_v7 = vpop.eup %10431 }
0x3c65   :  { %v2512_v9 = vsel %vm408_vm3, %v10432_v7, %v10430_v5 }
0x3c66   :  { %2515 = vrot.lane.b32.xlu1 %v2512_v9, %s10782_s0  ;;  %v2513_v35 = vmul.f32 %v2512_v9, %v2444_v48 }
0x3cd8   :  { %v2516_v1 = vpop.permute.xlu1 %2515 }
0x3cd9   :  { %v2518_v20 = vmul.f32 %v2516_v1, %v2512_v9 }
0x3cdb   :  { %2520 = vrot.lane.b32.xlu0 %v2518_v20, %s10782_s0 }
0x3d4d   :  { %v2521_v17 = vpop.permute.xlu0 %2520 }
0x3d4e   :  { %v2523_v56 = vadd.f32 %v2521_v17, %v2513_v35 }
0x3d50   :  { %10433 = vtanh.f32 %v2523_v56 }
0x3d5a   :  { %v10434_v21 = vpop.eup %10433 }
0x3d5b   :  { %2526 = vrot.lane.b32.xlu1 %v10434_v21, %s10782_s0 }
0x3dcd   :  { %v2527_v2 = vpop.permute.xlu1 %2526 }
0x3dce   :  { %v11627_v61 = vmul.f32 %v2527_v2, %v2512_v9 }
0x3dd0   :  { %v2535_v4 = vpack.c.bf16 %v11627_v61, %v11627_v61 }
0x3dd2   :  { %2538 = vrot.lane.b32.xlu0 %v2535_v4, %s10783_s30 }
0x3e44   :  { %v2539_v60 = vpop.permute.xlu0 %2538 }
0x3e45   :  { %9393 = vmatmul.mubr.msk.bf16.vlgmr.msra.gmra.mrb[72].mxu1 %vm422_vm4, %v2539_v60 }
0x3e46   :  { %9397 = vmatpush3.bf16.msra.mxu1 %v11421_v39  ;;  %9400 = vmatprep.mubr.msk.bf16.mxu1 %vm10780_vm2, %v10779_v3 }
0x3e47   :  { %9398 = vmatprep.subr.bf16.mxu1 %v10779_v3 }
0x3e4a   :  { %9399 = vmatpush3.bf16.msra.mxu1 %v11428_v42 }
0x3e4b   :  { %9412 = vmatprep.subr.bf16.mxu1 %v10779_v3 }
0x3f18   :  { %v2577_v22 = vpop.f32.mrb[72].mxu1 }
0x3f19   :  { %v2583_v25 = vadd.f32 %v11509_v49, %v2577_v22  ;;  %v9394_v18 = vpop.f32.mrb[73].mxu1 }
0x3f1a   :  { %v2580_v29 = vpop.f32.mrb[74].mxu1 }
0x3f1b   :  { %v8544_v30 = vmul.f32 -1.442695, %v2583_v25  ;;  %v9395_v33 = vpop.f32.mrb[75].mxu1 }
0x3f1d   :  { %10435 = vpow2.f32 %v8544_v30 }
0x3f1e   :  { %10437 = vtanh.f32 %v2583_v25 }
0x3f27   :  { %v10436_v28 = vpop.eup %10435 }
0x3f28   :  { %v2587_v26 = vadd.f32 1.0, %v10436_v28  ;;  %v10438_v34 = vpop.eup %10437 }
0x3f2a   :  { %10439 = vrcp.f32 %v2587_v26 }
0x3f34   :  { %v10440_v12 = vpop.eup %10439 }
0x3f35   :  { %v2591_v36 = vsel %vm408_vm3, %v10440_v12, %v10438_v34 }
0x3f36   :  { %2594 = vrot.lane.b32.xlu1 %v2591_v36, %s10782_s0  ;;  %v2592_v49 = vmul.f32 %v2591_v36, %v2523_v56 }
0x3fa8   :  { %v2595_v38 = vpop.permute.xlu1 %2594 }
0x3fa9   :  { %v2597_v31 = vmul.f32 %v2595_v38, %v2591_v36 }
0x3fab   :  { %2599 = vrot.lane.b32.xlu0 %v2597_v31, %s10782_s0 }
0x401d   :  { %v2600_v40 = vpop.permute.xlu0 %2599 }
0x401e   :  { %v2602_v53 = vadd.f32 %v2600_v40, %v2592_v49 }
0x4020   :  { %10441 = vtanh.f32 %v2602_v53 }
0x402a   :  { %v10442_v32 = vpop.eup %10441 }
0x402b   :  { %2605 = vrot.lane.b32.xlu1 %v10442_v32, %s10782_s0 }
0x409d   :  { %v2606_v13 = vpop.permute.xlu1 %2605 }
0x409e   :  { %v11645_v6 = vmul.f32 %v2606_v13, %v2591_v36 }
0x40a0   :  { %v2614_v48 = vpack.c.bf16 %v11645_v6, %v11645_v6 }
0x40a2   :  { %2617 = vrot.lane.b32.xlu0 %v2614_v48, %s10783_s30 }
0x4114   :  { %v2618_v24 = vpop.permute.xlu0 %2617 }
0x4115   :  { %9401 = vmatmul.mubr.msk.bf16.vlgmr.msra.gmra.mrb[76].mxu1 %vm422_vm4, %v2618_v24 }
0x4116   :  { %9413 = vmatpush3.bf16.msra.mxu1 %v11421_v39  ;;  %9416 = vmatprep.mubr.msk.bf16.mxu1 %vm10780_vm2, %v10779_v3 }
0x4117   :  { %9414 = vmatprep.subr.bf16.mxu1 %v10779_v3 }
0x411a   :  { %9415 = vmatpush3.bf16.msra.mxu1 %v11428_v42 }
0x411b   :  { %9428 = vmatprep.subr.bf16.mxu1 %v10779_v3 }
0x41e8   :  { %v2656_v23 = vpop.f32.mrb[76].mxu1 }
0x41e9   :  { %v2662_v16 = vadd.f32 %v11513_v45, %v2656_v23  ;;  %v9402_v51 = vpop.f32.mrb[77].mxu1 }
0x41ea   :  { %v2659_v52 = vpop.f32.mrb[78].mxu1 }
0x41eb   :  { %v8546_v55 = vmul.f32 -1.442695, %v2662_v16  ;;  %v9403_v8 = vpop.f32.mrb[79].mxu1 }
0x41ed   :  { %10443 = vpow2.f32 %v8546_v55 }
0x41ee   :  { %10445 = vtanh.f32 %v2662_v16 }
0x41f7   :  { %v10444_v57 = vpop.eup %10443 }
0x41f8   :  { %v2666_v59 = vadd.f32 1.0, %v10444_v57  ;;  %v10446_v10 = vpop.eup %10445 }
0x41fa   :  { %10447 = vrcp.f32 %v2666_v59 }
0x4204   :  { %v10448_v62 = vpop.eup %10447 }
0x4205   :  { %v2670_v0 = vsel %vm408_vm3, %v10448_v62, %v10446_v10 }
0x4206   :  { %2673 = vrot.lane.b32.xlu1 %v2670_v0, %s10782_s0  ;;  %v2671_v45 = vmul.f32 %v2670_v0, %v2602_v53 }
0x4278   :  { %v2674_v5 = vpop.permute.xlu1 %2673 }
0x4279   :  { %v2676_v7 = vmul.f32 %v2674_v5, %v2670_v0 }
0x427b   :  { %2678 = vrot.lane.b32.xlu0 %v2676_v7, %s10782_s0 }
0x42ed   :  { %v2679_v9 = vpop.permute.xlu0 %2678 }
0x42ee   :  { %v2681_v1 = vadd.f32 %v2679_v9, %v2671_v45 }
0x42f0   :  { %10449 = vtanh.f32 %v2681_v1 }
0x42fa   :  { %v10450_v20 = vpop.eup %10449 }
0x42fb   :  { %2684 = vrot.lane.b32.xlu1 %v10450_v20, %s10782_s0 }
0x436d   :  { %v2685_v35 = vpop.permute.xlu1 %2684 }
0x436e   :  { %v11663_v17 = vmul.f32 %v2685_v35, %v2670_v0 }
0x4370   :  { %v2693_v56 = vpack.c.bf16 %v11663_v17, %v11663_v17 }
0x4372   :  { %2696 = vrot.lane.b32.xlu0 %v2693_v56, %s10783_s30 }
0x43e4   :  { %v2697_v21 = vpop.permute.xlu0 %2696 }
0x43e5   :  { %9409 = vmatmul.mubr.msk.bf16.vlgmr.msra.gmra.mrb[48].mxu0 %vm422_vm4, %v2697_v21 }
0x43e6   :  { %9421 = vmatpush3.bf16.msra.mxu0 %v11421_v39  ;;  %9424 = vmatprep.mubr.msk.bf16.mxu0 %vm10780_vm2, %v10779_v3 }
0x43e7   :  { %9422 = vmatprep.subr.bf16.mxu0 %v10779_v3 }
0x43ea   :  { %9423 = vmatpush3.bf16.msra.mxu0 %v11428_v42 }
0x43eb   :  { %9436 = vmatprep.subr.bf16.mxu0 %v10779_v3 }
0x44b8   :  { %v2735_v2 = vpop.f32.mrb[48].mxu0 }
0x44b9   :  { %v2741_v4 = vadd.f32 %v2735_v2, %v11519_v43  ;;  %v9410_v60 = vpop.f32.mrb[49].mxu0 }
0x44ba   :  { %v2738_v22 = vpop.f32.mrb[50].mxu0 }
0x44bb   :  { %v8548_v25 = vmul.f32 -1.442695, %v2741_v4  ;;  %v9411_v18 = vpop.f32.mrb[51].mxu0 }
0x44bd   :  { %10451 = vpow2.f32 %v8548_v25 }
0x44be   :  { %10453 = vtanh.f32 %v2741_v4 }
0x44c7   :  { %v10452_v29 = vpop.eup %10451 }
0x44c8   :  { %v2745_v30 = vadd.f32 1.0, %v10452_v29  ;;  %v10454_v33 = vpop.eup %10453 }
0x44ca   :  { %10455 = vrcp.f32 %v2745_v30 }
0x44d4   :  { %v10456_v28 = vpop.eup %10455 }
0x44d5   :  { %v2749_v26 = vsel %vm408_vm3, %v10456_v28, %v10454_v33 }
0x44d6   :  { %2752 = vrot.lane.b32.xlu1 %v2749_v26, %s10782_s0  ;;  %v2750_v43 = vmul.f32 %v2749_v26, %v2681_v1 }
0x4548   :  { %v2753_v34 = vpop.permute.xlu1 %2752 }
0x4549   :  { %v2755_v12 = vmul.f32 %v2753_v34, %v2749_v26 }
0x454b   :  { %2757 = vrot.lane.b32.xlu0 %v2755_v12, %s10782_s0 }
0x45bd   :  { %v2758_v36 = vpop.permute.xlu0 %2757 }
0x45be   :  { %v2760_v38 = vadd.f32 %v2758_v36, %v2750_v43 }
0x45c0   :  { %10457 = vtanh.f32 %v2760_v38 }
0x45ca   :  { %v10458_v31 = vpop.eup %10457 }
0x45cb   :  { %2763 = vrot.lane.b32.xlu1 %v10458_v31, %s10782_s0 }
0x463d   :  { %v2764_v49 = vpop.permute.xlu1 %2763 }
0x463e   :  { %v11681_v40 = vmul.f32 %v2764_v49, %v2749_v26 }
0x4640   :  { %v2772_v53 = vpack.c.bf16 %v11681_v40, %v11681_v40 }
0x4642   :  { %2775 = vrot.lane.b32.xlu0 %v2772_v53, %s10783_s30 }
0x46b4   :  { %v2776_v32 = vpop.permute.xlu0 %2775 }
0x46b5   :  { %9417 = vmatmul.mubr.msk.bf16.vlgmr.msra.gmra.mrb[80].mxu1 %vm422_vm4, %v2776_v32 }
0x46b6   :  { %9429 = vmatpush3.bf16.msra.mxu1 %v11421_v39  ;;  %9432 = vmatprep.mubr.msk.bf16.mxu1 %vm10780_vm2, %v10779_v3 }
0x46b7   :  { %9430 = vmatprep.subr.bf16.mxu1 %v10779_v3 }
0x46ba   :  { %9431 = vmatpush3.bf16.msra.mxu1 %v11428_v42 }
0x46bb   :  { %9444 = vmatprep.subr.bf16.mxu1 %v10779_v3 }
0x4788   :  { %v2814_v13 = vpop.f32.mrb[80].mxu1 }
0x4789   :  { %v2820_v48 = vadd.f32 %v2814_v13, %v11523_v63  ;;  %v9418_v24 = vpop.f32.mrb[81].mxu1 }
0x478a   :  { %v2817_v23 = vpop.f32.mrb[82].mxu1 }
0x478b   :  { %v8550_v16 = vmul.f32 -1.442695, %v2820_v48  ;;  %v9419_v51 = vpop.f32.mrb[83].mxu1 }
0x478d   :  { %10459 = vpow2.f32 %v8550_v16 }
0x478e   :  { %10461 = vtanh.f32 %v2820_v48 }
0x4797   :  { %v10460_v52 = vpop.eup %10459 }
0x4798   :  { %v2824_v55 = vadd.f32 1.0, %v10460_v52  ;;  %v10462_v8 = vpop.eup %10461 }
0x479a   :  { %10463 = vrcp.f32 %v2824_v55 }
0x47a4   :  { %v10464_v57 = vpop.eup %10463 }
0x47a5   :  { %v2828_v59 = vsel %vm408_vm3, %v10464_v57, %v10462_v8 }
0x47a6   :  { %2831 = vrot.lane.b32.xlu1 %v2828_v59, %s10782_s0  ;;  %v2829_v63 = vmul.f32 %v2828_v59, %v2760_v38 }
0x4818   :  { %v2832_v10 = vpop.permute.xlu1 %2831 }
0x4819   :  { %v2834_v62 = vmul.f32 %v2832_v10, %v2828_v59 }
0x481b   :  { %2836 = vrot.lane.b32.xlu0 %v2834_v62, %s10782_s0 }
0x488d   :  { %v2837_v0 = vpop.permute.xlu0 %2836 }
0x488e   :  { %v2839_v5 = vadd.f32 %v2837_v0, %v2829_v63 }
0x4890   :  { %10465 = vtanh.f32 %v2839_v5 }
0x489a   :  { %v10466_v7 = vpop.eup %10465 }
0x489b   :  { %2842 = vrot.lane.b32.xlu1 %v10466_v7, %s10782_s0  ;;  %v10774_v7 = vld [vmem:[%s13394_s6 + $0x8] sm:$0xff]  }
0x490d   :  { %v2843_v45 = vpop.permute.xlu1 %2842 }
0x490e   :  { %v11699_v9 = vmul.f32 %v2843_v45, %v2828_v59 }
0x4910   :  { %v2851_v1 = vpack.c.bf16 %v11699_v9, %v11699_v9 }
0x4912   :  { %2854 = vrot.lane.b32.xlu0 %v2851_v1, %s10783_s30 }
0x4984   :  { %v2855_v20 = vpop.permute.xlu0 %2854 }
0x4985   :  { %9425 = vmatmul.mubr.msk.bf16.vlgmr.msra.gmra.mrb[52].mxu0 %vm422_vm4, %v2855_v20 }
0x4986   :  { %9437 = vmatpush3.bf16.msra.mxu0 %v11421_v39  ;;  %9440 = vmatprep.mubr.msk.bf16.mxu0 %vm10780_vm2, %v10779_v3 }
0x4987   :  { %9438 = vmatprep.subr.bf16.mxu0 %v10779_v3 }
0x498a   :  { %9439 = vmatpush3.bf16.msra.mxu0 %v11428_v42 }
0x498b   :  { %9452 = vmatprep.subr.bf16.mxu0 %v10779_v3 }
0x4a58   :  { %v2893_v35 = vpop.f32.mrb[52].mxu0 }
0x4a59   :  { %v2899_v56 = vadd.f32 %v11517_v41, %v2893_v35  ;;  %v9426_v21 = vpop.f32.mrb[53].mxu0 }
0x4a5a   :  { %v2896_v2 = vpop.f32.mrb[54].mxu0 }
0x4a5b   :  { %v8552_v4 = vmul.f32 -1.442695, %v2899_v56  ;;  %v9427_v60 = vpop.f32.mrb[55].mxu0 }
0x4a5d   :  { %10467 = vpow2.f32 %v8552_v4 }
0x4a5e   :  { %10469 = vtanh.f32 %v2899_v56 }
0x4a67   :  { %v10468_v22 = vpop.eup %10467 }
0x4a68   :  { %v2903_v25 = vadd.f32 1.0, %v10468_v22  ;;  %v10470_v18 = vpop.eup %10469 }
0x4a6a   :  { %10471 = vrcp.f32 %v2903_v25 }
0x4a74   :  { %v10472_v29 = vpop.eup %10471 }
0x4a75   :  { %v2907_v30 = vsel %vm408_vm3, %v10472_v29, %v10470_v18 }
0x4a76   :  { %2910 = vrot.lane.b32.xlu1 %v2907_v30, %s10782_s0  ;;  %v2908_v41 = vmul.f32 %v2907_v30, %v2839_v5  ;;  %v10773_v5 = vld [vmem:[%s13394_s6] sm:$0xff]  }
0x4ae8   :  { %v2911_v33 = vpop.permute.xlu1 %2910 }
0x4ae9   :  { %v2913_v28 = vmul.f32 %v2911_v33, %v2907_v30 }
0x4aeb   :  { %2915 = vrot.lane.b32.xlu0 %v2913_v28, %s10782_s0 }
0x4b5d   :  { %v2916_v26 = vpop.permute.xlu0 %2915 }
0x4b5e   :  { %v2918_v34 = vadd.f32 %v2916_v26, %v2908_v41 }
0x4b60   :  { %10473 = vtanh.f32 %v2918_v34 }
0x4b6a   :  { %v10474_v12 = vpop.eup %10473 }
0x4b6b   :  { %2921 = vrot.lane.b32.xlu1 %v10474_v12, %s10782_s0 }
0x4bdd   :  { %v2922_v43 = vpop.permute.xlu1 %2921 }
0x4bde   :  { %v11717_v36 = vmul.f32 %v2922_v43, %v2907_v30 }
0x4be0   :  { %v2930_v38 = vpack.c.bf16 %v11717_v36, %v11717_v36 }
0x4be2   :  { %2933 = vrot.lane.b32.xlu0 %v2930_v38, %s10783_s30 }
0x4c54   :  { %v2934_v31 = vpop.permute.xlu0 %2933 }
0x4c55   :  { %9433 = vmatmul.mubr.msk.bf16.vlgmr.msra.gmra.mrb[84].mxu1 %vm422_vm4, %v2934_v31 }
0x4c56   :  { %9445 = vmatpush3.bf16.msra.mxu1 %v11421_v39  ;;  %9448 = vmatprep.mubr.msk.bf16.mxu1 %vm10780_vm2, %v10779_v3 }
0x4c57   :  { %9446 = vmatprep.subr.bf16.mxu1 %v10779_v3 }
0x4c5a   :  { %9447 = vmatpush3.bf16.msra.mxu1 %v11428_v42 }
0x4c5b   :  { %9460 = vmatprep.subr.bf16.mxu1 %v10779_v3 }
0x4d28   :  { %v2972_v49 = vpop.f32.mrb[84].mxu1 }
0x4d29   :  { %v2978_v53 = vadd.f32 %v11521_v44, %v2972_v49  ;;  %v9434_v32 = vpop.f32.mrb[85].mxu1 }
0x4d2a   :  { %v2975_v13 = vpop.f32.mrb[86].mxu1 }
0x4d2b   :  { %v8554_v48 = vmul.f32 -1.442695, %v2978_v53  ;;  %v9435_v24 = vpop.f32.mrb[87].mxu1 }
0x4d2d   :  { %10475 = vpow2.f32 %v8554_v48 }
0x4d2e   :  { %10477 = vtanh.f32 %v2978_v53 }
0x4d37   :  { %v10476_v23 = vpop.eup %10475 }
0x4d38   :  { %v2982_v16 = vadd.f32 1.0, %v10476_v23  ;;  %v10478_v39 = vpop.eup %10477 }
0x4d3a   :  { %10479 = vrcp.f32 %v2982_v16 }
0x4d44   :  { %v10480_v51 = vpop.eup %10479 }
0x4d45   :  { %v2986_v52 = vsel %vm408_vm3, %v10480_v51, %v10478_v39 }
0x4d46   :  { %2989 = vrot.lane.b32.xlu1 %v2986_v52, %s10782_s0  ;;  %v2987_v44 = vmul.f32 %v2986_v52, %v2918_v34 }
0x4db8   :  { %v2990_v42 = vpop.permute.xlu1 %2989 }
0x4db9   :  { %v2992_v55 = vmul.f32 %v2990_v42, %v2986_v52 }
0x4dbb   :  { %2994 = vrot.lane.b32.xlu0 %v2992_v55, %s10782_s0 }
0x4e2d   :  { %v2995_v8 = vpop.permute.xlu0 %2994 }
0x4e2e   :  { %v2997_v57 = vadd.f32 %v2995_v8, %v2987_v44 }
0x4e30   :  { %10481 = vtanh.f32 %v2997_v57 }
0x4e3a   :  { %v10482_v59 = vpop.eup %10481 }
0x4e3b   :  { %3000 = vrot.lane.b32.xlu1 %v10482_v59, %s10782_s0 }
0x4ead   :  { %v3001_v10 = vpop.permute.xlu1 %3000 }
0x4eae   :  { %v11735_v62 = vmul.f32 %v3001_v10, %v2986_v52 }
0x4eb0   :  { %v3009_v63 = vpack.c.bf16 %v11735_v62, %v11735_v62 }
0x4eb2   :  { %3012 = vrot.lane.b32.xlu0 %v3009_v63, %s10783_s30 }
0x4f24   :  { %v3013_v0 = vpop.permute.xlu0 %3012 }
0x4f25   :  { %9441 = vmatmul.mubr.msk.bf16.vlgmr.msra.gmra.mrb[56].mxu0 %vm422_vm4, %v3013_v0 }
0x4f26   :  { %9453 = vmatpush3.bf16.msra.mxu0 %v10773_v5  ;;  %9456 = vmatprep.mubr.msk.bf16.mxu0 %vm10780_vm2, %v10779_v3 }
0x4f27   :  { %9454 = vmatprep.subr.bf16.mxu0 %v10779_v3 }
0x4f2a   :  { %9455 = vmatpush3.bf16.msra.mxu0 %v10774_v7 }
0x4ff8   :  { %v3051_v45 = vpop.f32.mrb[56].mxu0 }
0x4ff9   :  { %v3057_v1 = vadd.f32 %v3051_v45, %v11527_v19  ;;  %v9442_v20 = vpop.f32.mrb[57].mxu0 }
0x4ffa   :  { %v3054_v35 = vpop.f32.mrb[58].mxu0 }
0x4ffb   :  { %v8556_v56 = vmul.f32 -1.442695, %v3057_v1  ;;  %v9443_v21 = vpop.f32.mrb[59].mxu0 }
0x4ffd   :  { %10483 = vpow2.f32 %v8556_v56 }
0x4ffe   :  { %10485 = vtanh.f32 %v3057_v1 }
0x5007   :  { %v10484_v2 = vpop.eup %10483 }
0x5008   :  { %v3061_v4 = vadd.f32 1.0, %v10484_v2  ;;  %v10486_v60 = vpop.eup %10485 }
0x500a   :  { %10487 = vrcp.f32 %v3061_v4 }
0x5014   :  { %v10488_v22 = vpop.eup %10487 }
0x5015   :  { %v3065_v25 = vsel %vm408_vm3, %v10488_v22, %v10486_v60 }
0x5016   :  { %3068 = vrot.lane.b32.xlu1 %v3065_v25, %s10782_s0  ;;  %v3066_v19 = vmul.f32 %v3065_v25, %v2997_v57 }
0x5088   :  { %v3069_v18 = vpop.permute.xlu1 %3068 }
0x5089   :  { %v3071_v29 = vmul.f32 %v3069_v18, %v3065_v25 }
0x508b   :  { %3073 = vrot.lane.b32.xlu0 %v3071_v29, %s10782_s0 }
0x50fd   :  { %v3074_v30 = vpop.permute.xlu0 %3073 }
0x50fe   :  { %v3076_v33 = vadd.f32 %v3074_v30, %v3066_v19 }
0x5100   :  { %10489 = vtanh.f32 %v3076_v33 }
0x510a   :  { %v10490_v28 = vpop.eup %10489 }
0x510b   :  { %3079 = vrot.lane.b32.xlu1 %v10490_v28, %s10782_s0 }
0x517d   :  { %v3080_v41 = vpop.permute.xlu1 %3079 }
0x517e   :  { %v11756_v26 = vmul.f32 %v3080_v41, %v3065_v25 }
0x5180   :  { %v3088_v34 = vpack.c.bf16 %v11756_v26, %v11756_v26 }
0x5182   :  { %3091 = vrot.lane.b32.xlu0 %v3088_v34, %s10783_s30 }
0x51f4   :  { %v3092_v12 = vpop.permute.xlu0 %3091 }
0x51f5   :  { %9449 = vmatmul.mubr.msk.bf16.vlgmr.msra.gmra.mrb[88].mxu1 %vm422_vm4, %v3092_v12 }
0x51f6   :  { %9461 = vmatpush3.bf16.msra.mxu1 %v10773_v5  ;;  %9464 = vmatprep.mubr.msk.bf16.mxu1 %vm10780_vm2, %v10779_v3 }
0x51f7   :  { %9462 = vmatprep.subr.bf16.mxu1 %v10779_v3 }
0x51fa   :  { %9463 = vmatpush3.bf16.msra.mxu1 %v10774_v7 }
0x51fb   :  { %9508 = vmatprep.subr.bf16.mxu1 %v10779_v3 }
0x52c8   :  { %v3130_v43 = vpop.f32.mrb[88].mxu1 }
0x52c9   :  { %v3136_v38 = vadd.f32 %v3130_v43, %v11531_v15  ;;  %v9450_v31 = vpop.f32.mrb[89].mxu1 }
0x52ca   :  { %v3133_v49 = vpop.f32.mrb[90].mxu1 }
0x52cb   :  { %v8558_v53 = vmul.f32 -1.442695, %v3136_v38  ;;  %v9451_v32 = vpop.f32.mrb[91].mxu1 }
0x52cd   :  { %10491 = vpow2.f32 %v8558_v53 }
0x52ce   :  { %10493 = vtanh.f32 %v3136_v38 }
0x52d7   :  { %v10492_v13 = vpop.eup %10491 }
0x52d8   :  { %v3140_v48 = vadd.f32 1.0, %v10492_v13  ;;  %v10494_v24 = vpop.eup %10493 }
0x52da   :  { %10495 = vrcp.f32 %v3140_v48 }
0x52e4   :  { %v10496_v23 = vpop.eup %10495 }
0x52e5   :  { %v3144_v16 = vsel %vm408_vm3, %v10496_v23, %v10494_v24 }
0x52e6   :  { %3147 = vrot.lane.b32.xlu1 %v3144_v16, %s10782_s0  ;;  %v3145_v15 = vmul.f32 %v3144_v16, %v3076_v33 }
0x5358   :  { %v3148_v39 = vpop.permute.xlu1 %3147 }
0x5359   :  { %v3150_v51 = vmul.f32 %v3148_v39, %v3144_v16 }
0x535b   :  { %3152 = vrot.lane.b32.xlu0 %v3150_v51, %s10782_s0 }
0x53cd   :  { %v3153_v52 = vpop.permute.xlu0 %3152 }
0x53ce   :  { %v3155_v42 = vadd.f32 %v3153_v52, %v3145_v15 }
0x53d0   :  { %10497 = vtanh.f32 %v3155_v42 }
0x53da   :  { %v10498_v55 = vpop.eup %10497 }
0x53db   :  { %3158 = vrot.lane.b32.xlu1 %v10498_v55, %s10782_s0 }
0x544d   :  { %v3159_v44 = vpop.permute.xlu1 %3158 }
0x544e   :  { %v11772_v8 = vmul.f32 %v3159_v44, %v3144_v16 }
0x5450   :  { %v3167_v57 = vpack.c.bf16 %v11772_v8, %v11772_v8 }
0x5452   :  { %3170 = vrot.lane.b32.xlu0 %v3167_v57, %s10783_s30 }
0x54c4   :  { %v3171_v59 = vpop.permute.xlu0 %3170 }
0x54c5   :  { %9457 = vmatmul.mubr.msk.bf16.vlgmr.msra.gmra.mrb[60].mxu0 %vm422_vm4, %v3171_v59 }
0x5598   :  { %v3209_v10 = vpop.f32.mrb[60].mxu0 }
0x5599   :  { %v3215_v63 = vadd.f32 %v11525_v46, %v3209_v10  ;;  %v9458_v0 = vpop.f32.mrb[61].mxu0 }
0x559a   :  { %v3212_v5 = vpop.f32.mrb[62].mxu0  ;;  %v10219_v0 = vld [vmem:[%s13395_s8] sm:$0xff]  }
0x559b   :  { %v8560_v7 = vmul.f32 -1.442695, %v3215_v63  ;;  %v9459_v45 = vpop.f32.mrb[63].mxu0  ;;  %9468 = vmatprep.subr.bf16.mxu0 %v10219_v0  ;;  %v10220_v5 = vld [vmem:[%s13395_s8 + $0x8] sm:$0xff]  }
0x559c   :  { %9469 = vmatpush3.bf16.msra.mxu0 %v10219_v0 }
0x559d   :  { %10499 = vpow2.f32 %v8560_v7  ;;  %9470 = vmatprep.subr.bf16.mxu0 %v10220_v5  ;;  %v10221_v7 = vld [vmem:[%s13396_s7] sm:$0xff]  }
0x559e   :  { %10501 = vtanh.f32 %v3215_v63 }
0x55a0   :  { %9471 = vmatpush3.bf16.msra.mxu0 %v10220_v5 }
0x55a1   :  { %9488 = vmatprep.subr.bf16.mxu0 %v10221_v7 }
0x55a7   :  { %v10500_v1 = vpop.eup %10499 }
0x55a8   :  { %v3219_v20 = vadd.f32 1.0, %v10500_v1  ;;  %v10502_v35 = vpop.eup %10501 }
0x55aa   :  { %10503 = vrcp.f32 %v3219_v20 }
0x55b4   :  { %v10504_v56 = vpop.eup %10503 }
0x55b5   :  { %v3223_v21 = vsel %vm408_vm3, %v10504_v56, %v10502_v35 }
0x55b6   :  { %3226 = vrot.lane.b32.xlu1 %v3223_v21, %s10782_s0  ;;  %v3224_v46 = vmul.f32 %v3223_v21, %v3155_v42 }
0x5628   :  { %v3227_v2 = vpop.permute.xlu1 %3226 }
0x5629   :  { %v3229_v4 = vmul.f32 %v3227_v2, %v3223_v21 }
0x562b   :  { %3231 = vrot.lane.b32.xlu0 %v3229_v4, %s10782_s0 }
0x569d   :  { %v3232_v60 = vpop.permute.xlu0 %3231 }
0x569e   :  { %v3234_v22 = vadd.f32 %v3232_v60, %v3224_v46 }
0x56a0   :  { %10505 = vtanh.f32 %v3234_v22 }
0x56aa   :  { %v10506_v25 = vpop.eup %10505 }
0x56ab   :  { %3237 = vrot.lane.b32.xlu1 %v10506_v25, %s10782_s0  ;;  %v10222_v25 = vld [vmem:[%s13396_s7 + $0x8] sm:$0xff]  }
0x571d   :  { %v3238_v18 = vpop.permute.xlu1 %3237 }
0x571e   :  { %v3240_v29 = vmul.f32 %v3238_v18, %v3223_v21 }
0x5720   :  { %v3246_v19 = vpack.c.bf16 %v3240_v29, %v3240_v29 }
0x5722   :  { %3249 = vrot.lane.b32.xlu0 %v3246_v19, %s10783_s30 }
0x5794   :  { %v3250_v30 = vpop.permute.xlu0 %3249 }
0x5795   :  { %9465 = vmatmul.mubr.msk.bf16.vlgmr.msra.gmra.mrb[92].mxu1 %vm422_vm4, %v3250_v30 }
0x5796   :  { %9512 = vmatprep.mubr.msk.bf16.mxu1 %vm10780_vm2, %v10779_v3 }
0x5868   :  { %v3288_v33 = vpop.f32.mrb[92].mxu1 }
0x5869   :  { %v3294_v28 = vadd.f32 %v11529_v47, %v3288_v33  ;;  %v9466_v41 = vpop.f32.mrb[93].mxu1 }
0x586a   :  { %v3291_v34 = vpop.f32.mrb[94].mxu1 }
0x586b   :  { %v8562_v12 = vmul.f32 -1.442695, %v3294_v28  ;;  %v9467_v43 = vpop.f32.mrb[95].mxu1 }
0x586d   :  { %10507 = vpow2.f32 %v8562_v12 }
0x586e   :  { %10509 = vtanh.f32 %v3294_v28 }
0x5877   :  { %v10508_v38 = vpop.eup %10507 }
0x5878   :  { %v3298_v31 = vadd.f32 1.0, %v10508_v38  ;;  %v10510_v49 = vpop.eup %10509 }
0x587a   :  { %10511 = vrcp.f32 %v3298_v31 }
0x5884   :  { %v10512_v53 = vpop.eup %10511 }
0x5885   :  { %v3302_v32 = vsel %vm408_vm3, %v10512_v53, %v10510_v49 }
0x5886   :  { %3305 = vrot.lane.b32.xlu1 %v3302_v32, %s10782_s0  ;;  %v3303_v47 = vmul.f32 %v3302_v32, %v3234_v22 }
0x58f8   :  { %v3306_v13 = vpop.permute.xlu1 %3305 }
0x58f9   :  { %v3308_v48 = vmul.f32 %v3306_v13, %v3302_v32 }
0x58fb   :  { %3310 = vrot.lane.b32.xlu0 %v3308_v48, %s10782_s0 }
0x58ff   :  { %3242 = vrot.lane.b32.xlu0 %v3240_v29, %s10783_s30 }
0x5903   :  { %3084 = vrot.lane.b32.xlu0 %v11756_v26, %s10783_s30 }
0x5907   :  { %2926 = vrot.lane.b32.xlu0 %v11717_v36, %s10783_s30 }
0x590b   :  { %2768 = vrot.lane.b32.xlu0 %v11681_v40, %s10783_s30 }
0x590f   :  { %2610 = vrot.lane.b32.xlu0 %v11645_v6, %s10783_s30 }
0x5913   :  { %2452 = vrot.lane.b32.xlu0 %v11609_v50, %s10783_s30 }
0x5917   :  { %2294 = vrot.lane.b32.xlu0 %v11573_v54, %s10783_s30 }
0x591b   :  { %2136 = vrot.lane.b32.xlu0 %v11538_v58, %s10783_s30 }
0x596d   :  { %v3311_v26 = vpop.permute.xlu0 %3310 }
0x596e   :  { %v3313_v24 = vadd.f32 %v3311_v26, %v3303_v47 }
0x5970   :  { %10513 = vtanh.f32 %v3313_v24 }
0x5971   :  { %v3243_v36 = vpop.permute.xlu0 %3242 }
0x5972   :  { %3245 = vst.msk [vmem:[#allocation7 + $0x70] sm:$0xff] %vm422_vm4, %v3243_v36 }
0x5975   :  { %v3085_v40 = vpop.permute.xlu0 %3084 }
0x5976   :  { %3087 = vst.msk [vmem:[#allocation7 + $0x60] sm:$0xff] %vm422_vm4, %v3085_v40 }
0x5979   :  { %v11810_v6 = vld [vmem:[#allocation7 + $0x70] sm:$0xff]  ;;  %v2927_v23 = vpop.permute.xlu0 %2926 }
0x597a   :  { %v10514_v50 = vpop.eup %10513  ;;  %3328 = vst.msk [vmem:[#allocation8 + $0x8] sm:$0xff] %vm422_vm4, %v11810_v6  ;;  %2929 = vst.msk [vmem:[#allocation7 + $0x50] sm:$0xff] %vm422_vm4, %v2927_v23 }
0x597b   :  { %3316 = vrot.lane.b32.xlu1 %v10514_v50, %s10782_s0 }
0x597d   :  { %v11816_v58 = vld [vmem:[#allocation7 + $0x60] sm:$0xff]  ;;  %v2769_v54 = vpop.permute.xlu0 %2768 }
0x597e   :  { %3332 = vst.msk [vmem:[#allocation8 + $0x18] sm:$0xff] %vm422_vm4, %v11816_v58  ;;  %2771 = vst.msk [vmem:[#allocation7 + $0x40] sm:$0xff] %vm422_vm4, %v2769_v54 }
0x5981   :  { %v11821_v16 = vld [vmem:[#allocation7 + $0x50] sm:$0xff]  ;;  %v2611_v39 = vpop.permute.xlu0 %2610  ;;  %v3394_v56 = vld [vmem:[#allocation8 + $0x8] sm:$0xff] }
0x5982   :  { %3336 = vst.msk [vmem:[#allocation8 + $0x28] sm:$0xff] %vm422_vm4, %v11821_v16  ;;  %2613 = vst.msk [vmem:[#allocation7 + $0x30] sm:$0xff] %vm422_vm4, %v2611_v39 }
0x5985   :  { %v11826_v51 = vld [vmem:[#allocation7 + $0x40] sm:$0xff]  ;;  %v2453_v15 = vpop.permute.xlu0 %2452  ;;  %v3396_v60 = vld [vmem:[#allocation8 + $0x18] sm:$0xff] }
0x5986   :  { %3340 = vst.msk [vmem:[#allocation8 + $0x38] sm:$0xff] %vm422_vm4, %v11826_v51  ;;  %2455 = vst.msk [vmem:[#allocation7 + $0x20] sm:$0xff] %vm422_vm4, %v2453_v15 }
0x5989   :  { %v11831_v52 = vld [vmem:[#allocation7 + $0x30] sm:$0xff]  ;;  %v2295_v42 = vpop.permute.xlu0 %2294  ;;  %v3398_v30 = vld [vmem:[#allocation8 + $0x28] sm:$0xff] }
0x598a   :  { %3344 = vst.msk [vmem:[#allocation8 + $0x48] sm:$0xff] %vm422_vm4, %v11831_v52  ;;  %2297 = vst.msk [vmem:[#allocation7 + $0x10] sm:$0xff] %vm422_vm4, %v2295_v42 }
0x598d   :  { %v11836_v55 = vld [vmem:[#allocation7 + $0x20] sm:$0xff]  ;;  %v2137_v44 = vpop.permute.xlu0 %2136  ;;  %v3400_v12 = vld [vmem:[#allocation8 + $0x38] sm:$0xff] }
0x598e   :  { %3348 = vst.msk [vmem:[#allocation8 + $0x58] sm:$0xff] %vm422_vm4, %v11836_v55  ;;  %2139 = vst.msk [vmem:[#allocation7] sm:$0xff] %vm422_vm4, %v2137_v44 }
0x5991   :  { %v11841_v57 = vld [vmem:[#allocation7 + $0x10] sm:$0xff]  ;;  %v3402_v49 = vld [vmem:[#allocation8 + $0x48] sm:$0xff] }
0x5992   :  { %3352 = vst.msk [vmem:[#allocation8 + $0x68] sm:$0xff] %vm422_vm4, %v11841_v57 }
0x5995   :  { %v11845_v59 = vld [vmem:[#allocation7] sm:$0xff]  ;;  %v3404_v48 = vld [vmem:[#allocation8 + $0x58] sm:$0xff] }
0x5996   :  { %3356 = vst.msk [vmem:[#allocation8 + $0x78] sm:$0xff] %vm422_vm4, %v11845_v59 }
0x5999   :  { %v3406_v24 = vld [vmem:[#allocation8 + $0x68] sm:$0xff] }
0x599d   :  { %v3408_v23 = vld [vmem:[#allocation8 + $0x78] sm:$0xff] }
0x59ed   :  { %v3317_v10 = vpop.permute.xlu1 %3316 }
0x59ee   :  { %v3319_v63 = vmul.f32 %v3317_v10, %v3302_v32 }
0x59f0   :  { %3321 = vrot.lane.b32.xlu1 %v3319_v63, %s10783_s30 }
0x59f4   :  { %3163 = vrot.lane.b32.xlu1 %v11772_v8, %s10783_s30 }
0x59f8   :  { %3005 = vrot.lane.b32.xlu1 %v11735_v62, %s10783_s30 }
0x59fc   :  { %2847 = vrot.lane.b32.xlu1 %v11699_v9, %s10783_s30  ;;  %v11876_v9 = vld [vmem:[%s13397_s9] sm:$0xff]  }
0x59fd   :  { %9509 = vmatpush3.bf16.msra.mxu1 %v11876_v9 }
0x59fe   :  { %9510 = vmatprep.subr.bf16.mxu1 %v10779_v3 }
0x5a00   :  { %2689 = vrot.lane.b32.xlu1 %v11663_v17, %s10783_s30  ;;  %v11883_v17 = vld [vmem:[%s13397_s9 + $0x8] sm:$0xff]  }
0x5a01   :  { %9511 = vmatpush3.bf16.msra.mxu1 %v11883_v17 }
0x5a02   :  { %9516 = vmatprep.subr.bf16.mxu1 %v10779_v3 }
0x5a04   :  { %2531 = vrot.lane.b32.xlu1 %v11627_v61, %s10783_s30  ;;  %9513 = vmatmul.mubr.bf16.vlgmr.msra.gmra.mrb[96].mxu1 %v10781_v37 }
0x5a05   :  { %9517 = vmatpush3.bf16.msra.mxu1 %v11876_v9  ;;  %9520 = vmatprep.mubr.msk.bf16.mxu1 %vm10780_vm2, %v10779_v3 }
0x5a06   :  { %9518 = vmatprep.subr.bf16.mxu1 %v10779_v3 }
0x5a08   :  { %2373 = vrot.lane.b32.xlu1 %v11591_v27, %s10783_s30 }
0x5a09   :  { %9519 = vmatpush3.bf16.msra.mxu1 %v11883_v17 }
0x5a0a   :  { %9524 = vmatprep.subr.bf16.mxu1 %v10779_v3 }
0x5a0c   :  { %2215 = vrot.lane.b32.xlu1 %v11555_v11, %s10783_s30 }
0x5a62   :  { %v3322_v11 = vpop.permute.xlu1 %3321 }
0x5a63   :  { %3324 = vst.msk [vmem:[#allocation7 + $0x78] sm:$0xff] %vm422_vm4, %v3322_v11 }
0x5a66   :  { %v3164_v27 = vpop.permute.xlu1 %3163 }
0x5a67   :  { %3166 = vst.msk [vmem:[#allocation7 + $0x68] sm:$0xff] %vm422_vm4, %v3164_v27 }
0x5a6a   :  { %v11896_v61 = vld [vmem:[#allocation7 + $0x78] sm:$0xff]  ;;  %v3006_v62 = vpop.permute.xlu1 %3005 }
0x5a6b   :  { %3326 = vst.msk [vmem:[#allocation8] sm:$0xff] %vm422_vm4, %v11896_v61  ;;  %3008 = vst.msk [vmem:[#allocation7 + $0x58] sm:$0xff] %vm422_vm4, %v3006_v62 }
0x5a6e   :  { %v11901_v8 = vld [vmem:[#allocation7 + $0x68] sm:$0xff]  ;;  %v2848_v45 = vpop.permute.xlu1 %2847 }
0x5a6f   :  { %3330 = vst.msk [vmem:[#allocation8 + $0x10] sm:$0xff] %vm422_vm4, %v11901_v8  ;;  %2850 = vst.msk [vmem:[#allocation7 + $0x48] sm:$0xff] %vm422_vm4, %v2848_v45 }
0x5a72   :  { %v11906_v1 = vld [vmem:[#allocation7 + $0x58] sm:$0xff]  ;;  %v2690_v20 = vpop.permute.xlu1 %2689  ;;  %v3393_v35 = vld [vmem:[#allocation8] sm:$0xff] }
0x5a73   :  { %3334 = vst.msk [vmem:[#allocation8 + $0x20] sm:$0xff] %vm422_vm4, %v11906_v1  ;;  %2692 = vst.msk [vmem:[#allocation7 + $0x38] sm:$0xff] %vm422_vm4, %v2690_v20  ;;  %v3409_v21 = vpack.c.bf16 %v3394_v56, %v3393_v35 }
0x5a75   :  { %9472 = vmatprep.mubr.msk.bf16.mxu0 %vm422_vm4, %v3409_v21 }
0x5a76   :  { %v11912_v2 = vld [vmem:[#allocation7 + $0x48] sm:$0xff]  ;;  %v2532_v4 = vpop.permute.xlu1 %2531  ;;  %v3395_v46 = vld [vmem:[#allocation8 + $0x10] sm:$0xff] }
0x5a77   :  { %3338 = vst.msk [vmem:[#allocation8 + $0x30] sm:$0xff] %vm422_vm4, %v11912_v2  ;;  %2534 = vst.msk [vmem:[#allocation7 + $0x28] sm:$0xff] %vm422_vm4, %v2532_v4  ;;  %v3410_v22 = vpack.c.bf16 %v3396_v60, %v3395_v46  ;;  %v3389_v44 = vpack.c.bf16 %v11912_v2, %v11826_v51 }
0x5a79   :  { %9473 = vmatmul.mubr.msk.bf16.vlgmr.msra.gmra.mrb[64].mxu0 %vm422_vm4, %v3410_v22 }
0x5a7a   :  { %v3341_v18 = vld [vmem:[#allocation7 + $0x38] sm:$0xff]  ;;  %9489 = vmatpush3.bf16.msra.mxu0 %v10221_v7  ;;  %v2374_v29 = vpop.permute.xlu1 %2373  ;;  %v3397_v19 = vld [vmem:[#allocation8 + $0x20] sm:$0xff] }
0x5a7b   :  { %3342 = vst.msk [vmem:[#allocation8 + $0x40] sm:$0xff] %vm422_vm4, %v3341_v18  ;;  %2376 = vst.msk [vmem:[#allocation7 + $0x18] sm:$0xff] %vm422_vm4, %v2374_v29  ;;  %v3411_v33 = vpack.c.bf16 %v3398_v30, %v3397_v19  ;;  %9490 = vmatprep.subr.bf16.mxu0 %v10222_v25  ;;  %v3388_v42 = vpack.c.bf16 %v3341_v18, %v11831_v52  ;;  %v3392_v52 = vpack.c.bf16 %v11896_v61, %v11810_v6 }
0x5a7d   :  { %9476 = vmatprep.mubr.msk.bf16.mxu0 %vm422_vm4, %v3411_v33 }
0x5a7e   :  { %v3345_v28 = vld [vmem:[#allocation7 + $0x28] sm:$0xff]  ;;  %v2216_v41 = vpop.permute.xlu1 %2215  ;;  %v3399_v34 = vld [vmem:[#allocation8 + $0x30] sm:$0xff]  ;;  %9491 = vmatpush3.bf16.msra.mxu0 %v10222_v25 }
0x5a7f   :  { %3346 = vst.msk [vmem:[#allocation8 + $0x50] sm:$0xff] %vm422_vm4, %v3345_v28  ;;  %2218 = vst.msk [vmem:[#allocation7 + $0x8] sm:$0xff] %vm422_vm4, %v2216_v41  ;;  %v3412_v43 = vpack.c.bf16 %v3400_v12, %v3399_v34  ;;  %9572 = vmatprep.subr.bf16.mxu0 %v10779_v3  ;;  %v3387_v15 = vpack.c.bf16 %v3345_v28, %v11836_v55  ;;  %v3390_v55 = vpack.c.bf16 %v11906_v1, %v11821_v16 }
0x5a81   :  { %9477 = vmatmul.mubr.msk.bf16.gmra.mrb[68].mxu0 %vm422_vm4, %v3412_v43 }
0x5a82   :  { %v3349_v38 = vld [vmem:[#allocation7 + $0x18] sm:$0xff]  ;;  %v3401_v31 = vld [vmem:[#allocation8 + $0x40] sm:$0xff] }
0x5a83   :  { %3350 = vst.msk [vmem:[#allocation8 + $0x60] sm:$0xff] %vm422_vm4, %v3349_v38  ;;  %v3413_v53 = vpack.c.bf16 %v3402_v49, %v3401_v31  ;;  %v3386_v39 = vpack.c.bf16 %v3349_v38, %v11841_v57  ;;  %v3391_v57 = vpack.c.bf16 %v11901_v8, %v11816_v58 }
0x5a85   :  { %9480 = vmatprep.mubr.msk.bf16.mxu0 %vm422_vm4, %v3413_v53 }
0x5a86   :  { %v3353_v32 = vld [vmem:[#allocation7 + $0x8] sm:$0xff]  ;;  %v3403_v13 = vld [vmem:[#allocation8 + $0x50] sm:$0xff] }
0x5a87   :  { %3354 = vst.msk [vmem:[#allocation8 + $0x70] sm:$0xff] %vm422_vm4, %v3353_v32  ;;  %v3414_v47 = vpack.c.bf16 %v3404_v48, %v3403_v13  ;;  %v3385_v54 = vpack.c.bf16 %v3353_v32, %v11845_v59 }
0x5a89   :  { %9481 = vmatmul.mubr.msk.bf16.gmra.mrb[72].mxu0 %vm422_vm4, %v3414_v47 }
0x5a8a   :  { %v3405_v26 = vld [vmem:[#allocation8 + $0x60] sm:$0xff] }
0x5a8b   :  { %v3415_v36 = vpack.c.bf16 %v3406_v24, %v3405_v26 }
0x5a8d   :  { %9484 = vmatprep.mubr.msk.bf16.mxu0 %vm422_vm4, %v3415_v36 }
0x5a8e   :  { %v3407_v40 = vld [vmem:[#allocation8 + $0x70] sm:$0xff] }
0x5a8f   :  { %v3416_v50 = vpack.c.bf16 %v3408_v23, %v3407_v40 }
0x5a91   :  { %9485 = vmatmul.mubr.msk.bf16.gmra.mrb[76].mxu0 %vm422_vm4, %v3416_v50 }
0x5a92   :  { %9492 = vmatprep.mubr.msk.bf16.mxu0 %vm422_vm4, %v3385_v54 }
0x5a99   :  { %9493 = vmatmul.mubr.msk.bf16.vlgmr.msra.gmra.mrb[64].mxu0 %vm422_vm4, %v3386_v39 }
0x5a9a   :  { %9496 = vmatprep.mubr.msk.bf16.mxu0 %vm422_vm4, %v3387_v15  ;;  %9573 = vmatpush3.bf16.msra.mxu0 %v11876_v9 }
0x5a9b   :  { %9574 = vmatprep.subr.bf16.mxu0 %v10779_v3 }
0x5a9e   :  { %9575 = vmatpush3.bf16.msra.mxu0 %v11883_v17 }
0x5a9f   :  { %9588 = vmatprep.subr.bf16.mxu0 %v10779_v3 }
0x5aa1   :  { %9497 = vmatmul.mubr.msk.bf16.gmra.mrb[68].mxu0 %vm422_vm4, %v3388_v42 }
0x5aa2   :  { %9500 = vmatprep.mubr.msk.bf16.mxu0 %vm422_vm4, %v3389_v44 }
0x5aa9   :  { %9501 = vmatmul.mubr.msk.bf16.gmra.mrb[72].mxu0 %vm422_vm4, %v3390_v55 }
0x5aaa   :  { %9504 = vmatprep.mubr.msk.bf16.mxu0 %vm422_vm4, %v3391_v57 }
0x5ab1   :  { %9505 = vmatmul.mubr.msk.bf16.gmra.mrb[76].mxu0 %vm422_vm4, %v3392_v52 }
0x5ab2   :  { %9576 = vmatprep.mubr.msk.bf16.mxu0 %vm10780_vm2, %v10779_v3 }
0x5ad7   :  { %v3746_v51 = vpop.f32.mrb[96].mxu1 }
0x5ad8   :  { %v9514_v59 = vpop.f32.mrb[97].mxu1 }
0x5ad9   :  { %v3749_v10 = vpop.f32.mrb[98].mxu1 }
0x5ada   :  { %v9515_v63 = vpop.f32.mrb[99].mxu1 }
0x5b6c   :  { %v11960_v16 = vpop.f32.mrb[64].mxu0 }
0x5b6d   :  { %v3620_v0 = vpop.f32.mrb[65].mxu0 }
0x5b6e   :  { %v3752_v58 = vadd.f32 %v3746_v51, %v3620_v0  ;;  %v11962_v5 = vpop.f32.mrb[66].mxu0 }
0x5b6f   :  { %v3623_v7 = vpop.f32.mrb[67].mxu0 }
0x5b70   :  { %v8585_v11 = vmul.f32 -1.442695, %v3752_v58 }
0x5b72   :  { %10515 = vpow2.f32 %v8585_v11 }
0x5b73   :  { %10517 = vtanh.f32 %v3752_v58 }
0x5b74   :  { %v11964_v27 = vpop.f32.mrb[68].mxu0 }
0x5b75   :  { %v11966_v6 = vpop.f32.mrb[69].mxu0 }
0x5b76   :  { %v11968_v61 = vpop.f32.mrb[70].mxu0 }
0x5b77   :  { %v11970_v62 = vpop.f32.mrb[71].mxu0 }
0x5b7c   :  { %v10516_v8 = vpop.eup %10515  ;;  %v11972_v45 = vpop.f32.mrb[72].mxu0 }
0x5b7d   :  { %v3756_v1 = vadd.f32 1.0, %v10516_v8  ;;  %v11974_v20 = vpop.f32.mrb[73].mxu0  ;;  %v10518_v60 = vpop.eup %10517 }
0x5b7e   :  { %v11976_v35 = vpop.f32.mrb[74].mxu0 }
0x5b7f   :  { %10519 = vrcp.f32 %v3756_v1  ;;  %v11978_v56 = vpop.f32.mrb[75].mxu0 }
0x5b84   :  { %v11980_v21 = vpop.f32.mrb[76].mxu0 }
0x5b85   :  { %v11982_v2 = vpop.f32.mrb[77].mxu0 }
0x5b86   :  { %v11984_v4 = vpop.f32.mrb[78].mxu0 }
0x5b87   :  { %v11986_v46 = vpop.f32.mrb[79].mxu0 }
0x5b89   :  { %v10520_v22 = vpop.eup %10519 }
0x5b8a   :  { %v3760_v25 = vsel %vm408_vm3, %v10520_v22, %v10518_v60 }
0x5b8b   :  { %3763 = vrot.lane.b32.xlu0 %v3760_v25, %s10782_s0  ;;  %v3761_v19 = vmul.f32 0.0, %v3760_v25 }
0x5bfd   :  { %v3764_v18 = vpop.permute.xlu0 %3763 }
0x5bfe   :  { %v3766_v29 = vmul.f32 %v3764_v18, %v3760_v25 }
0x5c00   :  { %3768 = vrot.lane.b32.xlu1 %v3766_v29, %s10782_s0 }
0x5c72   :  { %v3769_v30 = vpop.permute.xlu1 %3768 }
0x5c73   :  { %v3771_v33 = vadd.f32 %v3769_v30, %v3761_v19 }
0x5c75   :  { %10521 = vtanh.f32 %v3771_v33 }
0x5c7f   :  { %v10522_v28 = vpop.eup %10521 }
0x5c80   :  { %3774 = vrot.lane.b32.xlu0 %v10522_v28, %s10782_s0 }
0x5cf2   :  { %v3775_v41 = vpop.permute.xlu0 %3774 }
0x5cf3   :  { %v11993_v34 = vmul.f32 %v3775_v41, %v3760_v25 }
0x5cf5   :  { %v3783_v12 = vpack.c.bf16 %v11993_v34, %v11993_v34 }
0x5cf7   :  { %3786 = vrot.lane.b32.xlu1 %v3783_v12, %s10783_s30 }
0x5d69   :  { %v3787_v43 = vpop.permute.xlu1 %3786 }
0x5d6a   :  { %9521 = vmatmul.mubr.msk.bf16.vlgmr.msra.gmra.mrb[100].mxu1 %vm422_vm4, %v3787_v43 }
0x5d6b   :  { %9525 = vmatpush3.bf16.msra.mxu1 %v11876_v9  ;;  %9528 = vmatprep.mubr.msk.bf16.mxu1 %vm10780_vm2, %v10779_v3 }
0x5d6c   :  { %9526 = vmatprep.subr.bf16.mxu1 %v10779_v3 }
0x5d6f   :  { %9527 = vmatpush3.bf16.msra.mxu1 %v11883_v17 }
0x5d70   :  { %9532 = vmatprep.subr.bf16.mxu1 %v10779_v3 }
0x5e3d   :  { %v3825_v38 = vpop.f32.mrb[100].mxu1 }
0x5e3e   :  { %v3831_v31 = vadd.f32 %v3825_v38, %v3623_v7  ;;  %v9522_v49 = vpop.f32.mrb[101].mxu1 }
0x5e3f   :  { %v3828_v53 = vpop.f32.mrb[102].mxu1 }
0x5e40   :  { %v8587_v32 = vmul.f32 -1.442695, %v3831_v31  ;;  %v9523_v13 = vpop.f32.mrb[103].mxu1 }
0x5e42   :  { %10523 = vpow2.f32 %v8587_v32 }
0x5e43   :  { %10525 = vtanh.f32 %v3831_v31 }
0x5e4c   :  { %v10524_v48 = vpop.eup %10523 }
0x5e4d   :  { %v3835_v47 = vadd.f32 1.0, %v10524_v48  ;;  %v10526_v26 = vpop.eup %10525 }
0x5e4f   :  { %10527 = vrcp.f32 %v3835_v47 }
0x5e59   :  { %v10528_v24 = vpop.eup %10527 }
0x5e5a   :  { %v3839_v36 = vsel %vm408_vm3, %v10528_v24, %v10526_v26 }
0x5e5b   :  { %3842 = vrot.lane.b32.xlu0 %v3839_v36, %s10782_s0  ;;  %v3840_v50 = vmul.f32 %v3839_v36, %v3771_v33 }
0x5ecd   :  { %v3843_v40 = vpop.permute.xlu0 %3842 }
0x5ece   :  { %v3845_v23 = vmul.f32 %v3843_v40, %v3839_v36 }
0x5ed0   :  { %3847 = vrot.lane.b32.xlu1 %v3845_v23, %s10782_s0 }
0x5f42   :  { %v3848_v54 = vpop.permute.xlu1 %3847 }
0x5f43   :  { %v3850_v39 = vadd.f32 %v3848_v54, %v3840_v50 }
0x5f45   :  { %10529 = vtanh.f32 %v3850_v39 }
0x5f4f   :  { %v10530_v15 = vpop.eup %10529 }
0x5f50   :  { %3853 = vrot.lane.b32.xlu0 %v10530_v15, %s10782_s0 }
0x5fc2   :  { %v3854_v42 = vpop.permute.xlu0 %3853 }
0x5fc3   :  { %v12010_v44 = vmul.f32 %v3854_v42, %v3839_v36 }
0x5fc5   :  { %v3862_v55 = vpack.c.bf16 %v12010_v44, %v12010_v44 }
0x5fc7   :  { %3865 = vrot.lane.b32.xlu1 %v3862_v55, %s10783_s30 }
0x6039   :  { %v3866_v57 = vpop.permute.xlu1 %3865 }
0x603a   :  { %9529 = vmatmul.mubr.msk.bf16.vlgmr.msra.gmra.mrb[104].mxu1 %vm422_vm4, %v3866_v57 }
0x603b   :  { %9533 = vmatpush3.bf16.msra.mxu1 %v11876_v9  ;;  %9536 = vmatprep.mubr.msk.bf16.mxu1 %vm10780_vm2, %v10779_v3 }
0x603c   :  { %9534 = vmatprep.subr.bf16.mxu1 %v10779_v3 }
0x603f   :  { %9535 = vmatpush3.bf16.msra.mxu1 %v11883_v17 }
0x6040   :  { %9540 = vmatprep.subr.bf16.mxu1 %v10779_v3 }
0x610d   :  { %v3904_v52 = vpop.f32.mrb[104].mxu1 }
0x610e   :  { %v3910_v51 = vadd.f32 %v11960_v16, %v3904_v52  ;;  %v9530_v59 = vpop.f32.mrb[105].mxu1 }
0x610f   :  { %v3907_v10 = vpop.f32.mrb[106].mxu1 }
0x6110   :  { %v8589_v63 = vmul.f32 -1.442695, %v3910_v51  ;;  %v9531_v0 = vpop.f32.mrb[107].mxu1 }
0x6112   :  { %10531 = vpow2.f32 %v8589_v63 }
0x6113   :  { %10533 = vtanh.f32 %v3910_v51 }
0x611c   :  { %v10532_v58 = vpop.eup %10531 }
0x611d   :  { %v3914_v7 = vadd.f32 1.0, %v10532_v58  ;;  %v10534_v11 = vpop.eup %10533 }
0x611f   :  { %10535 = vrcp.f32 %v3914_v7 }
0x6129   :  { %v10536_v8 = vpop.eup %10535 }
0x612a   :  { %v3918_v1 = vsel %vm408_vm3, %v10536_v8, %v10534_v11 }
0x612b   :  { %3921 = vrot.lane.b32.xlu0 %v3918_v1, %s10782_s0  ;;  %v3919_v16 = vmul.f32 %v3918_v1, %v3850_v39 }
0x619d   :  { %v3922_v60 = vpop.permute.xlu0 %3921 }
0x619e   :  { %v3924_v22 = vmul.f32 %v3922_v60, %v3918_v1 }
0x61a0   :  { %3926 = vrot.lane.b32.xlu1 %v3924_v22, %s10782_s0 }
0x6212   :  { %v3927_v25 = vpop.permute.xlu1 %3926 }
0x6213   :  { %v3929_v18 = vadd.f32 %v3927_v25, %v3919_v16 }
0x6215   :  { %10537 = vtanh.f32 %v3929_v18 }
0x621f   :  { %v10538_v29 = vpop.eup %10537 }
0x6220   :  { %3932 = vrot.lane.b32.xlu0 %v10538_v29, %s10782_s0 }
0x6292   :  { %v3933_v19 = vpop.permute.xlu0 %3932 }
0x6293   :  { %v12028_v30 = vmul.f32 %v3933_v19, %v3918_v1 }
0x6295   :  { %v3941_v33 = vpack.c.bf16 %v12028_v30, %v12028_v30 }
0x6297   :  { %3944 = vrot.lane.b32.xlu1 %v3941_v33, %s10783_s30 }
0x6309   :  { %v3945_v28 = vpop.permute.xlu1 %3944 }
0x630a   :  { %9537 = vmatmul.mubr.msk.bf16.vlgmr.msra.gmra.mrb[108].mxu1 %vm422_vm4, %v3945_v28 }
0x630b   :  { %9541 = vmatpush3.bf16.msra.mxu1 %v11876_v9  ;;  %9544 = vmatprep.mubr.msk.bf16.mxu1 %vm10780_vm2, %v10779_v3 }
0x630c   :  { %9542 = vmatprep.subr.bf16.mxu1 %v10779_v3 }
0x630f   :  { %9543 = vmatpush3.bf16.msra.mxu1 %v11883_v17 }
0x6310   :  { %9548 = vmatprep.subr.bf16.mxu1 %v10779_v3 }
0x63dd   :  { %v3983_v41 = vpop.f32.mrb[108].mxu1 }
0x63de   :  { %v3989_v12 = vadd.f32 %v11962_v5, %v3983_v41  ;;  %v9538_v43 = vpop.f32.mrb[109].mxu1 }
0x63df   :  { %v3986_v38 = vpop.f32.mrb[110].mxu1 }
0x63e0   :  { %v8591_v31 = vmul.f32 -1.442695, %v3989_v12  ;;  %v9539_v49 = vpop.f32.mrb[111].mxu1 }
0x63e2   :  { %10539 = vpow2.f32 %v8591_v31 }
0x63e3   :  { %10541 = vtanh.f32 %v3989_v12 }
0x63ec   :  { %v10540_v53 = vpop.eup %10539 }
0x63ed   :  { %v3993_v32 = vadd.f32 1.0, %v10540_v53  ;;  %v10542_v13 = vpop.eup %10541 }
0x63ef   :  { %10543 = vrcp.f32 %v3993_v32 }
0x63f9   :  { %v10544_v48 = vpop.eup %10543 }
0x63fa   :  { %v3997_v47 = vsel %vm408_vm3, %v10544_v48, %v10542_v13 }
0x63fb   :  { %4000 = vrot.lane.b32.xlu0 %v3997_v47, %s10782_s0  ;;  %v3998_v5 = vmul.f32 %v3997_v47, %v3929_v18 }
0x646d   :  { %v4001_v26 = vpop.permute.xlu0 %4000 }
0x646e   :  { %v4003_v24 = vmul.f32 %v4001_v26, %v3997_v47 }
0x6470   :  { %4005 = vrot.lane.b32.xlu1 %v4003_v24, %s10782_s0 }
0x64e2   :  { %v4006_v36 = vpop.permute.xlu1 %4005 }
0x64e3   :  { %v4008_v40 = vadd.f32 %v4006_v36, %v3998_v5 }
0x64e5   :  { %10545 = vtanh.f32 %v4008_v40 }
0x64ef   :  { %v10546_v23 = vpop.eup %10545 }
0x64f0   :  { %4011 = vrot.lane.b32.xlu0 %v10546_v23, %s10782_s0 }
0x6562   :  { %v4012_v50 = vpop.permute.xlu0 %4011 }
0x6563   :  { %v12046_v54 = vmul.f32 %v4012_v50, %v3997_v47 }
0x6565   :  { %v4020_v39 = vpack.c.bf16 %v12046_v54, %v12046_v54 }
0x6567   :  { %4023 = vrot.lane.b32.xlu1 %v4020_v39, %s10783_s30 }
0x65d9   :  { %v4024_v15 = vpop.permute.xlu1 %4023 }
0x65da   :  { %9545 = vmatmul.mubr.msk.bf16.vlgmr.msra.gmra.mrb[112].mxu1 %vm422_vm4, %v4024_v15 }
0x65db   :  { %9549 = vmatpush3.bf16.msra.mxu1 %v11876_v9  ;;  %9552 = vmatprep.mubr.msk.bf16.mxu1 %vm10780_vm2, %v10779_v3 }
0x65dc   :  { %9550 = vmatprep.subr.bf16.mxu1 %v10779_v3 }
0x65df   :  { %9551 = vmatpush3.bf16.msra.mxu1 %v11883_v17 }
0x65e0   :  { %9556 = vmatprep.subr.bf16.mxu1 %v10779_v3 }
0x66ad   :  { %v4062_v42 = vpop.f32.mrb[112].mxu1 }
0x66ae   :  { %v4068_v55 = vadd.f32 %v4062_v42, %v11966_v6  ;;  %v9546_v57 = vpop.f32.mrb[113].mxu1 }
0x66af   :  { %v4065_v52 = vpop.f32.mrb[114].mxu1 }
0x66b0   :  { %v8593_v51 = vmul.f32 -1.442695, %v4068_v55  ;;  %v9547_v59 = vpop.f32.mrb[115].mxu1 }
0x66b2   :  { %10547 = vpow2.f32 %v8593_v51 }
0x66b3   :  { %10549 = vtanh.f32 %v4068_v55 }
0x66bc   :  { %v10548_v10 = vpop.eup %10547 }
0x66bd   :  { %v4072_v63 = vadd.f32 1.0, %v10548_v10  ;;  %v10550_v0 = vpop.eup %10549 }
0x66bf   :  { %10551 = vrcp.f32 %v4072_v63 }
0x66c9   :  { %v10552_v58 = vpop.eup %10551 }
0x66ca   :  { %v4076_v7 = vsel %vm408_vm3, %v10552_v58, %v10550_v0 }
0x66cb   :  { %4079 = vrot.lane.b32.xlu0 %v4076_v7, %s10782_s0  ;;  %v4077_v6 = vmul.f32 %v4076_v7, %v4008_v40 }
0x673d   :  { %v4080_v11 = vpop.permute.xlu0 %4079 }
0x673e   :  { %v4082_v8 = vmul.f32 %v4080_v11, %v4076_v7 }
0x6740   :  { %4084 = vrot.lane.b32.xlu1 %v4082_v8, %s10782_s0 }
0x67b2   :  { %v4085_v1 = vpop.permute.xlu1 %4084 }
0x67b3   :  { %v4087_v60 = vadd.f32 %v4085_v1, %v4077_v6 }
0x67b5   :  { %10553 = vtanh.f32 %v4087_v60 }
0x67bf   :  { %v10554_v22 = vpop.eup %10553 }
0x67c0   :  { %4090 = vrot.lane.b32.xlu0 %v10554_v22, %s10782_s0 }
0x6832   :  { %v4091_v16 = vpop.permute.xlu0 %4090 }
0x6833   :  { %v12064_v25 = vmul.f32 %v4091_v16, %v4076_v7 }
0x6835   :  { %v4099_v18 = vpack.c.bf16 %v12064_v25, %v12064_v25 }
0x6837   :  { %4102 = vrot.lane.b32.xlu1 %v4099_v18, %s10783_s30 }
0x68a9   :  { %v4103_v29 = vpop.permute.xlu1 %4102 }
0x68aa   :  { %9553 = vmatmul.mubr.msk.bf16.vlgmr.msra.gmra.mrb[116].mxu1 %vm422_vm4, %v4103_v29 }
0x68ab   :  { %9557 = vmatpush3.bf16.msra.mxu1 %v11876_v9  ;;  %9560 = vmatprep.mubr.msk.bf16.mxu1 %vm10780_vm2, %v10779_v3 }
0x68ac   :  { %9558 = vmatprep.subr.bf16.mxu1 %v10779_v3 }
0x68af   :  { %9559 = vmatpush3.bf16.msra.mxu1 %v11883_v17 }
0x68b0   :  { %9564 = vmatprep.subr.bf16.mxu1 %v10779_v3 }
0x697d   :  { %v4141_v19 = vpop.f32.mrb[116].mxu1 }
0x697e   :  { %v4147_v33 = vadd.f32 %v4141_v19, %v11970_v62  ;;  %v9554_v28 = vpop.f32.mrb[117].mxu1 }
0x697f   :  { %v4144_v41 = vpop.f32.mrb[118].mxu1 }
0x6980   :  { %v8595_v12 = vmul.f32 -1.442695, %v4147_v33  ;;  %v9555_v43 = vpop.f32.mrb[119].mxu1 }
0x6982   :  { %10555 = vpow2.f32 %v8595_v12 }
0x6983   :  { %10557 = vtanh.f32 %v4147_v33 }
0x698c   :  { %v10556_v38 = vpop.eup %10555 }
0x698d   :  { %v4151_v31 = vadd.f32 1.0, %v10556_v38  ;;  %v10558_v49 = vpop.eup %10557 }
0x698f   :  { %10559 = vrcp.f32 %v4151_v31 }
0x6999   :  { %v10560_v53 = vpop.eup %10559 }
0x699a   :  { %v4155_v32 = vsel %vm408_vm3, %v10560_v53, %v10558_v49 }
0x699b   :  { %4158 = vrot.lane.b32.xlu0 %v4155_v32, %s10782_s0  ;;  %v4156_v62 = vmul.f32 %v4155_v32, %v4087_v60 }
0x6a0d   :  { %v4159_v13 = vpop.permute.xlu0 %4158 }
0x6a0e   :  { %v4161_v48 = vmul.f32 %v4159_v13, %v4155_v32 }
0x6a10   :  { %4163 = vrot.lane.b32.xlu1 %v4161_v48, %s10782_s0 }
0x6a82   :  { %v4164_v47 = vpop.permute.xlu1 %4163 }
0x6a83   :  { %v4166_v26 = vadd.f32 %v4164_v47, %v4156_v62 }
0x6a85   :  { %10561 = vtanh.f32 %v4166_v26 }
0x6a8f   :  { %v10562_v24 = vpop.eup %10561 }
0x6a90   :  { %4169 = vrot.lane.b32.xlu0 %v10562_v24, %s10782_s0 }
0x6b02   :  { %v4170_v5 = vpop.permute.xlu0 %4169 }
0x6b03   :  { %v12082_v36 = vmul.f32 %v4170_v5, %v4155_v32 }
0x6b05   :  { %v4178_v40 = vpack.c.bf16 %v12082_v36, %v12082_v36 }
0x6b07   :  { %4181 = vrot.lane.b32.xlu1 %v4178_v40, %s10783_s30 }
0x6b79   :  { %v4182_v23 = vpop.permute.xlu1 %4181 }
0x6b7a   :  { %9561 = vmatmul.mubr.msk.bf16.vlgmr.msra.gmra.mrb[120].mxu1 %vm422_vm4, %v4182_v23 }
0x6b7b   :  { %9565 = vmatpush3.bf16.msra.mxu1 %v11876_v9  ;;  %9568 = vmatprep.mubr.msk.bf16.mxu1 %vm10780_vm2, %v10779_v3 }
0x6b7c   :  { %9566 = vmatprep.subr.bf16.mxu1 %v10779_v3 }
0x6b7f   :  { %9567 = vmatpush3.bf16.msra.mxu1 %v11883_v17 }
0x6b80   :  { %9580 = vmatprep.subr.bf16.mxu1 %v10779_v3 }
0x6c4d   :  { %v4220_v50 = vpop.f32.mrb[120].mxu1 }
0x6c4e   :  { %v4226_v39 = vadd.f32 %v11964_v27, %v4220_v50  ;;  %v9562_v15 = vpop.f32.mrb[121].mxu1 }
0x6c4f   :  { %v4223_v42 = vpop.f32.mrb[122].mxu1 }
0x6c50   :  { %v8597_v55 = vmul.f32 -1.442695, %v4226_v39  ;;  %v9563_v57 = vpop.f32.mrb[123].mxu1 }
0x6c52   :  { %10563 = vpow2.f32 %v8597_v55 }
0x6c53   :  { %10565 = vtanh.f32 %v4226_v39 }
0x6c5c   :  { %v10564_v52 = vpop.eup %10563 }
0x6c5d   :  { %v4230_v51 = vadd.f32 1.0, %v10564_v52  ;;  %v10566_v59 = vpop.eup %10565 }
0x6c5f   :  { %10567 = vrcp.f32 %v4230_v51 }
0x6c69   :  { %v10568_v10 = vpop.eup %10567 }
0x6c6a   :  { %v4234_v63 = vsel %vm408_vm3, %v10568_v10, %v10566_v59 }
0x6c6b   :  { %4237 = vrot.lane.b32.xlu0 %v4234_v63, %s10782_s0  ;;  %v4235_v27 = vmul.f32 %v4234_v63, %v4166_v26 }
0x6cdd   :  { %v4238_v0 = vpop.permute.xlu0 %4237 }
0x6cde   :  { %v4240_v58 = vmul.f32 %v4238_v0, %v4234_v63 }
0x6ce0   :  { %4242 = vrot.lane.b32.xlu1 %v4240_v58, %s10782_s0 }
0x6d52   :  { %v4243_v7 = vpop.permute.xlu1 %4242 }
0x6d53   :  { %v4245_v11 = vadd.f32 %v4243_v7, %v4235_v27 }
0x6d55   :  { %10569 = vtanh.f32 %v4245_v11 }
0x6d5f   :  { %v10570_v8 = vpop.eup %10569 }
0x6d60   :  { %4248 = vrot.lane.b32.xlu0 %v10570_v8, %s10782_s0 }
0x6dd2   :  { %v4249_v6 = vpop.permute.xlu0 %4248 }
0x6dd3   :  { %v12100_v1 = vmul.f32 %v4249_v6, %v4234_v63 }
0x6dd5   :  { %v4257_v60 = vpack.c.bf16 %v12100_v1, %v12100_v1 }
0x6dd7   :  { %4260 = vrot.lane.b32.xlu1 %v4257_v60, %s10783_s30 }
0x6e49   :  { %v4261_v22 = vpop.permute.xlu1 %4260 }
0x6e4a   :  { %9569 = vmatmul.mubr.msk.bf16.vlgmr.msra.gmra.mrb[124].mxu1 %vm422_vm4, %v4261_v22 }
0x6e4b   :  { %9581 = vmatpush3.bf16.msra.mxu1 %v11876_v9  ;;  %9584 = vmatprep.mubr.msk.bf16.mxu1 %vm10780_vm2, %v10779_v3 }
0x6e4c   :  { %9582 = vmatprep.subr.bf16.mxu1 %v10779_v3 }
0x6e4f   :  { %9583 = vmatpush3.bf16.msra.mxu1 %v11883_v17 }
0x6e50   :  { %9596 = vmatprep.subr.bf16.mxu1 %v10779_v3 }
0x6f1d   :  { %v4299_v16 = vpop.f32.mrb[124].mxu1 }
0x6f1e   :  { %v4305_v18 = vadd.f32 %v11968_v61, %v4299_v16  ;;  %v9570_v29 = vpop.f32.mrb[125].mxu1 }
0x6f1f   :  { %v4302_v19 = vpop.f32.mrb[126].mxu1 }
0x6f20   :  { %v8599_v33 = vmul.f32 -1.442695, %v4305_v18  ;;  %v9571_v28 = vpop.f32.mrb[127].mxu1 }
0x6f22   :  { %10571 = vpow2.f32 %v8599_v33 }
0x6f23   :  { %10573 = vtanh.f32 %v4305_v18 }
0x6f2c   :  { %v10572_v41 = vpop.eup %10571 }
0x6f2d   :  { %v4309_v12 = vadd.f32 1.0, %v10572_v41  ;;  %v10574_v43 = vpop.eup %10573 }
0x6f2f   :  { %10575 = vrcp.f32 %v4309_v12 }
0x6f39   :  { %v10576_v38 = vpop.eup %10575 }
0x6f3a   :  { %v4313_v31 = vsel %vm408_vm3, %v10576_v38, %v10574_v43 }
0x6f3b   :  { %4316 = vrot.lane.b32.xlu0 %v4313_v31, %s10782_s0  ;;  %v4314_v61 = vmul.f32 %v4313_v31, %v4245_v11 }
0x6fad   :  { %v4317_v49 = vpop.permute.xlu0 %4316 }
0x6fae   :  { %v4319_v53 = vmul.f32 %v4317_v49, %v4313_v31 }
0x6fb0   :  { %4321 = vrot.lane.b32.xlu1 %v4319_v53, %s10782_s0 }
0x7022   :  { %v4322_v32 = vpop.permute.xlu1 %4321 }
0x7023   :  { %v4324_v13 = vadd.f32 %v4322_v32, %v4314_v61 }
0x7025   :  { %10577 = vtanh.f32 %v4324_v13 }
0x702f   :  { %v10578_v48 = vpop.eup %10577 }
0x7030   :  { %4327 = vrot.lane.b32.xlu0 %v10578_v48, %s10782_s0 }
0x70a2   :  { %v4328_v62 = vpop.permute.xlu0 %4327 }
0x70a3   :  { %v12118_v47 = vmul.f32 %v4328_v62, %v4313_v31 }
0x70a5   :  { %v4336_v26 = vpack.c.bf16 %v12118_v47, %v12118_v47 }
0x70a7   :  { %4339 = vrot.lane.b32.xlu1 %v4336_v26, %s10783_s30 }
0x7119   :  { %v4340_v24 = vpop.permute.xlu1 %4339 }
0x711a   :  { %9577 = vmatmul.mubr.msk.bf16.vlgmr.msra.gmra.mrb[80].mxu0 %vm422_vm4, %v4340_v24 }
0x711b   :  { %9589 = vmatpush3.bf16.msra.mxu0 %v11876_v9  ;;  %9592 = vmatprep.mubr.msk.bf16.mxu0 %vm10780_vm2, %v10779_v3 }
0x711c   :  { %9590 = vmatprep.subr.bf16.mxu0 %v10779_v3 }
0x711f   :  { %9591 = vmatpush3.bf16.msra.mxu0 %v11883_v17 }
0x7120   :  { %9604 = vmatprep.subr.bf16.mxu0 %v10779_v3 }
0x71ed   :  { %v4378_v5 = vpop.f32.mrb[80].mxu0 }
0x71ee   :  { %v4384_v40 = vadd.f32 %v4378_v5, %v11974_v20  ;;  %v9578_v23 = vpop.f32.mrb[81].mxu0 }
0x71ef   :  { %v4381_v50 = vpop.f32.mrb[82].mxu0 }
0x71f0   :  { %v8601_v39 = vmul.f32 -1.442695, %v4384_v40  ;;  %v9579_v15 = vpop.f32.mrb[83].mxu0 }
0x71f2   :  { %10579 = vpow2.f32 %v8601_v39 }
0x71f3   :  { %10581 = vtanh.f32 %v4384_v40 }
0x71fc   :  { %v10580_v42 = vpop.eup %10579 }
0x71fd   :  { %v4388_v55 = vadd.f32 1.0, %v10580_v42  ;;  %v10582_v57 = vpop.eup %10581 }
0x71ff   :  { %10583 = vrcp.f32 %v4388_v55 }
0x7209   :  { %v10584_v52 = vpop.eup %10583 }
0x720a   :  { %v4392_v51 = vsel %vm408_vm3, %v10584_v52, %v10582_v57 }
0x720b   :  { %4395 = vrot.lane.b32.xlu0 %v4392_v51, %s10782_s0  ;;  %v4393_v20 = vmul.f32 %v4392_v51, %v4324_v13 }
0x727d   :  { %v4396_v59 = vpop.permute.xlu0 %4395 }
0x727e   :  { %v4398_v10 = vmul.f32 %v4396_v59, %v4392_v51 }
0x7280   :  { %4400 = vrot.lane.b32.xlu1 %v4398_v10, %s10782_s0 }
0x72f2   :  { %v4401_v63 = vpop.permute.xlu1 %4400 }
0x72f3   :  { %v4403_v0 = vadd.f32 %v4401_v63, %v4393_v20 }
0x72f5   :  { %10585 = vtanh.f32 %v4403_v0 }
0x72ff   :  { %v10586_v58 = vpop.eup %10585 }
0x7300   :  { %4406 = vrot.lane.b32.xlu0 %v10586_v58, %s10782_s0 }
0x7372   :  { %v4407_v27 = vpop.permute.xlu0 %4406 }
0x7373   :  { %v12136_v7 = vmul.f32 %v4407_v27, %v4392_v51 }
0x7375   :  { %v4415_v11 = vpack.c.bf16 %v12136_v7, %v12136_v7 }
0x7377   :  { %4418 = vrot.lane.b32.xlu1 %v4415_v11, %s10783_s30 }
0x73e9   :  { %v4419_v8 = vpop.permute.xlu1 %4418 }
0x73ea   :  { %9585 = vmatmul.mubr.msk.bf16.vlgmr.msra.gmra.mrb[128].mxu1 %vm422_vm4, %v4419_v8 }
0x73eb   :  { %9597 = vmatpush3.bf16.msra.mxu1 %v11876_v9  ;;  %9600 = vmatprep.mubr.msk.bf16.mxu1 %vm10780_vm2, %v10779_v3 }
0x73ec   :  { %9598 = vmatprep.subr.bf16.mxu1 %v10779_v3 }
0x73ef   :  { %9599 = vmatpush3.bf16.msra.mxu1 %v11883_v17 }
0x73f0   :  { %9612 = vmatprep.subr.bf16.mxu1 %v10779_v3 }
0x74bd   :  { %v4457_v6 = vpop.f32.mrb[128].mxu1 }
0x74be   :  { %v4463_v60 = vadd.f32 %v4457_v6, %v11978_v56  ;;  %v9586_v22 = vpop.f32.mrb[129].mxu1 }
0x74bf   :  { %v4460_v16 = vpop.f32.mrb[130].mxu1 }
0x74c0   :  { %v8603_v18 = vmul.f32 -1.442695, %v4463_v60  ;;  %v9587_v29 = vpop.f32.mrb[131].mxu1 }
0x74c2   :  { %10587 = vpow2.f32 %v8603_v18 }
0x74c3   :  { %10589 = vtanh.f32 %v4463_v60 }
0x74cc   :  { %v10588_v19 = vpop.eup %10587 }
0x74cd   :  { %v4467_v33 = vadd.f32 1.0, %v10588_v19  ;;  %v10590_v28 = vpop.eup %10589 }
0x74cf   :  { %10591 = vrcp.f32 %v4467_v33 }
0x74d9   :  { %v10592_v41 = vpop.eup %10591 }
0x74da   :  { %v4471_v12 = vsel %vm408_vm3, %v10592_v41, %v10590_v28 }
0x74db   :  { %4474 = vrot.lane.b32.xlu0 %v4471_v12, %s10782_s0  ;;  %v4472_v56 = vmul.f32 %v4471_v12, %v4403_v0 }
0x754d   :  { %v4475_v43 = vpop.permute.xlu0 %4474 }
0x754e   :  { %v4477_v38 = vmul.f32 %v4475_v43, %v4471_v12 }
0x7550   :  { %4479 = vrot.lane.b32.xlu1 %v4477_v38, %s10782_s0 }
0x75c2   :  { %v4480_v31 = vpop.permute.xlu1 %4479 }
0x75c3   :  { %v4482_v49 = vadd.f32 %v4480_v31, %v4472_v56 }
0x75c5   :  { %10593 = vtanh.f32 %v4482_v49 }
0x75cf   :  { %v10594_v53 = vpop.eup %10593 }
0x75d0   :  { %4485 = vrot.lane.b32.xlu0 %v10594_v53, %s10782_s0  ;;  %v10776_v53 = vld [vmem:[%s13397_s9 + $0x8] sm:$0xff]  }
0x7642   :  { %v4486_v61 = vpop.permute.xlu0 %4485 }
0x7643   :  { %v12154_v32 = vmul.f32 %v4486_v61, %v4471_v12 }
0x7645   :  { %v4494_v13 = vpack.c.bf16 %v12154_v32, %v12154_v32 }
0x7647   :  { %4497 = vrot.lane.b32.xlu1 %v4494_v13, %s10783_s30 }
0x76b9   :  { %v4498_v48 = vpop.permute.xlu1 %4497 }
0x76ba   :  { %9593 = vmatmul.mubr.msk.bf16.vlgmr.msra.gmra.mrb[84].mxu0 %vm422_vm4, %v4498_v48 }
0x76bb   :  { %9605 = vmatpush3.bf16.msra.mxu0 %v11876_v9  ;;  %9608 = vmatprep.mubr.msk.bf16.mxu0 %vm10780_vm2, %v10779_v3 }
0x76bc   :  { %9606 = vmatprep.subr.bf16.mxu0 %v10779_v3 }
0x76bf   :  { %9607 = vmatpush3.bf16.msra.mxu0 %v11883_v17 }
0x76c0   :  { %9620 = vmatprep.subr.bf16.mxu0 %v10779_v3 }
0x778d   :  { %v4536_v62 = vpop.f32.mrb[84].mxu0 }
0x778e   :  { %v4542_v26 = vadd.f32 %v11972_v45, %v4536_v62  ;;  %v9594_v24 = vpop.f32.mrb[85].mxu0 }
0x778f   :  { %v4539_v5 = vpop.f32.mrb[86].mxu0 }
0x7790   :  { %v8605_v40 = vmul.f32 -1.442695, %v4542_v26  ;;  %v9595_v23 = vpop.f32.mrb[87].mxu0 }
0x7792   :  { %10595 = vpow2.f32 %v8605_v40 }
0x7793   :  { %10597 = vtanh.f32 %v4542_v26 }
0x779c   :  { %v10596_v50 = vpop.eup %10595 }
0x779d   :  { %v4546_v39 = vadd.f32 1.0, %v10596_v50  ;;  %v10598_v15 = vpop.eup %10597 }
0x779f   :  { %10599 = vrcp.f32 %v4546_v39 }
0x77a9   :  { %v10600_v42 = vpop.eup %10599 }
0x77aa   :  { %v4550_v55 = vsel %vm408_vm3, %v10600_v42, %v10598_v15 }
0x77ab   :  { %4553 = vrot.lane.b32.xlu0 %v4550_v55, %s10782_s0  ;;  %v4551_v45 = vmul.f32 %v4550_v55, %v4482_v49  ;;  %v10775_v49 = vld [vmem:[%s13397_s9] sm:$0xff]  }
0x781d   :  { %v4554_v57 = vpop.permute.xlu0 %4553 }
0x781e   :  { %v4556_v52 = vmul.f32 %v4554_v57, %v4550_v55 }
0x7820   :  { %4558 = vrot.lane.b32.xlu1 %v4556_v52, %s10782_s0 }
0x7892   :  { %v4559_v51 = vpop.permute.xlu1 %4558 }
0x7893   :  { %v4561_v59 = vadd.f32 %v4559_v51, %v4551_v45 }
0x7895   :  { %10601 = vtanh.f32 %v4561_v59 }
0x789f   :  { %v10602_v10 = vpop.eup %10601 }
0x78a0   :  { %4564 = vrot.lane.b32.xlu0 %v10602_v10, %s10782_s0 }
0x7912   :  { %v4565_v20 = vpop.permute.xlu0 %4564 }
0x7913   :  { %v12172_v63 = vmul.f32 %v4565_v20, %v4550_v55 }
0x7915   :  { %v4573_v0 = vpack.c.bf16 %v12172_v63, %v12172_v63 }
0x7917   :  { %4576 = vrot.lane.b32.xlu1 %v4573_v0, %s10783_s30 }
0x7989   :  { %v4577_v58 = vpop.permute.xlu1 %4576 }
0x798a   :  { %9601 = vmatmul.mubr.msk.bf16.vlgmr.msra.gmra.mrb[132].mxu1 %vm422_vm4, %v4577_v58 }
0x798b   :  { %9613 = vmatpush3.bf16.msra.mxu1 %v11876_v9  ;;  %9616 = vmatprep.mubr.msk.bf16.mxu1 %vm10780_vm2, %v10779_v3 }
0x798c   :  { %9614 = vmatprep.subr.bf16.mxu1 %v10779_v3 }
0x798f   :  { %9615 = vmatpush3.bf16.msra.mxu1 %v11883_v17 }
0x7990   :  { %9628 = vmatprep.subr.bf16.mxu1 %v10779_v3 }
0x7a5d   :  { %v4615_v27 = vpop.f32.mrb[132].mxu1 }
0x7a5e   :  { %v4621_v11 = vadd.f32 %v11976_v35, %v4615_v27  ;;  %v9602_v8 = vpop.f32.mrb[133].mxu1 }
0x7a5f   :  { %v4618_v6 = vpop.f32.mrb[134].mxu1 }
0x7a60   :  { %v8607_v60 = vmul.f32 -1.442695, %v4621_v11  ;;  %v9603_v22 = vpop.f32.mrb[135].mxu1 }
0x7a62   :  { %10603 = vpow2.f32 %v8607_v60 }
0x7a63   :  { %10605 = vtanh.f32 %v4621_v11 }
0x7a6c   :  { %v10604_v16 = vpop.eup %10603 }
0x7a6d   :  { %v4625_v18 = vadd.f32 1.0, %v10604_v16  ;;  %v10606_v9 = vpop.eup %10605 }
0x7a6f   :  { %10607 = vrcp.f32 %v4625_v18 }
0x7a79   :  { %v10608_v29 = vpop.eup %10607 }
0x7a7a   :  { %v4629_v19 = vsel %vm408_vm3, %v10608_v29, %v10606_v9 }
0x7a7b   :  { %4632 = vrot.lane.b32.xlu0 %v4629_v19, %s10782_s0  ;;  %v4630_v35 = vmul.f32 %v4629_v19, %v4561_v59 }
0x7aed   :  { %v4633_v17 = vpop.permute.xlu0 %4632 }
0x7aee   :  { %v4635_v33 = vmul.f32 %v4633_v17, %v4629_v19 }
0x7af0   :  { %4637 = vrot.lane.b32.xlu1 %v4635_v33, %s10782_s0 }
0x7b62   :  { %v4638_v28 = vpop.permute.xlu1 %4637 }
0x7b63   :  { %v4640_v41 = vadd.f32 %v4638_v28, %v4630_v35 }
0x7b65   :  { %10609 = vtanh.f32 %v4640_v41 }
0x7b6f   :  { %v10610_v12 = vpop.eup %10609 }
0x7b70   :  { %4643 = vrot.lane.b32.xlu0 %v10610_v12, %s10782_s0 }
0x7be2   :  { %v4644_v43 = vpop.permute.xlu0 %4643 }
0x7be3   :  { %v12190_v38 = vmul.f32 %v4644_v43, %v4629_v19 }
0x7be5   :  { %v4652_v56 = vpack.c.bf16 %v12190_v38, %v12190_v38 }
0x7be7   :  { %4655 = vrot.lane.b32.xlu1 %v4652_v56, %s10783_s30 }
0x7c59   :  { %v4656_v31 = vpop.permute.xlu1 %4655 }
0x7c5a   :  { %9609 = vmatmul.mubr.msk.bf16.vlgmr.msra.gmra.mrb[88].mxu0 %vm422_vm4, %v4656_v31 }
0x7c5b   :  { %9621 = vmatpush3.bf16.msra.mxu0 %v10775_v49  ;;  %9624 = vmatprep.mubr.msk.bf16.mxu0 %vm10780_vm2, %v10779_v3 }
0x7c5c   :  { %9622 = vmatprep.subr.bf16.mxu0 %v10779_v3 }
0x7c5f   :  { %9623 = vmatpush3.bf16.msra.mxu0 %v10776_v53 }
0x7d2d   :  { %v4694_v61 = vpop.f32.mrb[88].mxu0 }
0x7d2e   :  { %v4700_v13 = vadd.f32 %v4694_v61, %v11982_v2  ;;  %v9610_v48 = vpop.f32.mrb[89].mxu0 }
0x7d2f   :  { %v4697_v62 = vpop.f32.mrb[90].mxu0 }
0x7d30   :  { %v8609_v26 = vmul.f32 -1.442695, %v4700_v13  ;;  %v9611_v24 = vpop.f32.mrb[91].mxu0 }
0x7d32   :  { %10611 = vpow2.f32 %v8609_v26 }
0x7d33   :  { %10613 = vtanh.f32 %v4700_v13 }
0x7d3c   :  { %v10612_v5 = vpop.eup %10611 }
0x7d3d   :  { %v4704_v40 = vadd.f32 1.0, %v10612_v5  ;;  %v10614_v23 = vpop.eup %10613 }
0x7d3f   :  { %10615 = vrcp.f32 %v4704_v40 }
0x7d49   :  { %v10616_v50 = vpop.eup %10615 }
0x7d4a   :  { %v4708_v39 = vsel %vm408_vm3, %v10616_v50, %v10614_v23 }
0x7d4b   :  { %4711 = vrot.lane.b32.xlu0 %v4708_v39, %s10782_s0  ;;  %v4709_v2 = vmul.f32 %v4708_v39, %v4640_v41 }
0x7dbd   :  { %v4712_v15 = vpop.permute.xlu0 %4711 }
0x7dbe   :  { %v4714_v42 = vmul.f32 %v4712_v15, %v4708_v39 }
0x7dc0   :  { %4716 = vrot.lane.b32.xlu1 %v4714_v42, %s10782_s0 }
0x7e32   :  { %v4717_v55 = vpop.permute.xlu1 %4716 }
0x7e33   :  { %v4719_v57 = vadd.f32 %v4717_v55, %v4709_v2 }
0x7e35   :  { %10617 = vtanh.f32 %v4719_v57 }
0x7e3f   :  { %v10618_v52 = vpop.eup %10617 }
0x7e40   :  { %4722 = vrot.lane.b32.xlu0 %v10618_v52, %s10782_s0 }
0x7eb2   :  { %v4723_v45 = vpop.permute.xlu0 %4722 }
0x7eb3   :  { %v12211_v51 = vmul.f32 %v4723_v45, %v4708_v39 }
0x7eb5   :  { %v4731_v59 = vpack.c.bf16 %v12211_v51, %v12211_v51 }
0x7eb7   :  { %4734 = vrot.lane.b32.xlu1 %v4731_v59, %s10783_s30 }
0x7f29   :  { %v4735_v10 = vpop.permute.xlu1 %4734 }
0x7f2a   :  { %9617 = vmatmul.mubr.msk.bf16.vlgmr.msra.gmra.mrb[136].mxu1 %vm422_vm4, %v4735_v10 }
0x7f2b   :  { %9629 = vmatpush3.bf16.msra.mxu1 %v10775_v49  ;;  %9632 = vmatprep.mubr.msk.bf16.mxu1 %vm10780_vm2, %v10779_v3 }
0x7f2c   :  { %9630 = vmatprep.subr.bf16.mxu1 %v10779_v3 }
0x7f2f   :  { %9631 = vmatpush3.bf16.msra.mxu1 %v10776_v53 }
0x7f30   :  { %9676 = vmatprep.subr.bf16.mxu1 %v10779_v3 }
0x7ffd   :  { %v4773_v20 = vpop.f32.mrb[136].mxu1 }
0x7ffe   :  { %v4779_v0 = vadd.f32 %v4773_v20, %v11986_v46  ;;  %v9618_v58 = vpop.f32.mrb[137].mxu1 }
0x7fff   :  { %v4776_v27 = vpop.f32.mrb[138].mxu1 }
0x8000   :  { %v8611_v11 = vmul.f32 -1.442695, %v4779_v0  ;;  %v9619_v8 = vpop.f32.mrb[139].mxu1 }
0x8002   :  { %10619 = vpow2.f32 %v8611_v11 }
0x8003   :  { %10621 = vtanh.f32 %v4779_v0 }
0x800c   :  { %v10620_v6 = vpop.eup %10619 }
0x800d   :  { %v4783_v60 = vadd.f32 1.0, %v10620_v6  ;;  %v10622_v22 = vpop.eup %10621 }
0x800f   :  { %10623 = vrcp.f32 %v4783_v60 }
0x8019   :  { %v10624_v16 = vpop.eup %10623 }
0x801a   :  { %v4787_v18 = vsel %vm408_vm3, %v10624_v16, %v10622_v22 }
0x801b   :  { %4790 = vrot.lane.b32.xlu0 %v4787_v18, %s10782_s0  ;;  %v4788_v46 = vmul.f32 %v4787_v18, %v4719_v57 }
0x808d   :  { %v4791_v9 = vpop.permute.xlu0 %4790 }
0x808e   :  { %v4793_v29 = vmul.f32 %v4791_v9, %v4787_v18 }
0x8090   :  { %4795 = vrot.lane.b32.xlu1 %v4793_v29, %s10782_s0 }
0x8102   :  { %v4796_v19 = vpop.permute.xlu1 %4795 }
0x8103   :  { %v4798_v17 = vadd.f32 %v4796_v19, %v4788_v46 }
0x8105   :  { %10625 = vtanh.f32 %v4798_v17 }
0x810f   :  { %v10626_v33 = vpop.eup %10625 }
0x8110   :  { %4801 = vrot.lane.b32.xlu0 %v10626_v33, %s10782_s0 }
0x8182   :  { %v4802_v35 = vpop.permute.xlu0 %4801 }
0x8183   :  { %v12227_v28 = vmul.f32 %v4802_v35, %v4787_v18 }
0x8185   :  { %v4810_v41 = vpack.c.bf16 %v12227_v28, %v12227_v28 }
0x8187   :  { %4813 = vrot.lane.b32.xlu1 %v4810_v41, %s10783_s30 }
0x81f9   :  { %v4814_v12 = vpop.permute.xlu1 %4813 }
0x81fa   :  { %9625 = vmatmul.mubr.msk.bf16.vlgmr.msra.gmra.mrb[92].mxu0 %vm422_vm4, %v4814_v12 }
0x82cd   :  { %v4852_v43 = vpop.f32.mrb[92].mxu0 }
0x82ce   :  { %v4858_v56 = vadd.f32 %v11980_v21, %v4852_v43  ;;  %v9626_v31 = vpop.f32.mrb[93].mxu0 }
0x82cf   :  { %v4855_v49 = vpop.f32.mrb[94].mxu0  ;;  %v10225_v31 = vld [vmem:[%s13398_s11] sm:$0xff]  }
0x82d0   :  { %v8613_v53 = vmul.f32 -1.442695, %v4858_v56  ;;  %v9627_v61 = vpop.f32.mrb[95].mxu0  ;;  %9636 = vmatprep.subr.bf16.mxu0 %v10225_v31  ;;  %v10226_v49 = vld [vmem:[%s13398_s11 + $0x8] sm:$0xff]  }
0x82d1   :  { %9637 = vmatpush3.bf16.msra.mxu0 %v10225_v31 }
0x82d2   :  { %10627 = vpow2.f32 %v8613_v53  ;;  %9638 = vmatprep.subr.bf16.mxu0 %v10226_v49  ;;  %v10227_v53 = vld [vmem:[%s13399_s10] sm:$0xff]  }
0x82d3   :  { %10629 = vtanh.f32 %v4858_v56 }
0x82d5   :  { %9639 = vmatpush3.bf16.msra.mxu0 %v10226_v49 }
0x82d6   :  { %9656 = vmatprep.subr.bf16.mxu0 %v10227_v53 }
0x82dc   :  { %v10628_v13 = vpop.eup %10627 }
0x82dd   :  { %v4862_v48 = vadd.f32 1.0, %v10628_v13  ;;  %v10630_v62 = vpop.eup %10629 }
0x82df   :  { %10631 = vrcp.f32 %v4862_v48 }
0x82e9   :  { %v10632_v26 = vpop.eup %10631 }
0x82ea   :  { %v4866_v24 = vsel %vm408_vm3, %v10632_v26, %v10630_v62 }
0x82eb   :  { %4869 = vrot.lane.b32.xlu0 %v4866_v24, %s10782_s0  ;;  %v4867_v21 = vmul.f32 %v4866_v24, %v4798_v17 }
0x835d   :  { %v4870_v5 = vpop.permute.xlu0 %4869 }
0x835e   :  { %v4872_v40 = vmul.f32 %v4870_v5, %v4866_v24 }
0x8360   :  { %4874 = vrot.lane.b32.xlu1 %v4872_v40, %s10782_s0 }
0x83d2   :  { %v4875_v23 = vpop.permute.xlu1 %4874 }
0x83d3   :  { %v4877_v50 = vadd.f32 %v4875_v23, %v4867_v21 }
0x83d5   :  { %10633 = vtanh.f32 %v4877_v50 }
0x83df   :  { %v10634_v39 = vpop.eup %10633 }
0x83e0   :  { %4880 = vrot.lane.b32.xlu0 %v10634_v39, %s10782_s0 }
0x8452   :  { %v4881_v15 = vpop.permute.xlu0 %4880 }
0x8453   :  { %v4883_v42 = vmul.f32 %v4881_v15, %v4866_v24 }
0x8455   :  { %v4889_v2 = vpack.c.bf16 %v4883_v42, %v4883_v42 }
0x8457   :  { %4892 = vrot.lane.b32.xlu1 %v4889_v2, %s10783_s30 }
0x84c9   :  { %v4893_v55 = vpop.permute.xlu1 %4892 }
0x84ca   :  { %9633 = vmatmul.mubr.msk.bf16.vlgmr.msra.gmra.mrb[140].mxu1 %vm422_vm4, %v4893_v55 }
0x84cb   :  { %9680 = vmatprep.mubr.msk.bf16.mxu1 %vm10780_vm2, %v10779_v3 }
0x859d   :  { %v4931_v57 = vpop.f32.mrb[140].mxu1 }
0x859e   :  { %v4937_v52 = vadd.f32 %v11984_v4, %v4931_v57  ;;  %v9634_v45 = vpop.f32.mrb[141].mxu1 }
0x859f   :  { %v4934_v59 = vpop.f32.mrb[142].mxu1 }
0x85a0   :  { %v8615_v10 = vmul.f32 -1.442695, %v4937_v52  ;;  %v9635_v20 = vpop.f32.mrb[143].mxu1 }
0x85a2   :  { %10635 = vpow2.f32 %v8615_v10 }
0x85a3   :  { %10637 = vtanh.f32 %v4937_v52 }
0x85ac   :  { %v10636_v0 = vpop.eup %10635 }
0x85ad   :  { %v4941_v58 = vadd.f32 1.0, %v10636_v0  ;;  %v10638_v27 = vpop.eup %10637 }
0x85af   :  { %10639 = vrcp.f32 %v4941_v58 }
0x85b9   :  { %v10640_v11 = vpop.eup %10639 }
0x85ba   :  { %v4945_v8 = vsel %vm408_vm3, %v10640_v11, %v10638_v27 }
0x85bb   :  { %4948 = vrot.lane.b32.xlu0 %v4945_v8, %s10782_s0  ;;  %v4946_v4 = vmul.f32 %v4945_v8, %v4877_v50  ;;  %v10228_v50 = vld [vmem:[%s13399_s10 + $0x8] sm:$0xff]  }
0x862d   :  { %v4949_v6 = vpop.permute.xlu0 %4948 }
0x862e   :  { %v4951_v60 = vmul.f32 %v4949_v6, %v4945_v8 }
0x8630   :  { %4953 = vrot.lane.b32.xlu1 %v4951_v60, %s10782_s0 }
0x8634   :  { %4885 = vrot.lane.b32.xlu1 %v4883_v42, %s10783_s30 }
0x8638   :  { %4727 = vrot.lane.b32.xlu1 %v12211_v51, %s10783_s30 }
0x863c   :  { %4569 = vrot.lane.b32.xlu1 %v12172_v63, %s10783_s30 }
0x8640   :  { %4411 = vrot.lane.b32.xlu1 %v12136_v7, %s10783_s30 }
0x8644   :  { %4253 = vrot.lane.b32.xlu1 %v12100_v1, %s10783_s30 }
0x8648   :  { %4095 = vrot.lane.b32.xlu1 %v12064_v25, %s10783_s30 }
0x864c   :  { %3937 = vrot.lane.b32.xlu1 %v12028_v30, %s10783_s30 }
0x8650   :  { %3779 = vrot.lane.b32.xlu1 %v11993_v34, %s10783_s30 }
0x86a2   :  { %v4954_v51 = vpop.permute.xlu1 %4953 }
0x86a3   :  { %v4956_v22 = vadd.f32 %v4954_v51, %v4946_v4 }
0x86a5   :  { %10641 = vtanh.f32 %v4956_v22 }
0x86a6   :  { %v4886_v63 = vpop.permute.xlu1 %4885 }
0x86a7   :  { %4888 = vst.msk [vmem:[#allocation10 + $0x70] sm:$0xff] %vm422_vm4, %v4886_v63 }
0x86aa   :  { %v4728_v7 = vpop.permute.xlu1 %4727 }
0x86ab   :  { %4730 = vst.msk [vmem:[#allocation10 + $0x60] sm:$0xff] %vm422_vm4, %v4728_v7 }
0x86ae   :  { %v12265_v1 = vld [vmem:[#allocation10 + $0x70] sm:$0xff]  ;;  %v4570_v16 = vpop.permute.xlu1 %4569 }
0x86af   :  { %v10642_v25 = vpop.eup %10641  ;;  %4971 = vst.msk [vmem:[#allocation11 + $0x8] sm:$0xff] %vm422_vm4, %v12265_v1  ;;  %4572 = vst.msk [vmem:[#allocation10 + $0x50] sm:$0xff] %vm422_vm4, %v4570_v16 }
0x86b0   :  { %4959 = vrot.lane.b32.xlu0 %v10642_v25, %s10782_s0 }
0x86b2   :  { %v12271_v34 = vld [vmem:[#allocation10 + $0x60] sm:$0xff]  ;;  %v4412_v30 = vpop.permute.xlu1 %4411 }
0x86b3   :  { %4975 = vst.msk [vmem:[#allocation11 + $0x18] sm:$0xff] %vm422_vm4, %v12271_v34  ;;  %4414 = vst.msk [vmem:[#allocation10 + $0x40] sm:$0xff] %vm422_vm4, %v4412_v30 }
0x86b6   :  { %v12276_v18 = vld [vmem:[#allocation10 + $0x50] sm:$0xff]  ;;  %v4254_v9 = vpop.permute.xlu1 %4253  ;;  %v5037_v62 = vld [vmem:[#allocation11 + $0x8] sm:$0xff] }
0x86b7   :  { %4979 = vst.msk [vmem:[#allocation11 + $0x28] sm:$0xff] %vm422_vm4, %v12276_v18  ;;  %4256 = vst.msk [vmem:[#allocation10 + $0x30] sm:$0xff] %vm422_vm4, %v4254_v9 }
0x86ba   :  { %v12281_v29 = vld [vmem:[#allocation10 + $0x40] sm:$0xff]  ;;  %v4096_v46 = vpop.permute.xlu1 %4095  ;;  %v5039_v21 = vld [vmem:[#allocation11 + $0x18] sm:$0xff] }
0x86bb   :  { %4983 = vst.msk [vmem:[#allocation11 + $0x38] sm:$0xff] %vm422_vm4, %v12281_v29  ;;  %4098 = vst.msk [vmem:[#allocation10 + $0x20] sm:$0xff] %vm422_vm4, %v4096_v46 }
0x86be   :  { %v12286_v19 = vld [vmem:[#allocation10 + $0x30] sm:$0xff]  ;;  %v3938_v17 = vpop.permute.xlu1 %3937  ;;  %v5041_v2 = vld [vmem:[#allocation11 + $0x28] sm:$0xff] }
0x86bf   :  { %4987 = vst.msk [vmem:[#allocation11 + $0x48] sm:$0xff] %vm422_vm4, %v12286_v19  ;;  %3940 = vst.msk [vmem:[#allocation10 + $0x10] sm:$0xff] %vm422_vm4, %v3938_v17 }
0x86c2   :  { %v12291_v33 = vld [vmem:[#allocation10 + $0x20] sm:$0xff]  ;;  %v3780_v35 = vpop.permute.xlu1 %3779  ;;  %v5043_v59 = vld [vmem:[#allocation11 + $0x38] sm:$0xff] }
0x86c3   :  { %4991 = vst.msk [vmem:[#allocation11 + $0x58] sm:$0xff] %vm422_vm4, %v12291_v33  ;;  %3782 = vst.msk [vmem:[#allocation10] sm:$0xff] %vm422_vm4, %v3780_v35 }
0x86c6   :  { %v12296_v41 = vld [vmem:[#allocation10 + $0x10] sm:$0xff]  ;;  %v5045_v58 = vld [vmem:[#allocation11 + $0x48] sm:$0xff] }
0x86c7   :  { %4995 = vst.msk [vmem:[#allocation11 + $0x68] sm:$0xff] %vm422_vm4, %v12296_v41 }
0x86ca   :  { %v12300_v12 = vld [vmem:[#allocation10] sm:$0xff]  ;;  %v5047_v6 = vld [vmem:[#allocation11 + $0x58] sm:$0xff] }
0x86cb   :  { %4999 = vst.msk [vmem:[#allocation11 + $0x78] sm:$0xff] %vm422_vm4, %v12300_v12 }
0x86ce   :  { %v5049_v51 = vld [vmem:[#allocation11 + $0x68] sm:$0xff] }
0x86d2   :  { %v5051_v7 = vld [vmem:[#allocation11 + $0x78] sm:$0xff] }
0x8722   :  { %v4960_v43 = vpop.permute.xlu0 %4959 }
0x8723   :  { %v4962_v56 = vmul.f32 %v4960_v43, %v4945_v8 }
0x8725   :  { %4964 = vrot.lane.b32.xlu0 %v4962_v56, %s10783_s30 }
0x8729   :  { %4806 = vrot.lane.b32.xlu0 %v12227_v28, %s10783_s30 }
0x872d   :  { %4648 = vrot.lane.b32.xlu0 %v12190_v38, %s10783_s30 }
0x8731   :  { %4490 = vrot.lane.b32.xlu0 %v12154_v32, %s10783_s30  ;;  %v12331_v32 = vld [vmem:[%s13400_s12] sm:$0xff]  }
0x8732   :  { %9677 = vmatpush3.bf16.msra.mxu1 %v12331_v32 }
0x8733   :  { %9678 = vmatprep.subr.bf16.mxu1 %v10779_v3 }
0x8735   :  { %4332 = vrot.lane.b32.xlu0 %v12118_v47, %s10783_s30  ;;  %v12338_v47 = vld [vmem:[%s13400_s12 + $0x8] sm:$0xff]  }
0x8736   :  { %9679 = vmatpush3.bf16.msra.mxu1 %v12338_v47 }
0x8737   :  { %9684 = vmatprep.subr.bf16.mxu1 %v10779_v3 }
0x8739   :  { %4174 = vrot.lane.b32.xlu0 %v12082_v36, %s10783_s30  ;;  %9681 = vmatmul.mubr.bf16.vlgmr.msra.gmra.mrb[144].mxu1 %v10781_v37 }
0x873a   :  { %9685 = vmatpush3.bf16.msra.mxu1 %v12331_v32  ;;  %9688 = vmatprep.mubr.msk.bf16.mxu1 %vm10780_vm2, %v10779_v3 }
0x873b   :  { %9686 = vmatprep.subr.bf16.mxu1 %v10779_v3 }
0x873d   :  { %4016 = vrot.lane.b32.xlu0 %v12046_v54, %s10783_s30 }
0x873e   :  { %9687 = vmatpush3.bf16.msra.mxu1 %v12338_v47 }
0x873f   :  { %9692 = vmatprep.subr.bf16.mxu1 %v10779_v3 }
0x8741   :  { %3858 = vrot.lane.b32.xlu0 %v12010_v44, %s10783_s30 }
0x8797   :  { %v4965_v44 = vpop.permute.xlu0 %4964 }
0x8798   :  { %4967 = vst.msk [vmem:[#allocation10 + $0x78] sm:$0xff] %vm422_vm4, %v4965_v44 }
0x879b   :  { %v4807_v54 = vpop.permute.xlu0 %4806 }
0x879c   :  { %4809 = vst.msk [vmem:[#allocation10 + $0x68] sm:$0xff] %vm422_vm4, %v4807_v54 }
0x879f   :  { %v12351_v36 = vld [vmem:[#allocation10 + $0x78] sm:$0xff]  ;;  %v4649_v37 = vpop.permute.xlu0 %4648 }
0x87a0   :  { %4969 = vst.msk [vmem:[#allocation11] sm:$0xff] %vm422_vm4, %v12351_v36  ;;  %4651 = vst.msk [vmem:[#allocation10 + $0x58] sm:$0xff] %vm422_vm4, %v4649_v37 }
0x87a3   :  { %v12356_v38 = vld [vmem:[#allocation10 + $0x68] sm:$0xff]  ;;  %v4491_v28 = vpop.permute.xlu0 %4490 }
0x87a4   :  { %4973 = vst.msk [vmem:[#allocation11 + $0x10] sm:$0xff] %vm422_vm4, %v12356_v38  ;;  %4493 = vst.msk [vmem:[#allocation10 + $0x48] sm:$0xff] %vm422_vm4, %v4491_v28  ;;  %v5034_v35 = vpack.c.bf16 %v12356_v38, %v12271_v34 }
0x87a7   :  { %v12361_v61 = vld [vmem:[#allocation10 + $0x58] sm:$0xff]  ;;  %v4333_v13 = vpop.permute.xlu0 %4332  ;;  %v5036_v48 = vld [vmem:[#allocation11] sm:$0xff] }
0x87a8   :  { %4977 = vst.msk [vmem:[#allocation11 + $0x20] sm:$0xff] %vm422_vm4, %v12361_v61  ;;  %4335 = vst.msk [vmem:[#allocation10 + $0x38] sm:$0xff] %vm422_vm4, %v4333_v13  ;;  %v5052_v26 = vpack.c.bf16 %v5037_v62, %v5036_v48 }
0x87aa   :  { %9640 = vmatprep.mubr.msk.bf16.mxu0 %vm422_vm4, %v5052_v26 }
0x87ab   :  { %v12367_v24 = vld [vmem:[#allocation10 + $0x48] sm:$0xff]  ;;  %v4175_v5 = vpop.permute.xlu0 %4174  ;;  %v5038_v40 = vld [vmem:[#allocation11 + $0x10] sm:$0xff] }
0x87ac   :  { %4981 = vst.msk [vmem:[#allocation11 + $0x30] sm:$0xff] %vm422_vm4, %v12367_v24  ;;  %4177 = vst.msk [vmem:[#allocation10 + $0x28] sm:$0xff] %vm422_vm4, %v4175_v5  ;;  %v5053_v23 = vpack.c.bf16 %v5039_v21, %v5038_v40  ;;  %v5032_v17 = vpack.c.bf16 %v12367_v24, %v12281_v29 }
0x87ae   :  { %9641 = vmatmul.mubr.msk.bf16.vlgmr.msra.gmra.mrb[96].mxu0 %vm422_vm4, %v5053_v23 }
0x87af   :  { %v4984_v39 = vld [vmem:[#allocation10 + $0x38] sm:$0xff]  ;;  %9657 = vmatpush3.bf16.msra.mxu0 %v10227_v53  ;;  %v4017_v15 = vpop.permute.xlu0 %4016  ;;  %v5040_v42 = vld [vmem:[#allocation11 + $0x20] sm:$0xff] }
0x87b0   :  { %4985 = vst.msk [vmem:[#allocation11 + $0x40] sm:$0xff] %vm422_vm4, %v4984_v39  ;;  %4019 = vst.msk [vmem:[#allocation10 + $0x18] sm:$0xff] %vm422_vm4, %v4017_v15  ;;  %v5054_v55 = vpack.c.bf16 %v5041_v2, %v5040_v42  ;;  %9658 = vmatprep.subr.bf16.mxu0 %v10228_v50  ;;  %v5031_v46 = vpack.c.bf16 %v4984_v39, %v12286_v19  ;;  %v5035_v19 = vpack.c.bf16 %v12351_v36, %v12265_v1 }
0x87b2   :  { %9644 = vmatprep.mubr.msk.bf16.mxu0 %vm422_vm4, %v5054_v55 }
0x87b3   :  { %v4988_v57 = vld [vmem:[#allocation10 + $0x28] sm:$0xff]  ;;  %v3859_v52 = vpop.permute.xlu0 %3858  ;;  %v5042_v45 = vld [vmem:[#allocation11 + $0x30] sm:$0xff]  ;;  %9659 = vmatpush3.bf16.msra.mxu0 %v10228_v50 }
0x87b4   :  { %4989 = vst.msk [vmem:[#allocation11 + $0x50] sm:$0xff] %vm422_vm4, %v4988_v57  ;;  %3861 = vst.msk [vmem:[#allocation10 + $0x8] sm:$0xff] %vm422_vm4, %v3859_v52  ;;  %v5055_v10 = vpack.c.bf16 %v5043_v59, %v5042_v45  ;;  %9740 = vmatprep.subr.bf16.mxu0 %v10779_v3  ;;  %v5030_v9 = vpack.c.bf16 %v4988_v57, %v12291_v33  ;;  %v5033_v33 = vpack.c.bf16 %v12361_v61, %v12276_v18 }
0x87b6   :  { %9645 = vmatmul.mubr.msk.bf16.gmra.mrb[100].mxu0 %vm422_vm4, %v5055_v10 }
0x87b7   :  { %v4992_v20 = vld [vmem:[#allocation10 + $0x18] sm:$0xff]  ;;  %v5044_v0 = vld [vmem:[#allocation11 + $0x40] sm:$0xff] }
0x87b8   :  { %4993 = vst.msk [vmem:[#allocation11 + $0x60] sm:$0xff] %vm422_vm4, %v4992_v20  ;;  %v5056_v27 = vpack.c.bf16 %v5045_v58, %v5044_v0  ;;  %v5029_v30 = vpack.c.bf16 %v4992_v20, %v12296_v41 }
0x87ba   :  { %9648 = vmatprep.mubr.msk.bf16.mxu0 %vm422_vm4, %v5056_v27 }
0x87bb   :  { %v4996_v11 = vld [vmem:[#allocation10 + $0x8] sm:$0xff]  ;;  %v5046_v8 = vld [vmem:[#allocation11 + $0x50] sm:$0xff] }
0x87bc   :  { %4997 = vst.msk [vmem:[#allocation11 + $0x70] sm:$0xff] %vm422_vm4, %v4996_v11  ;;  %v5057_v60 = vpack.c.bf16 %v5047_v6, %v5046_v8  ;;  %v5028_v25 = vpack.c.bf16 %v4996_v11, %v12300_v12 }
0x87be   :  { %9649 = vmatmul.mubr.msk.bf16.gmra.mrb[104].mxu0 %vm422_vm4, %v5057_v60 }
0x87bf   :  { %v5048_v4 = vld [vmem:[#allocation11 + $0x60] sm:$0xff] }
0x87c0   :  { %v5058_v22 = vpack.c.bf16 %v5049_v51, %v5048_v4 }
0x87c2   :  { %9652 = vmatprep.mubr.msk.bf16.mxu0 %vm422_vm4, %v5058_v22 }
0x87c3   :  { %v5050_v63 = vld [vmem:[#allocation11 + $0x70] sm:$0xff] }
0x87c4   :  { %v5059_v16 = vpack.c.bf16 %v5051_v7, %v5050_v63 }
0x87c6   :  { %9653 = vmatmul.mubr.msk.bf16.gmra.mrb[108].mxu0 %vm422_vm4, %v5059_v16 }
0x87c7   :  { %9660 = vmatprep.mubr.msk.bf16.mxu0 %vm422_vm4, %v5028_v25 }
0x87ce   :  { %9661 = vmatmul.mubr.msk.bf16.vlgmr.msra.gmra.mrb[96].mxu0 %vm422_vm4, %v5029_v30 }
0x87cf   :  { %9664 = vmatprep.mubr.msk.bf16.mxu0 %vm422_vm4, %v5030_v9  ;;  %9741 = vmatpush3.bf16.msra.mxu0 %v12331_v32 }
0x87d0   :  { %9742 = vmatprep.subr.bf16.mxu0 %v10779_v3 }
0x87d3   :  { %9743 = vmatpush3.bf16.msra.mxu0 %v12338_v47 }
0x87d4   :  { %9756 = vmatprep.subr.bf16.mxu0 %v10779_v3 }
0x87d6   :  { %9665 = vmatmul.mubr.msk.bf16.gmra.mrb[100].mxu0 %vm422_vm4, %v5031_v46 }
0x87d7   :  { %9668 = vmatprep.mubr.msk.bf16.mxu0 %vm422_vm4, %v5032_v17 }
0x87de   :  { %9669 = vmatmul.mubr.msk.bf16.gmra.mrb[104].mxu0 %vm422_vm4, %v5033_v33 }
0x87df   :  { %9672 = vmatprep.mubr.msk.bf16.mxu0 %vm422_vm4, %v5034_v35 }
0x87e6   :  { %9673 = vmatmul.mubr.msk.bf16.gmra.mrb[108].mxu0 %vm422_vm4, %v5035_v19 }
0x87e7   :  { %9744 = vmatprep.mubr.msk.bf16.mxu0 %vm10780_vm2, %v10779_v3 }
0x880c   :  { %v5389_v29 = vpop.f32.mrb[144].mxu1 }
0x880d   :  { %v9682_v41 = vpop.f32.mrb[145].mxu1 }
0x880e   :  { %v5392_v12 = vpop.f32.mrb[146].mxu1 }
0x880f   :  { %v9683_v43 = vpop.f32.mrb[147].mxu1 }
0x88a1   :  { %v12415_v18 = vpop.f32.mrb[96].mxu0 }
0x88a2   :  { %v5263_v56 = vpop.f32.mrb[97].mxu0 }
0x88a3   :  { %v5395_v34 = vadd.f32 %v5389_v29, %v5263_v56  ;;  %v12417_v31 = vpop.f32.mrb[98].mxu0 }
0x88a4   :  { %v5266_v49 = vpop.f32.mrb[99].mxu0 }
0x88a5   :  { %v8638_v53 = vmul.f32 -1.442695, %v5395_v34 }
0x88a7   :  { %10643 = vpow2.f32 %v8638_v53 }
0x88a8   :  { %10645 = vtanh.f32 %v5395_v34 }
0x88a9   :  { %v12419_v44 = vpop.f32.mrb[100].mxu0 }
0x88aa   :  { %v12421_v1 = vpop.f32.mrb[101].mxu0 }
0x88ab   :  { %v12423_v54 = vpop.f32.mrb[102].mxu0 }
0x88ac   :  { %v12425_v36 = vpop.f32.mrb[103].mxu0 }
0x88b1   :  { %v10644_v37 = vpop.eup %10643  ;;  %v12427_v38 = vpop.f32.mrb[104].mxu0 }
0x88b2   :  { %v5399_v28 = vadd.f32 1.0, %v10644_v37  ;;  %v12429_v61 = vpop.f32.mrb[105].mxu0  ;;  %v10646_v40 = vpop.eup %10645 }
0x88b3   :  { %v12431_v13 = vpop.f32.mrb[106].mxu0 }
0x88b4   :  { %10647 = vrcp.f32 %v5399_v28  ;;  %v12433_v48 = vpop.f32.mrb[107].mxu0 }
0x88b9   :  { %v12435_v62 = vpop.f32.mrb[108].mxu0 }
0x88ba   :  { %v12437_v26 = vpop.f32.mrb[109].mxu0 }
0x88bb   :  { %v12439_v24 = vpop.f32.mrb[110].mxu0 }
0x88bc   :  { %v12441_v5 = vpop.f32.mrb[111].mxu0 }
0x88be   :  { %v10648_v21 = vpop.eup %10647 }
0x88bf   :  { %v5403_v23 = vsel %vm408_vm3, %v10648_v21, %v10646_v40 }
0x88c0   :  { %5406 = vrot.lane.b32.xlu1 %v5403_v23, %s10782_s0  ;;  %v5404_v15 = vmul.f32 0.0, %v5403_v23 }
0x8932   :  { %v5407_v50 = vpop.permute.xlu1 %5406 }
0x8933   :  { %v5409_v39 = vmul.f32 %v5407_v50, %v5403_v23 }
0x8935   :  { %5411 = vrot.lane.b32.xlu0 %v5409_v39, %s10782_s0 }
0x89a7   :  { %v5412_v42 = vpop.permute.xlu0 %5411 }
0x89a8   :  { %v5414_v2 = vadd.f32 %v5412_v42, %v5404_v15 }
0x89aa   :  { %10649 = vtanh.f32 %v5414_v2 }
0x89b4   :  { %v10650_v55 = vpop.eup %10649 }
0x89b5   :  { %5417 = vrot.lane.b32.xlu1 %v10650_v55, %s10782_s0 }
0x8a27   :  { %v5418_v57 = vpop.permute.xlu1 %5417 }
0x8a28   :  { %v12448_v52 = vmul.f32 %v5418_v57, %v5403_v23 }
0x8a2a   :  { %v5426_v45 = vpack.c.bf16 %v12448_v52, %v12448_v52 }
0x8a2c   :  { %5429 = vrot.lane.b32.xlu0 %v5426_v45, %s10783_s30 }
0x8a9e   :  { %v5430_v59 = vpop.permute.xlu0 %5429 }
0x8a9f   :  { %9689 = vmatmul.mubr.msk.bf16.vlgmr.msra.gmra.mrb[148].mxu1 %vm422_vm4, %v5430_v59 }
0x8aa0   :  { %9693 = vmatpush3.bf16.msra.mxu1 %v12331_v32  ;;  %9696 = vmatprep.mubr.msk.bf16.mxu1 %vm10780_vm2, %v10779_v3 }
0x8aa1   :  { %9694 = vmatprep.subr.bf16.mxu1 %v10779_v3 }
0x8aa4   :  { %9695 = vmatpush3.bf16.msra.mxu1 %v12338_v47 }
0x8aa5   :  { %9700 = vmatprep.subr.bf16.mxu1 %v10779_v3 }
0x8b72   :  { %v5468_v10 = vpop.f32.mrb[148].mxu1 }
0x8b73   :  { %v5474_v20 = vadd.f32 %v5468_v10, %v5266_v49  ;;  %v9690_v0 = vpop.f32.mrb[149].mxu1 }
0x8b74   :  { %v5471_v58 = vpop.f32.mrb[150].mxu1 }
0x8b75   :  { %v8640_v27 = vmul.f32 -1.442695, %v5474_v20  ;;  %v9691_v11 = vpop.f32.mrb[151].mxu1 }
0x8b77   :  { %10651 = vpow2.f32 %v8640_v27 }
0x8b78   :  { %10653 = vtanh.f32 %v5474_v20 }
0x8b81   :  { %v10652_v8 = vpop.eup %10651 }
0x8b82   :  { %v5478_v6 = vadd.f32 1.0, %v10652_v8  ;;  %v10654_v60 = vpop.eup %10653 }
0x8b84   :  { %10655 = vrcp.f32 %v5478_v6 }
0x8b8e   :  { %v10656_v4 = vpop.eup %10655 }
0x8b8f   :  { %v5482_v51 = vsel %vm408_vm3, %v10656_v4, %v10654_v60 }
0x8b90   :  { %5485 = vrot.lane.b32.xlu1 %v5482_v51, %s10782_s0  ;;  %v5483_v7 = vmul.f32 %v5482_v51, %v5414_v2 }
0x8c02   :  { %v5486_v22 = vpop.permute.xlu1 %5485 }
0x8c03   :  { %v5488_v63 = vmul.f32 %v5486_v22, %v5482_v51 }
0x8c05   :  { %5490 = vrot.lane.b32.xlu0 %v5488_v63, %s10782_s0 }
0x8c77   :  { %v5491_v16 = vpop.permute.xlu0 %5490 }
0x8c78   :  { %v5493_v25 = vadd.f32 %v5491_v16, %v5483_v7 }
0x8c7a   :  { %10657 = vtanh.f32 %v5493_v25 }
0x8c84   :  { %v10658_v30 = vpop.eup %10657 }
0x8c85   :  { %5496 = vrot.lane.b32.xlu1 %v10658_v30, %s10782_s0 }
0x8cf7   :  { %v5497_v9 = vpop.permute.xlu1 %5496 }
0x8cf8   :  { %v12465_v46 = vmul.f32 %v5497_v9, %v5482_v51 }
0x8cfa   :  { %v5505_v17 = vpack.c.bf16 %v12465_v46, %v12465_v46 }
0x8cfc   :  { %5508 = vrot.lane.b32.xlu0 %v5505_v17, %s10783_s30 }
0x8d6e   :  { %v5509_v33 = vpop.permute.xlu0 %5508 }
0x8d6f   :  { %9697 = vmatmul.mubr.msk.bf16.vlgmr.msra.gmra.mrb[152].mxu1 %vm422_vm4, %v5509_v33 }
0x8d70   :  { %9701 = vmatpush3.bf16.msra.mxu1 %v12331_v32  ;;  %9704 = vmatprep.mubr.msk.bf16.mxu1 %vm10780_vm2, %v10779_v3 }
0x8d71   :  { %9702 = vmatprep.subr.bf16.mxu1 %v10779_v3 }
0x8d74   :  { %9703 = vmatpush3.bf16.msra.mxu1 %v12338_v47 }
0x8d75   :  { %9708 = vmatprep.subr.bf16.mxu1 %v10779_v3 }
0x8e42   :  { %v5547_v35 = vpop.f32.mrb[152].mxu1 }
0x8e43   :  { %v5553_v19 = vadd.f32 %v12415_v18, %v5547_v35  ;;  %v9698_v29 = vpop.f32.mrb[153].mxu1 }
0x8e44   :  { %v5550_v41 = vpop.f32.mrb[154].mxu1 }
0x8e45   :  { %v8642_v12 = vmul.f32 -1.442695, %v5553_v19  ;;  %v9699_v43 = vpop.f32.mrb[155].mxu1 }
0x8e47   :  { %10659 = vpow2.f32 %v8642_v12 }
0x8e48   :  { %10661 = vtanh.f32 %v5553_v19 }
0x8e51   :  { %v10660_v56 = vpop.eup %10659 }
0x8e52   :  { %v5557_v34 = vadd.f32 1.0, %v10660_v56  ;;  %v10662_v49 = vpop.eup %10661 }
0x8e54   :  { %10663 = vrcp.f32 %v5557_v34 }
0x8e5e   :  { %v10664_v53 = vpop.eup %10663 }
0x8e5f   :  { %v5561_v37 = vsel %vm408_vm3, %v10664_v53, %v10662_v49 }
0x8e60   :  { %5564 = vrot.lane.b32.xlu1 %v5561_v37, %s10782_s0  ;;  %v5562_v18 = vmul.f32 %v5561_v37, %v5493_v25 }
0x8ed2   :  { %v5565_v28 = vpop.permute.xlu1 %5564 }
0x8ed3   :  { %v5567_v40 = vmul.f32 %v5565_v28, %v5561_v37 }
0x8ed5   :  { %5569 = vrot.lane.b32.xlu0 %v5567_v40, %s10782_s0 }
0x8f47   :  { %v5570_v21 = vpop.permute.xlu0 %5569 }
0x8f48   :  { %v5572_v23 = vadd.f32 %v5570_v21, %v5562_v18 }
0x8f4a   :  { %10665 = vtanh.f32 %v5572_v23 }
0x8f54   :  { %v10666_v50 = vpop.eup %10665 }
0x8f55   :  { %5575 = vrot.lane.b32.xlu1 %v10666_v50, %s10782_s0 }
0x8fc7   :  { %v5576_v39 = vpop.permute.xlu1 %5575 }
0x8fc8   :  { %v12483_v15 = vmul.f32 %v5576_v39, %v5561_v37 }
0x8fca   :  { %v5584_v42 = vpack.c.bf16 %v12483_v15, %v12483_v15 }
0x8fcc   :  { %5587 = vrot.lane.b32.xlu0 %v5584_v42, %s10783_s30 }
0x903e   :  { %v5588_v2 = vpop.permute.xlu0 %5587 }
0x903f   :  { %9705 = vmatmul.mubr.msk.bf16.vlgmr.msra.gmra.mrb[156].mxu1 %vm422_vm4, %v5588_v2 }
0x9040   :  { %9709 = vmatpush3.bf16.msra.mxu1 %v12331_v32  ;;  %9712 = vmatprep.mubr.msk.bf16.mxu1 %vm10780_vm2, %v10779_v3 }
0x9041   :  { %9710 = vmatprep.subr.bf16.mxu1 %v10779_v3 }
0x9044   :  { %9711 = vmatpush3.bf16.msra.mxu1 %v12338_v47 }
0x9045   :  { %9716 = vmatprep.subr.bf16.mxu1 %v10779_v3 }
0x9112   :  { %v5626_v55 = vpop.f32.mrb[156].mxu1 }
0x9113   :  { %v5632_v57 = vadd.f32 %v12417_v31, %v5626_v55  ;;  %v9706_v45 = vpop.f32.mrb[157].mxu1 }
0x9114   :  { %v5629_v59 = vpop.f32.mrb[158].mxu1 }
0x9115   :  { %v8644_v10 = vmul.f32 -1.442695, %v5632_v57  ;;  %v9707_v20 = vpop.f32.mrb[159].mxu1 }
0x9117   :  { %10667 = vpow2.f32 %v8644_v10 }
0x9118   :  { %10669 = vtanh.f32 %v5632_v57 }
0x9121   :  { %v10668_v0 = vpop.eup %10667 }
0x9122   :  { %v5636_v58 = vadd.f32 1.0, %v10668_v0  ;;  %v10670_v27 = vpop.eup %10669 }
0x9124   :  { %10671 = vrcp.f32 %v5636_v58 }
0x912e   :  { %v10672_v11 = vpop.eup %10671 }
0x912f   :  { %v5640_v8 = vsel %vm408_vm3, %v10672_v11, %v10670_v27 }
0x9130   :  { %5643 = vrot.lane.b32.xlu1 %v5640_v8, %s10782_s0  ;;  %v5641_v31 = vmul.f32 %v5640_v8, %v5572_v23 }
0x91a2   :  { %v5644_v6 = vpop.permute.xlu1 %5643 }
0x91a3   :  { %v5646_v60 = vmul.f32 %v5644_v6, %v5640_v8 }
0x91a5   :  { %5648 = vrot.lane.b32.xlu0 %v5646_v60, %s10782_s0 }
0x9217   :  { %v5649_v4 = vpop.permute.xlu0 %5648 }
0x9218   :  { %v5651_v51 = vadd.f32 %v5649_v4, %v5641_v31 }
0x921a   :  { %10673 = vtanh.f32 %v5651_v51 }
0x9224   :  { %v10674_v22 = vpop.eup %10673 }
0x9225   :  { %5654 = vrot.lane.b32.xlu1 %v10674_v22, %s10782_s0 }
0x9297   :  { %v5655_v63 = vpop.permute.xlu1 %5654 }
0x9298   :  { %v12501_v7 = vmul.f32 %v5655_v63, %v5640_v8 }
0x929a   :  { %v5663_v16 = vpack.c.bf16 %v12501_v7, %v12501_v7 }
0x929c   :  { %5666 = vrot.lane.b32.xlu0 %v5663_v16, %s10783_s30 }
0x930e   :  { %v5667_v25 = vpop.permute.xlu0 %5666 }
0x930f   :  { %9713 = vmatmul.mubr.msk.bf16.vlgmr.msra.gmra.mrb[160].mxu1 %vm422_vm4, %v5667_v25 }
0x9310   :  { %9717 = vmatpush3.bf16.msra.mxu1 %v12331_v32  ;;  %9720 = vmatprep.mubr.msk.bf16.mxu1 %vm10780_vm2, %v10779_v3 }
0x9311   :  { %9718 = vmatprep.subr.bf16.mxu1 %v10779_v3 }
0x9314   :  { %9719 = vmatpush3.bf16.msra.mxu1 %v12338_v47 }
0x9315   :  { %9724 = vmatprep.subr.bf16.mxu1 %v10779_v3 }
0x93e2   :  { %v5705_v30 = vpop.f32.mrb[160].mxu1 }
0x93e3   :  { %v5711_v9 = vadd.f32 %v5705_v30, %v12421_v1  ;;  %v9714_v17 = vpop.f32.mrb[161].mxu1 }
0x93e4   :  { %v5708_v33 = vpop.f32.mrb[162].mxu1 }
0x93e5   :  { %v8646_v35 = vmul.f32 -1.442695, %v5711_v9  ;;  %v9715_v19 = vpop.f32.mrb[163].mxu1 }
0x93e7   :  { %10675 = vpow2.f32 %v8646_v35 }
0x93e8   :  { %10677 = vtanh.f32 %v5711_v9 }
0x93f1   :  { %v10676_v29 = vpop.eup %10675 }
0x93f2   :  { %v5715_v41 = vadd.f32 1.0, %v10676_v29  ;;  %v10678_v12 = vpop.eup %10677 }
0x93f4   :  { %10679 = vrcp.f32 %v5715_v41 }
0x93fe   :  { %v10680_v43 = vpop.eup %10679 }
0x93ff   :  { %v5719_v56 = vsel %vm408_vm3, %v10680_v43, %v10678_v12 }
0x9400   :  { %5722 = vrot.lane.b32.xlu1 %v5719_v56, %s10782_s0  ;;  %v5720_v1 = vmul.f32 %v5719_v56, %v5651_v51 }
0x9472   :  { %v5723_v34 = vpop.permute.xlu1 %5722 }
0x9473   :  { %v5725_v49 = vmul.f32 %v5723_v34, %v5719_v56 }
0x9475   :  { %5727 = vrot.lane.b32.xlu0 %v5725_v49, %s10782_s0 }
0x94e7   :  { %v5728_v53 = vpop.permute.xlu0 %5727 }
0x94e8   :  { %v5730_v37 = vadd.f32 %v5728_v53, %v5720_v1 }
0x94ea   :  { %10681 = vtanh.f32 %v5730_v37 }
0x94f4   :  { %v10682_v28 = vpop.eup %10681 }
0x94f5   :  { %5733 = vrot.lane.b32.xlu1 %v10682_v28, %s10782_s0 }
0x9567   :  { %v5734_v40 = vpop.permute.xlu1 %5733 }
0x9568   :  { %v12519_v18 = vmul.f32 %v5734_v40, %v5719_v56 }
0x956a   :  { %v5742_v21 = vpack.c.bf16 %v12519_v18, %v12519_v18 }
0x956c   :  { %5745 = vrot.lane.b32.xlu0 %v5742_v21, %s10783_s30 }
0x95de   :  { %v5746_v23 = vpop.permute.xlu0 %5745 }
0x95df   :  { %9721 = vmatmul.mubr.msk.bf16.vlgmr.msra.gmra.mrb[164].mxu1 %vm422_vm4, %v5746_v23 }
0x95e0   :  { %9725 = vmatpush3.bf16.msra.mxu1 %v12331_v32  ;;  %9728 = vmatprep.mubr.msk.bf16.mxu1 %vm10780_vm2, %v10779_v3 }
0x95e1   :  { %9726 = vmatprep.subr.bf16.mxu1 %v10779_v3 }
0x95e4   :  { %9727 = vmatpush3.bf16.msra.mxu1 %v12338_v47 }
0x95e5   :  { %9732 = vmatprep.subr.bf16.mxu1 %v10779_v3 }
0x96b2   :  { %v5784_v50 = vpop.f32.mrb[164].mxu1 }
0x96b3   :  { %v5790_v39 = vadd.f32 %v5784_v50, %v12425_v36  ;;  %v9722_v42 = vpop.f32.mrb[165].mxu1 }
0x96b4   :  { %v5787_v2 = vpop.f32.mrb[166].mxu1 }
0x96b5   :  { %v8648_v55 = vmul.f32 -1.442695, %v5790_v39  ;;  %v9723_v57 = vpop.f32.mrb[167].mxu1 }
0x96b7   :  { %10683 = vpow2.f32 %v8648_v55 }
0x96b8   :  { %10685 = vtanh.f32 %v5790_v39 }
0x96c1   :  { %v10684_v45 = vpop.eup %10683 }
0x96c2   :  { %v5794_v59 = vadd.f32 1.0, %v10684_v45  ;;  %v10686_v10 = vpop.eup %10685 }
0x96c4   :  { %10687 = vrcp.f32 %v5794_v59 }
0x96ce   :  { %v10688_v20 = vpop.eup %10687 }
0x96cf   :  { %v5798_v0 = vsel %vm408_vm3, %v10688_v20, %v10686_v10 }
0x96d0   :  { %5801 = vrot.lane.b32.xlu1 %v5798_v0, %s10782_s0  ;;  %v5799_v36 = vmul.f32 %v5798_v0, %v5730_v37 }
0x9742   :  { %v5802_v58 = vpop.permute.xlu1 %5801 }
0x9743   :  { %v5804_v27 = vmul.f32 %v5802_v58, %v5798_v0 }
0x9745   :  { %5806 = vrot.lane.b32.xlu0 %v5804_v27, %s10782_s0 }
0x97b7   :  { %v5807_v11 = vpop.permute.xlu0 %5806 }
0x97b8   :  { %v5809_v8 = vadd.f32 %v5807_v11, %v5799_v36 }
0x97ba   :  { %10689 = vtanh.f32 %v5809_v8 }
0x97c4   :  { %v10690_v6 = vpop.eup %10689 }
0x97c5   :  { %5812 = vrot.lane.b32.xlu1 %v10690_v6, %s10782_s0 }
0x9837   :  { %v5813_v60 = vpop.permute.xlu1 %5812 }
0x9838   :  { %v12537_v31 = vmul.f32 %v5813_v60, %v5798_v0 }
0x983a   :  { %v5821_v4 = vpack.c.bf16 %v12537_v31, %v12537_v31 }
0x983c   :  { %5824 = vrot.lane.b32.xlu0 %v5821_v4, %s10783_s30 }
0x98ae   :  { %v5825_v51 = vpop.permute.xlu0 %5824 }
0x98af   :  { %9729 = vmatmul.mubr.msk.bf16.vlgmr.msra.gmra.mrb[168].mxu1 %vm422_vm4, %v5825_v51 }
0x98b0   :  { %9733 = vmatpush3.bf16.msra.mxu1 %v12331_v32  ;;  %9736 = vmatprep.mubr.msk.bf16.mxu1 %vm10780_vm2, %v10779_v3 }
0x98b1   :  { %9734 = vmatprep.subr.bf16.mxu1 %v10779_v3 }
0x98b4   :  { %9735 = vmatpush3.bf16.msra.mxu1 %v12338_v47 }
0x98b5   :  { %9748 = vmatprep.subr.bf16.mxu1 %v10779_v3 }
0x9982   :  { %v5863_v22 = vpop.f32.mrb[168].mxu1 }
0x9983   :  { %v5869_v63 = vadd.f32 %v12419_v44, %v5863_v22  ;;  %v9730_v16 = vpop.f32.mrb[169].mxu1 }
0x9984   :  { %v5866_v25 = vpop.f32.mrb[170].mxu1 }
0x9985   :  { %v8650_v30 = vmul.f32 -1.442695, %v5869_v63  ;;  %v9731_v9 = vpop.f32.mrb[171].mxu1 }
0x9987   :  { %10691 = vpow2.f32 %v8650_v30 }
0x9988   :  { %10693 = vtanh.f32 %v5869_v63 }
0x9991   :  { %v10692_v17 = vpop.eup %10691 }
0x9992   :  { %v5873_v33 = vadd.f32 1.0, %v10692_v17  ;;  %v10694_v35 = vpop.eup %10693 }
0x9994   :  { %10695 = vrcp.f32 %v5873_v33 }
0x999e   :  { %v10696_v19 = vpop.eup %10695 }
0x999f   :  { %v5877_v29 = vsel %vm408_vm3, %v10696_v19, %v10694_v35 }
0x99a0   :  { %5880 = vrot.lane.b32.xlu1 %v5877_v29, %s10782_s0  ;;  %v5878_v44 = vmul.f32 %v5877_v29, %v5809_v8 }
0x9a12   :  { %v5881_v41 = vpop.permute.xlu1 %5880 }
0x9a13   :  { %v5883_v12 = vmul.f32 %v5881_v41, %v5877_v29 }
0x9a15   :  { %5885 = vrot.lane.b32.xlu0 %v5883_v12, %s10782_s0 }
0x9a87   :  { %v5886_v43 = vpop.permute.xlu0 %5885 }
0x9a88   :  { %v5888_v56 = vadd.f32 %v5886_v43, %v5878_v44 }
0x9a8a   :  { %10697 = vtanh.f32 %v5888_v56 }
0x9a94   :  { %v10698_v34 = vpop.eup %10697 }
0x9a95   :  { %5891 = vrot.lane.b32.xlu1 %v10698_v34, %s10782_s0 }
0x9b07   :  { %v5892_v49 = vpop.permute.xlu1 %5891 }
0x9b08   :  { %v12555_v1 = vmul.f32 %v5892_v49, %v5877_v29 }
0x9b0a   :  { %v5900_v53 = vpack.c.bf16 %v12555_v1, %v12555_v1 }
0x9b0c   :  { %5903 = vrot.lane.b32.xlu0 %v5900_v53, %s10783_s30 }
0x9b7e   :  { %v5904_v37 = vpop.permute.xlu0 %5903 }
0x9b7f   :  { %9737 = vmatmul.mubr.msk.bf16.vlgmr.msra.gmra.mrb[172].mxu1 %vm422_vm4, %v5904_v37 }
0x9b80   :  { %9749 = vmatpush3.bf16.msra.mxu1 %v12331_v32  ;;  %9752 = vmatprep.mubr.msk.bf16.mxu1 %vm10780_vm2, %v10779_v3 }
0x9b81   :  { %9750 = vmatprep.subr.bf16.mxu1 %v10779_v3 }
0x9b84   :  { %9751 = vmatpush3.bf16.msra.mxu1 %v12338_v47 }
0x9b85   :  { %9764 = vmatprep.subr.bf16.mxu1 %v10779_v3 }
0x9c52   :  { %v5942_v28 = vpop.f32.mrb[172].mxu1 }
0x9c53   :  { %v5948_v40 = vadd.f32 %v12423_v54, %v5942_v28  ;;  %v9738_v21 = vpop.f32.mrb[173].mxu1 }
0x9c54   :  { %v5945_v23 = vpop.f32.mrb[174].mxu1 }
0x9c55   :  { %v8652_v50 = vmul.f32 -1.442695, %v5948_v40  ;;  %v9739_v39 = vpop.f32.mrb[175].mxu1 }
0x9c57   :  { %10699 = vpow2.f32 %v8652_v50 }
0x9c58   :  { %10701 = vtanh.f32 %v5948_v40 }
0x9c61   :  { %v10700_v42 = vpop.eup %10699 }
0x9c62   :  { %v5952_v2 = vadd.f32 1.0, %v10700_v42  ;;  %v10702_v55 = vpop.eup %10701 }
0x9c64   :  { %10703 = vrcp.f32 %v5952_v2 }
0x9c6e   :  { %v10704_v57 = vpop.eup %10703 }
0x9c6f   :  { %v5956_v45 = vsel %vm408_vm3, %v10704_v57, %v10702_v55 }
0x9c70   :  { %5959 = vrot.lane.b32.xlu1 %v5956_v45, %s10782_s0  ;;  %v5957_v54 = vmul.f32 %v5956_v45, %v5888_v56 }
0x9ce2   :  { %v5960_v59 = vpop.permute.xlu1 %5959 }
0x9ce3   :  { %v5962_v10 = vmul.f32 %v5960_v59, %v5956_v45 }
0x9ce5   :  { %5964 = vrot.lane.b32.xlu0 %v5962_v10, %s10782_s0 }
0x9d57   :  { %v5965_v20 = vpop.permute.xlu0 %5964 }
0x9d58   :  { %v5967_v0 = vadd.f32 %v5965_v20, %v5957_v54 }
0x9d5a   :  { %10705 = vtanh.f32 %v5967_v0 }
0x9d64   :  { %v10706_v58 = vpop.eup %10705 }
0x9d65   :  { %5970 = vrot.lane.b32.xlu1 %v10706_v58, %s10782_s0 }
0x9dd7   :  { %v5971_v27 = vpop.permute.xlu1 %5970 }
0x9dd8   :  { %v12573_v36 = vmul.f32 %v5971_v27, %v5956_v45 }
0x9dda   :  { %v5979_v11 = vpack.c.bf16 %v12573_v36, %v12573_v36 }
0x9ddc   :  { %5982 = vrot.lane.b32.xlu0 %v5979_v11, %s10783_s30 }
0x9e4e   :  { %v5983_v8 = vpop.permute.xlu0 %5982 }
0x9e4f   :  { %9745 = vmatmul.mubr.msk.bf16.vlgmr.msra.gmra.mrb[112].mxu0 %vm422_vm4, %v5983_v8 }
0x9e50   :  { %9757 = vmatpush3.bf16.msra.mxu0 %v12331_v32  ;;  %9760 = vmatprep.mubr.msk.bf16.mxu0 %vm10780_vm2, %v10779_v3 }
0x9e51   :  { %9758 = vmatprep.subr.bf16.mxu0 %v10779_v3 }
0x9e54   :  { %9759 = vmatpush3.bf16.msra.mxu0 %v12338_v47 }
0x9e55   :  { %9772 = vmatprep.subr.bf16.mxu0 %v10779_v3 }
0x9f22   :  { %v6021_v6 = vpop.f32.mrb[112].mxu0 }
0x9f23   :  { %v6027_v60 = vadd.f32 %v6021_v6, %v12429_v61  ;;  %v9746_v4 = vpop.f32.mrb[113].mxu0 }
0x9f24   :  { %v6024_v51 = vpop.f32.mrb[114].mxu0 }
0x9f25   :  { %v8654_v22 = vmul.f32 -1.442695, %v6027_v60  ;;  %v9747_v63 = vpop.f32.mrb[115].mxu0 }
0x9f27   :  { %10707 = vpow2.f32 %v8654_v22 }
0x9f28   :  { %10709 = vtanh.f32 %v6027_v60 }
0x9f31   :  { %v10708_v16 = vpop.eup %10707 }
0x9f32   :  { %v6031_v25 = vadd.f32 1.0, %v10708_v16  ;;  %v10710_v30 = vpop.eup %10709 }
0x9f34   :  { %10711 = vrcp.f32 %v6031_v25 }
0x9f3e   :  { %v10712_v9 = vpop.eup %10711 }
0x9f3f   :  { %v6035_v17 = vsel %vm408_vm3, %v10712_v9, %v10710_v30 }
0x9f40   :  { %6038 = vrot.lane.b32.xlu1 %v6035_v17, %s10782_s0  ;;  %v6036_v61 = vmul.f32 %v6035_v17, %v5967_v0 }
0x9fb2   :  { %v6039_v33 = vpop.permute.xlu1 %6038 }
0x9fb3   :  { %v6041_v35 = vmul.f32 %v6039_v33, %v6035_v17 }
0x9fb5   :  { %6043 = vrot.lane.b32.xlu0 %v6041_v35, %s10782_s0 }
0xa027   :  { %v6044_v19 = vpop.permute.xlu0 %6043 }
0xa028   :  { %v6046_v29 = vadd.f32 %v6044_v19, %v6036_v61 }
0xa02a   :  { %10713 = vtanh.f32 %v6046_v29 }
0xa034   :  { %v10714_v41 = vpop.eup %10713 }
0xa035   :  { %6049 = vrot.lane.b32.xlu1 %v10714_v41, %s10782_s0 }
0xa0a7   :  { %v6050_v12 = vpop.permute.xlu1 %6049 }
0xa0a8   :  { %v12591_v44 = vmul.f32 %v6050_v12, %v6035_v17 }
0xa0aa   :  { %v6058_v43 = vpack.c.bf16 %v12591_v44, %v12591_v44 }
0xa0ac   :  { %6061 = vrot.lane.b32.xlu0 %v6058_v43, %s10783_s30 }
0xa11e   :  { %v6062_v56 = vpop.permute.xlu0 %6061 }
0xa11f   :  { %9753 = vmatmul.mubr.msk.bf16.vlgmr.msra.gmra.mrb[176].mxu1 %vm422_vm4, %v6062_v56 }
0xa120   :  { %9765 = vmatpush3.bf16.msra.mxu1 %v12331_v32  ;;  %9768 = vmatprep.mubr.msk.bf16.mxu1 %vm10780_vm2, %v10779_v3 }
0xa121   :  { %9766 = vmatprep.subr.bf16.mxu1 %v10779_v3 }
0xa124   :  { %9767 = vmatpush3.bf16.msra.mxu1 %v12338_v47 }
0xa125   :  { %9780 = vmatprep.subr.bf16.mxu1 %v10779_v3 }
0xa1f2   :  { %v6100_v34 = vpop.f32.mrb[176].mxu1 }
0xa1f3   :  { %v6106_v49 = vadd.f32 %v6100_v34, %v12433_v48  ;;  %v9754_v53 = vpop.f32.mrb[177].mxu1 }
0xa1f4   :  { %v6103_v37 = vpop.f32.mrb[178].mxu1 }
0xa1f5   :  { %v8656_v28 = vmul.f32 -1.442695, %v6106_v49  ;;  %v9755_v40 = vpop.f32.mrb[179].mxu1 }
0xa1f7   :  { %10715 = vpow2.f32 %v8656_v28 }
0xa1f8   :  { %10717 = vtanh.f32 %v6106_v49 }
0xa201   :  { %v10716_v21 = vpop.eup %10715 }
0xa202   :  { %v6110_v23 = vadd.f32 1.0, %v10716_v21  ;;  %v10718_v50 = vpop.eup %10717 }
0xa204   :  { %10719 = vrcp.f32 %v6110_v23 }
0xa20e   :  { %v10720_v39 = vpop.eup %10719 }
0xa20f   :  { %v6114_v42 = vsel %vm408_vm3, %v10720_v39, %v10718_v50 }
0xa210   :  { %6117 = vrot.lane.b32.xlu1 %v6114_v42, %s10782_s0  ;;  %v6115_v48 = vmul.f32 %v6114_v42, %v6046_v29 }
0xa282   :  { %v6118_v2 = vpop.permute.xlu1 %6117 }
0xa283   :  { %v6120_v55 = vmul.f32 %v6118_v2, %v6114_v42 }
0xa285   :  { %6122 = vrot.lane.b32.xlu0 %v6120_v55, %s10782_s0 }
0xa2f7   :  { %v6123_v57 = vpop.permute.xlu0 %6122 }
0xa2f8   :  { %v6125_v45 = vadd.f32 %v6123_v57, %v6115_v48  ;;  %v10777_v57 = vld [vmem:[%s13400_s12] sm:$0xff]  }
0xa2fa   :  { %10721 = vtanh.f32 %v6125_v45 }
0xa304   :  { %v10722_v59 = vpop.eup %10721 }
0xa305   :  { %6128 = vrot.lane.b32.xlu1 %v10722_v59, %s10782_s0 }
0xa377   :  { %v6129_v10 = vpop.permute.xlu1 %6128 }
0xa378   :  { %v12609_v54 = vmul.f32 %v6129_v10, %v6114_v42 }
0xa37a   :  { %v6137_v20 = vpack.c.bf16 %v12609_v54, %v12609_v54 }
0xa37c   :  { %6140 = vrot.lane.b32.xlu0 %v6137_v20, %s10783_s30 }
0xa3ee   :  { %v6141_v0 = vpop.permute.xlu0 %6140 }
0xa3ef   :  { %9761 = vmatmul.mubr.msk.bf16.vlgmr.msra.gmra.mrb[116].mxu0 %vm422_vm4, %v6141_v0 }
0xa3f0   :  { %9773 = vmatpush3.bf16.msra.mxu0 %v12331_v32  ;;  %9776 = vmatprep.mubr.msk.bf16.mxu0 %vm10780_vm2, %v10779_v3 }
0xa3f1   :  { %9774 = vmatprep.subr.bf16.mxu0 %v10779_v3 }
0xa3f4   :  { %9775 = vmatpush3.bf16.msra.mxu0 %v12338_v47 }
0xa3f5   :  { %9788 = vmatprep.subr.bf16.mxu0 %v10779_v3 }
0xa4c2   :  { %v6179_v58 = vpop.f32.mrb[116].mxu0 }
0xa4c3   :  { %v6185_v27 = vadd.f32 %v12427_v38, %v6179_v58  ;;  %v9762_v11 = vpop.f32.mrb[117].mxu0 }
0xa4c4   :  { %v6182_v8 = vpop.f32.mrb[118].mxu0 }
0xa4c5   :  { %v8658_v6 = vmul.f32 -1.442695, %v6185_v27  ;;  %v9763_v60 = vpop.f32.mrb[119].mxu0 }
0xa4c7   :  { %10723 = vpow2.f32 %v8658_v6 }
0xa4c8   :  { %10725 = vtanh.f32 %v6185_v27 }
0xa4d1   :  { %v10724_v4 = vpop.eup %10723 }
0xa4d2   :  { %v6189_v51 = vadd.f32 1.0, %v10724_v4  ;;  %v10726_v22 = vpop.eup %10725 }
0xa4d4   :  { %10727 = vrcp.f32 %v6189_v51 }
0xa4de   :  { %v10728_v63 = vpop.eup %10727 }
0xa4df   :  { %v6193_v16 = vsel %vm408_vm3, %v10728_v63, %v10726_v22 }
0xa4e0   :  { %6196 = vrot.lane.b32.xlu1 %v6193_v16, %s10782_s0  ;;  %v6194_v38 = vmul.f32 %v6193_v16, %v6125_v45  ;;  %v10778_v45 = vld [vmem:[%s13400_s12 + $0x8] sm:$0xff]  }
0xa552   :  { %v6197_v25 = vpop.permute.xlu1 %6196 }
0xa553   :  { %v6199_v30 = vmul.f32 %v6197_v25, %v6193_v16 }
0xa555   :  { %6201 = vrot.lane.b32.xlu0 %v6199_v30, %s10782_s0 }
0xa5c7   :  { %v6202_v9 = vpop.permute.xlu0 %6201 }
0xa5c8   :  { %v6204_v17 = vadd.f32 %v6202_v9, %v6194_v38 }
0xa5ca   :  { %10729 = vtanh.f32 %v6204_v17 }
0xa5d4   :  { %v10730_v33 = vpop.eup %10729 }
0xa5d5   :  { %6207 = vrot.lane.b32.xlu1 %v10730_v33, %s10782_s0 }
0xa647   :  { %v6208_v35 = vpop.permute.xlu1 %6207 }
0xa648   :  { %v12627_v61 = vmul.f32 %v6208_v35, %v6193_v16 }
0xa64a   :  { %v6216_v19 = vpack.c.bf16 %v12627_v61, %v12627_v61 }
0xa64c   :  { %6219 = vrot.lane.b32.xlu0 %v6216_v19, %s10783_s30 }
0xa6be   :  { %v6220_v29 = vpop.permute.xlu0 %6219 }
0xa6bf   :  { %9769 = vmatmul.mubr.msk.bf16.vlgmr.msra.gmra.mrb[180].mxu1 %vm422_vm4, %v6220_v29 }
0xa6c0   :  { %9781 = vmatpush3.bf16.msra.mxu1 %v12331_v32  ;;  %9784 = vmatprep.mubr.msk.bf16.mxu1 %vm10780_vm2, %v10779_v3 }
0xa6c1   :  { %9782 = vmatprep.subr.bf16.mxu1 %v10779_v3 }
0xa6c4   :  { %9783 = vmatpush3.bf16.msra.mxu1 %v12338_v47 }
0xa6c5   :  { %9796 = vmatprep.subr.bf16.mxu1 %v10779_v3 }
0xa792   :  { %v6258_v41 = vpop.f32.mrb[180].mxu1 }
0xa793   :  { %v6264_v12 = vadd.f32 %v12431_v13, %v6258_v41  ;;  %v9770_v43 = vpop.f32.mrb[181].mxu1 }
0xa794   :  { %v6261_v56 = vpop.f32.mrb[182].mxu1 }
0xa795   :  { %v8660_v34 = vmul.f32 -1.442695, %v6264_v12  ;;  %v9771_v49 = vpop.f32.mrb[183].mxu1 }
0xa797   :  { %10731 = vpow2.f32 %v8660_v34 }
0xa798   :  { %10733 = vtanh.f32 %v6264_v12 }
0xa7a1   :  { %v10732_v53 = vpop.eup %10731 }
0xa7a2   :  { %v6268_v37 = vadd.f32 1.0, %v10732_v53  ;;  %v10734_v32 = vpop.eup %10733 }
0xa7a4   :  { %10735 = vrcp.f32 %v6268_v37 }
0xa7ae   :  { %v10736_v28 = vpop.eup %10735 }
0xa7af   :  { %v6272_v40 = vsel %vm408_vm3, %v10736_v28, %v10734_v32 }
0xa7b0   :  { %6275 = vrot.lane.b32.xlu1 %v6272_v40, %s10782_s0  ;;  %v6273_v13 = vmul.f32 %v6272_v40, %v6204_v17 }
0xa822   :  { %v6276_v47 = vpop.permute.xlu1 %6275 }
0xa823   :  { %v6278_v21 = vmul.f32 %v6276_v47, %v6272_v40 }
0xa825   :  { %6280 = vrot.lane.b32.xlu0 %v6278_v21, %s10782_s0 }
0xa897   :  { %v6281_v23 = vpop.permute.xlu0 %6280 }
0xa898   :  { %v6283_v50 = vadd.f32 %v6281_v23, %v6273_v13 }
0xa89a   :  { %10737 = vtanh.f32 %v6283_v50 }
0xa8a4   :  { %v10738_v39 = vpop.eup %10737 }
0xa8a5   :  { %6286 = vrot.lane.b32.xlu1 %v10738_v39, %s10782_s0 }
0xa917   :  { %v6287_v42 = vpop.permute.xlu1 %6286 }
0xa918   :  { %v12645_v2 = vmul.f32 %v6287_v42, %v6272_v40 }
0xa91a   :  { %v6295_v55 = vpack.c.bf16 %v12645_v2, %v12645_v2 }
0xa91c   :  { %6298 = vrot.lane.b32.xlu0 %v6295_v55, %s10783_s30 }
0xa98e   :  { %v6299_v48 = vpop.permute.xlu0 %6298 }
0xa98f   :  { %9777 = vmatmul.mubr.msk.bf16.vlgmr.msra.gmra.mrb[120].mxu0 %vm422_vm4, %v6299_v48 }
0xa990   :  { %9789 = vmatpush3.bf16.msra.mxu0 %v10777_v57  ;;  %9792 = vmatprep.mubr.msk.bf16.mxu0 %vm10780_vm2, %v10779_v3 }
0xa991   :  { %9790 = vmatprep.subr.bf16.mxu0 %v10779_v3 }
0xa994   :  { %9791 = vmatpush3.bf16.msra.mxu0 %v10778_v45 }
0xa995   :  { %9804 = vmatprep.subr.bf16.mxu0 %v10779_v3 }
0xaa62   :  { %v6337_v59 = vpop.f32.mrb[120].mxu0 }
0xaa63   :  { %v6343_v10 = vadd.f32 %v6337_v59, %v12437_v26  ;;  %v9778_v20 = vpop.f32.mrb[121].mxu0 }
0xaa64   :  { %v6340_v0 = vpop.f32.mrb[122].mxu0 }
0xaa65   :  { %v8662_v58 = vmul.f32 -1.442695, %v6343_v10  ;;  %v9779_v27 = vpop.f32.mrb[123].mxu0 }
0xaa67   :  { %10739 = vpow2.f32 %v8662_v58 }
0xaa68   :  { %10741 = vtanh.f32 %v6343_v10 }
0xaa71   :  { %v10740_v11 = vpop.eup %10739 }
0xaa72   :  { %v6347_v8 = vadd.f32 1.0, %v10740_v11  ;;  %v10742_v6 = vpop.eup %10741 }
0xaa74   :  { %10743 = vrcp.f32 %v6347_v8 }
0xaa7e   :  { %v10744_v60 = vpop.eup %10743 }
0xaa7f   :  { %v6351_v4 = vsel %vm408_vm3, %v10744_v60, %v10742_v6 }
0xaa80   :  { %6354 = vrot.lane.b32.xlu1 %v6351_v4, %s10782_s0  ;;  %v6352_v26 = vmul.f32 %v6351_v4, %v6283_v50 }
0xaaf2   :  { %v6355_v51 = vpop.permute.xlu1 %6354 }
0xaaf3   :  { %v6357_v22 = vmul.f32 %v6355_v51, %v6351_v4 }
0xaaf5   :  { %6359 = vrot.lane.b32.xlu0 %v6357_v22, %s10782_s0 }
0xab67   :  { %v6360_v63 = vpop.permute.xlu0 %6359 }
0xab68   :  { %v6362_v16 = vadd.f32 %v6360_v63, %v6352_v26 }
0xab6a   :  { %10745 = vtanh.f32 %v6362_v16 }
0xab74   :  { %v10746_v25 = vpop.eup %10745 }
0xab75   :  { %6365 = vrot.lane.b32.xlu1 %v10746_v25, %s10782_s0 }
0xabe7   :  { %v6366_v30 = vpop.permute.xlu1 %6365 }
0xabe8   :  { %v12667_v38 = vmul.f32 %v6366_v30, %v6351_v4 }
0xabea   :  { %v6374_v9 = vpack.c.bf16 %v12667_v38, %v12667_v38 }
0xabec   :  { %6377 = vrot.lane.b32.xlu0 %v6374_v9, %s10783_s30 }
0xac5e   :  { %v6378_v17 = vpop.permute.xlu0 %6377 }
0xac5f   :  { %9785 = vmatmul.mubr.msk.bf16.vlgmr.msra.gmra.mrb[184].mxu1 %vm422_vm4, %v6378_v17 }
0xac60   :  { %9797 = vmatpush3.bf16.msra.mxu1 %v10777_v57  ;;  %9800 = vmatprep.mubr.msk.bf16.mxu1 %vm10780_vm2, %v10779_v3 }
0xac61   :  { %9798 = vmatprep.subr.bf16.mxu1 %v10779_v3 }
0xac64   :  { %9799 = vmatpush3.bf16.msra.mxu1 %v10778_v45 }
0xac65   :  { %9828 = vmatprep.subr.bf16.mxu1 %v10779_v3 }
0xad32   :  { %v6416_v33 = vpop.f32.mrb[184].mxu1 }
0xad33   :  { %v6422_v35 = vadd.f32 %v6416_v33, %v12441_v5  ;;  %v9786_v19 = vpop.f32.mrb[185].mxu1 }
0xad34   :  { %v6419_v29 = vpop.f32.mrb[186].mxu1 }
0xad35   :  { %v8664_v41 = vmul.f32 -1.442695, %v6422_v35  ;;  %v9787_v12 = vpop.f32.mrb[187].mxu1 }
0xad37   :  { %10747 = vpow2.f32 %v8664_v41 }
0xad38   :  { %10749 = vtanh.f32 %v6422_v35 }
0xad41   :  { %v10748_v43 = vpop.eup %10747 }
0xad42   :  { %v6426_v56 = vadd.f32 1.0, %v10748_v43  ;;  %v10750_v34 = vpop.eup %10749 }
0xad44   :  { %10751 = vrcp.f32 %v6426_v56 }
0xad4e   :  { %v10752_v49 = vpop.eup %10751 }
0xad4f   :  { %v6430_v53 = vsel %vm408_vm3, %v10752_v49, %v10750_v34 }
0xad50   :  { %6433 = vrot.lane.b32.xlu1 %v6430_v53, %s10782_s0  ;;  %v6431_v5 = vmul.f32 %v6430_v53, %v6362_v16 }
0xadc2   :  { %v6434_v37 = vpop.permute.xlu1 %6433 }
0xadc3   :  { %v6436_v32 = vmul.f32 %v6434_v37, %v6430_v53 }
0xadc5   :  { %6438 = vrot.lane.b32.xlu0 %v6436_v32, %s10782_s0 }
0xae37   :  { %v6439_v28 = vpop.permute.xlu0 %6438 }
0xae38   :  { %v6441_v40 = vadd.f32 %v6439_v28, %v6431_v5 }
0xae3a   :  { %10753 = vtanh.f32 %v6441_v40 }
0xae44   :  { %v10754_v47 = vpop.eup %10753 }
0xae45   :  { %6444 = vrot.lane.b32.xlu1 %v10754_v47, %s10782_s0 }
0xaeb7   :  { %v6445_v21 = vpop.permute.xlu1 %6444 }
0xaeb8   :  { %v12683_v13 = vmul.f32 %v6445_v21, %v6430_v53 }
0xaeba   :  { %v6453_v23 = vpack.c.bf16 %v12683_v13, %v12683_v13 }
0xaebc   :  { %6456 = vrot.lane.b32.xlu0 %v6453_v23, %s10783_s30  ;;  %v10231_v23 = vld [vmem:[%s13401_s14] sm:$0xff]  }
0xaf2e   :  { %v6457_v50 = vpop.permute.xlu0 %6456 }
0xaf2f   :  { %9793 = vmatmul.mubr.msk.bf16.vlgmr.msra.gmra.mrb[124].mxu0 %vm422_vm4, %v6457_v50 }
0xaf30   :  { %9808 = vmatprep.mubr.msk.bf16.mxu0 %vm10780_vm2, %v10779_v3  ;;  %9805 = vmatpush3.bf16.msra.mxu0 %v10231_v23  ;;  %v10243_v23 = vld [vmem:[%s13402_s13 + $0x30] sm:$0xff]  }
0xaf31   :  { %9806 = vmatprep.subr.bf16.mxu0 %v10779_v3 }
0xb002   :  { %v6495_v39 = vpop.f32.mrb[124].mxu0 }
0xb003   :  { %v6501_v42 = vadd.f32 %v12435_v62, %v6495_v39  ;;  %v9794_v55 = vpop.f32.mrb[125].mxu0  ;;  %v10232_v39 = vld [vmem:[%s13402_s13] sm:$0xff]  }
0xb004   :  { %v6498_v48 = vpop.f32.mrb[126].mxu0  ;;  %v10233_v55 = vld [vmem:[%s13401_s14 + $0x8] sm:$0xff]  }
0xb005   :  { %v8666_v57 = vmul.f32 -1.442695, %v6501_v42  ;;  %v9795_v45 = vpop.f32.mrb[127].mxu0  ;;  %v10234_v48 = vld [vmem:[%s13402_s13 + $0x8] sm:$0xff]   ;;  %9807 = vmatpush3.bf16.msra.mxu0 %v10233_v55 }
0xb006   :  { %9852 = vmatprep.subr.bf16.mxu0 %v10779_v3 }
0xb007   :  { %10755 = vpow2.f32 %v8666_v57 }
0xb008   :  { %10757 = vtanh.f32 %v6501_v42 }
0xb011   :  { %v10756_v59 = vpop.eup %10755 }
0xb012   :  { %v6505_v10 = vadd.f32 1.0, %v10756_v59  ;;  %v10758_v20 = vpop.eup %10757 }
0xb014   :  { %10759 = vrcp.f32 %v6505_v10 }
0xb01e   :  { %v10760_v0 = vpop.eup %10759 }
0xb01f   :  { %v6509_v58 = vsel %vm408_vm3, %v10760_v0, %v10758_v20  ;;  %v10236_v20 = vld [vmem:[%s13401_s14 + $0x10] sm:$0xff]  }
0xb020   :  { %6512 = vrot.lane.b32.xlu1 %v6509_v58, %s10782_s0  ;;  %v6510_v62 = vmul.f32 %v6509_v58, %v6441_v40 }
0xb092   :  { %v6513_v27 = vpop.permute.xlu1 %6512 }
0xb093   :  { %v6515_v11 = vmul.f32 %v6513_v27, %v6509_v58 }
0xb095   :  { %6517 = vrot.lane.b32.xlu0 %v6515_v11, %s10782_s0 }
0xb107   :  { %v6518_v8 = vpop.permute.xlu0 %6517 }
0xb108   :  { %v6520_v6 = vadd.f32 %v6518_v8, %v6510_v62  ;;  %v10237_v62 = vld [vmem:[%s13402_s13 + $0x18] sm:$0xff]  }
0xb109   :  { %v10238_v8 = vld [vmem:[%s13401_s14 + $0x18] sm:$0xff]  }
0xb10a   :  { %10761 = vtanh.f32 %v6520_v6 }
0xb114   :  { %v10762_v60 = vpop.eup %10761 }
0xb115   :  { %6523 = vrot.lane.b32.xlu1 %v10762_v60, %s10782_s0 }
0xb187   :  { %v6524_v4 = vpop.permute.xlu1 %6523 }
0xb188   :  { %v6526_v51 = vmul.f32 %v6524_v4, %v6509_v58 }
0xb18a   :  { %v6532_v22 = vpack.c.bf16 %v6526_v51, %v6526_v51 }
0xb18c   :  { %6535 = vrot.lane.b32.xlu0 %v6532_v22, %s10783_s30 }
0xb1fe   :  { %v6536_v26 = vpop.permute.xlu0 %6535 }
0xb1ff   :  { %9801 = vmatmul.mubr.msk.bf16.vlgmr.msra.gmra.mrb[188].mxu1 %vm422_vm4, %v6536_v26 }
0xb200   :  { %9832 = vmatprep.mubr.msk.bf16.mxu1 %vm10780_vm2, %v10779_v3  ;;  %9829 = vmatpush3.bf16.msra.mxu1 %v10232_v39  ;;  %v10245_v39 = vld [vmem:[%s13402_s13 + $0x38] sm:$0xff]  }
0xb201   :  { %9830 = vmatprep.subr.bf16.mxu1 %v10779_v3 }
0xb204   :  { %9831 = vmatpush3.bf16.msra.mxu1 %v10234_v48 }
0xb205   :  { %9876 = vmatprep.subr.bf16.mxu1 %v10779_v3 }
0xb2d2   :  { %v6574_v63 = vpop.f32.mrb[188].mxu1 }
0xb2d3   :  { %v6580_v16 = vadd.f32 %v12439_v24, %v6574_v63  ;;  %v9802_v25 = vpop.f32.mrb[189].mxu1 }
0xb2d4   :  { %v6577_v30 = vpop.f32.mrb[190].mxu1 }
0xb2d5   :  { %v8668_v9 = vmul.f32 -1.442695, %v6580_v16  ;;  %v9803_v17 = vpop.f32.mrb[191].mxu1 }
0xb2d7   :  { %10763 = vpow2.f32 %v8668_v9 }
0xb2d8   :  { %10765 = vtanh.f32 %v6580_v16 }
0xb2e1   :  { %v10764_v33 = vpop.eup %10763 }
0xb2e2   :  { %v6584_v35 = vadd.f32 1.0, %v10764_v33  ;;  %v10766_v19 = vpop.eup %10765 }
0xb2e4   :  { %10767 = vrcp.f32 %v6584_v35 }
0xb2ee   :  { %v10768_v29 = vpop.eup %10767 }
0xb2ef   :  { %v6588_v41 = vsel %vm408_vm3, %v10768_v29, %v10766_v19 }
0xb2f0   :  { %6591 = vrot.lane.b32.xlu1 %v6588_v41, %s10782_s0  ;;  %v6589_v14 = vmul.f32 %v6588_v41, %v6520_v6 }
0xb362   :  { %v6592_v12 = vpop.permute.xlu1 %6591 }
0xb363   :  { %v6594_v43 = vmul.f32 %v6592_v12, %v6588_v41 }
0xb365   :  { %6596 = vrot.lane.b32.xlu0 %v6594_v43, %s10782_s0 }
0xb369   :  { %6528 = vrot.lane.b32.xlu0 %v6526_v51, %s10783_s30 }
0xb36d   :  { %6370 = vrot.lane.b32.xlu0 %v12667_v38, %s10783_s30 }
0xb371   :  { %5422 = vrot.lane.b32.xlu0 %v12448_v52, %s10783_s30 }
0xb375   :  { %6212 = vrot.lane.b32.xlu0 %v12627_v61, %s10783_s30 }
0xb379   :  { %5580 = vrot.lane.b32.xlu0 %v12483_v15, %s10783_s30 }
0xb37d   :  { %6054 = vrot.lane.b32.xlu0 %v12591_v44, %s10783_s30 }
0xb381   :  { %5738 = vrot.lane.b32.xlu0 %v12519_v18, %s10783_s30 }
0xb385   :  { %5896 = vrot.lane.b32.xlu0 %v12555_v1, %s10783_s30 }
0xb3d7   :  { %v6597_v24 = vpop.permute.xlu0 %6596 }
0xb3d8   :  { %v6599_v38 = vadd.f32 %v6597_v24, %v6589_v14 }
0xb3da   :  { %10769 = vtanh.f32 %v6599_v38 }
0xb3db   :  { %v6529_v52 = vpop.permute.xlu0 %6528 }
0xb3dc   :  { %6531 = vst.msk [vmem:[#allocation13 + $0x70] sm:$0xff] %vm422_vm4, %v6529_v52  ;;  %v10239_v52 = vld [vmem:[%s13402_s13 + $0x20] sm:$0xff]  }
0xb3df   :  { %v6371_v61 = vpop.permute.xlu0 %6370 }
0xb3e0   :  { %6373 = vst.msk [vmem:[#allocation13 + $0x60] sm:$0xff] %vm422_vm4, %v6371_v61  ;;  %v10240_v61 = vld [vmem:[%s13401_s14 + $0x20] sm:$0xff]  }
0xb3e3   :  { %v6613_v15 = vld [vmem:[#allocation13 + $0x70] sm:$0xff]  ;;  %v5423_v56 = vpop.permute.xlu0 %5422 }
0xb3e4   :  { %v10770_v34 = vpop.eup %10769  ;;  %6614 = vst.msk [vmem:[#allocation14 + $0x8] sm:$0xff] %vm422_vm4, %v6613_v15  ;;  %5425 = vst.msk [vmem:[#allocation13] sm:$0xff] %vm422_vm4, %v5423_v56 }
0xb3e5   :  { %6602 = vrot.lane.b32.xlu1 %v10770_v34, %s10782_s0  ;;  %v10241_v34 = vld [vmem:[%s13402_s13 + $0x28] sm:$0xff]  }
0xb3e7   :  { %v12726_v18 = vld [vmem:[#allocation13 + $0x60] sm:$0xff]  ;;  %v6213_v1 = vpop.permute.xlu0 %6212 }
0xb3e8   :  { %6618 = vst.msk [vmem:[#allocation14 + $0x18] sm:$0xff] %vm422_vm4, %v12726_v18  ;;  %6215 = vst.msk [vmem:[#allocation13 + $0x50] sm:$0xff] %vm422_vm4, %v6213_v1  ;;  %v10242_v1 = vld [vmem:[%s13401_s14 + $0x28] sm:$0xff]  }
0xb3eb   :  { %v12731_v44 = vld [vmem:[#allocation13] sm:$0xff]  ;;  %v5581_v49 = vpop.permute.xlu0 %5580 }
0xb3ec   :  { %6642 = vst.msk [vmem:[#allocation14 + $0x78] sm:$0xff] %vm422_vm4, %v12731_v44  ;;  %5583 = vst.msk [vmem:[#allocation13 + $0x10] sm:$0xff] %vm422_vm4, %v5581_v49 }
0xb3ef   :  { %v12736_v53 = vld [vmem:[#allocation13 + $0x50] sm:$0xff]  ;;  %v6055_v37 = vpop.permute.xlu0 %6054  ;;  %v6717_v51 = vld [vmem:[#allocation14 + $0x18] sm:$0xff] }
0xb3f0   :  { %6622 = vst.msk [vmem:[#allocation14 + $0x28] sm:$0xff] %vm422_vm4, %v12736_v53  ;;  %6057 = vst.msk [vmem:[#allocation13 + $0x40] sm:$0xff] %vm422_vm4, %v6055_v37 }
0xb3f3   :  { %v12741_v32 = vld [vmem:[#allocation13 + $0x10] sm:$0xff]  ;;  %v5739_v5 = vpop.permute.xlu0 %5738 }
0xb3f4   :  { %6638 = vst.msk [vmem:[#allocation14 + $0x68] sm:$0xff] %vm422_vm4, %v12741_v32  ;;  %5741 = vst.msk [vmem:[#allocation13 + $0x20] sm:$0xff] %vm422_vm4, %v5739_v5 }
0xb3f7   :  { %v12746_v28 = vld [vmem:[#allocation13 + $0x40] sm:$0xff]  ;;  %v5897_v40 = vpop.permute.xlu0 %5896  ;;  %v6719_v9 = vld [vmem:[#allocation14 + $0x28] sm:$0xff] }
0xb3f8   :  { %6626 = vst.msk [vmem:[#allocation14 + $0x38] sm:$0xff] %vm422_vm4, %v12746_v28  ;;  %5899 = vst.msk [vmem:[#allocation13 + $0x30] sm:$0xff] %vm422_vm4, %v5897_v40 }
0xb3fb   :  { %v12751_v47 = vld [vmem:[#allocation13 + $0x20] sm:$0xff] }
0xb3fc   :  { %6634 = vst.msk [vmem:[#allocation14 + $0x58] sm:$0xff] %vm422_vm4, %v12751_v47 }
0xb3ff   :  { %v12755_v21 = vld [vmem:[#allocation13 + $0x30] sm:$0xff]  ;;  %v6721_v29 = vld [vmem:[#allocation14 + $0x38] sm:$0xff] }
0xb400   :  { %6630 = vst.msk [vmem:[#allocation14 + $0x48] sm:$0xff] %vm422_vm4, %v12755_v21 }
0xb403   :  { %v7313_v55 = vld [vmem:[#allocation14 + $0x58] sm:$0xff] }
0xb407   :  { %v6723_v14 = vld [vmem:[#allocation14 + $0x48] sm:$0xff] }
0xb457   :  { %v6603_v50 = vpop.permute.xlu1 %6602 }
0xb458   :  { %v6605_v42 = vmul.f32 %v6603_v50, %v6588_v41  ;;  %v10244_v50 = vld [vmem:[%s13401_s14 + $0x30] sm:$0xff]  }
0xb45a   :  { %6607 = vrot.lane.b32.xlu1 %v6605_v42, %s10783_s30  ;;  %v10246_v42 = vld [vmem:[%s13401_s14 + $0x38] sm:$0xff]  }
0xb45e   :  { %6449 = vrot.lane.b32.xlu1 %v12683_v13, %s10783_s30 }
0xb462   :  { %5501 = vrot.lane.b32.xlu1 %v12465_v46, %s10783_s30 }
0xb466   :  { %6291 = vrot.lane.b32.xlu1 %v12645_v2, %s10783_s30 }
0xb46a   :  { %5659 = vrot.lane.b32.xlu1 %v12501_v7, %s10783_s30 }
0xb46e   :  { %6133 = vrot.lane.b32.xlu1 %v12609_v54, %s10783_s30 }
0xb472   :  { %5817 = vrot.lane.b32.xlu1 %v12537_v31, %s10783_s30  ;;  %v12799_v31 = vld [vmem:[#allocation14 + $0x8] sm:$0xff] }
0xb476   :  { %5975 = vrot.lane.b32.xlu1 %v12573_v36, %s10783_s30  ;;  %v10235_v36 = vld [vmem:[%s13402_s13 + $0x10] sm:$0xff]  }
0xb4cc   :  { %v6608_v13 = vpop.permute.xlu1 %6607 }
0xb4cd   :  { %6610 = vst.msk [vmem:[#allocation13 + $0x78] sm:$0xff] %vm422_vm4, %v6608_v13 }
0xb4d0   :  { %v6450_v57 = vpop.permute.xlu1 %6449 }
0xb4d1   :  { %6452 = vst.msk [vmem:[#allocation13 + $0x68] sm:$0xff] %vm422_vm4, %v6450_v57  ;;  %v10247_v57 = vld [vmem:[%s13402_s13 + $0x40] sm:$0xff]  }
0xb4d4   :  { %v6611_v46 = vld [vmem:[#allocation13 + $0x78] sm:$0xff]  ;;  %v5502_v2 = vpop.permute.xlu1 %5501 }
0xb4d5   :  { %6612 = vst.msk [vmem:[#allocation14] sm:$0xff] %vm422_vm4, %v6611_v46  ;;  %5504 = vst.msk [vmem:[#allocation13 + $0x8] sm:$0xff] %vm422_vm4, %v5502_v2  ;;  %v10249_v46 = vld [vmem:[%s13402_s13 + $0x48] sm:$0xff]  }
0xb4d6   :  { %v10250_v2 = vld [vmem:[%s13401_s14 + $0x48] sm:$0xff]  }
0xb4d8   :  { %v12794_v7 = vld [vmem:[#allocation13 + $0x68] sm:$0xff]  ;;  %v6292_v54 = vpop.permute.xlu1 %6291 }
0xb4d9   :  { %6616 = vst.msk [vmem:[#allocation14 + $0x10] sm:$0xff] %vm422_vm4, %v12794_v7  ;;  %6294 = vst.msk [vmem:[#allocation13 + $0x58] sm:$0xff] %vm422_vm4, %v6292_v54 }
0xb4dc   :  { %v12804_v45 = vld [vmem:[#allocation13 + $0x8] sm:$0xff]  ;;  %v5660_v59 = vpop.permute.xlu1 %5659  ;;  %v6714_v10 = vld [vmem:[#allocation14] sm:$0xff] }
0xb4dd   :  { %6640 = vst.msk [vmem:[#allocation14 + $0x70] sm:$0xff] %vm422_vm4, %v12804_v45  ;;  %5662 = vst.msk [vmem:[#allocation13 + $0x18] sm:$0xff] %vm422_vm4, %v5660_v59  ;;  %v6724_v0 = vpack.c.bf16 %v12799_v31, %v6714_v10  ;;  %v6709_v58 = vpack.c.bf16 %v12804_v45, %v12731_v44  ;;  %v6939_v15 = vpack.c.bf16 %v12741_v32, %v12804_v45  ;;  %v10251_v45 = vld [vmem:[%s13402_s13 + $0x50] sm:$0xff]   ;;  %v10253_v10 = vld [vmem:[%s13402_s13 + $0x58] sm:$0xff]  }
0xb4de   :  { %v10252_v59 = vld [vmem:[%s13401_s14 + $0x50] sm:$0xff]  }
0xb4df   :  { %9809 = vmatmul.mubr.msk.bf16.vlgmr.msra.gmra.mrb[128].mxu0 %vm422_vm4, %v6724_v0  ;;  %9833 = vmatmul.mubr.msk.bf16.vlgmr.msra.gmra.mrb[192].mxu1 %vm422_vm4, %v6709_v58  ;;  %v13155_v0 = vld [vmem:[#allocation14 + $0x68] sm:$0xff]  ;;  %v7693_v58 = vpack.c.bf16 %v12794_v7, %v12726_v18 }
0xb4e0   :  { %v12817_v27 = vld [vmem:[#allocation13 + $0x58] sm:$0xff]  ;;  %9853 = vmatpush3.bf16.msra.mxu0 %v10235_v36  ;;  %v6134_v11 = vpop.permute.xlu1 %6133  ;;  %9877 = vmatpush3.bf16.msra.mxu1 %v10236_v20  ;;  %v6716_v6 = vld [vmem:[#allocation14 + $0x10] sm:$0xff] }
0xb4e1   :  { %6620 = vst.msk [vmem:[#allocation14 + $0x20] sm:$0xff] %vm422_vm4, %v12817_v27  ;;  %6136 = vst.msk [vmem:[#allocation13 + $0x48] sm:$0xff] %vm422_vm4, %v6134_v11  ;;  %9812 = vmatprep.mubr.msk.bf16.mxu0 %vm10780_vm2, %v10779_v3  ;;  %9836 = vmatprep.mubr.msk.bf16.mxu1 %vm10780_vm2, %v10779_v3  ;;  %v12839_v22 = vpack.c.bf16 %v6717_v51, %v6716_v6  ;;  %v7064_v56 = vpack.c.bf16 %v6716_v6, %v12799_v31  ;;  %v10254_v20 = vld [vmem:[%s13401_s14 + $0x58] sm:$0xff]   ;;  %v10258_v6 = vld [vmem:[%s13401_s14 + $0x68] sm:$0xff]  }
0xb4e2   :  { %9854 = vmatprep.subr.bf16.mxu0 %v10779_v3  ;;  %9878 = vmatprep.subr.bf16.mxu1 %v10779_v3  ;;  %v13036_v48 = vpack.c.bf16 %v12817_v27, %v12736_v53  ;;  %v7443_v31 = vpack.c.bf16 %v12726_v18, %v12817_v27  ;;  %v10256_v18 = vld [vmem:[%s13401_s14 + $0x60] sm:$0xff]  }
0xb4e4   :  { %v12834_v60 = vld [vmem:[#allocation13 + $0x18] sm:$0xff]  ;;  %v5818_v4 = vpop.permute.xlu1 %5817  ;;  %9855 = vmatpush3.bf16.msra.mxu0 %v10237_v62  ;;  %9879 = vmatpush3.bf16.msra.mxu1 %v10238_v8  ;;  %v10255_v62 = vld [vmem:[%s13402_s13 + $0x60] sm:$0xff]   ;;  %v10257_v8 = vld [vmem:[%s13402_s13 + $0x68] sm:$0xff]  }
0xb4e5   :  { %6636 = vst.msk [vmem:[#allocation14 + $0x60] sm:$0xff] %vm422_vm4, %v12834_v60  ;;  %5820 = vst.msk [vmem:[#allocation13 + $0x28] sm:$0xff] %vm422_vm4, %v5818_v4  ;;  %v12843_v26 = vpack.c.bf16 %v12834_v60, %v12741_v32  ;;  %9900 = vmatprep.subr.bf16.mxu0 %v10779_v3  ;;  %9924 = vmatprep.subr.bf16.mxu1 %v10779_v3  ;;  %v12931_v44 = vpack.c.bf16 %v12751_v47, %v12834_v60 }
0xb4e7   :  { %9813 = vmatmul.mubr.msk.bf16.gmra.mrb[132].mxu0 %vm422_vm4, %v12839_v22  ;;  %9837 = vmatmul.mubr.msk.bf16.gmra.mrb[196].mxu1 %vm422_vm4, %v12843_v26 }
0xb4e8   :  { %v12851_v63 = vld [vmem:[#allocation13 + $0x48] sm:$0xff]  ;;  %v5976_v16 = vpop.permute.xlu1 %5975  ;;  %9816 = vmatprep.mubr.msk.bf16.mxu0 %vm10780_vm2, %v10779_v3  ;;  %9840 = vmatprep.mubr.msk.bf16.mxu1 %vm10780_vm2, %v10779_v3  ;;  %v6718_v25 = vld [vmem:[#allocation14 + $0x20] sm:$0xff] }
0xb4e9   :  { %6624 = vst.msk [vmem:[#allocation14 + $0x30] sm:$0xff] %vm422_vm4, %v12851_v63  ;;  %5978 = vst.msk [vmem:[#allocation13 + $0x38] sm:$0xff] %vm422_vm4, %v5976_v16  ;;  %v12861_v17 = vpack.c.bf16 %v6719_v9, %v6718_v25  ;;  %v12896_v38 = vpack.c.bf16 %v12851_v63, %v12746_v28  ;;  %v12933_v49 = vpack.c.bf16 %v6718_v25, %v6717_v51 }
0xb4ec   :  { %v6631_v30 = vld [vmem:[#allocation13 + $0x28] sm:$0xff]  ;;  %v7563_v54 = vld [vmem:[#allocation14 + $0x60] sm:$0xff] }
0xb4ed   :  { %6632 = vst.msk [vmem:[#allocation14 + $0x50] sm:$0xff] %vm422_vm4, %v6631_v30  ;;  %v12864_v33 = vpack.c.bf16 %v6631_v30, %v12751_v47  ;;  %v12946_v37 = vpack.c.bf16 %v12755_v21, %v6631_v30  ;;  %v13098_v36 = vpack.c.bf16 %v7563_v54, %v7313_v55  ;;  %v13160_v11 = vpack.c.bf16 %v13155_v0, %v7563_v54 }
0xb4ef   :  { %9817 = vmatmul.mubr.msk.bf16.gmra.mrb[136].mxu0 %vm422_vm4, %v12861_v17  ;;  %9841 = vmatmul.mubr.msk.bf16.gmra.mrb[200].mxu1 %vm422_vm4, %v12864_v33 }
0xb4f0   :  { %v12870_v35 = vld [vmem:[#allocation13 + $0x38] sm:$0xff]  ;;  %9820 = vmatprep.mubr.msk.bf16.mxu0 %vm10780_vm2, %v10779_v3  ;;  %9844 = vmatprep.mubr.msk.bf16.mxu1 %vm10780_vm2, %v10779_v3  ;;  %v6720_v19 = vld [vmem:[#allocation14 + $0x30] sm:$0xff] }
0xb4f1   :  { %6628 = vst.msk [vmem:[#allocation14 + $0x40] sm:$0xff] %vm422_vm4, %v12870_v35  ;;  %v12878_v41 = vpack.c.bf16 %v6721_v29, %v6720_v19  ;;  %v12882_v12 = vpack.c.bf16 %v12870_v35, %v12755_v21  ;;  %v12948_v32 = vpack.c.bf16 %v6720_v19, %v6719_v9  ;;  %v12960_v5 = vpack.c.bf16 %v12746_v28, %v12870_v35 }
0xb4f2   :  { %v12974_v21 = vpack.c.bf16 %v12736_v53, %v12851_v63  ;;  %v10248_v53 = vld [vmem:[%s13401_s14 + $0x40] sm:$0xff]  }
0xb4f4   :  { %v7063_v47 = vld [vmem:[#allocation14 + $0x50] sm:$0xff] }
0xb4f5   :  { %v12976_v28 = vpack.c.bf16 %v7063_v47, %v6723_v14  ;;  %v13038_v13 = vpack.c.bf16 %v7313_v55, %v7063_v47  ;;  %v13230_v47 = vld [vmem:[#allocation13 + $0x70] sm:$0xff] }
0xb4f7   :  { %9821 = vmatmul.mubr.msk.bf16.gmra.mrb[140].mxu0 %vm422_vm4, %v12878_v41  ;;  %9845 = vmatmul.mubr.msk.bf16.gmra.mrb[204].mxu1 %vm422_vm4, %v12882_v12 }
0xb4f8   :  { %9824 = vmatprep.mubr.msk.bf16.mxu0 %vm10780_vm2, %v10779_v3  ;;  %9848 = vmatprep.mubr.msk.bf16.mxu1 %vm10780_vm2, %v10779_v3  ;;  %v6722_v43 = vld [vmem:[#allocation14 + $0x40] sm:$0xff] }
0xb4f9   :  { %v12892_v24 = vpack.c.bf16 %v6723_v14, %v6722_v43  ;;  %v12962_v40 = vpack.c.bf16 %v6722_v43, %v6721_v29 }
0xb4ff   :  { %9825 = vmatmul.mubr.msk.bf16.gmra.mrb[144].mxu0 %vm422_vm4, %v12892_v24  ;;  %9849 = vmatmul.mubr.msk.bf16.gmra.mrb[208].mxu1 %vm422_vm4, %v12896_v38 }
0xb500   :  { %9856 = vmatprep.mubr.msk.bf16.mxu0 %vm10780_vm2, %v10779_v3  ;;  %9880 = vmatprep.mubr.msk.bf16.mxu1 %vm10780_vm2, %v10779_v3 }
0xb507   :  { %9857 = vmatmul.mubr.msk.bf16.vlgmr.msra.gmra.mrb[148].mxu0 %vm422_vm4, %v6939_v15  ;;  %9881 = vmatmul.mubr.msk.bf16.vlgmr.msra.gmra.mrb[212].mxu1 %vm422_vm4, %v7064_v56 }
0xb508   :  { %9901 = vmatpush3.bf16.msra.mxu0 %v10239_v52  ;;  %9925 = vmatpush3.bf16.msra.mxu1 %v10240_v61  ;;  %v13213_v52 = vld [vmem:[#allocation13 + $0x60] sm:$0xff] }
0xb509   :  { %9860 = vmatprep.mubr.msk.bf16.mxu0 %vm10780_vm2, %v10779_v3  ;;  %9884 = vmatprep.mubr.msk.bf16.mxu1 %vm10780_vm2, %v10779_v3 }
0xb50a   :  { %9902 = vmatprep.subr.bf16.mxu0 %v10779_v3  ;;  %9926 = vmatprep.subr.bf16.mxu1 %v10779_v3 }
0xb50c   :  { %9903 = vmatpush3.bf16.msra.mxu0 %v10241_v34  ;;  %9927 = vmatpush3.bf16.msra.mxu1 %v10242_v1  ;;  %v7942_v34 = vpack.c.bf16 %v13213_v52, %v12817_v27 }
0xb50d   :  { %9948 = vmatprep.subr.bf16.mxu0 %v10779_v3  ;;  %9972 = vmatprep.subr.bf16.mxu1 %v10779_v3 }
0xb50f   :  { %9861 = vmatmul.mubr.msk.bf16.gmra.mrb[152].mxu0 %vm422_vm4, %v12931_v44  ;;  %9885 = vmatmul.mubr.msk.bf16.gmra.mrb[216].mxu1 %vm422_vm4, %v12933_v49 }
0xb510   :  { %9864 = vmatprep.mubr.msk.bf16.mxu0 %vm10780_vm2, %v10779_v3  ;;  %9888 = vmatprep.mubr.msk.bf16.mxu1 %vm10780_vm2, %v10779_v3 }
0xb517   :  { %9865 = vmatmul.mubr.msk.bf16.gmra.mrb[156].mxu0 %vm422_vm4, %v12946_v37  ;;  %9889 = vmatmul.mubr.msk.bf16.gmra.mrb[220].mxu1 %vm422_vm4, %v12948_v32 }
0xb518   :  { %9868 = vmatprep.mubr.msk.bf16.mxu0 %vm10780_vm2, %v10779_v3  ;;  %9892 = vmatprep.mubr.msk.bf16.mxu1 %vm10780_vm2, %v10779_v3 }
0xb51f   :  { %9869 = vmatmul.mubr.msk.bf16.gmra.mrb[160].mxu0 %vm422_vm4, %v12960_v5  ;;  %9893 = vmatmul.mubr.msk.bf16.gmra.mrb[224].mxu1 %vm422_vm4, %v12962_v40 }
0xb520   :  { %9872 = vmatprep.mubr.msk.bf16.mxu0 %vm10780_vm2, %v10779_v3  ;;  %9896 = vmatprep.mubr.msk.bf16.mxu1 %vm10780_vm2, %v10779_v3 }
0xb527   :  { %9873 = vmatmul.mubr.msk.bf16.gmra.mrb[164].mxu0 %vm422_vm4, %v12974_v21  ;;  %9897 = vmatmul.mubr.msk.bf16.gmra.mrb[228].mxu1 %vm422_vm4, %v12976_v28 }
0xb528   :  { %9904 = vmatprep.mubr.msk.bf16.mxu0 %vm10780_vm2, %v10779_v3  ;;  %9928 = vmatprep.mubr.msk.bf16.mxu1 %vm10780_vm2, %v10779_v3 }
0xb52f   :  { %9905 = vmatmul.mubr.msk.bf16.vlgmr.msra.gmra.mrb[168].mxu0 %vm422_vm4, %v12843_v26  ;;  %9929 = vmatmul.mubr.msk.bf16.vlgmr.msra.gmra.mrb[232].mxu1 %vm422_vm4, %v12839_v22 }
0xb530   :  { %9949 = vmatpush3.bf16.msra.mxu0 %v10243_v23  ;;  %9973 = vmatpush3.bf16.msra.mxu1 %v10244_v50  ;;  %v7943_v50 = vpack.c.bf16 %v13230_v47, %v12794_v7 }
0xb531   :  { %9908 = vmatprep.mubr.msk.bf16.mxu0 %vm10780_vm2, %v10779_v3  ;;  %9932 = vmatprep.mubr.msk.bf16.mxu1 %vm10780_vm2, %v10779_v3 }
0xb532   :  { %9950 = vmatprep.subr.bf16.mxu0 %v10779_v3  ;;  %9974 = vmatprep.subr.bf16.mxu1 %v10779_v3 }
0xb534   :  { %9951 = vmatpush3.bf16.msra.mxu0 %v10245_v39  ;;  %9975 = vmatpush3.bf16.msra.mxu1 %v10246_v42 }
0xb535   :  { %9996 = vmatprep.subr.bf16.mxu0 %v10779_v3  ;;  %10020 = vmatprep.subr.bf16.mxu1 %v10779_v3 }
0xb537   :  { %9909 = vmatmul.mubr.msk.bf16.gmra.mrb[172].mxu0 %vm422_vm4, %v12864_v33  ;;  %9933 = vmatmul.mubr.msk.bf16.gmra.mrb[236].mxu1 %vm422_vm4, %v12861_v17 }
0xb538   :  { %9912 = vmatprep.mubr.msk.bf16.mxu0 %vm10780_vm2, %v10779_v3  ;;  %9936 = vmatprep.mubr.msk.bf16.mxu1 %vm10780_vm2, %v10779_v3 }
0xb53f   :  { %9913 = vmatmul.mubr.msk.bf16.gmra.mrb[176].mxu0 %vm422_vm4, %v12882_v12  ;;  %9937 = vmatmul.mubr.msk.bf16.gmra.mrb[240].mxu1 %vm422_vm4, %v12878_v41 }
0xb540   :  { %9916 = vmatprep.mubr.msk.bf16.mxu0 %vm10780_vm2, %v10779_v3  ;;  %9940 = vmatprep.mubr.msk.bf16.mxu1 %vm10780_vm2, %v10779_v3 }
0xb547   :  { %9917 = vmatmul.mubr.msk.bf16.gmra.mrb[180].mxu0 %vm422_vm4, %v12896_v38  ;;  %9941 = vmatmul.mubr.msk.bf16.gmra.mrb[244].mxu1 %vm422_vm4, %v12892_v24 }
0xb548   :  { %9920 = vmatprep.mubr.msk.bf16.mxu0 %vm10780_vm2, %v10779_v3  ;;  %9944 = vmatprep.mubr.msk.bf16.mxu1 %vm10780_vm2, %v10779_v3 }
0xb54f   :  { %9921 = vmatmul.mubr.msk.bf16.gmra.mrb[184].mxu0 %vm422_vm4, %v13036_v48  ;;  %9945 = vmatmul.mubr.msk.bf16.gmra.mrb[248].mxu1 %vm422_vm4, %v13038_v13 }
0xb550   :  { %9952 = vmatprep.mubr.msk.bf16.mxu0 %vm10780_vm2, %v10779_v3  ;;  %9976 = vmatprep.mubr.msk.bf16.mxu1 %vm10780_vm2, %v10779_v3 }
0xb557   :  { %9953 = vmatmul.mubr.msk.bf16.vlgmr.msra.gmra.mrb[188].mxu0 %vm422_vm4, %v12931_v44  ;;  %9977 = vmatmul.mubr.msk.bf16.vlgmr.msra.gmra.mrb[252].mxu1 %vm422_vm4, %v12933_v49  ;;  %v13226_v49 = vld [vmem:[#allocation14 + $0x70] sm:$0xff] }
0xb558   :  { %9997 = vmatpush3.bf16.msra.mxu0 %v10247_v57  ;;  %10021 = vmatpush3.bf16.msra.mxu1 %v10248_v53  ;;  %v8068_v39 = vpack.c.bf16 %v13226_v49, %v13155_v0 }
0xb559   :  { %9956 = vmatprep.mubr.msk.bf16.mxu0 %vm10780_vm2, %v10779_v3  ;;  %9980 = vmatprep.mubr.msk.bf16.mxu1 %vm10780_vm2, %v10779_v3 }
0xb55a   :  { %9998 = vmatprep.subr.bf16.mxu0 %v10779_v3  ;;  %10022 = vmatprep.subr.bf16.mxu1 %v10779_v3 }
0xb55c   :  { %9999 = vmatpush3.bf16.msra.mxu0 %v10249_v46  ;;  %10023 = vmatpush3.bf16.msra.mxu1 %v10250_v2  ;;  %v8179_v2 = vld [vmem:[#allocation13 + $0x30] sm:$0xff] }
0xb55d   :  { %10044 = vmatprep.subr.bf16.mxu0 %v10779_v3  ;;  %10068 = vmatprep.subr.bf16.mxu1 %v10779_v3 }
0xb55f   :  { %9957 = vmatmul.mubr.msk.bf16.gmra.mrb[192].mxu0 %vm422_vm4, %v12946_v37  ;;  %9981 = vmatmul.mubr.msk.bf16.gmra.mrb[0].mxu1 %vm422_vm4, %v12948_v32 }
0xb560   :  { %9960 = vmatprep.mubr.msk.bf16.mxu0 %vm10780_vm2, %v10779_v3  ;;  %9984 = vmatprep.mubr.msk.bf16.mxu1 %vm10780_vm2, %v10779_v3 }
0xb567   :  { %9961 = vmatmul.mubr.msk.bf16.gmra.mrb[196].mxu0 %vm422_vm4, %v12960_v5  ;;  %9985 = vmatmul.mubr.msk.bf16.gmra.mrb[4].mxu1 %vm422_vm4, %v12962_v40 }
0xb568   :  { %9964 = vmatprep.mubr.msk.bf16.mxu0 %vm10780_vm2, %v10779_v3  ;;  %9988 = vmatprep.mubr.msk.bf16.mxu1 %vm10780_vm2, %v10779_v3 }
0xb56f   :  { %9965 = vmatmul.mubr.msk.bf16.gmra.mrb[200].mxu0 %vm422_vm4, %v12974_v21  ;;  %9989 = vmatmul.mubr.msk.bf16.gmra.mrb[8].mxu1 %vm422_vm4, %v12976_v28 }
0xb570   :  { %9968 = vmatprep.mubr.msk.bf16.mxu0 %vm10780_vm2, %v10779_v3  ;;  %9992 = vmatprep.mubr.msk.bf16.mxu1 %vm10780_vm2, %v10779_v3 }
0xb577   :  { %9969 = vmatmul.mubr.msk.bf16.gmra.mrb[204].mxu0 %vm422_vm4, %v7443_v31  ;;  %9993 = vmatmul.mubr.msk.bf16.gmra.mrb[12].mxu1 %vm422_vm4, %v13098_v36 }
0xb578   :  { %10000 = vmatprep.mubr.msk.bf16.mxu0 %vm10780_vm2, %v10779_v3  ;;  %10024 = vmatprep.mubr.msk.bf16.mxu1 %vm10780_vm2, %v10779_v3 }
0xb57f   :  { %10001 = vmatmul.mubr.msk.bf16.vlgmr.msra.gmra.mrb[208].mxu0 %vm422_vm4, %v12864_v33  ;;  %10025 = vmatmul.mubr.msk.bf16.vlgmr.msra.gmra.mrb[16].mxu1 %vm422_vm4, %v12861_v17 }
0xb580   :  { %10045 = vmatpush3.bf16.msra.mxu0 %v10251_v45  ;;  %10069 = vmatpush3.bf16.msra.mxu1 %v10252_v59  ;;  %v8189_v45 = vpack.c.bf16 %v12870_v35, %v8179_v2  ;;  %v8181_v35 = vld [vmem:[#allocation13 + $0x40] sm:$0xff] }
0xb581   :  { %10004 = vmatprep.mubr.msk.bf16.mxu0 %vm10780_vm2, %v10779_v3  ;;  %10028 = vmatprep.mubr.msk.bf16.mxu1 %vm10780_vm2, %v10779_v3 }
0xb582   :  { %10046 = vmatprep.subr.bf16.mxu0 %v10779_v3  ;;  %10070 = vmatprep.subr.bf16.mxu1 %v10779_v3 }
0xb584   :  { %10047 = vmatpush3.bf16.msra.mxu0 %v10253_v10  ;;  %10071 = vmatpush3.bf16.msra.mxu1 %v10254_v20 }
0xb585   :  { %10092 = vmatprep.subr.bf16.mxu0 %v10779_v3  ;;  %10116 = vmatprep.subr.bf16.mxu1 %v10779_v3 }
0xb587   :  { %10005 = vmatmul.mubr.msk.bf16.gmra.mrb[212].mxu0 %vm422_vm4, %v12882_v12  ;;  %10029 = vmatmul.mubr.msk.bf16.gmra.mrb[20].mxu1 %vm422_vm4, %v12878_v41 }
0xb588   :  { %10008 = vmatprep.mubr.msk.bf16.mxu0 %vm10780_vm2, %v10779_v3  ;;  %10032 = vmatprep.mubr.msk.bf16.mxu1 %vm10780_vm2, %v10779_v3 }
0xb58f   :  { %10009 = vmatmul.mubr.msk.bf16.gmra.mrb[216].mxu0 %vm422_vm4, %v12896_v38  ;;  %10033 = vmatmul.mubr.msk.bf16.gmra.mrb[24].mxu1 %vm422_vm4, %v12892_v24 }
0xb590   :  { %10012 = vmatprep.mubr.msk.bf16.mxu0 %vm10780_vm2, %v10779_v3  ;;  %10036 = vmatprep.mubr.msk.bf16.mxu1 %vm10780_vm2, %v10779_v3 }
0xb597   :  { %10013 = vmatmul.mubr.msk.bf16.gmra.mrb[220].mxu0 %vm422_vm4, %v13036_v48  ;;  %10037 = vmatmul.mubr.msk.bf16.gmra.mrb[28].mxu1 %vm422_vm4, %v13038_v13 }
0xb598   :  { %10016 = vmatprep.mubr.msk.bf16.mxu0 %vm10780_vm2, %v10779_v3  ;;  %10040 = vmatprep.mubr.msk.bf16.mxu1 %vm10780_vm2, %v10779_v3 }
0xb59f   :  { %10017 = vmatmul.mubr.msk.bf16.gmra.mrb[224].mxu0 %vm422_vm4, %v7693_v58  ;;  %10041 = vmatmul.mubr.msk.bf16.gmra.mrb[32].mxu1 %vm422_vm4, %v13160_v11 }
0xb5a0   :  { %10048 = vmatprep.mubr.msk.bf16.mxu0 %vm10780_vm2, %v10779_v3  ;;  %10072 = vmatprep.mubr.msk.bf16.mxu1 %vm10780_vm2, %v10779_v3 }
0xb5a7   :  { %10049 = vmatmul.mubr.msk.bf16.vlgmr.msra.gmra.mrb[228].mxu0 %vm422_vm4, %v12946_v37  ;;  %10073 = vmatmul.mubr.msk.bf16.vlgmr.msra.gmra.mrb[36].mxu1 %vm422_vm4, %v12948_v32 }
0xb5a8   :  { %10093 = vmatpush3.bf16.msra.mxu0 %v10255_v62  ;;  %10117 = vmatpush3.bf16.msra.mxu1 %v10256_v18 }
0xb5a9   :  { %10052 = vmatprep.mubr.msk.bf16.mxu0 %vm10780_vm2, %v10779_v3  ;;  %10076 = vmatprep.mubr.msk.bf16.mxu1 %vm10780_vm2, %v10779_v3 }
0xb5aa   :  { %10094 = vmatprep.subr.bf16.mxu0 %v10779_v3  ;;  %10118 = vmatprep.subr.bf16.mxu1 %v10779_v3 }
0xb5ac   :  { %10095 = vmatpush3.bf16.msra.mxu0 %v10257_v8  ;;  %10119 = vmatpush3.bf16.msra.mxu1 %v10258_v6 }
0xb5af   :  { %10053 = vmatmul.mubr.msk.bf16.gmra.mrb[232].mxu0 %vm422_vm4, %v12960_v5  ;;  %10077 = vmatmul.mubr.msk.bf16.gmra.mrb[40].mxu1 %vm422_vm4, %v12962_v40 }
0xb5b0   :  { %10056 = vmatprep.mubr.msk.bf16.mxu0 %vm10780_vm2, %v10779_v3  ;;  %10080 = vmatprep.mubr.msk.bf16.mxu1 %vm10780_vm2, %v10779_v3 }
0xb5b2   :  { %v6790_v60 = vpop.f32.mrb[128].mxu0  ;;  %v6890_v4 = vpop.f32.mrb[192].mxu1 }
0xb5b3   :  { %v13199_v51 = vadd.f32 %v6890_v4, %v6790_v60  ;;  %v9810_v22 = vpop.f32.mrb[129].mxu0  ;;  %v9834_v26 = vpop.f32.mrb[193].mxu1 }
0xb5b4   :  { %v6793_v16 = vpop.f32.mrb[130].mxu0  ;;  %v6893_v25 = vpop.f32.mrb[194].mxu1  ;;  %v8184_v26 = vld [vmem:[#allocation13 + $0x58] sm:$0xff] }
0xb5b5   :  { %v13201_v30 = vadd.f32 %v6893_v25, %v6793_v16  ;;  %v9811_v9 = vpop.f32.mrb[131].mxu0  ;;  %v9835_v17 = vpop.f32.mrb[195].mxu1 }
0xb5b7   :  { %10057 = vmatmul.mubr.msk.bf16.gmra.mrb[236].mxu0 %vm422_vm4, %v12974_v21  ;;  %10081 = vmatmul.mubr.msk.bf16.gmra.mrb[44].mxu1 %vm422_vm4, %v12976_v28 }
0xb5b8   :  { %10060 = vmatprep.mubr.msk.bf16.mxu0 %vm10780_vm2, %v10779_v3  ;;  %10084 = vmatprep.mubr.msk.bf16.mxu1 %vm10780_vm2, %v10779_v3 }
0xb5ba   :  { %v6798_v33 = vpop.f32.mrb[132].mxu0  ;;  %v6898_v19 = vpop.f32.mrb[196].mxu1 }
0xb5bb   :  { %v13211_v29 = vadd.f32 %v6898_v19, %v6798_v33  ;;  %v9814_v12 = vpop.f32.mrb[133].mxu0  ;;  %v9838_v43 = vpop.f32.mrb[197].mxu1  ;;  %v8183_v33 = vld [vmem:[#allocation13 + $0x50] sm:$0xff] }
0xb5bc   :  { %v6801_v14 = vpop.f32.mrb[134].mxu0  ;;  %v6901_v38 = vpop.f32.mrb[198].mxu1 }
0xb5bd   :  { %v13215_v61 = vadd.f32 %v6901_v38, %v6801_v14  ;;  %v9815_v15 = vpop.f32.mrb[135].mxu0  ;;  %v9839_v56 = vpop.f32.mrb[199].mxu1  ;;  %v8191_v14 = vpack.c.bf16 %v8184_v26, %v8183_v33 }
0xb5be   :  { %v8186_v56 = vld [vmem:[#allocation13 + $0x68] sm:$0xff] }
0xb5bf   :  { %10061 = vmatmul.mubr.msk.bf16.gmra.mrb[240].mxu0 %vm422_vm4, %v7942_v34  ;;  %10085 = vmatmul.mubr.msk.bf16.gmra.mrb[48].mxu1 %vm422_vm4, %v13098_v36 }
0xb5c0   :  { %10064 = vmatprep.mubr.msk.bf16.mxu0 %vm10780_vm2, %v10779_v3  ;;  %10088 = vmatprep.mubr.msk.bf16.mxu1 %vm10780_vm2, %v10779_v3 }
0xb5c2   :  { %v6806_v1 = vpop.f32.mrb[136].mxu0  ;;  %v6906_v44 = vpop.f32.mrb[200].mxu1 }
0xb5c3   :  { %v13228_v37 = vadd.f32 %v6906_v44, %v6806_v1  ;;  %v9818_v32 = vpop.f32.mrb[137].mxu0  ;;  %v9842_v5 = vpop.f32.mrb[201].mxu1 }
0xb5c4   :  { %v6809_v27 = vpop.f32.mrb[138].mxu0  ;;  %v6909_v40 = vpop.f32.mrb[202].mxu1 }
0xb5c5   :  { %v13232_v21 = vadd.f32 %v6909_v40, %v6809_v27  ;;  %v9819_v28 = vpop.f32.mrb[139].mxu0  ;;  %v9843_v23 = vpop.f32.mrb[203].mxu1 }
0xb5c6   :  { %v8192_v28 = vpack.c.bf16 %v8186_v56, %v13213_v52 }
0xb5c7   :  { %10065 = vmatmul.mubr.msk.bf16.gmra.mrb[244].mxu0 %vm422_vm4, %v7943_v50  ;;  %10089 = vmatmul.mubr.msk.bf16.gmra.mrb[52].mxu1 %vm422_vm4, %v8068_v39 }
0xb5c8   :  { %10096 = vmatprep.mubr.msk.bf16.mxu0 %vm10780_vm2, %v10779_v3  ;;  %10120 = vmatprep.mubr.msk.bf16.mxu1 %vm10780_vm2, %v10779_v3 }
0xb5ca   :  { %v6814_v42 = vpop.f32.mrb[140].mxu0  ;;  %v6914_v55 = vpop.f32.mrb[204].mxu1 }
0xb5cb   :  { %v13244_v48 = vadd.f32 %v6914_v55, %v6814_v42  ;;  %v9822_v57 = vpop.f32.mrb[141].mxu0  ;;  %v9846_v53 = vpop.f32.mrb[205].mxu1 }
0xb5cc   :  { %v6817_v7 = vpop.f32.mrb[142].mxu0  ;;  %v6917_v46 = vpop.f32.mrb[206].mxu1  ;;  %v8313_v53 = vld [vmem:[#allocation14 + $0x78] sm:$0xff] }
0xb5cd   :  { %v13246_v54 = vadd.f32 %v6917_v46, %v6817_v7  ;;  %v9823_v31 = vpop.f32.mrb[143].mxu0  ;;  %v9847_v36 = vpop.f32.mrb[207].mxu1 }
0xb5ce   :  { %v8318_v36 = vpack.c.bf16 %v8313_v53, %v13226_v49 }
0xb5cf   :  { %10097 = vmatmul.mubr.msk.bf16.vlgmr.msra.gmra.mrb[248].mxu0 %vm422_vm4, %v8189_v45  ;;  %10121 = vmatmul.mubr.msk.bf16.vlgmr.msra.gmra.mrb[56].mxu1 %vm422_vm4, %v12878_v41  ;;  %v8190_v41 = vpack.c.bf16 %v12851_v63, %v8181_v35 }
0xb5d0   :  { %10100 = vmatprep.mubr.msk.bf16.mxu0 %vm10780_vm2, %v10779_v3  ;;  %10124 = vmatprep.mubr.msk.bf16.mxu1 %vm10780_vm2, %v10779_v3 }
0xb5d2   :  { %v6822_v59 = vpop.f32.mrb[144].mxu0  ;;  %v6922_v10 = vpop.f32.mrb[208].mxu1 }
0xb5d3   :  { %v13256_v20 = vadd.f32 %v6922_v10, %v6822_v59  ;;  %v9826_v0 = vpop.f32.mrb[145].mxu0  ;;  %v9850_v58 = vpop.f32.mrb[209].mxu1 }
0xb5d4   :  { %v6825_v62 = vpop.f32.mrb[146].mxu0  ;;  %v6925_v18 = vpop.f32.mrb[210].mxu1 }
0xb5d5   :  { %v13258_v8 = vadd.f32 %v6925_v18, %v6825_v62  ;;  %v9827_v6 = vpop.f32.mrb[147].mxu0  ;;  %v9851_v60 = vpop.f32.mrb[211].mxu1 }
0xb5d7   :  { %10101 = vmatmul.mubr.msk.bf16.gmra.mrb[252].mxu0 %vm422_vm4, %v8190_v41  ;;  %10125 = vmatmul.mubr.msk.bf16.gmra.mrb[60].mxu1 %vm422_vm4, %v12892_v24 }
0xb5d8   :  { %10104 = vmatprep.mubr.msk.bf16.mxu0 %vm10780_vm2, %v10779_v3  ;;  %10128 = vmatprep.mubr.msk.bf16.mxu1 %vm10780_vm2, %v10779_v3 }
0xb5da   :  { %v7005_v4 = vpop.f32.mrb[148].mxu0  ;;  %v7130_v22 = vpop.f32.mrb[212].mxu1 }
0xb5db   :  { %v7044_v16 = vadd.f32 %v7005_v4, %v13199_v51  ;;  %v9858_v25 = vpop.f32.mrb[149].mxu0  ;;  %v9882_v9 = vpop.f32.mrb[213].mxu1 }
0xb5dc   :  { %v7008_v17 = vpop.f32.mrb[150].mxu0  ;;  %v7133_v63 = vpop.f32.mrb[214].mxu1 }
0xb5dd   :  { %v13269_v19 = vadd.f32 %v7130_v22, %v7044_v16  ;;  %v7045_v24 = vadd.f32 %v7008_v17, %v13201_v30  ;;  %v9859_v12 = vpop.f32.mrb[151].mxu0  ;;  %v9883_v43 = vpop.f32.mrb[215].mxu1 }
0xb5df   :  { %v13272_v38 = vadd.f32 %v7133_v63, %v7045_v24  ;;  %10105 = vmatmul.mubr.msk.bf16.gmra.mrb[0].mxu0 %vm422_vm4, %v8191_v14  ;;  %10129 = vmatmul.mubr.msk.bf16.gmra.mrb[64].mxu1 %vm422_vm4, %v13038_v13 }
0xb5e0   :  { %10108 = vmatprep.mubr.msk.bf16.mxu0 %vm10780_vm2, %v10779_v3  ;;  %10132 = vmatprep.mubr.msk.bf16.mxu1 %vm10780_vm2, %v10779_v3 }
0xb5e2   :  { %v7013_v51 = vpop.f32.mrb[152].mxu0  ;;  %v7138_v15 = vpop.f32.mrb[216].mxu1 }
0xb5e3   :  { %v7046_v30 = vadd.f32 %v7013_v51, %v13211_v29  ;;  %v9862_v34 = vpop.f32.mrb[153].mxu0  ;;  %v9886_v1 = vpop.f32.mrb[217].mxu1 }
0xb5e4   :  { %v7016_v44 = vpop.f32.mrb[154].mxu0  ;;  %v7141_v32 = vpop.f32.mrb[218].mxu1 }
0xb5e5   :  { %v13282_v5 = vadd.f32 %v7138_v15, %v7046_v30  ;;  %v7047_v27 = vadd.f32 %v7016_v44, %v13215_v61  ;;  %v9863_v13 = vpop.f32.mrb[155].mxu0  ;;  %v9887_v40 = vpop.f32.mrb[219].mxu1  ;;  %v8188_v61 = vld [vmem:[#allocation13 + $0x78] sm:$0xff] }
0xb5e6   :  { %v8193_v31 = vpack.c.bf16 %v8188_v61, %v13230_v47 }
0xb5e7   :  { %v13286_v23 = vadd.f32 %v7141_v32, %v7047_v27  ;;  %10109 = vmatmul.mubr.msk.bf16.gmra.mrb[4].mxu0 %vm422_vm4, %v8192_v28  ;;  %10133 = vmatmul.mubr.msk.bf16.gmra.mrb[68].mxu1 %vm422_vm4, %v13160_v11 }
0xb5e8   :  { %10112 = vmatprep.mubr.msk.bf16.mxu0 %vm10780_vm2, %v10779_v3  ;;  %10136 = vmatprep.mubr.msk.bf16.mxu1 %vm10780_vm2, %v10779_v3 }
0xb5ea   :  { %v7021_v29 = vpop.f32.mrb[156].mxu0  ;;  %v7146_v50 = vpop.f32.mrb[220].mxu1 }
0xb5eb   :  { %v7048_v39 = vadd.f32 %v7021_v29, %v13228_v37  ;;  %v9866_v42 = vpop.f32.mrb[157].mxu0  ;;  %v9890_v52 = vpop.f32.mrb[221].mxu1 }
0xb5ec   :  { %v7024_v55 = vpop.f32.mrb[158].mxu0  ;;  %v7149_v57 = vpop.f32.mrb[222].mxu1 }
0xb5ed   :  { %v7173_v7 = vadd.f32 %v7146_v50, %v7048_v39  ;;  %v7049_v46 = vadd.f32 %v7024_v55, %v13232_v21  ;;  %v9867_v11 = vpop.f32.mrb[159].mxu0  ;;  %v9891_v2 = vpop.f32.mrb[223].mxu1 }
0xb5ef   :  { %v7174_v3 = vadd.f32 %v7149_v57, %v7049_v46  ;;  %10113 = vmatmul.mubr.msk.bf16.gmra.mrb[8].mxu0 %vm422_vm4, %v8193_v31  ;;  %10137 = vmatmul.mubr.msk.bf16.gmra.mrb[72].mxu1 %vm422_vm4, %v8318_v36 }
0xb5f2   :  { %v7029_v37 = vpop.f32.mrb[160].mxu0  ;;  %v7154_v45 = vpop.f32.mrb[224].mxu1 }
0xb5f3   :  { %v7050_v59 = vadd.f32 %v7029_v37, %v13244_v48  ;;  %v9870_v10 = vpop.f32.mrb[161].mxu0  ;;  %v9894_v0 = vpop.f32.mrb[225].mxu1 }
0xb5f4   :  { %v7032_v58 = vpop.f32.mrb[162].mxu0  ;;  %v7157_v62 = vpop.f32.mrb[226].mxu1 }
0xb5f5   :  { %v7175_v21 = vadd.f32 %v7154_v45, %v7050_v59  ;;  %v7051_v18 = vadd.f32 %v7032_v58, %v13246_v54  ;;  %v9871_v35 = vpop.f32.mrb[163].mxu0  ;;  %v9895_v47 = vpop.f32.mrb[227].mxu1 }
0xb5f7   :  { %v7176_v6 = vadd.f32 %v7157_v62, %v7051_v18 }
0xb5fa   :  { %v7037_v49 = vpop.f32.mrb[164].mxu0  ;;  %v7162_v60 = vpop.f32.mrb[228].mxu1 }
0xb5fb   :  { %v7052_v41 = vadd.f32 %v7037_v49, %v13256_v20  ;;  %v9874_v4 = vpop.f32.mrb[165].mxu0  ;;  %v9898_v22 = vpop.f32.mrb[229].mxu1 }
0xb5fc   :  { %v7040_v26 = vpop.f32.mrb[166].mxu0  ;;  %v7165_v16 = vpop.f32.mrb[230].mxu1 }
0xb5fd   :  { %v7177_v25 = vadd.f32 %v7162_v60, %v7052_v41  ;;  %v7053_v48 = vadd.f32 %v7040_v26, %v13258_v8  ;;  %v9875_v9 = vpop.f32.mrb[167].mxu0  ;;  %v9899_v17 = vpop.f32.mrb[231].mxu1 }
0xb5ff   :  { %v7178_v63 = vadd.f32 %v7165_v16, %v7053_v48 }
0xb602   :  { %v7255_v33 = vpop.f32.mrb[168].mxu0  ;;  %v7380_v24 = vpop.f32.mrb[232].mxu1 }
0xb603   :  { %v7294_v54 = vadd.f32 %v7255_v33, %v13269_v19  ;;  %v9906_v12 = vpop.f32.mrb[169].mxu0  ;;  %v9930_v43 = vpop.f32.mrb[233].mxu1 }
0xb604   :  { %v7258_v14 = vpop.f32.mrb[170].mxu0  ;;  %v7383_v51 = vpop.f32.mrb[234].mxu1 }
0xb605   :  { %v7419_v15 = vadd.f32 %v7380_v24, %v7294_v54  ;;  %v7295_v20 = vadd.f32 %v7258_v14, %v13272_v38  ;;  %v9907_v56 = vpop.f32.mrb[171].mxu0  ;;  %v9931_v30 = vpop.f32.mrb[235].mxu1 }
0xb607   :  { %v7420_v34 = vadd.f32 %v7383_v51, %v7295_v20 }
0xb60a   :  { %v7263_v1 = vpop.f32.mrb[172].mxu0  ;;  %v7388_v44 = vpop.f32.mrb[236].mxu1 }
0xb60b   :  { %v7296_v8 = vadd.f32 %v7263_v1, %v13282_v5  ;;  %v9910_v32 = vpop.f32.mrb[173].mxu0  ;;  %v9934_v27 = vpop.f32.mrb[237].mxu1 }
0xb60c   :  { %v7266_v13 = vpop.f32.mrb[174].mxu0  ;;  %v7391_v40 = vpop.f32.mrb[238].mxu1 }
0xb60d   :  { %v7421_v28 = vadd.f32 %v7388_v44, %v7296_v8  ;;  %v7297_v19 = vadd.f32 %v7266_v13, %v13286_v23  ;;  %v9911_v29 = vpop.f32.mrb[175].mxu0  ;;  %v9935_v50 = vpop.f32.mrb[239].mxu1 }
0xb60f   :  { %v7422_v61 = vadd.f32 %v7391_v40, %v7297_v19 }
0xb612   :  { %v7271_v39 = vpop.f32.mrb[176].mxu0  ;;  %v7396_v42 = vpop.f32.mrb[240].mxu1 }
0xb613   :  { %v7298_v38 = vadd.f32 %v7271_v39, %v7173_v7  ;;  %v9914_v52 = vpop.f32.mrb[177].mxu0  ;;  %v9938_v55 = vpop.f32.mrb[241].mxu1 }
0xb614   :  { %v7274_v57 = vpop.f32.mrb[178].mxu0  ;;  %v7399_v53 = vpop.f32.mrb[242].mxu1 }
0xb615   :  { %v7423_v46 = vadd.f32 %v7396_v42, %v7298_v38  ;;  %v7299_v11 = vadd.f32 %v7274_v57, %v7174_v3  ;;  %v9915_v5 = vpop.f32.mrb[179].mxu0  ;;  %v9939_v2 = vpop.f32.mrb[243].mxu1 }
0xb617   :  { %v7424_v31 = vadd.f32 %v7399_v53, %v7299_v11 }
0xb61a   :  { %v7279_v36 = vpop.f32.mrb[180].mxu0  ;;  %v7404_v37 = vpop.f32.mrb[244].mxu1 }
0xb61b   :  { %v7300_v45 = vadd.f32 %v7279_v36, %v7175_v21  ;;  %v9918_v59 = vpop.f32.mrb[181].mxu0  ;;  %v9942_v23 = vpop.f32.mrb[245].mxu1 }
0xb61c   :  { %v7282_v10 = vpop.f32.mrb[182].mxu0  ;;  %v7407_v0 = vpop.f32.mrb[246].mxu1 }
0xb61d   :  { %v7425_v58 = vadd.f32 %v7404_v37, %v7300_v45  ;;  %v7301_v62 = vadd.f32 %v7282_v10, %v7176_v6  ;;  %v9919_v18 = vpop.f32.mrb[183].mxu0  ;;  %v9943_v7 = vpop.f32.mrb[247].mxu1 }
0xb61f   :  { %v7426_v35 = vadd.f32 %v7407_v0, %v7301_v62 }
0xb622   :  { %v7287_v47 = vpop.f32.mrb[184].mxu0  ;;  %v7412_v49 = vpop.f32.mrb[248].mxu1 }
0xb623   :  { %v7302_v60 = vadd.f32 %v7287_v47, %v7177_v25  ;;  %v9922_v41 = vpop.f32.mrb[185].mxu0  ;;  %v9946_v3 = vpop.f32.mrb[249].mxu1 }
0xb624   :  { %v7290_v4 = vpop.f32.mrb[186].mxu0  ;;  %v7415_v22 = vpop.f32.mrb[250].mxu1 }
0xb625   :  { %v7427_v26 = vadd.f32 %v7412_v49, %v7302_v60  ;;  %v7303_v16 = vadd.f32 %v7290_v4, %v7178_v63  ;;  %v9923_v48 = vpop.f32.mrb[187].mxu0  ;;  %v9947_v21 = vpop.f32.mrb[251].mxu1 }
0xb627   :  { %v7428_v9 = vadd.f32 %v7415_v22, %v7303_v16 }
0xb62a   :  { %v7505_v17 = vpop.f32.mrb[188].mxu0  ;;  %v7630_v33 = vpop.f32.mrb[252].mxu1 }
0xb62b   :  { %v7544_v24 = vadd.f32 %v7505_v17, %v7419_v15  ;;  %v9954_v54 = vpop.f32.mrb[189].mxu0  ;;  %v9978_v6 = vpop.f32.mrb[253].mxu1 }
0xb62c   :  { %v7508_v12 = vpop.f32.mrb[190].mxu0  ;;  %v7633_v43 = vpop.f32.mrb[254].mxu1 }
0xb62d   :  { %v7669_v14 = vadd.f32 %v7630_v33, %v7544_v24  ;;  %v7545_v51 = vadd.f32 %v7508_v12, %v7420_v34  ;;  %v9955_v20 = vpop.f32.mrb[191].mxu0  ;;  %v9979_v25 = vpop.f32.mrb[255].mxu1 }
0xb62f   :  { %v7670_v56 = vadd.f32 %v7633_v43, %v7545_v51 }
0xb632   :  { %v7513_v30 = vpop.f32.mrb[192].mxu0  ;;  %v7638_v1 = vpop.f32.mrb[0].mxu1 }
0xb633   :  { %v7546_v44 = vadd.f32 %v7513_v30, %v7421_v28  ;;  %v9958_v8 = vpop.f32.mrb[193].mxu0  ;;  %v9982_v63 = vpop.f32.mrb[1].mxu1 }
0xb634   :  { %v7516_v32 = vpop.f32.mrb[194].mxu0  ;;  %v7641_v27 = vpop.f32.mrb[2].mxu1 }
0xb635   :  { %v7671_v13 = vadd.f32 %v7638_v1, %v7546_v44  ;;  %v7547_v40 = vadd.f32 %v7516_v32, %v7422_v61  ;;  %v9959_v19 = vpop.f32.mrb[195].mxu0  ;;  %v9983_v15 = vpop.f32.mrb[3].mxu1 }
0xb637   :  { %v7672_v29 = vadd.f32 %v7641_v27, %v7547_v40 }
0xb63a   :  { %v7521_v50 = vpop.f32.mrb[196].mxu0  ;;  %v7646_v39 = vpop.f32.mrb[4].mxu1 }
0xb63b   :  { %v7548_v42 = vadd.f32 %v7521_v50, %v7423_v46  ;;  %v9962_v38 = vpop.f32.mrb[197].mxu0  ;;  %v9986_v34 = vpop.f32.mrb[5].mxu1 }
0xb63c   :  { %v7524_v52 = vpop.f32.mrb[198].mxu0  ;;  %v7649_v55 = vpop.f32.mrb[6].mxu1 }
0xb63d   :  { %v7673_v57 = vadd.f32 %v7646_v39, %v7548_v42  ;;  %v7549_v53 = vadd.f32 %v7524_v52, %v7424_v31  ;;  %v9963_v11 = vpop.f32.mrb[199].mxu0  ;;  %v9987_v28 = vpop.f32.mrb[7].mxu1 }
0xb63f   :  { %v7674_v5 = vadd.f32 %v7649_v55, %v7549_v53 }
0xb642   :  { %v7529_v2 = vpop.f32.mrb[200].mxu0  ;;  %v7654_v36 = vpop.f32.mrb[8].mxu1 }
0xb643   :  { %v7550_v37 = vadd.f32 %v7529_v2, %v7425_v58  ;;  %v9966_v45 = vpop.f32.mrb[201].mxu0  ;;  %v9990_v61 = vpop.f32.mrb[9].mxu1 }
0xb644   :  { %v7532_v59 = vpop.f32.mrb[202].mxu0  ;;  %v7657_v23 = vpop.f32.mrb[10].mxu1 }
0xb645   :  { %v7675_v10 = vadd.f32 %v7654_v36, %v7550_v37  ;;  %v7551_v0 = vadd.f32 %v7532_v59, %v7426_v35  ;;  %v9967_v62 = vpop.f32.mrb[203].mxu0  ;;  %v9991_v46 = vpop.f32.mrb[11].mxu1 }
0xb647   :  { %v7676_v18 = vadd.f32 %v7657_v23, %v7551_v0 }
0xb64a   :  { %v7537_v7 = vpop.f32.mrb[204].mxu0  ;;  %v7662_v47 = vpop.f32.mrb[12].mxu1 }
0xb64b   :  { %v7552_v49 = vadd.f32 %v7537_v7, %v7427_v26  ;;  %v9970_v60 = vpop.f32.mrb[205].mxu0  ;;  %v9994_v31 = vpop.f32.mrb[13].mxu1 }
0xb64c   :  { %v7540_v41 = vpop.f32.mrb[206].mxu0  ;;  %v7665_v3 = vpop.f32.mrb[14].mxu1 }
0xb64d   :  { %v7677_v4 = vadd.f32 %v7662_v47, %v7552_v49  ;;  %v7553_v22 = vadd.f32 %v7540_v41, %v7428_v9  ;;  %v9971_v16 = vpop.f32.mrb[207].mxu0  ;;  %v9995_v58 = vpop.f32.mrb[15].mxu1 }
0xb64f   :  { %v7678_v48 = vadd.f32 %v7665_v3, %v7553_v22 }
0xb652   :  { %v7755_v21 = vpop.f32.mrb[208].mxu0  ;;  %v7880_v17 = vpop.f32.mrb[16].mxu1 }
0xb653   :  { %v7794_v33 = vadd.f32 %v7755_v21, %v7669_v14  ;;  %v10002_v24 = vpop.f32.mrb[209].mxu0  ;;  %v10026_v35 = vpop.f32.mrb[17].mxu1 }
0xb654   :  { %v7758_v54 = vpop.f32.mrb[210].mxu0  ;;  %v7883_v6 = vpop.f32.mrb[18].mxu1 }
0xb655   :  { %v7919_v12 = vadd.f32 %v7880_v17, %v7794_v33  ;;  %v7795_v43 = vadd.f32 %v7758_v54, %v7670_v56  ;;  %v10003_v51 = vpop.f32.mrb[211].mxu0  ;;  %v10027_v26 = vpop.f32.mrb[19].mxu1 }
0xb657   :  { %v7920_v20 = vadd.f32 %v7883_v6, %v7795_v43 }
0xb65a   :  { %v7763_v25 = vpop.f32.mrb[212].mxu0  ;;  %v7888_v30 = vpop.f32.mrb[20].mxu1 }
0xb65b   :  { %v7796_v1 = vadd.f32 %v7763_v25, %v7671_v13  ;;  %v10006_v44 = vpop.f32.mrb[213].mxu0  ;;  %v10030_v9 = vpop.f32.mrb[21].mxu1 }
0xb65c   :  { %v7766_v8 = vpop.f32.mrb[214].mxu0  ;;  %v7891_v63 = vpop.f32.mrb[22].mxu1 }
0xb65d   :  { %v7921_v32 = vadd.f32 %v7888_v30, %v7796_v1  ;;  %v7797_v27 = vadd.f32 %v7766_v8, %v7672_v29  ;;  %v10007_v40 = vpop.f32.mrb[215].mxu0  ;;  %v10031_v14 = vpop.f32.mrb[23].mxu1 }
0xb65f   :  { %v7922_v19 = vadd.f32 %v7891_v63, %v7797_v27 }
0xb662   :  { %v7771_v15 = vpop.f32.mrb[216].mxu0  ;;  %v7896_v50 = vpop.f32.mrb[24].mxu1 }
0xb663   :  { %v7798_v39 = vadd.f32 %v7771_v15, %v7673_v57  ;;  %v10010_v42 = vpop.f32.mrb[217].mxu0  ;;  %v10034_v56 = vpop.f32.mrb[25].mxu1 }
0xb664   :  { %v7774_v38 = vpop.f32.mrb[218].mxu0  ;;  %v7899_v34 = vpop.f32.mrb[26].mxu1 }
0xb665   :  { %v7923_v52 = vadd.f32 %v7896_v50, %v7798_v39  ;;  %v7799_v55 = vadd.f32 %v7774_v38, %v7674_v5  ;;  %v10011_v53 = vpop.f32.mrb[219].mxu0  ;;  %v10035_v13 = vpop.f32.mrb[27].mxu1 }
0xb667   :  { %v7924_v11 = vadd.f32 %v7899_v34, %v7799_v55 }
0xb66a   :  { %v7779_v28 = vpop.f32.mrb[220].mxu0  ;;  %v7904_v2 = vpop.f32.mrb[28].mxu1 }
0xb66b   :  { %v7800_v36 = vadd.f32 %v7779_v28, %v7675_v10  ;;  %v10014_v37 = vpop.f32.mrb[221].mxu0  ;;  %v10038_v29 = vpop.f32.mrb[29].mxu1 }
0xb66c   :  { %v7782_v45 = vpop.f32.mrb[222].mxu0  ;;  %v7907_v61 = vpop.f32.mrb[30].mxu1 }
0xb66d   :  { %v7925_v59 = vadd.f32 %v7904_v2, %v7800_v36  ;;  %v7801_v23 = vadd.f32 %v7782_v45, %v7676_v18  ;;  %v10015_v0 = vpop.f32.mrb[223].mxu0  ;;  %v10039_v57 = vpop.f32.mrb[31].mxu1 }
0xb66f   :  { %v7926_v62 = vadd.f32 %v7907_v61, %v7801_v23 }
0xb672   :  { %v7787_v46 = vpop.f32.mrb[224].mxu0  ;;  %v7912_v7 = vpop.f32.mrb[32].mxu1 }
0xb673   :  { %v7802_v47 = vadd.f32 %v7787_v46, %v7677_v4  ;;  %v10018_v49 = vpop.f32.mrb[225].mxu0  ;;  %v10042_v5 = vpop.f32.mrb[33].mxu1 }
0xb674   :  { %v7790_v60 = vpop.f32.mrb[226].mxu0  ;;  %v7915_v31 = vpop.f32.mrb[34].mxu1 }
0xb675   :  { %v7927_v41 = vadd.f32 %v7912_v7, %v7802_v47  ;;  %v7803_v3 = vadd.f32 %v7790_v60, %v7678_v48  ;;  %v10019_v22 = vpop.f32.mrb[227].mxu0  ;;  %v10043_v10 = vpop.f32.mrb[35].mxu1 }
0xb677   :  { %v7928_v16 = vadd.f32 %v7915_v31, %v7803_v3 }
0xb67a   :  { %v8005_v58 = vpop.f32.mrb[228].mxu0  ;;  %v8130_v21 = vpop.f32.mrb[36].mxu1 }
0xb67b   :  { %v8044_v17 = vadd.f32 %v8005_v58, %v7919_v12  ;;  %v10050_v33 = vpop.f32.mrb[229].mxu0  ;;  %v10074_v18 = vpop.f32.mrb[37].mxu1 }
0xb67c   :  { %v8008_v24 = vpop.f32.mrb[230].mxu0  ;;  %v8133_v35 = vpop.f32.mrb[38].mxu1 }
0xb67d   :  { %v8169_v54 = vadd.f32 %v8130_v21, %v8044_v17  ;;  %v8045_v6 = vadd.f32 %v8008_v24, %v7920_v20  ;;  %v10051_v43 = vpop.f32.mrb[231].mxu0  ;;  %v10075_v4 = vpop.f32.mrb[39].mxu1 }
0xb67f   :  { %v8170_v51 = vadd.f32 %v8133_v35, %v8045_v6 }
0xb682   :  { %v8013_v26 = vpop.f32.mrb[232].mxu0  ;;  %v8138_v25 = vpop.f32.mrb[40].mxu1 }
0xb683   :  { %v8046_v30 = vadd.f32 %v8013_v26, %v7921_v32  ;;  %v10054_v1 = vpop.f32.mrb[233].mxu0  ;;  %v10078_v48 = vpop.f32.mrb[41].mxu1 }
0xb684   :  { %v8016_v44 = vpop.f32.mrb[234].mxu0  ;;  %v8141_v9 = vpop.f32.mrb[42].mxu1 }
0xb685   :  { %v13309_v8 = vadd.f32 %v8138_v25, %v8046_v30  ;;  %v8047_v63 = vadd.f32 %v8016_v44, %v7922_v19  ;;  %v10055_v12 = vpop.f32.mrb[235].mxu0  ;;  %v10079_v27 = vpop.f32.mrb[43].mxu1 }
0xb687   :  { %v13311_v40 = vadd.f32 %v8141_v9, %v8047_v63 }
0xb68a   :  { %v8021_v14 = vpop.f32.mrb[236].mxu0  ;;  %v8146_v15 = vpop.f32.mrb[44].mxu1 }
0xb68b   :  { %v8048_v20 = vadd.f32 %v8021_v14, %v7923_v52  ;;  %v10058_v50 = vpop.f32.mrb[237].mxu0  ;;  %v10082_v39 = vpop.f32.mrb[45].mxu1 }
0xb68c   :  { %v8024_v42 = vpop.f32.mrb[238].mxu0  ;;  %v8149_v56 = vpop.f32.mrb[46].mxu1 }
0xb68d   :  { %v13313_v38 = vadd.f32 %v8146_v15, %v8048_v20  ;;  %v8049_v32 = vadd.f32 %v8024_v42, %v7924_v11  ;;  %v10059_v34 = vpop.f32.mrb[239].mxu0  ;;  %v10083_v55 = vpop.f32.mrb[47].mxu1 }
0xb68f   :  { %v13315_v53 = vadd.f32 %v8149_v56, %v8049_v32 }
0xb692   :  { %v8029_v13 = vpop.f32.mrb[240].mxu0  ;;  %v8154_v19 = vpop.f32.mrb[48].mxu1 }
0xb693   :  { %v8050_v28 = vadd.f32 %v8029_v13, %v7925_v59  ;;  %v10062_v2 = vpop.f32.mrb[241].mxu0  ;;  %v10086_v36 = vpop.f32.mrb[49].mxu1 }
0xb694   :  { %v8032_v37 = vpop.f32.mrb[242].mxu0  ;;  %v8157_v29 = vpop.f32.mrb[50].mxu1 }
0xb695   :  { %v13317_v45 = vadd.f32 %v8154_v19, %v8050_v28  ;;  %v8051_v52 = vadd.f32 %v8032_v37, %v7926_v62  ;;  %v10063_v61 = vpop.f32.mrb[243].mxu0  ;;  %v10087_v23 = vpop.f32.mrb[51].mxu1 }
0xb697   :  { %v13319_v0 = vadd.f32 %v8157_v29, %v8051_v52 }
0xb69a   :  { %v8037_v57 = vpop.f32.mrb[244].mxu0  ;;  %v8162_v11 = vpop.f32.mrb[52].mxu1 }
0xb69b   :  { %v8052_v46 = vadd.f32 %v8037_v57, %v7927_v41  ;;  %v10066_v7 = vpop.f32.mrb[245].mxu0  ;;  %v10090_v47 = vpop.f32.mrb[53].mxu1  ;;  %v13328_v41 = vld [vmem:[%s13403_s15] ss:$0 sm:$0xff] }
0xb69c   :  { %v8040_v49 = vpop.f32.mrb[246].mxu0  ;;  %v8165_v5 = vpop.f32.mrb[54].mxu1 }
0xb69d   :  { %v13321_v60 = vadd.f32 %v8162_v11, %v8052_v46  ;;  %v8053_v59 = vadd.f32 %v8040_v49, %v7928_v16  ;;  %v10067_v31 = vpop.f32.mrb[247].mxu0  ;;  %v10091_v3 = vpop.f32.mrb[55].mxu1 }
0xb69f   :  { %v13323_v22 = vadd.f32 %v8165_v5, %v8053_v59 }
0xb6a2   :  { %v8255_v10 = vpop.f32.mrb[248].mxu0  ;;  %v8380_v62 = vpop.f32.mrb[56].mxu1 }
0xb6a3   :  { %v8294_v58 = vadd.f32 %v8255_v10, %v8169_v54  ;;  %v10098_v21 = vpop.f32.mrb[249].mxu0  ;;  %v10122_v17 = vpop.f32.mrb[57].mxu1 }
0xb6a4   :  { %v8258_v33 = vpop.f32.mrb[250].mxu0  ;;  %v8383_v18 = vpop.f32.mrb[58].mxu1 }
0xb6a5   :  { %v8419_v24 = vadd.f32 %v8380_v62, %v8294_v58  ;;  %v8295_v35 = vadd.f32 %v8258_v33, %v8170_v51  ;;  %v10099_v6 = vpop.f32.mrb[251].mxu0  ;;  %v10123_v16 = vpop.f32.mrb[59].mxu1 }
0xb6a7   :  { %v8436_v43 = vadd.f32 %v13328_v41, %v8419_v24  ;;  %v8420_v4 = vadd.f32 %v8383_v18, %v8295_v35 }
0xb6a9   :  { %8447 = vst.msk [vmem:[%s13404_s16] sm:$0xff] %vm8446_vm5, %v8436_v43  ;;  %v8437_v54 = vadd.f32 %v13328_v41, %v8420_v4 }
0xb6aa   :  { %v8263_v26 = vpop.f32.mrb[252].mxu0  ;;  %v8388_v25 = vpop.f32.mrb[60].mxu1 }
0xb6ab   :  { %8448 = vst.msk [vmem:[%s13404_s16 + $0x8] sm:$0xff] %vm8446_vm5, %v8437_v54  ;;  %v8296_v51 = vadd.f32 %v8263_v26, %v13309_v8  ;;  %v10102_v30 = vpop.f32.mrb[253].mxu0  ;;  %v10126_v1 = vpop.f32.mrb[61].mxu1 }
0xb6ac   :  { %v8266_v48 = vpop.f32.mrb[254].mxu0  ;;  %v8391_v44 = vpop.f32.mrb[62].mxu1 }
0xb6ad   :  { %v8421_v9 = vadd.f32 %v8388_v25, %v8296_v51  ;;  %v8297_v63 = vadd.f32 %v8266_v48, %v13311_v40  ;;  %v10103_v12 = vpop.f32.mrb[255].mxu0  ;;  %v10127_v27 = vpop.f32.mrb[63].mxu1 }
0xb6af   :  { %v8438_v14 = vadd.f32 %v13328_v41, %v8421_v9  ;;  %v8422_v15 = vadd.f32 %v8391_v44, %v8297_v63 }
0xb6b1   :  { %8449 = vst.msk [vmem:[%s13404_s16 + $0x10] sm:$0xff] %vm8446_vm5, %v8438_v14  ;;  %v8439_v20 = vadd.f32 %v13328_v41, %v8422_v15 }
0xb6b2   :  { %v8271_v8 = vpop.f32.mrb[0].mxu0  ;;  %v8396_v50 = vpop.f32.mrb[64].mxu1 }
0xb6b3   :  { %8450 = vst.msk [vmem:[%s13404_s16 + $0x18] sm:$0xff] %vm8446_vm5, %v8439_v20  ;;  %v8298_v40 = vadd.f32 %v8271_v8, %v13313_v38  ;;  %v10106_v39 = vpop.f32.mrb[1].mxu0  ;;  %v10130_v42 = vpop.f32.mrb[65].mxu1 }
0xb6b4   :  { %v8274_v56 = vpop.f32.mrb[2].mxu0  ;;  %v8399_v32 = vpop.f32.mrb[66].mxu1 }
0xb6b5   :  { %v8423_v34 = vadd.f32 %v8396_v50, %v8298_v40  ;;  %v8299_v55 = vadd.f32 %v8274_v56, %v13315_v53  ;;  %v10107_v13 = vpop.f32.mrb[3].mxu0  ;;  %v10131_v19 = vpop.f32.mrb[67].mxu1 }
0xb6b7   :  { %v8440_v28 = vadd.f32 %v13328_v41, %v8423_v34  ;;  %v8424_v2 = vadd.f32 %v8399_v32, %v8299_v55 }
0xb6b9   :  { %8451 = vst.msk [vmem:[%s13404_s16 + $0x20] sm:$0xff] %vm8446_vm5, %v8440_v28  ;;  %v8441_v36 = vadd.f32 %v13328_v41, %v8424_v2 }
0xb6ba   :  { %v8279_v38 = vpop.f32.mrb[4].mxu0  ;;  %v8404_v37 = vpop.f32.mrb[68].mxu1 }
0xb6bb   :  { %8452 = vst.msk [vmem:[%s13404_s16 + $0x28] sm:$0xff] %vm8446_vm5, %v8441_v36  ;;  %v8300_v53 = vadd.f32 %v8279_v38, %v13317_v45  ;;  %v10110_v29 = vpop.f32.mrb[5].mxu0  ;;  %v10134_v52 = vpop.f32.mrb[69].mxu1 }
0xb6bc   :  { %v8282_v61 = vpop.f32.mrb[6].mxu0  ;;  %v8407_v23 = vpop.f32.mrb[70].mxu1 }
0xb6bd   :  { %v8425_v57 = vadd.f32 %v8404_v37, %v8300_v53  ;;  %v8301_v11 = vadd.f32 %v8282_v61, %v13319_v0  ;;  %v10111_v46 = vpop.f32.mrb[7].mxu0  ;;  %v10135_v7 = vpop.f32.mrb[71].mxu1 }
0xb6bf   :  { %v8442_v47 = vadd.f32 %v13328_v41, %v8425_v57  ;;  %v8426_v49 = vadd.f32 %v8407_v23, %v8301_v11 }
0xb6c1   :  { %8453 = vst.msk [vmem:[%s13404_s16 + $0x30] sm:$0xff] %vm8446_vm5, %v8442_v47  ;;  %v8443_v5 = vadd.f32 %v13328_v41, %v8426_v49 }
0xb6c2   :  { %v8287_v45 = vpop.f32.mrb[8].mxu0  ;;  %v8412_v59 = vpop.f32.mrb[72].mxu1 }
0xb6c3   :  { %8454 = vst.msk [vmem:[%s13404_s16 + $0x38] sm:$0xff] %vm8446_vm5, %v8443_v5  ;;  %v8302_v0 = vadd.f32 %v8287_v45, %v13321_v60  ;;  %v10114_v31 = vpop.f32.mrb[9].mxu0  ;;  %v10138_v3 = vpop.f32.mrb[73].mxu1 }
0xb6c4   :  { %v8290_v10 = vpop.f32.mrb[10].mxu0  ;;  %v8415_v62 = vpop.f32.mrb[74].mxu1 }
0xb6c5   :  { %v8427_v58 = vadd.f32 %v8412_v59, %v8302_v0  ;;  %v8303_v21 = vadd.f32 %v8290_v10, %v13323_v22  ;;  %v10115_v17 = vpop.f32.mrb[11].mxu0  ;;  %v10139_v33 = vpop.f32.mrb[75].mxu1 }
0xb6c7   :  { %v8444_v18 = vadd.f32 %v13328_v41, %v8427_v58  ;;  %v8428_v24 = vadd.f32 %v8415_v62, %v8303_v21 }
0xb6c9   :  { %8455 = vst.msk [vmem:[%s13404_s16 + $0x40] sm:$0xff] %vm8446_vm5, %v8444_v18  ;;  %v8445_v35 = vadd.f32 %v13328_v41, %v8428_v24 }
0xb6cb   :  { %8456 = vst.msk [vmem:[%s13404_s16 + $0x48] sm:$0xff] %vm8446_vm5, %v8445_v35 }

</bundles_post_ra>
